<compile_context>
chip_gen: v7x
topology: tpu7x:2x2x1
jax: 0.10.0
libtpu: 0.0.40
codegen_flags: <defaults>
</compile_context>

<pallas_src>
import math
import functools

import jax
import jax.numpy as jnp
from jax.experimental import pallas as pl
from jax.experimental.pallas import tpu as pltpu


_TAPS3 = tuple((dh, dw) for dh in (-1, 0, 1) for dw in (-1, 0, 1))


# ------------------------------ fused kernel --------------------------------
def _fused_bottleneck_kernel(x_ref, w1_ref, b1_ref, w2_ref, b2_ref,
                             w3_ref, b3_ref, caw1_ref, caw2_ref,
                             m3_ref, saop_ref, o_ref, *, H, W):
    """One residual block for one image, fully fused in VMEM.

    x_ref  : (M, Cin)        bf16  flattened NHWC image (M = H*W)
    w1     : (Cin, DC)       bf16  conv1 weight, BN1 scale folded
    w2     : (nblk, 9*B, B)  bf16  diagonal-tiled grouped conv2 weight (BN2 folded)
    w3     : (DC, Cout)      bf16  conv3 weight, BN3 scale folded
    b*     : (1, C)          f32   BN shifts
    caw*   : f32             CBAM channel-attention MLP weights
    m3     : (M, 9)          f32   3x3-tap zero-pad validity masks (lane-packed)
    saop   : (M, 2M)         bf16  dense 7x7 spatial-attention operator
    o_ref  : (M, Cout)       bf16
    """
    M = H * W
    nblk, _, B = w2_ref.shape

    # ---- conv1 (1x1, BN scale folded) + shift + ReLU -----------------------
    h1 = jnp.dot(x_ref[...], w1_ref[...], preferred_element_type=jnp.float32)
    h1 = jnp.maximum(h1 + b1_ref[...], 0.0)                    # (M, DC) f32

    # ---- conv2: grouped 3x3 (stride 1, pad 1) -------------------------------
    # Diagonal-tiled: only the (k, k) channel block is multiplied; the 9
    # shifted taps are stacked along K so each block is ONE MXU matmul.
    masks = m3_ref[...]                                        # (M, 9) f32
    h2_parts = []
    for k in range(nblk):
        blk = h1[:, k * B:(k + 1) * B]                         # (M, B) f32
        taps = []
        for t, (dh, dw) in enumerate(_TAPS3):
            s = dh * W + dw
            if s == 0:
                taps.append(blk)                               # center tap, always valid
            else:
                rolled = pltpu.roll(blk, shift=(-s) % M, axis=0)
                taps.append(rolled * masks[:, t:t + 1])        # zero-pad boundary
        stacked = jnp.concatenate(taps, axis=-1).astype(jnp.bfloat16)   # (M, 9B)
        part = jnp.dot(stacked, w2_ref[k], preferred_element_type=jnp.float32)
        part = jnp.maximum(part + b2_ref[:, k * B:(k + 1) * B], 0.0)
        h2_parts.append(part.astype(jnp.bfloat16))
    h2 = h2_parts[0] if nblk == 1 else jnp.concatenate(h2_parts, axis=-1)  # (M, DC) bf16

    # ---- conv3 (1x1, BN scale folded) + shift (no ReLU) ---------------------
    h3 = jnp.dot(h2, w3_ref[...],
                 preferred_element_type=jnp.float32) + b3_ref[...]        # (M, Cout) f32

    # ---- CBAM channel attention (shared MLP, one pass over [avg; max]) ------
    pooled = jnp.concatenate([jnp.mean(h3, axis=0, keepdims=True),
                              jnp.max(h3, axis=0, keepdims=True)], axis=0)  # (2, Cout)
    hid = jnp.maximum(jnp.dot(pooled, caw1_ref[...],
                              preferred_element_type=jnp.float32), 0.0)
    proj = jnp.dot(hid, caw2_ref[...], preferred_element_type=jnp.float32)  # (2, Cout)
    att = jax.nn.sigmoid(jnp.sum(proj, axis=0, keepdims=True))              # (1, Cout)
    x1 = h3 * att                                                            # (M, Cout)

    # ---- CBAM spatial attention: one matmul with the dense 7x7 operator -----
    mm = jnp.concatenate([jnp.mean(x1, axis=-1, keepdims=True),
                          jnp.max(x1, axis=-1, keepdims=True)], axis=0)     # (2M, 1)
    sacc = jnp.dot(saop_ref[...], mm.astype(jnp.bfloat16),
                   preferred_element_type=jnp.float32)                      # (M, 1)
    sa = jax.nn.sigmoid(sacc)

    # ---- apply spatial attention + residual add + final ReLU ----------------
    identity = x_ref[...].astype(jnp.float32)      # loaded late: short live range
    o_ref[...] = jnp.maximum(x1 * sa + identity, 0.0).astype(o_ref.dtype)


# ------------------------ trace-time helper tensors -------------------------
def _spatial_constants(H, W, sa_wa, sa_wm):
    """(M, 9) 3x3 validity masks + dense (M, 2M) 7x7 spatial-attn operator."""
    M = H * W
    hh = jnp.arange(H, dtype=jnp.int32)[:, None]
    ww = jnp.arange(W, dtype=jnp.int32)[None, :]

    def valid(dh, dw):
        v = (hh + dh >= 0) & (hh + dh < H) & (ww + dw >= 0) & (ww + dw < W)
        return v.reshape(M)

    m3 = jnp.stack([valid(dh, dw).astype(jnp.float32)
                    for dh, dw in _TAPS3], axis=1)                     # (M, 9)

    # Dense zero-padded 7x7 conv operator acting on [mean; max] maps.
    h_t = jnp.arange(H)[:, None, None, None]
    w_t = jnp.arange(W)[None, :, None, None]
    h_s = jnp.arange(H)[None, None, :, None]
    w_s = jnp.arange(W)[None, None, None, :]
    dh = h_s - h_t
    dw = w_s - w_t
    inside = (jnp.abs(dh) <= 3) & (jnp.abs(dw) <= 3)
    tap = jnp.where(inside, (dh + 3) * 7 + (dw + 3), 0)                # (H,W,H,W)
    op_a = jnp.where(inside, sa_wa[tap], 0.0).reshape(M, M)
    op_m = jnp.where(inside, sa_wm[tap], 0.0).reshape(M, M)
    sa_op = jnp.concatenate([op_a, op_m], axis=1).astype(jnp.bfloat16)  # (M, 2M)
    return m3, sa_op


# ------------------------------ parameters ----------------------------------
def init_params(key, in_channels, out_channels, cardinality=32,
                bottleneck_width=4, reduction=16):
    D = int(math.floor(out_channels * (bottleneck_width / 64.0)))
    C = cardinality
    DC = D * C
    Cout = out_channels * 4                      # expansion = 4
    hidden = max(Cout // reduction, 1)
    ks = jax.random.split(key, 6)

    def kaiming(k, shape, fan_in):
        return jax.random.normal(k, shape, jnp.float32) * math.sqrt(2.0 / fan_in)

    # conv1: 1x1, in_channels -> DC (stored as [Cin, Cout] matmul weight)
    w1 = kaiming(ks[0], (in_channels, DC), in_channels)
    # conv2: 3x3, grouped (groups=C): [g, out_d, in_d, kh, kw]
    w2g = kaiming(ks[1], (C, D, D, 3, 3), D * 9)
    # conv3: 1x1, DC -> Cout
    w3 = kaiming(ks[2], (DC, Cout), DC)
    # CBAM channel-attention MLP + 7x7 spatial conv (2 -> 1 channel)
    ca_w1 = kaiming(ks[3], (Cout, hidden), Cout)
    ca_w2 = kaiming(ks[4], (hidden, Cout), hidden)
    sa_w = kaiming(ks[5], (7, 7, 2), 2 * 49)

    eps = 1e-5

    def bn_fold(c):  # inference BN with the module's init stats (general form)
        gamma = jnp.ones((c,), jnp.float32)
        beta = jnp.zeros((c,), jnp.float32)
        mean = jnp.zeros((c,), jnp.float32)
        var = jnp.ones((c,), jnp.float32)
        scale = gamma / jnp.sqrt(var + eps)
        shift = beta - mean * scale
        return scale, shift

    s1, b1 = bn_fold(DC)
    s2, b2 = bn_fold(DC)
    s3, b3 = bn_fold(Cout)

    # ---- diagonal-tiled grouped-conv weight: (nblk, 9*B, B) -----------------
    B = DC
    for cand in (256, 128):                      # MXU-friendly block width
        if DC % cand == 0 and cand % D == 0:
            B = cand
            break
    nblk = DC // B
    gpb = B // D
    wt = jnp.transpose(w2g, (3, 4, 0, 2, 1)).reshape(9, C, D, D)   # [t, g, in, out]
    wt = wt * s2.reshape(1, C, 1, D)                               # fold BN2 scale
    wt = wt.reshape(9, nblk, gpb, D, D)
    eye_g = jnp.eye(gpb, dtype=jnp.float32)
    w2_bd = jnp.einsum('tkgio,gh->tkgiho', wt, eye_g)              # (9,nblk,gpb,D,gpb,D)
    w2_bd = (w2_bd.reshape(9, nblk, B, B)
                  .transpose(1, 0, 2, 3)
                  .reshape(nblk, 9 * B, B))

    return dict(
        w1=(w1 * s1[None, :]).astype(jnp.bfloat16),
        w2=w2_bd.astype(jnp.bfloat16),
        w3=(w3 * s3[None, :]).astype(jnp.bfloat16),
        bn1_shift=b1.reshape(1, DC),
        bn2_shift=b2.reshape(1, DC),
        bn3_shift=b3.reshape(1, Cout),
        ca_w1=ca_w1, ca_w2=ca_w2,
        sa_wa=sa_w[:, :, 0].reshape(49),   # 7x7 weights on the avg-channel map
        sa_wm=sa_w[:, :, 1].reshape(49),   # 7x7 weights on the max-channel map
    )


# ------------------------------- forward ------------------------------------
def resnext_bottleneck_forward(x_nchw, params):
    N, Cin, H, W = x_nchw.shape
    M = H * W
    DC = params['w1'].shape[1]
    Cout = params['w3'].shape[1]
    nblk, _, B = params['w2'].shape
    assert Cin == Cout, "identity_downsample is None => in == out * expansion"

    # NCHW -> flattened NHWC (channels on the TPU lane dimension), bf16 I/O.
    x = jnp.transpose(x_nchw, (0, 2, 3, 1)).reshape(N, M, Cin).astype(jnp.bfloat16)

    m3, sa_op = _spatial_constants(H, W, params['sa_wa'], params['sa_wm'])

    consts = (params['w1'], params['bn1_shift'],
              params['w2'], params['bn2_shift'],
              params['w3'], params['bn3_shift'],
              params['ca_w1'], params['ca_w2'],
              m3, sa_op)

    # VMEM budget: single-buffered constants + double-buffered bf16 I/O blocks
    # + in-kernel f32 live values + 128-lane padding of narrow temporaries.
    def nbytes(a):
        return int(a.size) * a.dtype.itemsize
    weight_bytes = sum(nbytes(a) for a in consts)
    io_bytes = 2 * 2 * M * (Cin + Cout)                     # 2 buffers, bf16
    live_bytes = (4 * M * (2 * DC + 2 * Cout + Cin)         # h1/h2/h3/x1/identity
                  + 6 * M * 9 * B                           # stacked taps (f32+bf16)
                  + 6 * M * 128 * 4)                        # lane-padded (M,1) temps
    est = weight_bytes + io_bytes + live_bytes
    try:
        phys = int(pltpu.get_tpu_info().vmem_capacity_bytes)
    except Exception:
        phys = 64 * 1024 * 1024                             # conservative (v7x)
    cap = int(phys * 0.85)
    vmem_limit = int(min(max(2 * est, 16 * 1024 * 1024), cap))

    const_spec = pl.BlockSpec(memory_space=pltpu.MemorySpace.VMEM)  # single copy

    out = pl.pallas_call(
        functools.partial(_fused_bottleneck_kernel, H=H, W=W),
        out_shape=jax.ShapeDtypeStruct((N, M, Cout), jnp.bfloat16),
        grid=(N,),
        in_specs=[pl.BlockSpec((None, M, Cin), lambda i: (i, 0, 0))]
                 + [const_spec] * len(consts),
        out_specs=pl.BlockSpec((None, M, Cout), lambda i: (i, 0, 0)),
        compiler_params=pltpu.CompilerParams(
            dimension_semantics=("parallel",),
            vmem_limit_bytes=vmem_limit,
        ),
    )(x, *consts)

    out = out.astype(jnp.float32).reshape(N, H, W, Cout)
    return jnp.transpose(out, (0, 3, 1, 2))                 # back to NCHW


# --------------------------------- main --------------------------------------
if __name__ == "__main__":
    key = jax.random.PRNGKey(0)
    kx, kp = jax.random.split(key)

    # Lane-aligned ResNeXt-50 stage-1 bottleneck: 256 -> (D*C=128, groups=32) -> 256
    in_channels, out_channels = 256, 64
    H = W = 16
    x = jax.random.normal(kx, (2, in_channels, H, W), jnp.float32)   # NCHW

    params = init_params(kp, in_channels, out_channels)
    out = resnext_bottleneck_forward(x, params)
    jax.block_until_ready(out)

    assert out.shape == (2, in_channels, H, W)
    assert bool(jnp.all(jnp.isfinite(out)))
    assert bool(jnp.all(out >= 0.0))   # final ReLU
    print("KERNEL_OK")
</pallas_src>

<mosaic_0001>
module attributes {stable_mosaic.version = 11 : i64} {
  func.func @_fused_bottleneck_kernel(%arg0: i32, %arg1: memref<1x256x256xbf16, #tpu.memory_space<vmem>>, %arg2: memref<256x128xbf16, #tpu.memory_space<vmem>>, %arg3: memref<1x128xf32, #tpu.memory_space<vmem>>, %arg4: memref<1x1152x128xbf16, #tpu.memory_space<vmem>>, %arg5: memref<1x128xf32, #tpu.memory_space<vmem>>, %arg6: memref<128x256xbf16, #tpu.memory_space<vmem>>, %arg7: memref<1x256xf32, #tpu.memory_space<vmem>>, %arg8: memref<256x16xf32, #tpu.memory_space<vmem>>, %arg9: memref<16x256xf32, #tpu.memory_space<vmem>>, %arg10: memref<256x9xf32, #tpu.memory_space<vmem>>, %arg11: memref<256x512xbf16, #tpu.memory_space<vmem>>, %arg12: memref<1x256x256xbf16, #tpu.memory_space<vmem>>) attributes {dimension_semantics = [#tpu.dimension_semantics<parallel>], iteration_bounds = array<i64: 2>, scalar_prefetch = 0 : i64, scratch_operands = 0 : i64, tpu.core_type = #tpu.core_type<tc>, window_params = [{transform_indices = @transform_0, window_bounds = array<i64: 1, 256, 256>}, {pipeline_mode = #tpu.pipeline_mode<synchronous>, transform_indices = @transform_1, window_bounds = array<i64: 256, 128>}, {pipeline_mode = #tpu.pipeline_mode<synchronous>, transform_indices = @transform_2, window_bounds = array<i64: 1, 128>}, {pipeline_mode = #tpu.pipeline_mode<synchronous>, transform_indices = @transform_3, window_bounds = array<i64: 1, 1152, 128>}, {pipeline_mode = #tpu.pipeline_mode<synchronous>, transform_indices = @transform_4, window_bounds = array<i64: 1, 128>}, {pipeline_mode = #tpu.pipeline_mode<synchronous>, transform_indices = @transform_5, window_bounds = array<i64: 128, 256>}, {pipeline_mode = #tpu.pipeline_mode<synchronous>, transform_indices = @transform_6, window_bounds = array<i64: 1, 256>}, {pipeline_mode = #tpu.pipeline_mode<synchronous>, transform_indices = @transform_7, window_bounds = array<i64: 256, 16>}, {pipeline_mode = #tpu.pipeline_mode<synchronous>, transform_indices = @transform_8, window_bounds = array<i64: 16, 256>}, {pipeline_mode = #tpu.pipeline_mode<synchronous>, transform_indices = @transform_9, window_bounds = array<i64: 256, 9>}, {pipeline_mode = #tpu.pipeline_mode<synchronous>, transform_indices = @transform_10, window_bounds = array<i64: 256, 512>}, {transform_indices = @transform_11, window_bounds = array<i64: 1, 256, 256>}]} {
    %c0 = arith.constant 0 : index
    %c0_0 = arith.constant 0 : index
    %c0_1 = arith.constant 0 : index
    %0 = vector.load %arg1[%c0, %c0_0, %c0_1] : memref<1x256x256xbf16, #tpu.memory_space<vmem>>, vector<1x256x256xbf16>
    %1 = vector.shape_cast %0 : vector<1x256x256xbf16> to vector<256x256xbf16>
    %c0_2 = arith.constant 0 : index
    %c0_3 = arith.constant 0 : index
    %2 = vector.load %arg2[%c0_2, %c0_3] : memref<256x128xbf16, #tpu.memory_space<vmem>>, vector<256x128xbf16>
    %cst = arith.constant dense<0.000000e+00> : vector<256x128xf32>
    %3 = tpu.matmul %1, %2, %cst {dimension_numbers = #tpu.dot_dimension_numbers<[1], [0], [0], [1], [0, 0, 1, 1], [], []>} : vector<256x256xbf16>, vector<256x128xbf16>, vector<256x128xf32> -> vector<256x128xf32>
    %c0_4 = arith.constant 0 : index
    %c0_5 = arith.constant 0 : index
    %4 = vector.load %arg3[%c0_4, %c0_5] : memref<1x128xf32, #tpu.memory_space<vmem>>, vector<1x128xf32>
    %5 = vector.broadcast %4 : vector<1x128xf32> to vector<256x128xf32>
    %6 = arith.addf %3, %5 : vector<256x128xf32>
    %cst_6 = arith.constant 0.000000e+00 : f32
    %7 = vector.broadcast %cst_6 : f32 to vector<256x128xf32>
    %8 = arith.maximumf %6, %7 : vector<256x128xf32>
    %c0_7 = arith.constant 0 : index
    %c0_8 = arith.constant 0 : index
    %9 = vector.load %arg10[%c0_7, %c0_8] : memref<256x9xf32, #tpu.memory_space<vmem>>, vector<256x9xf32>
    %c17_i32 = arith.constant 17 : i32
    %10 = tpu.dynamic_rotate %8 by %c17_i32 dim 0 : vector<256x128xf32>, i32 -> vector<256x128xf32>
    %11 = vector.extract_strided_slice %9 {offsets = [0, 0], sizes = [256, 1], strides = [1, 1]} : vector<256x9xf32> to vector<256x1xf32>
    %12 = vector.broadcast %11 : vector<256x1xf32> to vector<256x128xf32>
    %13 = arith.mulf %10, %12 : vector<256x128xf32>
    %c16_i32 = arith.constant 16 : i32
    %14 = tpu.dynamic_rotate %8 by %c16_i32 dim 0 : vector<256x128xf32>, i32 -> vector<256x128xf32>
    %15 = vector.extract_strided_slice %9 {offsets = [0, 1], sizes = [256, 1], strides = [1, 1]} : vector<256x9xf32> to vector<256x1xf32>
    %16 = vector.broadcast %15 : vector<256x1xf32> to vector<256x128xf32>
    %17 = arith.mulf %14, %16 : vector<256x128xf32>
    %c15_i32 = arith.constant 15 : i32
    %18 = tpu.dynamic_rotate %8 by %c15_i32 dim 0 : vector<256x128xf32>, i32 -> vector<256x128xf32>
    %19 = vector.extract_strided_slice %9 {offsets = [0, 2], sizes = [256, 1], strides = [1, 1]} : vector<256x9xf32> to vector<256x1xf32>
    %20 = vector.broadcast %19 : vector<256x1xf32> to vector<256x128xf32>
    %21 = arith.mulf %18, %20 : vector<256x128xf32>
    %c1_i32 = arith.constant 1 : i32
    %22 = tpu.dynamic_rotate %8 by %c1_i32 dim 0 : vector<256x128xf32>, i32 -> vector<256x128xf32>
    %23 = vector.extract_strided_slice %9 {offsets = [0, 3], sizes = [256, 1], strides = [1, 1]} : vector<256x9xf32> to vector<256x1xf32>
    %24 = vector.broadcast %23 : vector<256x1xf32> to vector<256x128xf32>
    %25 = arith.mulf %22, %24 : vector<256x128xf32>
    %c255_i32 = arith.constant 255 : i32
    %26 = tpu.dynamic_rotate %8 by %c255_i32 dim 0 : vector<256x128xf32>, i32 -> vector<256x128xf32>
    %27 = vector.extract_strided_slice %9 {offsets = [0, 5], sizes = [256, 1], strides = [1, 1]} : vector<256x9xf32> to vector<256x1xf32>
    %28 = vector.broadcast %27 : vector<256x1xf32> to vector<256x128xf32>
    %29 = arith.mulf %26, %28 : vector<256x128xf32>
    %c241_i32 = arith.constant 241 : i32
    %30 = tpu.dynamic_rotate %8 by %c241_i32 dim 0 : vector<256x128xf32>, i32 -> vector<256x128xf32>
    %31 = vector.extract_strided_slice %9 {offsets = [0, 6], sizes = [256, 1], strides = [1, 1]} : vector<256x9xf32> to vector<256x1xf32>
    %32 = vector.broadcast %31 : vector<256x1xf32> to vector<256x128xf32>
    %33 = arith.mulf %30, %32 : vector<256x128xf32>
    %c240_i32 = arith.constant 240 : i32
    %34 = tpu.dynamic_rotate %8 by %c240_i32 dim 0 : vector<256x128xf32>, i32 -> vector<256x128xf32>
    %35 = vector.extract_strided_slice %9 {offsets = [0, 7], sizes = [256, 1], strides = [1, 1]} : vector<256x9xf32> to vector<256x1xf32>
    %36 = vector.broadcast %35 : vector<256x1xf32> to vector<256x128xf32>
    %37 = arith.mulf %34, %36 : vector<256x128xf32>
    %c239_i32 = arith.constant 239 : i32
    %38 = tpu.dynamic_rotate %8 by %c239_i32 dim 0 : vector<256x128xf32>, i32 -> vector<256x128xf32>
    %39 = vector.extract_strided_slice %9 {offsets = [0, 8], sizes = [256, 1], strides = [1, 1]} : vector<256x9xf32> to vector<256x1xf32>
    %40 = vector.broadcast %39 : vector<256x1xf32> to vector<256x128xf32>
    %41 = arith.mulf %38, %40 : vector<256x128xf32>
    %42 = tpu.concatenate %13, %17, %21, %25, %8, %29, %33, %37, %41 in 1 : vector<256x128xf32>, vector<256x128xf32>, vector<256x128xf32>, vector<256x128xf32>, vector<256x128xf32>, vector<256x128xf32>, vector<256x128xf32>, vector<256x128xf32>, vector<256x128xf32> -> vector<256x1152xf32>
    %43 = arith.truncf %42 : vector<256x1152xf32> to vector<256x1152xbf16>
    %c0_9 = arith.constant 0 : index
    %c0_10 = arith.constant 0 : index
    %c0_11 = arith.constant 0 : index
    %44 = vector.load %arg4[%c0_9, %c0_10, %c0_11] : memref<1x1152x128xbf16, #tpu.memory_space<vmem>>, vector<1x1152x128xbf16>
    %45 = vector.shape_cast %44 : vector<1x1152x128xbf16> to vector<1152x128xbf16>
    %cst_12 = arith.constant dense<0.000000e+00> : vector<256x128xf32>
    %46 = tpu.matmul %43, %45, %cst_12 {dimension_numbers = #tpu.dot_dimension_numbers<[1], [0], [0], [1], [0, 0, 1, 1], [], []>} : vector<256x1152xbf16>, vector<1152x128xbf16>, vector<256x128xf32> -> vector<256x128xf32>
    %c0_13 = arith.constant 0 : index
    %c0_14 = arith.constant 0 : index
    %47 = vector.load %arg5[%c0_13, %c0_14] : memref<1x128xf32, #tpu.memory_space<vmem>>, vector<1x128xf32>
    %48 = vector.broadcast %47 : vector<1x128xf32> to vector<256x128xf32>
    %49 = arith.addf %46, %48 : vector<256x128xf32>
    %cst_15 = arith.constant 0.000000e+00 : f32
    %50 = vector.broadcast %cst_15 : f32 to vector<256x128xf32>
    %51 = arith.maximumf %49, %50 : vector<256x128xf32>
    %52 = arith.truncf %51 : vector<256x128xf32> to vector<256x128xbf16>
    %c0_16 = arith.constant 0 : index
    %c0_17 = arith.constant 0 : index
    %53 = vector.load %arg6[%c0_16, %c0_17] : memref<128x256xbf16, #tpu.memory_space<vmem>>, vector<128x256xbf16>
    %cst_18 = arith.constant dense<0.000000e+00> : vector<256x256xf32>
    %54 = tpu.matmul %52, %53, %cst_18 {dimension_numbers = #tpu.dot_dimension_numbers<[1], [0], [0], [1], [0, 0, 1, 1], [], []>} : vector<256x128xbf16>, vector<128x256xbf16>, vector<256x256xf32> -> vector<256x256xf32>
    %c0_19 = arith.constant 0 : index
    %c0_20 = arith.constant 0 : index
    %55 = vector.load %arg7[%c0_19, %c0_20] : memref<1x256xf32, #tpu.memory_space<vmem>>, vector<1x256xf32>
    %56 = vector.broadcast %55 : vector<1x256xf32> to vector<256x256xf32>
    %57 = arith.addf %54, %56 : vector<256x256xf32>
    %cst_21 = arith.constant dense<0.000000e+00> : vector<256xf32>
    %58 = vector.multi_reduction <add>, %57, %cst_21 [0] : vector<256x256xf32> to vector<256xf32>
    %59 = vector.shape_cast %58 : vector<256xf32> to vector<1x256xf32>
    %cst_22 = arith.constant 2.560000e+02 : f32
    %60 = vector.broadcast %cst_22 : f32 to vector<1x256xf32>
    %61 = arith.divf %59, %60 : vector<1x256xf32>
    %cst_23 = arith.constant dense<0xFF800000> : vector<256xf32>
    %62 = vector.multi_reduction <maximumf>, %57, %cst_23 [0] : vector<256x256xf32> to vector<256xf32>
    %63 = vector.shape_cast %62 : vector<256xf32> to vector<1x256xf32>
    %64 = tpu.concatenate %61, %63 in 0 : vector<1x256xf32>, vector<1x256xf32> -> vector<2x256xf32>
    %c0_24 = arith.constant 0 : index
    %c0_25 = arith.constant 0 : index
    %65 = vector.load %arg8[%c0_24, %c0_25] : memref<256x16xf32, #tpu.memory_space<vmem>>, vector<256x16xf32>
    %cst_26 = arith.constant dense<0.000000e+00> : vector<2x16xf32>
    %66 = tpu.matmul %64, %65, %cst_26 {dimension_numbers = #tpu.dot_dimension_numbers<[1], [0], [0], [1], [0, 0, 1, 1], [], []>} : vector<2x256xf32>, vector<256x16xf32>, vector<2x16xf32> -> vector<2x16xf32>
    %cst_27 = arith.constant 0.000000e+00 : f32
    %67 = vector.broadcast %cst_27 : f32 to vector<2x16xf32>
    %68 = arith.maximumf %66, %67 : vector<2x16xf32>
    %c0_28 = arith.constant 0 : index
    %c0_29 = arith.constant 0 : index
    %69 = vector.load %arg9[%c0_28, %c0_29] : memref<16x256xf32, #tpu.memory_space<vmem>>, vector<16x256xf32>
    %cst_30 = arith.constant dense<0.000000e+00> : vector<2x256xf32>
    %70 = tpu.matmul %68, %69, %cst_30 {dimension_numbers = #tpu.dot_dimension_numbers<[1], [0], [0], [1], [0, 0, 1, 1], [], []>} : vector<2x16xf32>, vector<16x256xf32>, vector<2x256xf32> -> vector<2x256xf32>
    %cst_31 = arith.constant dense<0.000000e+00> : vector<256xf32>
    %71 = vector.multi_reduction <add>, %70, %cst_31 [0] : vector<2x256xf32> to vector<256xf32>
    %72 = vector.shape_cast %71 : vector<256xf32> to vector<1x256xf32>
    %73 = arith.negf %72 : vector<1x256xf32>
    %74 = math.exp %73 : vector<1x256xf32>
    %cst_32 = arith.constant 1.000000e+00 : f32
    %75 = vector.broadcast %cst_32 : f32 to vector<1x256xf32>
    %76 = arith.addf %75, %74 : vector<1x256xf32>
    %77 = arith.divf %75, %76 : vector<1x256xf32>
    %78 = vector.broadcast %77 : vector<1x256xf32> to vector<256x256xf32>
    %79 = arith.mulf %57, %78 : vector<256x256xf32>
    %cst_33 = arith.constant dense<0.000000e+00> : vector<256xf32>
    %80 = vector.multi_reduction <add>, %79, %cst_33 [1] : vector<256x256xf32> to vector<256xf32>
    %81 = vector.shape_cast %80 : vector<256xf32> to vector<256x1xf32>
    %cst_34 = arith.constant 2.560000e+02 : f32
    %82 = vector.broadcast %cst_34 : f32 to vector<256x1xf32>
    %83 = arith.divf %81, %82 : vector<256x1xf32>
    %cst_35 = arith.constant dense<0xFF800000> : vector<256xf32>
    %84 = vector.multi_reduction <maximumf>, %79, %cst_35 [1] : vector<256x256xf32> to vector<256xf32>
    %85 = vector.shape_cast %84 : vector<256xf32> to vector<256x1xf32>
    %86 = tpu.concatenate %83, %85 in 0 : vector<256x1xf32>, vector<256x1xf32> -> vector<512x1xf32>
    %c0_36 = arith.constant 0 : index
    %c0_37 = arith.constant 0 : index
    %87 = vector.load %arg11[%c0_36, %c0_37] : memref<256x512xbf16, #tpu.memory_space<vmem>>, vector<256x512xbf16>
    %88 = arith.truncf %86 : vector<512x1xf32> to vector<512x1xbf16>
    %cst_38 = arith.constant dense<0.000000e+00> : vector<256x1xf32>
    %89 = tpu.matmul %87, %88, %cst_38 {dimension_numbers = #tpu.dot_dimension_numbers<[1], [0], [0], [1], [0, 0, 1, 1], [], []>} : vector<256x512xbf16>, vector<512x1xbf16>, vector<256x1xf32> -> vector<256x1xf32>
    %90 = arith.negf %89 : vector<256x1xf32>
    %91 = math.exp %90 : vector<256x1xf32>
    %cst_39 = arith.constant 1.000000e+00 : f32
    %92 = vector.broadcast %cst_39 : f32 to vector<256x1xf32>
    %93 = arith.addf %92, %91 : vector<256x1xf32>
    %94 = arith.divf %92, %93 : vector<256x1xf32>
    %c0_40 = arith.constant 0 : index
    %c0_41 = arith.constant 0 : index
    %c0_42 = arith.constant 0 : index
    %95 = vector.load %arg1[%c0_40, %c0_41, %c0_42] : memref<1x256x256xbf16, #tpu.memory_space<vmem>>, vector<1x256x256xbf16>
    %96 = vector.shape_cast %95 : vector<1x256x256xbf16> to vector<256x256xbf16>
    %97 = arith.extf %96 : vector<256x256xbf16> to vector<256x256xf32>
    %98 = vector.broadcast %94 : vector<256x1xf32> to vector<256x256xf32>
    %99 = arith.mulf %79, %98 : vector<256x256xf32>
    %100 = arith.addf %99, %97 : vector<256x256xf32>
    %cst_43 = arith.constant 0.000000e+00 : f32
    %101 = vector.broadcast %cst_43 : f32 to vector<256x256xf32>
    %102 = arith.maximumf %100, %101 : vector<256x256xf32>
    %103 = arith.truncf %102 : vector<256x256xf32> to vector<256x256xbf16>
    %c0_44 = arith.constant 0 : index
    %c0_45 = arith.constant 0 : index
    %c0_46 = arith.constant 0 : index
    %104 = vector.load %arg12[%c0_44, %c0_45, %c0_46] : memref<1x256x256xbf16, #tpu.memory_space<vmem>>, vector<1x256x256xbf16>
    %105 = vector.shape_cast %104 : vector<1x256x256xbf16> to vector<256x256xbf16>
    %106 = vector.shape_cast %103 : vector<256x256xbf16> to vector<1x256x256xbf16>
    tpu.vector_store %arg12[%c0_44, %c0_45, %c0_46], %106 {strides = array<i32>} : memref<1x256x256xbf16, #tpu.memory_space<vmem>>, vector<1x256x256xbf16>,
    return
  }
  func.func @transform_0(%arg0: i32) -> (i32, i32, i32) {
    %c0_i32 = arith.constant 0 : i32
    %c0_i32_0 = arith.constant 0 : i32
    %c0_i32_1 = arith.constant 0 : i32
    return %arg0, %c0_i32, %c0_i32_0 : i32, i32, i32
  }
  func.func @transform_1(%arg0: i32) -> (i32, i32) {
    %c0_i32 = arith.constant 0 : i32
    %c0_i32_0 = arith.constant 0 : i32
    %c0_i32_1 = arith.constant 0 : i32
    return %c0_i32, %c0_i32_0 : i32, i32
  }
  func.func @transform_2(%arg0: i32) -> (i32, i32) {
    %c0_i32 = arith.constant 0 : i32
    %c0_i32_0 = arith.constant 0 : i32
    %c0_i32_1 = arith.constant 0 : i32
    return %c0_i32, %c0_i32_0 : i32, i32
  }
  func.func @transform_3(%arg0: i32) -> (i32, i32, i32) {
    %c0_i32 = arith.constant 0 : i32
    %c0_i32_0 = arith.constant 0 : i32
    %c0_i32_1 = arith.constant 0 : i32
    %c0_i32_2 = arith.constant 0 : i32
    return %c0_i32, %c0_i32_0, %c0_i32_1 : i32, i32, i32
  }
  func.func @transform_4(%arg0: i32) -> (i32, i32) {
    %c0_i32 = arith.constant 0 : i32
    %c0_i32_0 = arith.constant 0 : i32
    %c0_i32_1 = arith.constant 0 : i32
    return %c0_i32, %c0_i32_0 : i32, i32
  }
  func.func @transform_5(%arg0: i32) -> (i32, i32) {
    %c0_i32 = arith.constant 0 : i32
    %c0_i32_0 = arith.constant 0 : i32
    %c0_i32_1 = arith.constant 0 : i32
    return %c0_i32, %c0_i32_0 : i32, i32
  }
  func.func @transform_6(%arg0: i32) -> (i32, i32) {
    %c0_i32 = arith.constant 0 : i32
    %c0_i32_0 = arith.constant 0 : i32
    %c0_i32_1 = arith.constant 0 : i32
    return %c0_i32, %c0_i32_0 : i32, i32
  }
  func.func @transform_7(%arg0: i32) -> (i32, i32) {
    %c0_i32 = arith.constant 0 : i32
    %c0_i32_0 = arith.constant 0 : i32
    %c0_i32_1 = arith.constant 0 : i32
    return %c0_i32, %c0_i32_0 : i32, i32
  }
  func.func @transform_8(%arg0: i32) -> (i32, i32) {
    %c0_i32 = arith.constant 0 : i32
    %c0_i32_0 = arith.constant 0 : i32
    %c0_i32_1 = arith.constant 0 : i32
    return %c0_i32, %c0_i32_0 : i32, i32
  }
  func.func @transform_9(%arg0: i32) -> (i32, i32) {
    %c0_i32 = arith.constant 0 : i32
    %c0_i32_0 = arith.constant 0 : i32
    %c0_i32_1 = arith.constant 0 : i32
    return %c0_i32, %c0_i32_0 : i32, i32
  }
  func.func @transform_10(%arg0: i32) -> (i32, i32) {
    %c0_i32 = arith.constant 0 : i32
    %c0_i32_0 = arith.constant 0 : i32
    %c0_i32_1 = arith.constant 0 : i32
    return %c0_i32, %c0_i32_0 : i32, i32
  }
  func.func @transform_11(%arg0: i32) -> (i32, i32, i32) {
    %c0_i32 = arith.constant 0 : i32
    %c0_i32_0 = arith.constant 0 : i32
    %c0_i32_1 = arith.constant 0 : i32
    return %arg0, %c0_i32, %c0_i32_0 : i32, i32, i32
  }
}

</mosaic_0001>

<bundles_post_ra>
// kernel: tpu_custom_call.1
= control target key start
LH: loop header
LB: loop body
LE: loop exit
PB: predicated region body
PF: predicated region fallthrough
CT: control target
= control target key end

     0   :  { %s13128_s0 = inlined_call_operand.hbm [shape: bf16[2,256,256], index: 0, kind: input, shape index: {}]   ;;  %s13129_s1 = inlined_call_operand.hbm [shape: bf16[256,128], index: 1, kind: input, shape index: {}]   ;;  %s13130_s2 = inlined_call_operand.hbm [shape: f32[1,128], index: 2, kind: input, shape index: {}]   ;;  %s13131_s3 = inlined_call_operand.vmem [shape: bf16[1,1152,128], index: 3, kind: input, shape index: {}]   ;;  %s13132_s4 = inlined_call_operand.hbm [shape: f32[1,128], index: 4, kind: input, shape index: {}]   ;;  %s13133_s5 = inlined_call_operand.hbm [shape: bf16[128,256], index: 5, kind: input, shape index: {}]   ;;  %s13134_s6 = inlined_call_operand.vmem [shape: f32[1,256], index: 6, kind: input, shape index: {}]   ;;  %s13135_s7 = inlined_call_operand.vmem [shape: f32[256,16], index: 7, kind: input, shape index: {}]   ;;  %s13136_s8 = inlined_call_operand.hbm [shape: f32[16,256], index: 8, kind: input, shape index: {}]   ;;  %s13137_s9 = inlined_call_operand.vmem [shape: f32[256,9], index: 9, kind: input, shape index: {}]   ;;  %s13138_s10 = inlined_call_operand.hbm [shape: bf16[256,512], index: 10, kind: input, shape index: {}]   ;;  %s13139_s11 = inlined_call_operand.hbm [shape: bf16[2,256,256], index: 11, kind: output, shape index: {}]  }
   0x1   :  { %13354 = sst [smem:[#allocation130_spill]] %s13129_s1 }
   0x2   :  { %13355 = sst [smem:[#allocation131_spill]] %s13132_s4 }
   0x3   :  { %13356 = sst [smem:[#allocation132_spill]] %s13134_s6 }
   0x4   :  { %13357 = sst [smem:[#allocation133_spill]] %s13135_s7 }
   0x5   :  { %13358 = sst [smem:[#allocation134_spill]] %s13139_s11 }
   0x6   :  { %16 = vsyncpa [#allocation3], 0 }
   0x7   :  { %18 = vsyncpa [#allocation3 + $0x1], 0 }
   0x8   :  { %19 = vsyncpa [#allocation6], 0 }
   0x9   :  { %20 = vsyncpa [#allocation9], 0 }
   0xa   :  { %21 = vsyncpa [#allocation12], 0 }
   0xb   :  { %22 = vsyncpa [#allocation4], 0 }
   0xc   :  { %24 = vsyncpa [#allocation4 + $0x1], 0  ;;  %s9099_s17 = smov 0   ;;  %s9101_s18 = smov 0  }
   0xd   :  { %s9103_s19 = smov 0   ;;  %s9105_s20 = smov 0  }
   0xe LB: > { %s9014_s21 = smov [#allocation5]   ;;  %s9120_s23 = sadd.s32 4294967295, %s9012_s20   ;;  %s9012_s20 = sphi %s9105_s20, %s13914_s20   ;;  %s9008_s19 = sphi %s9103_s19, %s13913_s19   ;;  %s9004_s18 = sphi %s9101_s18, %s13912_s18   ;;  %s9000_s17 = sphi %s9099_s17, %s13911_s17  }
   0xf   : > { %s309_s22 = sshll.u32 %s9014_s21, 4  ;;  %p6732_p0 = scmp.ge.s32.totalorder %s9012_s20, 1  ;;  %s9125_s22 = int_to_ptr.vmem [resolvable:$true] %s309_s22 }
  0x10   : > { %p13142_p1 = scmp.eq.s32.totalorder %s9120_s23, 0  ;;  %p297_p2 = scmp.lt.s32.totalorder %s9012_s20, 3 }
  0x11   : > { %s9015_s25 = smov [#allocation8]   ;;  %s9016_s28 = smov [#allocation11]  }
  0x12   : > { %p9127_p3 = pnand %p6732_p0, %p297_p2  ;;  %s337_s26 = sshll.u32 %s9015_s25, 4  ;;  %s9140_s26 = int_to_ptr.vmem [resolvable:$true] %s337_s26 }
  0x13   : > { %s366_s29 = sshll.u32 %s9016_s28, 4  ;;  %s13361_s1 = sld [smem:[#allocation130_spill]]  ;;  %s9142_s29 = int_to_ptr.vmem [resolvable:$true] %s366_s29 }
  0x14   : > { %s13359_s24 = scalar_select %p9127_p3, 1, 0 }
  0x15   : > { %p8031_p5 = pneg %p9127_p3 }
  0x17   : > { %p9136_p6 = pnand %p8031_p5, %p13142_p1 }
  0x19   : > { %s8736_s13 = scalar_lea.hbm %s13361_s1, 2048  ;;  %p9152_p8 = pneg %p9136_p6 }
  0x1a   : > { %p8737_p7 = scmp.ne.s32.totalorder %s13361_s1, %s8736_s13  ;;  %p8743_p11 = scmp.lt.u32.totalorder %s8736_s13, %s13361_s1 }
  0x1c   : > { %p8739_p9 = pnand %p9152_p8, %p8737_p7 }
  0x1e   : > { %p8740_p10 = pneg %p8739_p9 }
  0x20   : > { %p8745_p12 = pnand %p8743_p11, %p8740_p10 }
  0x22   : > { %8748 = shalt.err (!%p8745_p12)
}
  0x23   : > { %s8749_s28 = scalar_lea.vmem %s9125_s22, 2048  ;;  %p8757_p5 = scmp.lt.s32.totalorder %s9125_s22, %s9125_s22 }
  0x24   : > { %p8750_p13 = scmp.ne.s32.totalorder %s9125_s22, %s8749_s28  ;;  %p8758_p4 = scmp.lt.s32.totalorder %s8749_s28, %s8749_s28 }
  0x26   : > { %p8752_p0 = pnand %p8750_p13, %p9152_p8  ;;  %p8759_p7 = por %p8758_p4, %p8757_p5 }
  0x28   : > { %p8753_p2 = pneg %p8752_p0 }
  0x2a   : > { %p8760_p9 = pnand %p8759_p7, %p8753_p2 }
  0x2c   : > { %8763 = shalt.err (!%p8760_p9)
}
  0x2d   : > { %s9017_s30 = smov 64   ;;  %s9018_s12 = smov 4  }
  0x2e   : > { %8034 = dma.hbm_to_vmem [thread:$0]  (!%p9136_p6), %s13361_s1, 2048, %s9125_s22, [#allocation6], %s9017_s30, %s9017_s30, %s9018_s12  }
  0x2f   : > { %s13363_s4 = sld [smem:[#allocation131_spill]] }
  0x35   : > { %s8764_s25 = scalar_lea.hbm %s13363_s4, 16 }
  0x36   : > { %p8765_p4 = scmp.ne.s32.totalorder %s13363_s4, %s8764_s25  ;;  %p8771_p12 = scmp.lt.u32.totalorder %s8764_s25, %s13363_s4 }
  0x38   : > { %p8767_p10 = pnand %p8765_p4, %p9152_p8 }
  0x3a   : > { %p8768_p11 = pneg %p8767_p10 }
  0x3c   : > { %p8773_p13 = pnand %p8771_p12, %p8768_p11 }
  0x3e   : > { %8776 = shalt.err (!%p8773_p13)
}
  0x3f   : > { %s8777_s22 = scalar_lea.vmem %s9140_s26, 16  ;;  %s8784_s6 = scalar_lea.vmem %s9140_s26, 32 }
  0x40   : > { %p8778_p0 = scmp.ne.s32.totalorder %s9140_s26, %s8777_s22  ;;  %p8785_p7 = scmp.lt.s32.totalorder %s9140_s26, %s9140_s26 }
  0x41   : > { %p8786_p9 = scmp.lt.s32.totalorder %s8784_s6, %s8777_s22 }
  0x42   : > { %p8780_p2 = pnand %p8778_p0, %p9152_p8 }
  0x43   : > { %p8787_p4 = por %p8786_p9, %p8785_p7 }
  0x44   : > { %p8781_p5 = pneg %p8780_p2 }
  0x46   : > { %p8788_p10 = pnand %p8787_p4, %p8781_p5 }
  0x48   : > { %8791 = shalt.err (!%p8788_p10)
}
  0x49   : > { %8040 = dma.hbm_to_vmem [thread:$0]  (!%p9136_p6), %s13363_s4, 16, %s9140_s26, [#allocation9]  }
  0x4a   : > { %s8792_s13 = scalar_lea.hbm %s13136_s8, 512 }
  0x4b   : > { %p8793_p11 = scmp.ne.s32.totalorder %s13136_s8, %s8792_s13  ;;  %p8799_p0 = scmp.lt.u32.totalorder %s8792_s13, %s13136_s8 }
  0x4d   : > { %p8795_p12 = pnand %p8793_p11, %p9152_p8 }
  0x4f   : > { %p8796_p13 = pneg %p8795_p12 }
  0x51   : > { %p8801_p2 = pnand %p8799_p0, %p8796_p13 }
  0x53   : > { %8804 = shalt.err (!%p8801_p2)
}
  0x54   : > { %s8805_s26 = scalar_lea.vmem %s9142_s29, 512  ;;  %p8813_p4 = scmp.lt.s32.totalorder %s9142_s29, %s9142_s29 }
  0x55   : > { %p8806_p5 = scmp.ne.s32.totalorder %s9142_s29, %s8805_s26  ;;  %p8814_p10 = scmp.lt.s32.totalorder %s8805_s26, %s8805_s26 }
  0x57   : > { %p8808_p7 = pnand %p8806_p5, %p9152_p8  ;;  %p8815_p11 = por %p8814_p10, %p8813_p4 }
  0x59   : > { %p8809_p9 = pneg %p8808_p7 }
  0x5b   : > { %p8816_p12 = pnand %p8815_p11, %p8809_p9 }
  0x5d   : > { %8819 = shalt.err (!%p8816_p12)
}
  0x5e   : > { %s9019_s28 = smov 256   ;;  %s9020_s22 = smov 16  }
  0x5f   : > { %8046 = dma.hbm_to_vmem [thread:$0]  (!%p9136_p6), %s13136_s8, 512, %s9142_s29, [#allocation12], %s9019_s28, %s9019_s28, %s9020_s22  }
  0x60   : > { %s9021_s11 = smov [#allocation7]   ;;  %s9022_s12 = smov [#allocation10]  }
  0x61   : > { %s323_s30 = sshll.u32 %s9021_s11, 4  ;;  %s347_s13 = sshll.u32 %s9022_s12, 4  ;;  %s324_s30 = int_to_ptr.vmem [resolvable:$true] %s323_s30  ;;  %s348_s13 = int_to_ptr.vmem [resolvable:$true] %s347_s13 }
  0x62   : > { %s8820_s21 = scalar_lea.hbm %s13130_s2, 16 }
  0x63   : > { %p8821_p13 = scmp.ne.s32.totalorder %s13130_s2, %s8820_s21  ;;  %p8827_p5 = scmp.lt.u32.totalorder %s8820_s21, %s13130_s2 }
  0x65   : > { %p8823_p0 = pnand %p8821_p13, %p9152_p8 }
  0x67   : > { %p8824_p2 = pneg %p8823_p0 }
  0x69   : > { %p8829_p7 = pnand %p8827_p5, %p8824_p2 }
  0x6b   : > { %8832 = shalt.err (!%p8829_p7)
}
  0x6c   : > { %s8833_s29 = scalar_lea.vmem %s324_s30, 16  ;;  %s8840_s6 = scalar_lea.vmem %s324_s30, 32 }
  0x6d   : > { %p8834_p9 = scmp.ne.s32.totalorder %s324_s30, %s8833_s29  ;;  %p8841_p11 = scmp.lt.s32.totalorder %s324_s30, %s324_s30 }
  0x6e   : > { %p8842_p12 = scmp.lt.s32.totalorder %s8840_s6, %s8833_s29 }
  0x6f   : > { %p8836_p4 = pnand %p8834_p9, %p9152_p8 }
  0x70   : > { %p8843_p1 = por %p8842_p12, %p8841_p11 }
  0x71   : > { %p8837_p10 = pneg %p8836_p4 }
  0x73   : > { %p8844_p3 = pnand %p8843_p1, %p8837_p10 }
  0x75   : > { %8847 = shalt.err (!%p8844_p3)
}
  0x76   : > { %8037 = dma.hbm_to_vmem [thread:$0]  (!%p9136_p6), %s13130_s2, 16, %s324_s30, [#allocation6]  }
  0x77   : > { %s8848_s12 = scalar_lea.hbm %s13133_s5, 2048 }
  0x78   : > { %p8849_p13 = scmp.ne.s32.totalorder %s13133_s5, %s8848_s12  ;;  %p8855_p3 = scmp.lt.u32.totalorder %s8848_s12, %s13133_s5 }
  0x7a   : > { %p8851_p0 = pnand %p8849_p13, %p9152_p8 }
  0x7c   : > { %p8852_p1 = pneg %p8851_p0 }
  0x7e   : > { %p8857_p2 = pnand %p8855_p3, %p8852_p1 }
  0x80   : > { %8860 = shalt.err (!%p8857_p2)
}
  0x81   : > { %s8861_s26 = scalar_lea.vmem %s348_s13, 2048  ;;  %p8869_p4 = scmp.lt.s32.totalorder %s348_s13, %s348_s13 }
  0x82   : > { %p8862_p5 = scmp.ne.s32.totalorder %s348_s13, %s8861_s26  ;;  %p8870_p10 = scmp.lt.s32.totalorder %s8861_s26, %s8861_s26 }
  0x84   : > { %p8864_p7 = pnand %p8862_p5, %p9152_p8  ;;  %p8871_p11 = por %p8870_p10, %p8869_p4 }
  0x86   : > { %p8865_p9 = pneg %p8864_p7 }
  0x88   : > { %p8872_p12 = pnand %p8871_p11, %p8865_p9 }
  0x8a   : > { %8875 = shalt.err (!%p8872_p12)
}
  0x8b   : > { %s9023_s30 = smov 128   ;;  %s9024_s29 = smov 8  }
  0x8c   : > { %8043 = dma.hbm_to_vmem [thread:$0]  (!%p9136_p6), %s13133_s5, 2048, %s348_s13, [#allocation9], %s9023_s30, %s9023_s30, %s9024_s29  }
  0x8d   : > { %s9025_s11 = smov [#allocation13]   ;;  %s8876_s14 = scalar_lea.hbm %s13138_s10, 8192 }
  0x8e   : > { %s382_s1 = sshll.u32 %s9025_s11, 4  ;;  %p8877_p13 = scmp.ne.s32.totalorder %s13138_s10, %s8876_s14  ;;  %s383_s1 = int_to_ptr.vmem [resolvable:$true] %s382_s1 }
  0x8f   : > { %p8883_p3 = scmp.lt.u32.totalorder %s8876_s14, %s13138_s10 }
  0x90   : > { %p8879_p0 = pnand %p8877_p13, %p9152_p8 }
  0x92   : > { %p8880_p1 = pneg %p8879_p0 }
  0x94   : > { %p8885_p2 = pnand %p8883_p3, %p8880_p1 }
  0x96   : > { %8888 = shalt.err (!%p8885_p2)
}
  0x97   : > { %s8889_s13 = scalar_lea.vmem %s383_s1, 8192  ;;  %p8897_p4 = scmp.lt.s32.totalorder %s383_s1, %s383_s1 }
  0x98   : > { %p8890_p5 = scmp.ne.s32.totalorder %s383_s1, %s8889_s13  ;;  %p8898_p10 = scmp.lt.s32.totalorder %s8889_s13, %s8889_s13 }
  0x9a   : > { %p8892_p7 = pnand %p8890_p5, %p9152_p8  ;;  %p8899_p11 = por %p8898_p10, %p8897_p4 }
  0x9c   : > { %p8893_p9 = pneg %p8892_p7 }
  0x9e   : > { %p8900_p12 = pnand %p8899_p11, %p8893_p9 }
  0xa0   : > { %8903 = shalt.err (!%p8900_p12)
}
  0xa1   : > { %8049 = dma.hbm_to_vmem [thread:$0]  (!%p9136_p6), %s13138_s10, 8192, %s383_s1, [#allocation12], %s9019_s28, %s9019_s28, %s9020_s22  }
  0xa2   : > { %s6731_s27 = sadd.s32 4294967294, %s9012_s20   ;;  %s9285_s16 = sadd.s32 1, %s9012_s20  }
  0xa3   : > { %s34_s11 = ssub.s32 %s9012_s20, %s9285_s16  ;;  %s37_s4 = sadd.s32 1, %s9008_s19 }
  0xa4   : > { %p35_p8 = scmp.eq.s32.totalorder %s34_s11, 0  ;;  %p44_p13 = scmp.ne.s32.totalorder %s9008_s19, %s9004_s18 }
  0xa5   : > { %p45_p0 = scmp.eq.s32.totalorder %s9012_s20, 0  ;;  %p50_p1 = scmp.ne.s32.totalorder %s9004_s18, %s9000_s17 }
  0xa6   : > { %s9296_s12 = scalar_select %p35_p8, %s9008_s19, %s37_s4  }
  0xa7   : > { %p9298_p3 = por %p45_p0, %p44_p13  ;;  %p13365_p2 = scmp.eq.s32.totalorder %s9120_s23, 0 }
  0xa8   : > { %p284_p5 = scmp.eq.s32.totalorder %s9120_s23, 1  ;;  %p290_p7 = scmp.eq.s32.totalorder %s6731_s27, 1 }
  0xa9   : > { %p9304_p6 = por %p13365_p2, %p50_p1  ;;  %p8064_p9 = scmp.lt.s32.totalorder %s9012_s20, 2 }
  0xaa   : > { %s396_s22 = sand.u32 1, %s9008_s19   ;;  %p9311_p4 = por %p284_p5, %p44_p13 }
  0xab   : > { %p9315_p10 = por %p290_p7, %p50_p1  ;;  %s6740_s21 = sshll.u32 %s396_s22, 8 }
  0xac   : > { %s13367_s1 = scalar_select %p9311_p4, 1, 0 }
  0xad   : > { %s13368_s15 = scalar_select %p9315_p10, 1, 0 }
  0xae   : > { %s7026_s25 = sshll.u32 %s9012_s20, 12  ;;  %s400_s7 = scalar_lea.vmem [#allocation2], %s6740_s21 }
  0xaf   : > { %s9323_s6 = scalar_lea.hbm %s13128_s0, %s7026_s25  ;;  %s407_s27 = sshll.u32 %s400_s7, 4  ;;  %s9325_s27 = int_to_ptr.vmem [resolvable:$true] %s407_s27 }
  0xb0   : > { %p9329_p11 = pnand %p8064_p9, %p9298_p3  ;;  %s9333_s4 = scalar_lea.sflag [#allocation3], %s396_s22 }
  0xb1   : > { %s8904_s26 = scalar_lea.hbm %s9323_s6, 4096  ;;  %s8909_s14 = scalar_lea.hbm %s13128_s0, 8192 }
  0xb2   : > { %p8905_p12 = scmp.ne.s32.totalorder %s9323_s6, %s8904_s26  ;;  %p8906_p8 = pneg %p9329_p11 }
  0xb3   : > { %p8910_p1 = scmp.lt.u32.totalorder %s9323_s6, %s13128_s0  ;;  %p8911_p3 = scmp.lt.u32.totalorder %s8909_s14, %s8904_s26 }
  0xb4   : > { %p8907_p13 = pnand %p8906_p8, %p8905_p12  ;;  %p8913_p5 = scmp.lt.u32.totalorder %s8904_s26, %s9323_s6 }
  0xb5   : > { %p8912_p2 = por %p8911_p3, %p8910_p1 }
  0xb6   : > { %p8908_p0 = pneg %p8907_p13 }
  0xb7   : > { %p8914_p7 = por %p8913_p5, %p8912_p2 }
  0xb9   : > { %p8915_p9 = pnand %p8914_p7, %p8908_p0 }
  0xbb   : > { %8918 = shalt.err (!%p8915_p9)
}
  0xbc   : > { %s8919_s22 = scalar_lea.vmem %s9325_s27, 4096  ;;  %s9026_s21 = smov [#allocation2]  }
  0xbd   : > { %p8920_p12 = scmp.ne.s32.totalorder %s9325_s27, %s8919_s22  ;;  %s8924_s25 = sshll.u32 %s9026_s21, 4  ;;  %s8925_s25 = int_to_ptr.vmem [resolvable:$false] %s8924_s25 }
  0xbe   : > { %s8926_s13 = scalar_lea.vmem %s8925_s25, 8192  ;;  %p8927_p4 = scmp.lt.s32.totalorder %s9325_s27, %s8925_s25 }
  0xbf   : > { %p8922_p13 = pnand %p8920_p12, %p8906_p8  ;;  %p8928_p1 = scmp.lt.s32.totalorder %s8926_s13, %s8919_s22 }
  0xc1   : > { %p8923_p10 = pneg %p8922_p13  ;;  %p8929_p3 = por %p8928_p1, %p8927_p4 }
  0xc3   : > { %p8930_p2 = pnand %p8929_p3, %p8923_p10 }
  0xc5   : > { %8933 = shalt.err (!%p8930_p2)
}
  0xc6   : > { %8053 = dma.hbm_to_vmem [thread:$0]  (!%p9329_p11), %s9323_s6, 4096, %s9325_s27, %s9333_s4, %s9023_s30, %s9023_s30, %s9024_s29  }
  0xc7   : > { %p13370_p8 = scmp.ne.s32.totalorder %s13359_s24, 0 }
  0xc9   : > { %419 = sbr.rel (%p13370_p8) target bundleno = 2838 (0xb16), region = 64 }
  0xd0   : > { %s9367_s26 = sand.u32 1, %s9004_s18  }
  0xd1   : > { %s6744_s14 = sshll.u32 %s9367_s26, 8  ;;  %s422_s7 = scalar_lea.sflag [#allocation3], %s9367_s26 }
  0xd2   : > { %s9373_s11 = scalar_lea.vmem [#allocation2], %s6744_s14 }
  0xd3   : > { %8979 = dma.done.wait (%p9304_p6), %s422_s7, 4096  }
  0xd4   : > { %8981 = vsyncadd (%p9304_p6), %s422_s7, 4294963200  ;;  %p13371_p4 = scmp.eq.s32.totalorder %s9120_s23, 0 }
  0xd6   : > { %8983 = dma.done.wait (%p13371_p4), [#allocation6], 2064   ;;  %p13372_p10 = pmov %p13371_p4 }
  0xd7   : > { %p13373_p11 = pmov %p13371_p4 }
  0xd8   : > { %8985 = vsyncadd (%p13372_p10), [#allocation6], 4294965232 }
  0xd9   : > { %8987 = dma.done.wait (%p13373_p11), [#allocation9], 2064   ;;  %p13374_p0 = pmov %p13371_p4 }
  0xdb   : > { %8989 = vsyncadd (%p13374_p0), [#allocation9], 4294965232  ;;  %p13375_p5 = pmov %p13374_p0 }
  0xdc   : > { %p13376_p7 = pmov %p13374_p0 }
  0xdd   : > { %8991 = dma.done.wait (%p13375_p5), [#allocation12], 8704  }
  0xde   : > { %8993 = vsyncadd (%p13376_p7), [#allocation12], 4294958592  ;;  %v13145_v0 = vmov 0   ;;  %v9396_v1 = vld [vmem:[%s13137_s9 + $0x10] sm:$0xff]  ;;  %v9401_v2 = vld [vmem:[%s13137_s9] sm:$0xff]  ;;  %v9028_v12 = vmov 1  }
  0xdf   : > { %8129 = vset.pattern.permute.xlu0 %v13145_v0  ;;  %8127 = vset.pattern.permute.xlu1 %v13145_v0  ;;  %v8263_v3 = vld [vmem:[#allocation5 + $0x40] sm:$0xff]   ;;  %v1015_v5 = vld [vmem:[%s13137_s9 + $0x30] sm:$0xff]  ;;  %v9411_v6 = vld [vmem:[%s13137_s9 + $0x8] sm:$0xff]  ;;  %s13778_s29 = sld [smem:[#allocation133_spill]]  ;;  %s13780_s24 = sld [smem:[#allocation132_spill]]  ;;  %vm4517_vm2 = vcmask 1040384  }
  0xe0   : > { %1120 = vperm.xlu0 %8129, %v9396_v1   ;;  %1110 = vperm.xlu1 %8127, %v9401_v2   ;;  %v8264_v4 = vld [vmem:[#allocation5] sm:$0xff]   ;;  %v8265_v7 = vld [vmem:[#allocation5 + $0x48] sm:$0xff]   ;;  %v9417_v9 = vld [vmem:[%s13137_s9 + $0x18] sm:$0xff]  ;;  %vm4627_vm3 = vcmask 130048   ;;  %vm4702_vm4 = vcmask 1041408   ;;  %s12954_s30 = scalar_lea.vmem [#allocation14], %s6744_s14 }
  0xe1   : > { %7060 = vmatprep.subr.bf16.mxu0 %v8263_v3  ;;  %v8266_v8 = vld [vmem:[#allocation5 + $0x8] sm:$0xff]   ;;  %v8267_v10 = vld [vmem:[#allocation5 + $0x50] sm:$0xff]   ;;  %v8269_v13 = vld [vmem:[#allocation5 + $0x58] sm:$0xff]   ;;  %s7059_s14 = sshll.u32 %s9120_s23, 12  ;;  %s13907_s27 = sld [smem:[#allocation134_spill]] }
  0xe2   : > { %7061 = vmatpush3.bf16.msra.mxu0 %v8264_v4  ;;  %v8268_v11 = vld [vmem:[#allocation5 + $0x10] sm:$0xff]   ;;  %v8270_v14 = vld [vmem:[#allocation5 + $0x18] sm:$0xff]   ;;  %v8271_v15 = vld [vmem:[#allocation5 + $0x60] sm:$0xff]   ;;  %s6588_s23 = scalar_lea.sflag [#allocation4], %s9367_s26  ;;  %p13908_p9 = scmp.ne.s32.totalorder %s13367_s1, 0 }
  0xe3   : > { %7062 = vmatprep.subr.bf16.mxu0 %v8265_v7  ;;  %v9429_v16 = vld [vmem:[%s13137_s9 + $0x20] sm:$0xff]  ;;  %v8273_v18 = vld [vmem:[#allocation5 + $0x68] sm:$0xff]   ;;  %v8275_v24 = vld [vmem:[#allocation5 + $0x70] sm:$0xff]   ;;  %s9036_s21 = smov [#allocation14]  }
  0xe4   : > { %1140 = vperm.xlu0 %8129, %v1015_v5   ;;  %1115 = vperm.xlu1 %8127, %v9411_v6   ;;  %v8272_v17 = vld [vmem:[#allocation5 + $0x20] sm:$0xff]   ;;  %v9436_v19 = vld [vmem:[%s13137_s9 + $0x28] sm:$0xff]  ;;  %v8276_v25 = vld [vmem:[#allocation5 + $0x30] sm:$0xff]   ;;  %s8938_s25 = sshll.u32 %s9036_s21, 4  ;;  %s8939_s25 = int_to_ptr.vmem [resolvable:$false] %s8938_s25 }
  0xe5   : > { %v489_v20 = vld [vmem:[%s9373_s11] sm:$0xff]  ;;  %v490_v21 = vld [vmem:[%s9373_s11 + $0x8] sm:$0xff]  ;;  %v8277_v26 = vld [vmem:[#allocation5 + $0x78] sm:$0xff]   ;;  %s8940_s13 = scalar_lea.vmem %s8939_s25, 8192 }
  0xe6   : > { %7063 = vmatpush3.bf16.msra.mxu0 %v8266_v8  ;;  %v8274_v22 = vld [vmem:[#allocation5 + $0x28] sm:$0xff]   ;;  %v6754_v23 = vcombine.high %v489_v20, %v490_v21  ;;  %v8278_v28 = vld [vmem:[#allocation5 + $0x38] sm:$0xff]   ;;  %v491_v29 = vld [vmem:[%s9373_s11 + $0x10] sm:$0xff]  ;;  %v6753_v33 = vcombine.low %v489_v20, %v490_v21 }
  0xe7   : > { %7064 = vmatprep.subr.bf16.mxu0 %v8267_v10  ;;  %v9447_v27 = vld [vmem:[%s13137_s9 + $0x48] sm:$0xff]  ;;  %v492_v30 = vld [vmem:[%s9373_s11 + $0x18] sm:$0xff]  ;;  %v9456_v31 = vld [vmem:[%s13137_s9 + $0x50] sm:$0xff]  ;;  %s13080_s4 = scalar_lea.hbm %s13907_s27, %s7059_s14 }
  0xe8   : > { %8134 = vset.pattern.permute.xlu0 %v9028_v12  ;;  %8128 = vset.pattern.permute.xlu1 %v9028_v12  ;;  %v9461_v32 = vld [vmem:[%s13137_s9 + $0x38] sm:$0xff]  ;;  %v6756_v34 = vcombine.high %v491_v29, %v492_v30  ;;  %v9469_v35 = vld [vmem:[%s13137_s9 + $0x68] sm:$0xff]  ;;  %v493_v36 = vld [vmem:[%s9373_s11 + $0x20] sm:$0xff]  ;;  %v6755_v39 = vcombine.low %v491_v29, %v492_v30  ;;  %v13153_v30 = vmov 5  }
  0xe9   : > { %1301 = vperm.xlu0 %8134, %v9401_v2   ;;  %1313 = vperm.xlu1 %8128, %v9417_v9   ;;  %v494_v37 = vld [vmem:[%s9373_s11 + $0x28] sm:$0xff]  ;;  %v9476_v38 = vld [vmem:[%s13137_s9 + $0x70] sm:$0xff]  ;;  %v9484_v40 = vld [vmem:[%s13137_s9 + $0x40] sm:$0xff] }
  0xea   : > { %7065 = vmatpush3.bf16.msra.mxu0 %v8268_v11  ;;  %848 = vmatprep.mubr.bf16.mxu0 %v6754_v23  ;;  %v6758_v41 = vcombine.high %v493_v36, %v494_v37  ;;  %v9489_v42 = vld [vmem:[%s13137_s9 + $0x88] sm:$0xff]  ;;  %v495_v43 = vld [vmem:[%s9373_s11 + $0x30] sm:$0xff]  ;;  %v496_v44 = vld [vmem:[%s9373_s11 + $0x38] sm:$0xff]  ;;  %v6757_v46 = vcombine.low %v493_v36, %v494_v37 }
  0xeb   : > { %7066 = vmatprep.subr.bf16.mxu0 %v8269_v13  ;;  %v9499_v45 = vld [vmem:[%s13137_s9 + $0x90] sm:$0xff]  ;;  %v6760_v47 = vcombine.high %v495_v43, %v496_v44  ;;  %v9507_v48 = vld [vmem:[%s13137_s9 + $0xa8] sm:$0xff]  ;;  %v497_v49 = vld [vmem:[%s9373_s11 + $0x40] sm:$0xff]  ;;  %v6759_v53 = vcombine.low %v495_v43, %v496_v44 }
  0xec   : > { %v498_v50 = vld [vmem:[%s9373_s11 + $0x48] sm:$0xff]  ;;  %v9516_v51 = vld [vmem:[%s13137_s9 + $0xb0] sm:$0xff]  ;;  %v9521_v52 = vld [vmem:[%s13137_s9 + $0x58] sm:$0xff] }
  0xed   : > { %1305 = vperm.xlu0 %8134, %v9411_v6   ;;  %8130 = vset.pattern.permute.xlu1 %v13145_v0  ;;  %v6762_v54 = vcombine.high %v497_v49, %v498_v50  ;;  %v9528_v55 = vld [vmem:[%s13137_s9 + $0xc8] sm:$0xff]  ;;  %v499_v56 = vld [vmem:[%s9373_s11 + $0x50] sm:$0xff]  ;;  %v500_v57 = vld [vmem:[%s9373_s11 + $0x58] sm:$0xff]  ;;  %v6761_v59 = vcombine.low %v497_v49, %v498_v50 }
  0xee   : > { %1125 = vperm.xlu1 %8130, %v9417_v9   ;;  %7067 = vmatpush3.bf16.msra.mxu0 %v8270_v14  ;;  %v9537_v58 = vld [vmem:[%s13137_s9 + $0xd0] sm:$0xff]  ;;  %v9545_v60 = vld [vmem:[%s13137_s9 + $0x60] sm:$0xff]  ;;  %v6764_v61 = vcombine.high %v499_v56, %v500_v57  ;;  %v9550_v62 = vld [vmem:[%s13137_s9 + $0xe8] sm:$0xff] }
  0xef   : > { %7068 = vmatprep.subr.bf16.mxu0 %v8271_v15  ;;  %v501_v63 = vld [vmem:[%s9373_s11 + $0x60] sm:$0xff]  ;;  %v502_v3 = vld [vmem:[%s9373_s11 + $0x68] sm:$0xff]  ;;  %v9560_v4 = vld [vmem:[%s13137_s9 + $0xf0] sm:$0xff] }
  0xf0   : > { %v6766_v7 = vcombine.high %v501_v63, %v502_v3  ;;  %v503_v8 = vld [vmem:[%s9373_s11 + $0x70] sm:$0xff]  ;;  %v504_v10 = vld [vmem:[%s9373_s11 + $0x78] sm:$0xff]  ;;  %v6765_v13 = vcombine.low %v501_v63, %v502_v3  ;;  %v505_v15 = vld [vmem:[%s9373_s11 + $0x80] sm:$0xff] }
  0xf1   : > { %1309 = vperm.xlu0 %8134, %v9396_v1   ;;  %v9572_v11 = vld [vmem:[%s13137_s9 + $0x78] sm:$0xff]  ;;  %v6768_v14 = vcombine.high %v503_v8, %v504_v10  ;;  %v6767_v20 = vcombine.low %v503_v8, %v504_v10  ;;  %v511_v36 = vld [vmem:[%s9373_s11 + $0xb0] sm:$0xff]  ;;  %v513_v43 = vld [vmem:[%s9373_s11 + $0xc0] sm:$0xff] }
  0xf2   : > { %8131 = vset.pattern.permute.xlu1 %v9028_v12  ;;  %7069 = vmatpush3.bf16.msra.mxu0 %v8272_v17  ;;  %v506_v17 = vld [vmem:[%s9373_s11 + $0x88] sm:$0xff]  ;;  %v508_v23 = vld [vmem:[%s9373_s11 + $0x98] sm:$0xff]  ;;  %v9661_v63 = vld [vmem:[%s13137_s9 + $0xc0] sm:$0xff] }
  0xf3   : > { %1317 = vperm.xlu1 %8131, %v9429_v16   ;;  %7070 = vmatprep.subr.bf16.mxu0 %v8273_v18  ;;  %v9587_v18 = vld [vmem:[%s13137_s9 + $0x80] sm:$0xff]  ;;  %v6770_v21 = vcombine.high %v505_v15, %v506_v17  ;;  %v9604_v29 = vld [vmem:[%s13137_s9 + $0x98] sm:$0xff]  ;;  %v514_v44 = vld [vmem:[%s9373_s11 + $0xc8] sm:$0xff] }
  0xf4   : > { %v512_v37 = vld [vmem:[%s9373_s11 + $0xb8] sm:$0xff] }
  0xf5   : > { %1321 = vperm.xlu0 %8134, %v9436_v19   ;;  %v9637_v49 = vld [vmem:[%s13137_s9 + $0xb8] sm:$0xff] }
  0xf6   : > { %7071 = vmatpush3.bf16.msra.mxu0 %v8274_v22  ;;  %v507_v22 = vld [vmem:[%s9373_s11 + $0x90] sm:$0xff]  ;;  %v520_v8 = vld [vmem:[%s9373_s11 + $0xf8] sm:$0xff] }
  0xf7   : > { %8132 = vset.pattern.permute.xlu1 %v13145_v0  ;;  %7072 = vmatprep.subr.bf16.mxu0 %v8275_v24  ;;  %v6769_v24 = vcombine.low %v505_v15, %v506_v17  ;;  %v9686_v17 = vld [vmem:[%s13137_s9 + $0xd8] sm:$0xff] }
  0xf8   : > { %1130 = vperm.xlu1 %8132, %v9429_v16  }
  0xf9   : > { %1325 = vperm.xlu0 %8134, %v1015_v5   ;;  %v6763_v5 = vcombine.low %v499_v56, %v500_v57  ;;  %v517_v57 = vld [vmem:[%s9373_s11 + $0xe0] sm:$0xff] }
  0xfa   : > { %7073 = vmatpush3.bf16.msra.mxu0 %v8276_v25  ;;  %v6772_v25 = vcombine.high %v507_v22, %v508_v23 }
  0xfb   : > { %7074 = vmatprep.subr.bf16.mxu0 %v8277_v26  ;;  %v509_v26 = vld [vmem:[%s9373_s11 + $0xa0] sm:$0xff] }
  0xfc   : > { %1135 = vperm.xlu1 %8132, %v9436_v19  }
  0xfd   : > { %1337 = vperm.xlu0 %8134, %v9447_v27  }
  0xfe   : > { %7075 = vmatpush3.bf16.msra.mxu0 %v8278_v28  ;;  %v510_v28 = vld [vmem:[%s9373_s11 + $0xa8] sm:$0xff] }
 0x100   : > { %8133 = vset.pattern.permute.xlu1 %v9028_v12 }
 0x101   : > { %1341 = vperm.xlu0 %8134, %v9456_v31   ;;  %1329 = vperm.xlu1 %8133, %v9461_v32  }
 0x102   : > { %849 = vmatmul.mubr.bf16.vlgmr.msra.gmra.mrb[0].mxu0 %v6753_v33  ;;  %v6771_v33 = vcombine.low %v507_v22, %v508_v23 }
 0x103   : > { %856 = vmatprep.mubr.bf16.mxu0 %v6756_v34  ;;  %v6774_v34 = vcombine.high %v509_v26, %v510_v28 }
 0x105   : > { %1353 = vperm.xlu0 %8134, %v9469_v35   ;;  %8135 = vset.pattern.permute.xlu1 %v13145_v0 }
 0x106   : > { %1145 = vperm.xlu1 %8135, %v9461_v32  }
 0x109   : > { %1357 = vperm.xlu0 %8134, %v9476_v38  }
 0x10a   : > { %8136 = vset.pattern.permute.xlu1 %v9028_v12  ;;  %857 = vmatmul.mubr.bf16.gmra.mrb[4].mxu0 %v6755_v39  ;;  %v13147_v39 = vmov 3  }
 0x10b   : > { %1333 = vperm.xlu1 %8136, %v9484_v40   ;;  %864 = vmatprep.mubr.bf16.mxu0 %v6758_v41  ;;  %v9620_v41 = vld [vmem:[%s13137_s9 + $0xa0] sm:$0xff] }
 0x10d   : > { %1369 = vperm.xlu0 %8134, %v9489_v42  }
 0x10f   : > { %8137 = vset.pattern.permute.xlu1 %v13145_v0 }
 0x110   : > { %1150 = vperm.xlu1 %8137, %v9484_v40  }
 0x111   : > { %1373 = vperm.xlu0 %8134, %v9499_v45  }
 0x112   : > { %865 = vmatmul.mubr.bf16.gmra.mrb[8].mxu0 %v6757_v46  ;;  %v6778_v46 = vcombine.high %v513_v43, %v514_v44 }
 0x113   : > { %872 = vmatprep.mubr.bf16.mxu0 %v6760_v47  ;;  %v515_v47 = vld [vmem:[%s9373_s11 + $0xd0] sm:$0xff] }
 0x114   : > { %1155 = vperm.xlu1 %8137, %v9447_v27  }
 0x115   : > { %1385 = vperm.xlu0 %8134, %v9507_v48  }
 0x118   : > { %8138 = vset.pattern.permute.xlu1 %v9028_v12 }
 0x119   : > { %1389 = vperm.xlu0 %8134, %v9516_v51   ;;  %1345 = vperm.xlu1 %8138, %v9521_v52  }
 0x11a   : > { %873 = vmatmul.mubr.bf16.gmra.mrb[12].mxu0 %v6759_v53 }
 0x11b   : > { %880 = vmatprep.mubr.bf16.mxu0 %v6762_v54 }
 0x11d   : > { %1401 = vperm.xlu0 %8134, %v9528_v55   ;;  %8139 = vset.pattern.permute.xlu1 %v13145_v0 }
 0x11e   : > { %1165 = vperm.xlu1 %8139, %v9521_v52  }
 0x121   : > { %1405 = vperm.xlu0 %8134, %v9537_v58  }
 0x122   : > { %8140 = vset.pattern.permute.xlu1 %v9028_v12  ;;  %881 = vmatmul.mubr.bf16.gmra.mrb[16].mxu0 %v6761_v59  ;;  %v518_v59 = vld [vmem:[%s9373_s11 + $0xe8] sm:$0xff] }
 0x123   : > { %1349 = vperm.xlu1 %8140, %v9545_v60   ;;  %888 = vmatprep.mubr.bf16.mxu0 %v6764_v61  ;;  %v6781_v10 = vcombine.low %v517_v57, %v518_v59 }
 0x125   : > { %1417 = vperm.xlu0 %8134, %v9550_v62  }
 0x127   : > { %8141 = vset.pattern.permute.xlu1 %v13145_v0 }
 0x128   : > { %1170 = vperm.xlu1 %8141, %v9545_v60  }
 0x129   : > { %1421 = vperm.xlu0 %8134, %v9560_v4  }
 0x12a   : > { %889 = vmatmul.mubr.bf16.gmra.mrb[20].mxu0 %v6763_v5 }
 0x12b   : > { %896 = vmatprep.mubr.bf16.mxu0 %v6766_v7  ;;  %v519_v7 = vld [vmem:[%s9373_s11 + $0xf0] sm:$0xff] }
 0x12c   : > { %1175 = vperm.xlu1 %8141, %v9469_v35  }
 0x12d   : > { %8158 = vset.pattern.permute.xlu0 %v13145_v0 }
 0x12e   : > { %1160 = vperm.xlu0 %8158, %v9456_v31  }
 0x130   : > { %8142 = vset.pattern.permute.xlu1 %v9028_v12 }
 0x131   : > { %1361 = vperm.xlu1 %8142, %v9572_v11  }
 0x132   : > { %1180 = vperm.xlu0 %8158, %v9476_v38   ;;  %897 = vmatmul.mubr.bf16.gmra.mrb[24].mxu0 %v6765_v13  ;;  %v6784_v13 = vcombine.high %v519_v7, %v520_v8 }
 0x133   : > { %904 = vmatprep.mubr.bf16.mxu0 %v6768_v14 }
 0x135   : > { %8143 = vset.pattern.permute.xlu1 %v13145_v0 }
 0x136   : > { %1200 = vperm.xlu0 %8158, %v9499_v45   ;;  %1185 = vperm.xlu1 %8143, %v9572_v11  }
 0x13a   : > { %1220 = vperm.xlu0 %8158, %v9516_v51   ;;  %8144 = vset.pattern.permute.xlu1 %v9028_v12 }
 0x13b   : > { %905 = vmatmul.mubr.bf16.gmra.mrb[28].mxu0 %v6767_v20  ;;  %1365 = vperm.xlu1 %8144, %v9587_v18  }
 0x13c   : > { %912 = vmatprep.mubr.bf16.mxu0 %v6770_v21 }
 0x13e   : > { %1240 = vperm.xlu0 %8158, %v9537_v58  }
 0x13f   : > { %8145 = vset.pattern.permute.xlu1 %v13145_v0 }
 0x140   : > { %1190 = vperm.xlu1 %8145, %v9587_v18  }
 0x142   : > { %1260 = vperm.xlu0 %8158, %v9560_v4  }
 0x143   : > { %913 = vmatmul.mubr.bf16.gmra.mrb[32].mxu0 %v6769_v24  ;;  %v9708_v24 = vld [vmem:[%s13137_s9 + $0xe0] sm:$0xff] }
 0x144   : > { %1195 = vperm.xlu1 %8145, %v9489_v42   ;;  %920 = vmatprep.mubr.bf16.mxu0 %v6772_v25 }
 0x146   : > { %8163 = vset.pattern.permute.xlu0 %v13153_v30 }
 0x147   : > { %1846 = vperm.xlu0 %8163, %v9401_v2   ;;  %v6773_v2 = vcombine.low %v509_v26, %v510_v28 }
 0x148   : > { %8146 = vset.pattern.permute.xlu1 %v9028_v12 }
 0x149   : > { %1377 = vperm.xlu1 %8146, %v9604_v29  }
 0x14b   : > { %921 = vmatmul.mubr.bf16.gmra.mrb[36].mxu0 %v6771_v33  ;;  %1854 = vperm.xlu0 %8163, %v9396_v1   ;;  %v6776_v1 = vcombine.high %v511_v36, %v512_v37 }
 0x14c   : > { %928 = vmatprep.mubr.bf16.mxu0 %v6774_v34 }
 0x14d   : > { %8147 = vset.pattern.permute.xlu1 %v13145_v0 }
 0x14e   : > { %1205 = vperm.xlu1 %8147, %v9604_v29  }
 0x14f   : > { %8167 = vset.pattern.permute.xlu0 %v13147_v39 }
 0x150   : > { %1690 = vperm.xlu0 %8167, %v9411_v6   ;;  %v6775_v6 = vcombine.low %v511_v36, %v512_v37 }
 0x152   : > { %8148 = vset.pattern.permute.xlu1 %v9028_v12 }
 0x153   : > { %929 = vmatmul.mubr.bf16.gmra.mrb[40].mxu0 %v6773_v2  ;;  %1381 = vperm.xlu1 %8148, %v9620_v41   ;;  %v9744_v2 = vld [vmem:[%s13137_s9 + $0x30] sm:$0xff] }
 0x154   : > { %1698 = vperm.xlu0 %8167, %v9417_v9   ;;  %936 = vmatprep.mubr.bf16.mxu0 %v6776_v1  ;;  %v516_v9 = vld [vmem:[%s9373_s11 + $0xd8] sm:$0xff] }
 0x157   : > { %8149 = vset.pattern.permute.xlu1 %v13145_v0 }
 0x158   : > { %1706 = vperm.xlu0 %8167, %v9436_v19   ;;  %1210 = vperm.xlu1 %8149, %v9620_v41   ;;  %v6777_v19 = vcombine.low %v513_v43, %v514_v44  ;;  %v13149_v44 = vmov 2  }
 0x15b   : > { %937 = vmatmul.mubr.bf16.gmra.mrb[44].mxu0 %v6775_v6 }
 0x15c   : > { %1714 = vperm.xlu0 %8167, %v9461_v32   ;;  %1215 = vperm.xlu1 %8149, %v9507_v48   ;;  %v6780_v32 = vcombine.high %v515_v47, %v516_v9 }
 0x15d   : > { %944 = vmatprep.mubr.bf16.mxu0 %v6778_v46  ;;  %v9776_v46 = vld [vmem:[%s13137_s9 + $0x8] sm:$0xff] }
 0x15f   : > { %v9639_v50 = vpop.permute.xlu1 %1110  ;;  %v9641_v53 = vpop.permute.xlu0 %1120 }
 0x160   : > { %1722 = vperm.xlu0 %8167, %v9447_v27   ;;  %8150 = vset.pattern.permute.xlu1 %v9028_v12  ;;  %v6779_v27 = vcombine.low %v515_v47, %v516_v9 }
 0x161   : > { %1393 = vperm.xlu1 %8150, %v9637_v49  }
 0x163   : > { %945 = vmatmul.mubr.bf16.gmra.mrb[48].mxu0 %v6777_v19  ;;  %v9646_v54 = vpop.permute.xlu1 %1115  ;;  %v9648_v56 = vpop.permute.xlu0 %1140 }
 0x164   : > { %13377 = vst [vmem:[#allocation20_spill] sm:$0xff] %v9648_v56  ;;  %1730 = vperm.xlu0 %8167, %v9521_v52   ;;  %952 = vmatprep.mubr.bf16.mxu0 %v6780_v32  ;;  %v6782_v52 = vcombine.high %v517_v57, %v518_v59  ;;  %v9808_v57 = vld [vmem:[%s13137_s9 + $0x18] sm:$0xff] }
 0x165   : > { %8151 = vset.pattern.permute.xlu1 %v13145_v0 }
 0x166   : > { %1225 = vperm.xlu1 %8151, %v9637_v49  }
 0x168   : > { %1738 = vperm.xlu0 %8167, %v9469_v35   ;;  %v9656_v61 = vpop.permute.xlu1 %1313  ;;  %v9663_v3 = vpop.permute.xlu0 %1301 }
 0x16a   : > { %8152 = vset.pattern.permute.xlu1 %v9028_v12 }
 0x16b   : > { %953 = vmatmul.mubr.bf16.gmra.mrb[52].mxu0 %v6779_v27  ;;  %1397 = vperm.xlu1 %8152, %v9661_v63  }
 0x16c   : > { %1746 = vperm.xlu0 %8167, %v9572_v11   ;;  %960 = vmatprep.mubr.bf16.mxu0 %v6782_v52  ;;  %v9668_v5 = vpop.permute.xlu0 %1305  ;;  %v8312_v52 = vld [vmem:[%s13131_s3] sm:$0xff]  }
 0x16d   : > { %v9670_v35 = vpop.permute.xlu1 %1125 }
 0x16f   : > { %8153 = vset.pattern.permute.xlu1 %v13145_v0 }
 0x170   : > { %1754 = vperm.xlu0 %8167, %v9489_v42   ;;  %1230 = vperm.xlu1 %8153, %v9661_v63   ;;  %v9679_v15 = vpop.permute.xlu0 %1309  ;;  %v6783_v42 = vcombine.low %v519_v7, %v520_v8  ;;  %v8313_v7 = vld [vmem:[%s13131_s3 + $0xc0] sm:$0xff]  }
 0x171   : > { %7284 = vmatprep.subr.bf16.mxu0 %v8313_v7  ;;  %v8319_v7 = vld [vmem:[%s13131_s3 + $0x50] sm:$0xff]  }
 0x172   : > { %v9677_v14 = vpop.permute.xlu1 %1317 }
 0x173   : > { %961 = vmatmul.mubr.bf16.gmra.mrb[56].mxu0 %v6781_v10  ;;  %v8314_v10 = vld [vmem:[%s13131_s3 + $0x80] sm:$0xff]  }
 0x174   : > { %1762 = vperm.xlu0 %8167, %v9604_v29   ;;  %1235 = vperm.xlu1 %8153, %v9528_v55   ;;  %v9692_v21 = vpop.permute.xlu0 %1321 }
 0x175   : > { %968 = vmatprep.mubr.bf16.mxu0 %v6784_v13  ;;  %v9840_v13 = vld [vmem:[%s13137_s9 + $0x20] sm:$0xff]  ;;  %7285 = vmatpush3.bf16.msra.mxu0 %v8314_v10  ;;  %v8320_v10 = vld [vmem:[%s13131_s3 + $0x10] sm:$0xff]  }
 0x177   : > { %v9688_v20 = vpop.permute.xlu1 %1130 }
 0x178   : > { %1770 = vperm.xlu0 %8167, %v9507_v48   ;;  %8154 = vset.pattern.permute.xlu1 %v9028_v12  ;;  %v9700_v23 = vpop.permute.xlu0 %1325 }
 0x179   : > { %1409 = vperm.xlu1 %8154, %v9686_v17  }
 0x17b   : > { %969 = vmatmul.mubr.bf16.gmra.mrb[60].mxu0 %v6783_v42  ;;  %v9695_v22 = vpop.permute.xlu1 %1135  ;;  %v8315_v42 = vld [vmem:[%s13131_s3 + $0x48] sm:$0xff]  }
 0x17c   : > { %1778 = vperm.xlu0 %8167, %v9637_v49   ;;  %v9713_v25 = vpop.permute.xlu0 %1337 }
 0x17d   : > { %8155 = vset.pattern.permute.xlu1 %v13145_v0  ;;  %13378 = vst [vmem:[#allocation21_spill] sm:$0xff] %v9713_v25 }
 0x17e   : > { %1245 = vperm.xlu1 %8155, %v9686_v17  }
 0x180   : > { %1786 = vperm.xlu0 %8167, %v9528_v55   ;;  %v9703_v48 = vpop.permute.xlu1 %1329  ;;  %v9723_v55 = vld [vmem:[%s13137_s9 + $0xf8] sm:$0xff]  ;;  %v9727_v33 = vpop.permute.xlu0 %1341 }
 0x181   : > { %13381 = vst [vmem:[#allocation24_spill] sm:$0xff] %v9727_v33 }
 0x182   : > { %8156 = vset.pattern.permute.xlu1 %v9028_v12 }
 0x183   : > { %1413 = vperm.xlu1 %8156, %v9708_v24  }
 0x184   : > { %1794 = vperm.xlu0 %8167, %v9686_v17   ;;  %v9733_v36 = vpop.permute.xlu0 %1353 }
 0x185   : > { %v9715_v26 = vpop.permute.xlu1 %1145  ;;  %13383 = vst [vmem:[#allocation26_spill] sm:$0xff] %v9733_v36 }
 0x186   : > { %13379 = vst [vmem:[#allocation22_spill] sm:$0xff] %v9715_v26  ;;  %v1073_v26 = vlaneseq }
 0x187   : > { %8157 = vset.pattern.permute.xlu1 %v13145_v0 }
 0x188   : > { %1802 = vperm.xlu0 %8167, %v9550_v62   ;;  %1250 = vperm.xlu1 %8157, %v9708_v24  }
 0x18a   : > { %v9725_v28 = vpop.permute.xlu1 %1333 }
 0x18b   : > { %13380 = vst [vmem:[#allocation23_spill] sm:$0xff] %v9725_v28  ;;  %v8658_v28 = vld [vmem:[%s13137_s9 + $0x88] sm:$0xff] }
 0x18c   : > { %1810 = vperm.xlu0 %8167, %v9723_v55   ;;  %1255 = vperm.xlu1 %8157, %v9550_v62   ;;  %v9748_v62 = vpop.permute.xlu0 %1357 }
 0x18d   : > { %13385 = vst [vmem:[#allocation28_spill] sm:$0xff] %v9748_v62 }
 0x18f   : > { %v9731_v34 = vpop.permute.xlu1 %1150 }
 0x190   : > { %13382 = vst [vmem:[#allocation25_spill] sm:$0xff] %v9731_v34  ;;  %8209 = vset.pattern.permute.xlu0 %v13153_v30  ;;  %8159 = vset.pattern.permute.xlu1 %v9028_v12  ;;  %v9761_v1 = vpop.permute.xlu0 %1369 }
 0x191   : > { %1862 = vperm.xlu0 %8209, %v9429_v16   ;;  %1425 = vperm.xlu1 %8159, %v9723_v55   ;;  %v9758_v16 = vld [vmem:[%s13137_s9] sm:$0xff]  ;;  %13387 = vst [vmem:[#allocation30_spill] sm:$0xff] %v9761_v1 }
 0x193   : > { %v9739_v37 = vpop.permute.xlu1 %1155 }
 0x194   : > { %13384 = vst [vmem:[#allocation27_spill] sm:$0xff] %v9739_v37 }
 0x195   : > { %1870 = vperm.xlu0 %8209, %v9744_v2   ;;  %8160 = vset.pattern.permute.xlu1 %v13145_v0  ;;  %v8318_v0 = vld [vmem:[%s13131_s3 + $0x88] sm:$0xff]  }
 0x196   : > { %1265 = vperm.xlu1 %8160, %v9723_v55  }
 0x198   : > { %v9751_v12 = vpop.permute.xlu1 %1345 }
 0x199   : > { %13386 = vst [vmem:[#allocation29_spill] sm:$0xff] %v9751_v12  ;;  %1878 = vperm.xlu0 %8209, %v9484_v40   ;;  %v9769_v40 = vpop.permute.xlu0 %1373 }
 0x19a   : > { %8161 = vset.pattern.permute.xlu1 %v13147_v39  ;;  %13389 = vst [vmem:[#allocation32_spill] sm:$0xff] %v9769_v40 }
 0x19b   : > { %1686 = vperm.xlu1 %8161, %v9758_v16  }
 0x19d   : > { %1886 = vperm.xlu0 %8209, %v9456_v31   ;;  %v9764_v43 = vpop.permute.xlu1 %1165  ;;  %v9782_v47 = vpop.permute.xlu0 %1385 }
 0x19e   : > { %13388 = vst [vmem:[#allocation31_spill] sm:$0xff] %v9764_v43  ;;  %13392 = vst [vmem:[#allocation35_spill] sm:$0xff] %v9782_v47 }
 0x19f   : > { %8162 = vset.pattern.permute.xlu1 %v13149_v44 }
 0x1a0   : > { %1526 = vperm.xlu1 %8162, %v9758_v16  }
 0x1a1   : > { %1894 = vperm.xlu0 %8209, %v9545_v60   ;;  %v9791_v9 = vpop.permute.xlu0 %1389 }
 0x1a2   : > { %v9771_v6 = vpop.permute.xlu1 %1349  ;;  %13394 = vst [vmem:[#allocation37_spill] sm:$0xff] %v9791_v9  ;;  %v8335_v9 = vld [vmem:[%s13131_s3 + $0x70] sm:$0xff]  }
 0x1a3   : > { %13390 = vst [vmem:[#allocation33_spill] sm:$0xff] %v9771_v6 }
 0x1a4   : > { %1530 = vperm.xlu1 %8162, %v9776_v46  }
 0x1a5   : > { %1902 = vperm.xlu0 %8209, %v9476_v38   ;;  %v8642_v38 = vld [vmem:[%s13137_s9 + $0x10] sm:$0xff]  ;;  %v9800_v32 = vpop.permute.xlu0 %1401 }
 0x1a6   : > { %13396 = vst [vmem:[#allocation39_spill] sm:$0xff] %v9800_v32 }
 0x1a7   : > { %v9780_v31 = vpop.permute.xlu1 %1170 }
 0x1a8   : > { %13391 = vst [vmem:[#allocation34_spill] sm:$0xff] %v9780_v31  ;;  %8164 = vset.pattern.permute.xlu1 %v13153_v30 }
 0x1a9   : > { %1910 = vperm.xlu0 %8209, %v9587_v18   ;;  %1850 = vperm.xlu1 %8164, %v9776_v46   ;;  %v9812_v59 = vpop.permute.xlu0 %1405 }
 0x1aa   : > { %13398 = vst [vmem:[#allocation41_spill] sm:$0xff] %v9812_v59  ;;  %v13155_v59 = vmov 7  }
 0x1ab   : > { %v9787_v60 = vpop.permute.xlu1 %1175 }
 0x1ac   : > { %13393 = vst [vmem:[#allocation36_spill] sm:$0xff] %v9787_v60 }
 0x1ad   : > { %1918 = vperm.xlu0 %8209, %v9499_v45   ;;  %8165 = vset.pattern.permute.xlu1 %v13147_v39 }
 0x1ae   : > { %1694 = vperm.xlu1 %8165, %v8642_v38  }
 0x1b0   : > { %v9796_v19 = vpop.permute.xlu1 %1361 }
 0x1b1   : > { %13395 = vst [vmem:[#allocation38_spill] sm:$0xff] %v9796_v19  ;;  %1926 = vperm.xlu0 %8209, %v9620_v41  }
 0x1b2   : > { %8166 = vset.pattern.permute.xlu1 %v13149_v44 }
 0x1b3   : > { %1534 = vperm.xlu1 %8166, %v8642_v38   ;;  %v8316_v38 = vld [vmem:[%s13131_s3 + $0x8] sm:$0xff]  }
 0x1b5   : > { %1934 = vperm.xlu0 %8209, %v9516_v51   ;;  %v9803_v45 = vpop.permute.xlu1 %1185  ;;  %v8311_v51 = vld [vmem:[%s13131_s3 + $0x40] sm:$0xff]  }
 0x1b6   : > { %13397 = vst [vmem:[#allocation40_spill] sm:$0xff] %v9803_v45  ;;  %7172 = vmatprep.subr.bf16.mxu1 %v8311_v51  ;;  %v8317_v51 = vld [vmem:[%s13131_s3 + $0xc8] sm:$0xff]  }
 0x1b7   : > { %1538 = vperm.xlu1 %8166, %v9808_v57   ;;  %7173 = vmatpush3.bf16.msra.mxu1 %v8312_v52 }
 0x1b8   : > { %7174 = vmatprep.subr.bf16.mxu1 %v8315_v42  ;;  %7286 = vmatprep.subr.bf16.mxu0 %v8317_v51  ;;  %v8321_v42 = vld [vmem:[%s13131_s3 + $0xd0] sm:$0xff]   ;;  %v13151_v51 = vmov 8  }
 0x1b9   : > { %1942 = vperm.xlu0 %8209, %v9661_v63   ;;  %7287 = vmatpush3.bf16.msra.mxu0 %v8318_v0  ;;  %v9884_v0 = vld [vmem:[%s13137_s9 + $0x28] sm:$0xff] }
 0x1ba   : > { %v9814_v27 = vpop.permute.xlu1 %1365  ;;  %7288 = vmatprep.subr.bf16.mxu0 %v8321_v42 }
 0x1bb   : > { %13399 = vst [vmem:[#allocation42_spill] sm:$0xff] %v9814_v27  ;;  %8168 = vset.pattern.permute.xlu1 %v13153_v30  ;;  %7175 = vmatpush3.bf16.msra.mxu1 %v8316_v38  ;;  %v8327_v30 = vld [vmem:[%s13131_s3 + $0x60] sm:$0xff]  }
 0x1bc   : > { %1858 = vperm.xlu1 %8168, %v9808_v57   ;;  %7176 = vmatprep.subr.bf16.mxu1 %v8319_v7  ;;  %v8324_v7 = vld [vmem:[%s13131_s3 + $0x18] sm:$0xff]  }
 0x1bd   : > { %1950 = vperm.xlu0 %8209, %v9537_v58   ;;  %v9833_v58 = vpop.permute.xlu0 %1417 }
 0x1be   : > { %13401 = vst [vmem:[#allocation44_spill] sm:$0xff] %v9833_v58 }
 0x1bf   : > { %v9828_v8 = vpop.permute.xlu1 %1190  ;;  %7177 = vmatpush3.bf16.msra.mxu1 %v8320_v10  ;;  %v8325_v10 = vld [vmem:[%s13131_s3 + $0xd8] sm:$0xff]  }
 0x1c0   : > { %13400 = vst [vmem:[#allocation43_spill] sm:$0xff] %v9828_v8  ;;  %8169 = vset.pattern.permute.xlu1 %v13147_v39  ;;  %v13413_v8 = vmov 2  }
 0x1c1   : > { %1958 = vperm.xlu0 %8209, %v9708_v24   ;;  %1702 = vperm.xlu1 %8169, %v9840_v13   ;;  %v9862_v39 = vpop.permute.xlu0 %1421 }
 0x1c2   : > { %13403 = vst [vmem:[#allocation46_spill] sm:$0xff] %v9862_v39  ;;  %v13407_v39 = vmov 5  }
 0x1c3   : > { %v9852_v52 = vpop.permute.xlu1 %1195 }
 0x1c4   : > { %13402 = vst [vmem:[#allocation45_spill] sm:$0xff] %v9852_v52 }
 0x1c5   : > { %1966 = vperm.xlu0 %8209, %v9560_v4   ;;  %8170 = vset.pattern.permute.xlu1 %v13149_v44  ;;  %v8322_v4 = vld [vmem:[%s13131_s3 + $0x90] sm:$0xff]   ;;  %v8323_v44 = vld [vmem:[%s13131_s3 + $0x58] sm:$0xff]   ;;  %v9896_v42 = vpop.permute.xlu0 %1160 }
 0x1c6   : > { %1542 = vperm.xlu1 %8170, %v9840_v13   ;;  %7289 = vmatpush3.bf16.msra.mxu0 %v8322_v4  ;;  %13405 = vst [vmem:[#allocation48_spill] sm:$0xff] %v9896_v42  ;;  %v8329_v4 = vld [vmem:[%s13131_s3 + $0xe0] sm:$0xff]  }
 0x1c7   : > { %7178 = vmatprep.subr.bf16.mxu1 %v8323_v44  ;;  %7290 = vmatprep.subr.bf16.mxu0 %v8325_v10  ;;  %v8328_v44 = vld [vmem:[%s13131_s3 + $0x20] sm:$0xff]   ;;  %v8331_v10 = vld [vmem:[%s13131_s3 + $0x68] sm:$0xff]  }
 0x1c8   : > { %v9874_v38 = vpop.permute.xlu1 %1377  ;;  %7179 = vmatpush3.bf16.msra.mxu1 %v8324_v7  ;;  %v8330_v7 = vld [vmem:[%s13131_s3 + $0xa0] sm:$0xff]  }
 0x1c9   : > { %13404 = vst [vmem:[#allocation47_spill] sm:$0xff] %v9874_v38  ;;  %8214 = vset.pattern.permute.xlu0 %v13151_v51  ;;  %7180 = vmatprep.subr.bf16.mxu1 %v8327_v30  ;;  %v9918_v58 = vpop.permute.xlu0 %1180  ;;  %v8332_v30 = vld [vmem:[%s13131_s3 + $0x28] sm:$0xff]   ;;  %v8338_v38 = vld [vmem:[%s13131_s3 + $0xb0] sm:$0xff]  }
 0x1ca   : > { %2326 = vperm.xlu0 %8214, %v9758_v16   ;;  %1546 = vperm.xlu1 %8170, %v9884_v0   ;;  %v8326_v16 = vld [vmem:[%s13131_s3 + $0x98] sm:$0xff]   ;;  %13408 = vst [vmem:[#allocation50_spill] sm:$0xff] %v9918_v58 }
 0x1cb   : > { %7291 = vmatpush3.bf16.msra.mxu0 %v8326_v16  ;;  %v8333_v16 = vld [vmem:[%s13131_s3 + $0xe8] sm:$0xff]  }
 0x1cc   : > { %7292 = vmatprep.subr.bf16.mxu0 %v8329_v4  ;;  %7181 = vmatpush3.bf16.msra.mxu1 %v8328_v44  ;;  %v13410_v44 = vmov 3   ;;  %v8334_v4 = vld [vmem:[%s13131_s3 + $0xa8] sm:$0xff]  }
 0x1cd   : > { %v9898_v51 = vpop.permute.xlu1 %1205  ;;  %7182 = vmatprep.subr.bf16.mxu1 %v8331_v10 }
 0x1ce   : > { %13406 = vst [vmem:[#allocation49_spill] sm:$0xff] %v9898_v51  ;;  %2338 = vperm.xlu0 %8214, %v9808_v57   ;;  %8171 = vset.pattern.permute.xlu1 %v13407_v39  ;;  %v9949_v51 = vpop.permute.xlu0 %1200 }
 0x1cf   : > { %1866 = vperm.xlu1 %8171, %v9884_v0   ;;  %7293 = vmatpush3.bf16.msra.mxu0 %v8330_v7  ;;  %v8337_v7 = vld [vmem:[%s13131_s3 + $0xf0] sm:$0xff]   ;;  %13412 = vst [vmem:[#allocation53_spill] sm:$0xff] %v9949_v51 }
 0x1d0   : > { %7294 = vmatprep.subr.bf16.mxu0 %v8333_v16  ;;  %7183 = vmatpush3.bf16.msra.mxu1 %v8332_v30 }
 0x1d1   : > { %7184 = vmatprep.subr.bf16.mxu1 %v8335_v9  ;;  %v8341_v9 = vld [vmem:[%s13131_s3 + $0xf8] sm:$0xff]  }
 0x1d2   : > { %8216 = vset.pattern.permute.xlu0 %v13155_v59  ;;  %v9921_v32 = vpop.permute.xlu1 %1381 }
 0x1d3   : > { %13409 = vst [vmem:[#allocation51_spill] sm:$0xff] %v9921_v32  ;;  %2170 = vperm.xlu0 %8216, %v9776_v46   ;;  %8172 = vset.pattern.permute.xlu1 %v13410_v44  ;;  %v8336_v46 = vld [vmem:[%s13131_s3 + $0x30] sm:$0xff]  }
 0x1d4   : > { %1710 = vperm.xlu1 %8172, %v9744_v2   ;;  %7295 = vmatpush3.bf16.msra.mxu0 %v8334_v4  ;;  %v8342_v4 = vld [vmem:[%s13131_s3 + $0xb8] sm:$0xff]  }
 0x1d5   : > { %v7076_v59 = vpop.f32.mrb[0].mxu0  ;;  %7296 = vmatprep.subr.bf16.mxu0 %v8337_v7  ;;  %7185 = vmatpush3.bf16.msra.mxu1 %v8336_v46  ;;  %v8646_v7 = vld [vmem:[%s13137_s9 + $0x38] sm:$0xff] }
 0x1d6   : > { %v7077_v32 = vpop.f32.mrb[1].mxu0 }
 0x1d7   : > { %v9944_v47 = vadd.f32 %v7077_v32, %v7076_v59  ;;  %2178 = vperm.xlu0 %8216, %v9808_v57   ;;  %v9947_v10 = vpop.permute.xlu1 %1210  ;;  %v7079_v16 = vpop.f32.mrb[2].mxu0  ;;  %v8339_v32 = vld [vmem:[%s13131_s3 + $0x78] sm:$0xff]  }
 0x1d8   : > { %13411 = vst [vmem:[#allocation52_spill] sm:$0xff] %v9947_v10  ;;  %8173 = vset.pattern.permute.xlu1 %v13413_v8  ;;  %v7080_v30 = vpop.f32.mrb[3].mxu0  ;;  %v8340_v57 = vld [vmem:[%s13131_s3 + $0x38] sm:$0xff]   ;;  %7186 = vmatprep.subr.bf16.mxu1 %v8339_v32 }
 0x1d9   : > { %v9955_v40 = vadd.f32 %v7080_v30, %v7079_v16  ;;  %1550 = vperm.xlu1 %8173, %v9744_v2   ;;  %7297 = vmatpush3.bf16.msra.mxu0 %v8338_v38  ;;  %v9976_v16 = vpop.permute.xlu0 %1220 }
 0x1da   : > { %7298 = vmatprep.subr.bf16.mxu0 %v8341_v9  ;;  %13415 = vst [vmem:[#allocation55_spill] sm:$0xff] %v9976_v16  ;;  %7187 = vmatpush3.bf16.msra.mxu1 %v8340_v57  ;;  %v9989_v9 = vld [vmem:[%s13137_s9 + $0x58] sm:$0xff] }
 0x1db   : > { %2182 = vperm.xlu0 %8216, %v9840_v13   ;;  %v9968_v59 = vpop.permute.xlu1 %1215 }
 0x1dc   : > { %13414 = vst [vmem:[#allocation54_spill] sm:$0xff] %v9968_v59 }
 0x1dd   : > { %1554 = vperm.xlu1 %8173, %v8646_v7   ;;  %v7082_v46 = vpop.f32.mrb[4].mxu0  ;;  %7299 = vmatpush3.bf16.msra.mxu0 %v8342_v4  ;;  %v9992_v57 = vpop.permute.xlu0 %1240 }
 0x1de   : > { %v7083_v30 = vpop.f32.mrb[5].mxu0  ;;  %13417 = vst [vmem:[#allocation57_spill] sm:$0xff] %v9992_v57 }
 0x1df   : > { %v9978_v10 = vadd.f32 %v7083_v30, %v7082_v46  ;;  %2190 = vperm.xlu0 %8216, %v9744_v2   ;;  %v7085_v38 = vpop.f32.mrb[6].mxu0  ;;  %v13157_v30 = vmov 6  }
 0x1e0   : > { %v9981_v32 = vpop.permute.xlu1 %1393  ;;  %v7086_v59 = vpop.f32.mrb[7].mxu0 }
 0x1e1   : > { %13416 = vst [vmem:[#allocation56_spill] sm:$0xff] %v9981_v32  ;;  %v9983_v51 = vadd.f32 %v7086_v59, %v7085_v38  ;;  %8174 = vset.pattern.permute.xlu1 %v13407_v39  ;;  %v8648_v38 = vld [vmem:[%s13137_s9 + $0x40] sm:$0xff] }
 0x1e2   : > { %1874 = vperm.xlu1 %8174, %v8646_v7  }
 0x1e3   : > { %2210 = vperm.xlu0 %8216, %v9989_v9  }
 0x1e5   : > { %v9994_v2 = vpop.permute.xlu1 %1225  ;;  %v7088_v46 = vpop.f32.mrb[8].mxu0 }
 0x1e6   : > { %13418 = vst [vmem:[#allocation58_spill] sm:$0xff] %v9994_v2  ;;  %8175 = vset.pattern.permute.xlu1 %v13410_v44  ;;  %v7089_v4 = vpop.f32.mrb[9].mxu0  ;;  %v10006_v2 = vpop.permute.xlu0 %1260 }
 0x1e7   : > { %v9997_v59 = vadd.f32 %v7089_v4, %v7088_v46  ;;  %8228 = vset.pattern.permute.xlu0 %v13157_v30  ;;  %1718 = vperm.xlu1 %8175, %v8648_v38   ;;  %v7091_v16 = vpop.f32.mrb[10].mxu0  ;;  %13419 = vst [vmem:[#allocation59_spill] sm:$0xff] %v10006_v2 }
 0x1e8   : > { %2022 = vperm.xlu0 %8228, %v9840_v13   ;;  %v7092_v57 = vpop.f32.mrb[11].mxu0  ;;  %v8649_v13 = vld [vmem:[%s13137_s9 + $0x48] sm:$0xff] }
 0x1e9   : > { %v10004_v32 = vadd.f32 %v7092_v57, %v7091_v16 }
 0x1ea   : > { %v10008_v52 = vpop.permute.xlu1 %1397  ;;  %v10015_v45 = vpop.permute.xlu0 %1846 }
 0x1eb   : > { %13420 = vst [vmem:[#allocation60_spill] sm:$0xff] %v10008_v52  ;;  %8176 = vset.pattern.permute.xlu1 %v13413_v8  ;;  %13422 = vst [vmem:[#allocation62_spill] sm:$0xff] %v10015_v45 }
 0x1ec   : > { %2034 = vperm.xlu0 %8228, %v8646_v7   ;;  %1558 = vperm.xlu1 %8176, %v8648_v38  }
 0x1ed   : > { %v7094_v46 = vpop.f32.mrb[12].mxu0 }
 0x1ee   : > { %v7095_v4 = vpop.f32.mrb[13].mxu0  ;;  %v10031_v45 = vpop.permute.xlu0 %1854 }
 0x1ef   : > { %v10011_v30 = vadd.f32 %v7095_v4, %v7094_v46  ;;  %v10013_v27 = vpop.permute.xlu1 %1230  ;;  %v7097_v1 = vpop.f32.mrb[14].mxu0  ;;  %v10027_v46 = vld [vmem:[%s13137_s9 + $0x60] sm:$0xff]  ;;  %13424 = vst [vmem:[#allocation64_spill] sm:$0xff] %v10031_v45 }
 0x1f0   : > { %13421 = vst [vmem:[#allocation61_spill] sm:$0xff] %v10013_v27  ;;  %2038 = vperm.xlu0 %8228, %v8648_v38   ;;  %1562 = vperm.xlu1 %8176, %v8649_v13   ;;  %v7098_v16 = vpop.f32.mrb[15].mxu0 }
 0x1f1   : > { %v10020_v57 = vadd.f32 %v7098_v16, %v7097_v1 }
 0x1f2   : > { %v10044_v58 = vpop.permute.xlu0 %1690 }
 0x1f3   : > { %v10022_v7 = vpop.permute.xlu1 %1235 }
 0x1f4   : > { %13423 = vst [vmem:[#allocation63_spill] sm:$0xff] %v10022_v7  ;;  %2054 = vperm.xlu0 %8228, %v10027_v46   ;;  %8177 = vset.pattern.permute.xlu1 %v13407_v39 }
 0x1f5   : > { %1882 = vperm.xlu1 %8177, %v8649_v13   ;;  %v7100_v4 = vpop.f32.mrb[16].mxu0  ;;  %v8651_v13 = vld [vmem:[%s13137_s9 + $0x50] sm:$0xff] }
 0x1f6   : > { %v7101_v2 = vpop.f32.mrb[17].mxu0  ;;  %v10058_v62 = vpop.permute.xlu0 %1698 }
 0x1f7   : > { %v10033_v27 = vadd.f32 %v7101_v2, %v7100_v4  ;;  %v7103_v1 = vpop.f32.mrb[18].mxu0 }
 0x1f8   : > { %2066 = vperm.xlu0 %8228, %v9572_v11   ;;  %v10036_v16 = vpop.permute.xlu1 %1409  ;;  %v7104_v7 = vpop.f32.mrb[19].mxu0 }
 0x1f9   : > { %13425 = vst [vmem:[#allocation65_spill] sm:$0xff] %v10036_v16  ;;  %v10038_v52 = vadd.f32 %v7104_v7, %v7103_v1  ;;  %8178 = vset.pattern.permute.xlu1 %v13410_v44  ;;  %v13428_v1 = vmov 8  }
 0x1fa   : > { %1726 = vperm.xlu1 %8178, %v8651_v13  }
 0x1fc   : > { %2070 = vperm.xlu0 %8228, %v9587_v18  }
 0x1fd   : > { %v10047_v2 = vpop.permute.xlu1 %1245  ;;  %v7106_v4 = vpop.f32.mrb[20].mxu0 }
 0x1fe   : > { %13426 = vst [vmem:[#allocation66_spill] sm:$0xff] %v10047_v2  ;;  %8179 = vset.pattern.permute.xlu1 %v13413_v8  ;;  %v7107_v11 = vpop.f32.mrb[21].mxu0 }
 0x1ff   : > { %v10050_v45 = vadd.f32 %v7107_v11, %v7106_v4  ;;  %1566 = vperm.xlu1 %8179, %v8651_v13   ;;  %v7109_v7 = vpop.f32.mrb[22].mxu0 }
 0x200   : > { %8236 = vset.pattern.permute.xlu0 %v13428_v1  ;;  %v7110_v16 = vpop.f32.mrb[23].mxu0 }
 0x201   : > { %13427 = vst [vmem:[#allocation67_spill] sm:$0xff] %v10050_v45  ;;  %v10053_v31 = vadd.f32 %v7110_v16, %v7109_v7  ;;  %2346 = vperm.xlu0 %8236, %v9884_v0   ;;  %v10067_v0 = vpop.permute.xlu0 %1706 }
 0x202   : > { %v10056_v19 = vpop.permute.xlu1 %1413 }
 0x203   : > { %13429 = vst [vmem:[#allocation68_spill] sm:$0xff] %v10053_v31  ;;  %13430 = vst [vmem:[#allocation69_spill] sm:$0xff] %v10056_v19  ;;  %1570 = vperm.xlu1 %8179, %v9989_v9  }
 0x205   : > { %2358 = vperm.xlu0 %8236, %v8648_v38   ;;  %v7112_v2 = vpop.f32.mrb[24].mxu0 }
 0x206   : > { %v7113_v60 = vpop.f32.mrb[25].mxu0 }
 0x207   : > { %v10061_v4 = vadd.f32 %v7113_v60, %v7112_v2  ;;  %8180 = vset.pattern.permute.xlu1 %v13407_v39  ;;  %v10064_v13 = vpop.permute.xlu1 %1250  ;;  %v7115_v11 = vpop.f32.mrb[26].mxu0  ;;  %v8652_v60 = vld [vmem:[%s13137_s9 + $0x68] sm:$0xff] }
 0x208   : > { %13432 = vst [vmem:[#allocation71_spill] sm:$0xff] %v10064_v13  ;;  %1890 = vperm.xlu1 %8180, %v9989_v9   ;;  %v7116_v16 = vpop.f32.mrb[27].mxu0  ;;  %v10079_v2 = vpop.permute.xlu0 %1714 }
 0x209   : > { %13431 = vst [vmem:[#allocation70_spill] sm:$0xff] %v10061_v4  ;;  %v10069_v7 = vadd.f32 %v7116_v16, %v7115_v11  ;;  %2370 = vperm.xlu0 %8236, %v9989_v9  }
 0x20b   : > { %13433 = vst [vmem:[#allocation72_spill] sm:$0xff] %v10069_v7  ;;  %v10072_v19 = vpop.permute.xlu1 %1255 }
 0x20c   : > { %13434 = vst [vmem:[#allocation73_spill] sm:$0xff] %v10072_v19  ;;  %8181 = vset.pattern.permute.xlu1 %v13410_v44  ;;  %v10090_v36 = vpop.permute.xlu0 %1722 }
 0x20d   : > { %2378 = vperm.xlu0 %8236, %v8652_v60   ;;  %1734 = vperm.xlu1 %8181, %v10027_v46   ;;  %13438 = vst [vmem:[#allocation77_spill] sm:$0xff] %v10090_v36 }
 0x20e   : > { %v7118_v38 = vpop.f32.mrb[28].mxu0 }
 0x20f   : > { %v7119_v13 = vpop.f32.mrb[29].mxu0 }
 0x210   : > { %v10081_v6 = vadd.f32 %v7119_v13, %v7118_v38  ;;  %v7121_v11 = vpop.f32.mrb[30].mxu0  ;;  %v10083_v16 = vpop.permute.xlu1 %1425 }
 0x211   : > { %13436 = vst [vmem:[#allocation75_spill] sm:$0xff] %v10083_v16  ;;  %v7122_v9 = vpop.f32.mrb[31].mxu0  ;;  %2390 = vperm.xlu0 %8236, %v9587_v18   ;;  %8182 = vset.pattern.permute.xlu1 %v13413_v8  ;;  %v10100_v18 = vld [vmem:[%s13137_s9 + $0xa8] sm:$0xff] }
 0x212   : > { %13435 = vst [vmem:[#allocation74_spill] sm:$0xff] %v10081_v6  ;;  %v10087_v19 = vadd.f32 %v7122_v9, %v7121_v11  ;;  %1574 = vperm.xlu1 %8182, %v10027_v46  }
 0x214   : > { %13437 = vst [vmem:[#allocation76_spill] sm:$0xff] %v10087_v19 }
 0x215   : > { %2402 = vperm.xlu0 %8236, %v9604_v29   ;;  %v10093_v43 = vpop.permute.xlu1 %1265 }
 0x216   : > { %13439 = vst [vmem:[#allocation78_spill] sm:$0xff] %v10093_v43  ;;  %v7124_v13 = vpop.f32.mrb[32].mxu0  ;;  %1578 = vperm.xlu1 %8182, %v8652_v60   ;;  %v10108_v43 = vpop.permute.xlu0 %1730 }
 0x217   : > { %v7125_v38 = vpop.f32.mrb[33].mxu0  ;;  %13442 = vst [vmem:[#allocation81_spill] sm:$0xff] %v10108_v43 }
 0x218   : > { %v10095_v6 = vadd.f32 %v7125_v38, %v7124_v13  ;;  %v7127_v16 = vpop.f32.mrb[34].mxu0  ;;  %v13443_v13 = vmov 7  }
 0x219   : > { %v7128_v42 = vpop.f32.mrb[35].mxu0  ;;  %2410 = vperm.xlu0 %8236, %v10100_v18  }
 0x21a   : > { %13440 = vst [vmem:[#allocation79_spill] sm:$0xff] %v10095_v6  ;;  %v10103_v11 = vadd.f32 %v7128_v42, %v7127_v16  ;;  %8183 = vset.pattern.permute.xlu1 %v13407_v39  ;;  %v10106_v9 = vpop.permute.xlu1 %1686  ;;  %v8654_v16 = vld [vmem:[%s13137_s9 + $0x70] sm:$0xff] }
 0x21b   : > { %1898 = vperm.xlu1 %8183, %v8652_v60  }
 0x21c   : > { %13441 = vst [vmem:[#allocation80_spill] sm:$0xff] %v10103_v11  ;;  %v10120_v11 = vpop.permute.xlu0 %1738 }
 0x21d   : > { %8244 = vset.pattern.permute.xlu0 %v13443_v13  ;;  %13445 = vst [vmem:[#allocation83_spill] sm:$0xff] %v10120_v11 }
 0x21e   : > { %v7130_v38 = vpop.f32.mrb[36].mxu0  ;;  %2214 = vperm.xlu0 %8244, %v10027_v46  }
 0x21f   : > { %v7131_v6 = vpop.f32.mrb[37].mxu0  ;;  %8184 = vset.pattern.permute.xlu1 %v13410_v44  ;;  %v10113_v19 = vpop.permute.xlu1 %1526 }
 0x220   : > { %v10115_v7 = vadd.f32 %v7131_v6, %v7130_v38  ;;  %v7133_v42 = vpop.f32.mrb[38].mxu0  ;;  %1742 = vperm.xlu1 %8184, %v8654_v16   ;;  %v10128_v6 = vpop.permute.xlu0 %1746 }
 0x221   : > { %v7134_v60 = vpop.f32.mrb[39].mxu0  ;;  %13447 = vst [vmem:[#allocation85_spill] sm:$0xff] %v10128_v6 }
 0x222   : > { %13444 = vst [vmem:[#allocation82_spill] sm:$0xff] %v10115_v7  ;;  %v10122_v4 = vadd.f32 %v7134_v60, %v7133_v42  ;;  %2222 = vperm.xlu0 %8244, %v8654_v16   ;;  %v8655_v42 = vld [vmem:[%s13137_s9 + $0x78] sm:$0xff] }
 0x223   : > { %v10124_v46 = vpop.permute.xlu1 %1530 }
 0x224   : > { %13446 = vst [vmem:[#allocation84_spill] sm:$0xff] %v10122_v4  ;;  %8185 = vset.pattern.permute.xlu1 %v13413_v8  ;;  %v8657_v4 = vld [vmem:[%s13137_s9 + $0x80] sm:$0xff] }
 0x225   : > { %1582 = vperm.xlu1 %8185, %v8654_v16   ;;  %v10140_v16 = vpop.permute.xlu0 %1754 }
 0x226   : > { %v7136_v34 = vpop.f32.mrb[40].mxu0  ;;  %2242 = vperm.xlu0 %8244, %v9604_v29   ;;  %13451 = vst [vmem:[#allocation89_spill] sm:$0xff] %v10140_v16 }
 0x227   : > { %v7137_v38 = vpop.f32.mrb[41].mxu0 }
 0x228   : > { %v10130_v7 = vadd.f32 %v7137_v38, %v7136_v34  ;;  %v7139_v43 = vpop.f32.mrb[42].mxu0  ;;  %v10132_v12 = vpop.permute.xlu1 %1850  ;;  %v10148_v38 = vld [vmem:[%s13137_s9 + $0xb0] sm:$0xff] }
 0x229   : > { %13449 = vst [vmem:[#allocation87_spill] sm:$0xff] %v10132_v12  ;;  %v7140_v11 = vpop.f32.mrb[43].mxu0  ;;  %1586 = vperm.xlu1 %8185, %v8655_v42   ;;  %13452 = vst [vmem:[#allocation90_spill] sm:$0xff] %v10148_v38  ;;  %v10159_v6 = vpop.permute.xlu0 %1762 }
 0x22a   : > { %13448 = vst [vmem:[#allocation86_spill] sm:$0xff] %v10130_v7  ;;  %v10137_v60 = vadd.f32 %v7140_v11, %v7139_v43  ;;  %2246 = vperm.xlu0 %8244, %v9620_v41   ;;  %13455 = vst [vmem:[#allocation93_spill] sm:$0xff] %v10159_v6 }
 0x22c   : > { %13450 = vst [vmem:[#allocation88_spill] sm:$0xff] %v10137_v60 }
 0x22d   : > { %8186 = vset.pattern.permute.xlu1 %v13407_v39  ;;  %v10143_v29 = vpop.permute.xlu1 %1694  ;;  %v10171_v6 = vpop.permute.xlu0 %1770 }
 0x22e   : > { %v7142_v34 = vpop.f32.mrb[44].mxu0  ;;  %2254 = vperm.xlu0 %8244, %v10148_v38   ;;  %1906 = vperm.xlu1 %8186, %v8655_v42   ;;  %13458 = vst [vmem:[#allocation95_spill] sm:$0xff] %v10171_v6  ;;  %v10198_v6 = vld [vmem:[#allocation7] ss:$0 sm:$0xff] }
 0x22f   : > { %v7143_v12 = vpop.f32.mrb[45].mxu0 }
 0x230   : > { %v10151_v43 = vadd.f32 %v7143_v12, %v7142_v34  ;;  %v7145_v11 = vpop.f32.mrb[46].mxu0  ;;  %v13456_v12 = vmov 6  }
 0x231   : > { %v7146_v60 = vpop.f32.mrb[47].mxu0  ;;  %v10181_v25 = vpop.permute.xlu0 %1778 }
 0x232   : > { %13453 = vst [vmem:[#allocation91_spill] sm:$0xff] %v10151_v43  ;;  %v10153_v7 = vadd.f32 %v7146_v60, %v7145_v11  ;;  %2274 = vperm.xlu0 %8244, %v9686_v17   ;;  %8187 = vset.pattern.permute.xlu1 %v13410_v44  ;;  %v10157_v16 = vpop.permute.xlu1 %1534  ;;  %13461 = vst [vmem:[#allocation98_spill] sm:$0xff] %v10181_v25 }
 0x233   : > { %1750 = vperm.xlu1 %8187, %v8657_v4  }
 0x234   : > { %13454 = vst [vmem:[#allocation92_spill] sm:$0xff] %v10153_v7 }
 0x236   : > { %v7148_v42 = vpop.f32.mrb[48].mxu0  ;;  %8251 = vset.pattern.permute.xlu0 %v13456_v12  ;;  %v10165_v34 = vpop.permute.xlu1 %1538 }
 0x237   : > { %v7149_v60 = vpop.f32.mrb[49].mxu0  ;;  %2086 = vperm.xlu0 %8251, %v9620_v41   ;;  %8188 = vset.pattern.permute.xlu1 %v13413_v8 }
 0x238   : > { %v10169_v11 = vadd.f32 %v7149_v60, %v7148_v42  ;;  %v7151_v43 = vpop.f32.mrb[50].mxu0  ;;  %1590 = vperm.xlu1 %8188, %v8657_v4   ;;  %v8343_v4 = vld [vmem:[%s13131_s3 + $0x140] sm:$0xff]  }
 0x239   : > { %v7152_v7 = vpop.f32.mrb[51].mxu0  ;;  %7396 = vmatprep.subr.bf16.mxu1 %v8343_v4 }
 0x23a   : > { %13457 = vst [vmem:[#allocation94_spill] sm:$0xff] %v10169_v11  ;;  %v10173_v33 = vadd.f32 %v7152_v7, %v7151_v43  ;;  %v859_v11 = vadd.f32 %v9978_v10, %v10198_v6 }
 0x23b   : > { %2098 = vperm.xlu0 %8251, %v9637_v49   ;;  %v10176_v37 = vpop.permute.xlu1 %1858 }
 0x23c   : > { %13459 = vst [vmem:[#allocation96_spill] sm:$0xff] %v10173_v33  ;;  %13460 = vst [vmem:[#allocation97_spill] sm:$0xff] %v10176_v37  ;;  %1594 = vperm.xlu1 %8188, %v8658_v28  }
 0x23e   : > { %v7154_v36 = vpop.f32.mrb[52].mxu0 }
 0x23f   : > { %v7155_v42 = vpop.f32.mrb[53].mxu0  ;;  %2102 = vperm.xlu0 %8251, %v9661_v63  }
 0x240   : > { %v10187_v7 = vadd.f32 %v7155_v42, %v7154_v36  ;;  %v7157_v49 = vpop.f32.mrb[54].mxu0  ;;  %8189 = vset.pattern.permute.xlu1 %v13407_v39  ;;  %v10190_v43 = vpop.permute.xlu1 %1702 }
 0x241   : > { %v7158_v60 = vpop.f32.mrb[55].mxu0  ;;  %1914 = vperm.xlu1 %8189, %v8658_v28   ;;  %v10200_v36 = vpop.permute.xlu0 %1786 }
 0x242   : > { %13462 = vst [vmem:[#allocation99_spill] sm:$0xff] %v10187_v7  ;;  %v10192_v37 = vadd.f32 %v7158_v60, %v7157_v49  ;;  %13464 = vst [vmem:[#allocation101_spill] sm:$0xff] %v10200_v36  ;;  %v8659_v7 = vld [vmem:[%s13137_s9 + $0x90] sm:$0xff]  ;;  %v851_v60 = vadd.f32 %v9944_v47, %v10198_v6  ;;  %v854_v36 = vadd.f32 %v9955_v40, %v10198_v6 }
 0x243   : > { %2118 = vperm.xlu0 %8251, %v9708_v24  }
 0x244   : > { %13463 = vst [vmem:[#allocation100_spill] sm:$0xff] %v10192_v37  ;;  %v10223_v47 = vmax.f32 %v851_v60, 0.0  ;;  %v10225_v40 = vmax.f32 %v854_v36, 0.0 }
 0x245   : > { %8190 = vset.pattern.permute.xlu1 %v13410_v44  ;;  %v10196_v25 = vpop.permute.xlu1 %1542 }
 0x246   : > { %v7160_v42 = vpop.f32.mrb[56].mxu0  ;;  %1758 = vperm.xlu1 %8190, %v8659_v7   ;;  %13467 = vst [vmem:[#allocation104_spill] sm:$0xff] %v10223_v47  ;;  %13468 = vst [vmem:[#allocation105_spill] sm:$0xff] %v10225_v40 }
 0x247   : > { %v7161_v28 = vpop.f32.mrb[57].mxu0  ;;  %8254 = vset.pattern.permute.xlu0 %v13428_v1  ;;  %v10229_v1 = vshrl.u32 %v1073_v26, 7  ;;  %v10242_v26 = vld [vmem:[%s13137_s9 + $0xe8] sm:$0xff] }
 0x248   : > { %v10206_v4 = vadd.f32 %v7161_v28, %v7160_v42  ;;  %v7163_v49 = vpop.f32.mrb[58].mxu0  ;;  %2422 = vperm.xlu0 %8254, %v9661_v63   ;;  %v862_v42 = vadd.f32 %v9983_v51, %v10198_v6  ;;  %v10220_v63 = vpop.permute.xlu0 %1794  ;;  %v10227_v28 = vmax.f32 %v859_v11, 0.0  ;;  %13471 = vst [vmem:[#allocation108_spill] sm:$0xff] %v10242_v26  ;;  %v1042_v11 = vrot.slane %v10225_v40, 7 }
 0x249   : > { %v7164_v37 = vpop.f32.mrb[59].mxu0  ;;  %v10213_v33 = vpop.permute.xlu1 %1546  ;;  %13466 = vst [vmem:[#allocation103_spill] sm:$0xff] %v10220_v63  ;;  %13469 = vst [vmem:[#allocation106_spill] sm:$0xff] %v10229_v1  ;;  %vm1075_vm0 = vcmp.lt.s32.totalorder %v10229_v1, 1  ;;  %vm1492_vm1 = vcmp.lt.s32.totalorder %v10229_v1, 7 }
 0x24a   : > { %13465 = vst [vmem:[#allocation102_spill] sm:$0xff] %v10206_v4  ;;  %v7165_v56 = vadd.f32 %v7164_v37, %v7163_v49  ;;  %8191 = vset.pattern.permute.xlu1 %v13413_v8  ;;  %v10233_v49 = vmax.f32 %v862_v42, 0.0 }
 0x24b   : > { %1598 = vperm.xlu1 %8191, %v8659_v7  }
 0x24c   : > { %2434 = vperm.xlu0 %8254, %v9686_v17   ;;  %v966_v51 = vadd.f32 %v7165_v56, %v10198_v6  ;;  %v8660_v17 = vld [vmem:[%s13137_s9 + $0x98] sm:$0xff]  ;;  %v1041_v56 = vrot.slane %v10223_v47, 7  ;;  %v10247_v63 = vpop.permute.xlu0 %1802  ;;  %v13164_v4 = vrot.slane %v10233_v49, 7 }
 0x24d   : > { %13472 = vst [vmem:[#allocation109_spill] sm:$0xff] %v10247_v63 }
 0x24e   : > { %v7166_v10 = vpop.f32.mrb[60].mxu0  ;;  %v10231_v37 = vpop.permute.xlu1 %1866  ;;  %v10254_v31 = vmax.f32 %v966_v51, 0.0  ;;  %v867_v51 = vadd.f32 %v9997_v59, %v10198_v6 }
 0x24f   : > { %13470 = vst [vmem:[#allocation107_spill] sm:$0xff] %v10231_v37  ;;  %v7167_v7 = vpop.f32.mrb[61].mxu0  ;;  %1602 = vperm.xlu1 %8191, %v8660_v17   ;;  %v1043_v37 = vrot.slane %v10227_v28, 7 }
 0x250   : > { %v7168_v60 = vadd.f32 %v7167_v7, %v7166_v10  ;;  %v7169_v36 = vpop.f32.mrb[62].mxu0  ;;  %2442 = vperm.xlu0 %8254, %v10242_v26   ;;  %13473 = vst [vmem:[#allocation110_spill] sm:$0xff] %v10254_v31 }
 0x251   : > { %v7170_v42 = vpop.f32.mrb[63].mxu0 }
 0x252   : > { %v971_v10 = vadd.f32 %v7168_v60, %v10198_v6  ;;  %v7171_v7 = vadd.f32 %v7170_v42, %v7169_v36  ;;  %v10266_v60 = vmul.f32 %v9679_v15, %v10223_v47  ;;  %v870_v36 = vadd.f32 %v10004_v32, %v10198_v6 }
 0x253   : > { %8192 = vset.pattern.permute.xlu1 %v13407_v39  ;;  %v10257_v26 = vpop.permute.xlu1 %1710  ;;  %v10275_v42 = vsel %vm1075_vm0, %v1041_v56, %v1042_v11 }
 0x254   : > { %v10260_v63 = vmax.f32 %v971_v10, 0.0  ;;  %v974_v38 = vadd.f32 %v7171_v7, %v10198_v6  ;;  %8257 = vset.pattern.permute.xlu0 %v13443_v13  ;;  %1922 = vperm.xlu1 %8192, %v8660_v17   ;;  %13475 = vst [vmem:[#allocation112_spill] sm:$0xff] %v10275_v42  ;;  %v1431_v10 = vmul.f32 %v9656_v61, %v10225_v40  ;;  %v10309_v61 = vmax.f32 %v867_v51, 0.0 }
 0x255   : > { %2278 = vperm.xlu0 %8257, %v9708_v24   ;;  %v10281_v17 = vsel %vm1075_vm0, %v1042_v11, %v1043_v37  ;;  %v1814_v32 = vmul.f32 %v10044_v58, %v10275_v42  ;;  %v10293_v24 = vsel %vm1075_vm0, %v1043_v37, %v13164_v4  ;;  %v10311_v7 = vmax.f32 %v870_v36, 0.0 }
 0x256   : > { %13474 = vst [vmem:[#allocation111_spill] sm:$0xff] %v10260_v63  ;;  %13476 = vst [vmem:[#allocation113_spill] sm:$0xff] %v10281_v17  ;;  %v10283_v15 = vmax.f32 %v974_v38, 0.0  ;;  %v1428_v59 = vmul.f32 %v9663_v3, %v10260_v63  ;;  %v1071_v11 = vrot.slane %v10260_v63, 7  ;;  %v10298_v38 = vpop.permute.xlu0 %1810  ;;  %v1816_v3 = vmul.f32 %v10058_v62, %v10293_v24  ;;  %v10318_v62 = vld [vmem:[%s13137_s9 + $0xf0] sm:$0xff] }
 0x257   : > { %13478 = vst [vmem:[#allocation115_spill] sm:$0xff] %v10293_v24  ;;  %13479 = vst [vmem:[#allocation116_spill] sm:$0xff] %v10298_v38  ;;  %v1815_v38 = vmul.f32 %v10143_v29, %v10281_v17 }
 0x258   : > { %13477 = vst [vmem:[#allocation114_spill] sm:$0xff] %v10283_v15  ;;  %v1491_v45 = vrot.slane %v10283_v15, 1  ;;  %8193 = vset.pattern.permute.xlu1 %v13410_v44  ;;  %v10304_v58 = vpop.permute.xlu1 %1550  ;;  %v1429_v37 = vmul.f32 %v9668_v5, %v10283_v15  ;;  %v1072_v4 = vrot.slane %v10283_v15, 7  ;;  %v13480_v5 = vrot.slane %v10254_v31, 7 }
 0x259   : > { %2286 = vperm.xlu0 %8257, %v10318_v62   ;;  %1766 = vperm.xlu1 %8193, %v9620_v41  }
 0x25a   : > { %v10326_v51 = vsel %vm1075_vm0, %v13480_v5, %v1071_v11  ;;  %v2486_v36 = vpack.c.bf16 %v1429_v37, %v1428_v59  ;;  %v10330_v15 = vsel %vm1075_vm0, %v1071_v11, %v1072_v4  ;;  %v10336_v13 = vsel %vm1075_vm0, %v1072_v4, %v1041_v56 }
 0x25b   : > { %13481 = vst [vmem:[#allocation117_spill] sm:$0xff] %v10326_v51  ;;  %13482 = vst [vmem:[#allocation118_spill] sm:$0xff] %v10330_v15  ;;  %v1268_v29 = vmul.f32 %v9639_v50, %v10326_v51  ;;  %v1269_v41 = vmul.f32 %v9646_v54, %v10330_v15  ;;  %v1813_v31 = vmul.f32 %v10106_v9, %v10336_v13  ;;  %v13484_v5 = vrot.slane %v10260_v63, 1 }
 0x25c   : > { %13483 = vst [vmem:[#allocation119_spill] sm:$0xff] %v10336_v13  ;;  %v13486_v11 = vrot.slane %v10223_v47, 1  ;;  %v1461_v4 = vrot.slane %v10225_v40, 1  ;;  %v10355_v56 = vpop.permute.xlu1 %1554  ;;  %3244 = vmatprep.mubr.bf16.mxu1 %v2486_v36  ;;  %v2495_v54 = vpack.c.bf16 %v1431_v10, %v10266_v60  ;;  %v13172_v63 = vrot.slane %v10227_v28, 1  ;;  %v8344_v60 = vld [vmem:[%s13131_s3 + $0x100] sm:$0xff]   ;;  %v10372_v10 = vpop.permute.xlu0 %1862 }
 0x25d   : > { %v10346_v59 = vsel %vm1492_vm1, %v13484_v5, %v1491_v45  ;;  %v875_v5 = vadd.f32 %v10011_v30, %v10198_v6  ;;  %8260 = vset.pattern.permute.xlu0 %v13456_v12  ;;  %8194 = vset.pattern.permute.xlu1 %v13413_v8  ;;  %v1046_v30 = vrot.slane %v10311_v7, 7  ;;  %v8663_v36 = vld [vmem:[%s13137_s9 + $0xa0] sm:$0xff] }
 0x25e   : > { %13485 = vst [vmem:[#allocation120_spill] sm:$0xff] %v10346_v59  ;;  %v10352_v50 = vsel %vm1492_vm1, %v1491_v45, %v13486_v11  ;;  %v1653_v9 = vmul.f32 %v10113_v19, %v10346_v59  ;;  %v2485_v45 = vpack.c.bf16 %v1269_v41, %v1268_v29  ;;  %v2488_v11 = vpack.c.bf16 %v1814_v32, %v1813_v31  ;;  %v8345_v32 = vld [vmem:[%s13131_s3 + $0x148] sm:$0xff]  }
 0x25f   : > { %13487 = vst [vmem:[#allocation121_spill] sm:$0xff] %v10352_v50  ;;  %v1654_v37 = vmul.f32 %v10124_v46, %v10352_v50  ;;  %v878_v19 = vadd.f32 %v10020_v57, %v10198_v6  ;;  %v1045_v46 = vrot.slane %v10309_v61, 7  ;;  %2130 = vperm.xlu0 %8260, %v9723_v55   ;;  %1606 = vperm.xlu1 %8194, %v8663_v36   ;;  %v13488_v57 = vrot.slane %v10223_v47, 1 }
 0x260   : > { %v2497_v29 = vpack.c.bf16 %v1816_v3, %v1815_v38  ;;  %3245 = vmatmul.mubr.bf16.vlgmr.msra.gmra.mrb[0].mxu1 %v2485_v45  ;;  %3405 = vmatprep.mubr.bf16.mxu0 %v2488_v11  ;;  %v10389_v55 = vmax.f32 %v875_v5, 0.0  ;;  %v1270_v3 = vmul.f32 %v9641_v53, %v10336_v13  ;;  %v13492_v11 = vrot.slane %v10233_v49, 7  ;;  %v8664_v13 = vld [vmem:[%s13137_s9 + $0xb8] sm:$0xff] }
 0x261   : > { %v2487_v31 = vpack.c.bf16 %v1654_v37, %v1653_v9  ;;  %v10387_v41 = vsel %vm1492_vm1, %v13488_v57, %v1461_v4  ;;  %3252 = vmatprep.mubr.bf16.mxu1 %v2495_v54  ;;  %v10395_v9 = vsel %vm1492_vm1, %v1461_v4, %v13172_v63  ;;  %v10397_v38 = vpop.permute.xlu1 %1874  ;;  %v1433_v37 = vmul.f32 %v9692_v21, %v10233_v49  ;;  %v8346_v54 = vld [vmem:[%s13131_s3 + $0x108] sm:$0xff]   ;;  %v8347_v21 = vld [vmem:[%s13131_s3 + $0x150] sm:$0xff]  }
 0x262   : > { %13489 = vst [vmem:[#allocation122_spill] sm:$0xff] %v10387_v41  ;;  %13490 = vst [vmem:[#allocation123_spill] sm:$0xff] %v10395_v9  ;;  %7397 = vmatpush3.bf16.msra.mxu1 %v8344_v60  ;;  %v10406_v5 = vmax.f32 %v878_v19, 0.0  ;;  %v1656_v4 = vmul.f32 %v10165_v34, %v10395_v9  ;;  %v10412_v45 = vsel %vm1075_vm0, %v1045_v46, %v1046_v30  ;;  %v13494_v36 = vmov 0  }
 0x263   : > { %3406 = vmatmul.mubr.bf16.vlgmr.msra.gmra.mrb[64].mxu0 %v2487_v31  ;;  %13491 = vst [vmem:[#allocation124_spill] sm:$0xff] %v10412_v45  ;;  %v10418_v53 = vsel %vm1075_vm0, %v13492_v11, %v1045_v46  ;;  %1610 = vperm.xlu1 %8194, %v10100_v18   ;;  %v1818_v60 = vmul.f32 %v10067_v0, %v10412_v45 }
 0x264   : > { %3413 = vmatprep.mubr.bf16.mxu0 %v2497_v29  ;;  %13493 = vst [vmem:[#allocation125_spill] sm:$0xff] %v10418_v53  ;;  %7398 = vmatprep.subr.bf16.mxu1 %v8345_v32  ;;  %v1817_v34 = vmul.f32 %v10190_v43, %v10418_v53  ;;  %v1271_v19 = vmul.f32 %v9670_v35, %v10275_v42  ;;  %v1463_v32 = vrot.slane %v10233_v49, 1  ;;  %v1047_v43 = vrot.slane %v10389_v55, 7  ;;  %v8348_v35 = vld [vmem:[%s13131_s3 + $0x110] sm:$0xff]  }
 0x265   : > { %v1432_v46 = vmul.f32 %v9677_v14, %v10227_v28  ;;  %8262 = vset.pattern.permute.xlu0 %v13494_v36  ;;  %v1655_v31 = vmul.f32 %v10157_v16, %v10387_v41  ;;  %v883_v14 = vadd.f32 %v10033_v27, %v10198_v6  ;;  %v886_v0 = vadd.f32 %v10038_v52, %v10198_v6 }
 0x266   : > { %v2494_v57 = vpack.c.bf16 %v1271_v19, %v1270_v3  ;;  %7399 = vmatpush3.bf16.msra.mxu1 %v8346_v54  ;;  %v1048_v63 = vrot.slane %v10406_v5, 7  ;;  %v10447_v29 = vpop.permute.xlu1 %1718  ;;  %v8349_v3 = vld [vmem:[%s13131_s3 + $0x158] sm:$0xff]   ;;  %v1272_v27 = vmul.f32 %v9688_v20, %v10281_v17  ;;  %v1273_v52 = vmul.f32 %v9695_v22, %v10293_v24 }
 0x267   : > { %v2504_v11 = vpack.c.bf16 %v1433_v37, %v1432_v46  ;;  %v2496_v16 = vpack.c.bf16 %v1656_v4, %v1655_v31  ;;  %8195 = vset.pattern.permute.xlu1 %v13407_v39  ;;  %7400 = vmatprep.subr.bf16.mxu1 %v8347_v21  ;;  %v2506_v37 = vpack.c.bf16 %v1818_v60, %v1817_v34  ;;  %v13495_v4 = vrot.slane %v10309_v61, 1  ;;  %v8350_v22 = vld [vmem:[%s13131_s3 + $0x118] sm:$0xff]  }
 0x268   : > { %3253 = vmatmul.mubr.bf16.gmra.mrb[4].mxu1 %v2494_v57  ;;  %1930 = vperm.xlu1 %8195, %v10100_v18   ;;  %v1434_v54 = vmul.f32 %v9700_v23, %v10309_v61  ;;  %v10467_v18 = vsel %vm1075_vm0, %v1046_v30, %v1047_v43  ;;  %v1435_v20 = vmul.f32 %v9703_v48, %v10311_v7  ;;  %v10474_v23 = vmax.f32 %v883_v14, 0.0  ;;  %v8351_v48 = vld [vmem:[%s13131_s3 + $0x160] sm:$0xff]  }
 0x269   : > { %3260 = vmatprep.mubr.bf16.mxu1 %v2504_v11  ;;  %v10463_v21 = vsel %vm1492_vm1, %v1463_v32, %v13495_v4  ;;  %13496 = vst [vmem:[#allocation126_spill] sm:$0xff] %v10467_v18  ;;  %v10476_v34 = vmax.f32 %v886_v0, 0.0  ;;  %v10482_v30 = vsel %vm1075_vm0, %v1047_v43, %v1048_v63  ;;  %v13500_v19 = vrot.slane %v10227_v28, 1  ;;  %v13501_v11 = vld [vmem:[#allocation90_spill] sm:$0xff]  ;;  %v13502_v14 = vld [vmem:[#allocation67_spill] sm:$0xff]  ;;  %v13503_v0 = vld [vmem:[#allocation68_spill] sm:$0xff] }
 0x26a   : > { %7401 = vmatpush3.bf16.msra.mxu1 %v8348_v35  ;;  %13497 = vst [vmem:[#allocation127_spill] sm:$0xff] %v10474_v23  ;;  %v1658_v60 = vmul.f32 %v10213_v33, %v10463_v21  ;;  %13499 = vst [vmem:[#allocation129_spill] sm:$0xff] %v10482_v30  ;;  %v1819_v31 = vmul.f32 %v10257_v26, %v10467_v18  ;;  %v1820_v33 = vmul.f32 %v10079_v2, %v10482_v30 }
 0x26b   : > { %3414 = vmatmul.mubr.bf16.gmra.mrb[68].mxu0 %v2496_v16  ;;  %13498 = vst [vmem:[#allocation128_spill] sm:$0xff] %v10476_v34  ;;  %7402 = vmatprep.subr.bf16.mxu1 %v8349_v3  ;;  %v10491_v46 = vsel %vm1492_vm1, %v13500_v19, %v1463_v32  ;;  %v10498_v43 = vpop.permute.xlu1 %1558  ;;  %v2503_v35 = vpack.c.bf16 %v1273_v52, %v1272_v27  ;;  %v1465_v26 = vrot.slane %v10311_v7, 1  ;;  %v13173_v2 = vrot.slane %v10389_v55, 1  ;;  %v8352_v27 = vld [vmem:[%s13131_s3 + $0x120] sm:$0xff]  }
 0x26c   : > { %3421 = vmatprep.mubr.bf16.mxu0 %v2506_v37  ;;  %8196 = vset.pattern.permute.xlu1 %v13410_v44  ;;  %v1657_v57 = vmul.f32 %v10196_v25, %v10491_v46  ;;  %v891_v32 = vadd.f32 %v13502_v14, %v10198_v6  ;;  %v894_v16 = vadd.f32 %v13503_v0, %v10198_v6  ;;  %v1049_v37 = vrot.slane %v10474_v23, 7  ;;  %v8353_v14 = vld [vmem:[%s13131_s3 + $0x168] sm:$0xff]  }
 0x26d   : > { %1774 = vperm.xlu1 %8196, %v13501_v11   ;;  %v1050_v4 = vrot.slane %v10476_v34, 7  ;;  %v2513_v25 = vpack.c.bf16 %v1435_v20, %v1434_v54  ;;  %v2515_v52 = vpack.c.bf16 %v1820_v33, %v1819_v31  ;;  %v10529_v31 = vsel %vm1492_vm1, %v1465_v26, %v13173_v2  ;;  %v13508_v33 = vld [vmem:[#allocation21_spill] sm:$0xff] }
 0x26e   : > { %7403 = vmatpush3.bf16.msra.mxu1 %v8350_v22  ;;  %v2505_v3 = vpack.c.bf16 %v1658_v60, %v1657_v57  ;;  %v13504_v22 = vld [vmem:[#allocation20_spill] sm:$0xff]  ;;  %v13505_v57 = vld [vmem:[#allocation22_spill] sm:$0xff]  ;;  %v10521_v20 = vmax.f32 %v891_v32, 0.0  ;;  %v1660_v0 = vmul.f32 %v10355_v56, %v10529_v31 }
 0x26f   : > { %7404 = vmatprep.subr.bf16.mxu1 %v8351_v48  ;;  %v1563_v19 = vpop.permute.xlu1 %1562  ;;  %v1274_v60 = vmul.f32 %v13504_v22, %v10418_v53  ;;  %v1275_v54 = vmul.f32 %v13505_v57, %v10412_v45  ;;  %v10523_v48 = vmax.f32 %v894_v16, 0.0  ;;  %v10538_v32 = vsel %vm1075_vm0, %v1049_v37, %v1050_v4  ;;  %v13512_v22 = vld [vmem:[#allocation77_spill] sm:$0xff]  ;;  %v13513_v57 = vld [vmem:[#allocation23_spill] sm:$0xff]  ;;  %v13546_v53 = vld [vmem:[#allocation50_spill] sm:$0xff] }
 0x270   : > { %3261 = vmatmul.mubr.bf16.gmra.mrb[8].mxu1 %v2503_v35  ;;  %13506 = vst [vmem:[#allocation90_spill] sm:$0xff] %v10521_v20  ;;  %v1437_v35 = vmul.f32 %v13508_v33, %v10406_v5  ;;  %13509 = vst [vmem:[#allocation68_spill] sm:$0xff] %v10538_v32  ;;  %v10542_v16 = vsel %vm1075_vm0, %v1048_v63, %v1049_v37  ;;  %v1822_v63 = vmul.f32 %v13512_v22, %v10538_v32 }
 0x271   : > { %3268 = vmatprep.mubr.bf16.mxu1 %v2513_v25  ;;  %13507 = vst [vmem:[#allocation67_spill] sm:$0xff] %v10523_v48  ;;  %8197 = vset.pattern.permute.xlu1 %v13413_v8  ;;  %13510 = vst [vmem:[#allocation20_spill] sm:$0xff] %v10542_v16  ;;  %v13511_v25 = vrot.slane %v10309_v61, 1  ;;  %v1051_v33 = vrot.slane %v10521_v20, 7  ;;  %v1467_v22 = vrot.slane %v10406_v5, 1 }
 0x272   : > { %1614 = vperm.xlu1 %8197, %v13501_v11   ;;  %7405 = vmatpush3.bf16.msra.mxu1 %v8352_v27  ;;  %v8355_v11 = vld [vmem:[%s13131_s3 + $0x170] sm:$0xff]  }
 0x273   : > { %3422 = vmatmul.mubr.bf16.gmra.mrb[72].mxu0 %v2505_v3  ;;  %v8354_v3 = vld [vmem:[%s13131_s3 + $0x128] sm:$0xff]   ;;  %v10552_v56 = vsel %vm1492_vm1, %v13511_v25, %v1465_v26  ;;  %7406 = vmatprep.subr.bf16.mxu1 %v8353_v14  ;;  %v1436_v26 = vmul.f32 %v13513_v57, %v10389_v55  ;;  %v2512_v25 = vpack.c.bf16 %v1275_v54, %v1274_v60  ;;  %v1468_v14 = vrot.slane %v10474_v23, 1  ;;  %v8356_v57 = vld [vmem:[%s13131_s3 + $0x130] sm:$0xff]   ;;  %v8357_v60 = vld [vmem:[%s13131_s3 + $0x178] sm:$0xff]  }
 0x274   : > { %3429 = vmatprep.mubr.bf16.mxu0 %v2515_v52  ;;  %v1821_v52 = vmul.f32 %v10447_v29, %v10542_v16  ;;  %v1659_v37 = vmul.f32 %v10304_v58, %v10552_v56  ;;  %v10563_v27 = vpop.permute.xlu1 %1882  ;;  %v13176_v29 = vrot.slane %v10523_v48, 7  ;;  %v13514_v54 = vld [vmem:[#allocation27_spill] sm:$0xff] }
 0x275   : > { %v2522_v58 = vpack.c.bf16 %v1437_v35, %v1436_v26  ;;  %v10584_v35 = vsel %vm1075_vm0, %v1050_v4, %v1051_v33  ;;  %v10598_v26 = vsel %vm1492_vm1, %v1467_v22, %v1468_v14  ;;  %v13519_v4 = vld [vmem:[#allocation81_spill] sm:$0xff] }
 0x276   : > { %v2514_v2 = vpack.c.bf16 %v1660_v0, %v1659_v37  ;;  %1618 = vperm.xlu1 %8197, %v8664_v13   ;;  %7407 = vmatpush3.bf16.msra.mxu1 %v8354_v3  ;;  %v2524_v42 = vpack.c.bf16 %v1822_v63, %v1821_v52  ;;  %v1277_v0 = vmul.f32 %v13514_v54, %v10482_v30  ;;  %v13517_v63 = vld [vmem:[#allocation24_spill] sm:$0xff]  ;;  %v13520_v54 = vld [vmem:[#allocation25_spill] sm:$0xff] }
 0x277   : > { %7408 = vmatprep.subr.bf16.mxu1 %v8355_v11  ;;  %13515 = vst [vmem:[#allocation22_spill] sm:$0xff] %v10584_v35  ;;  %v10590_v52 = vsel %vm1075_vm0, %v1051_v33, %v13176_v29  ;;  %v1438_v11 = vmul.f32 %v13517_v63, %v10474_v23  ;;  %v8358_v33 = vld [vmem:[%s13131_s3 + $0x138] sm:$0xff]   ;;  %v1276_v63 = vmul.f32 %v13520_v54, %v10467_v18  ;;  %v13523_v30 = vld [vmem:[#allocation72_spill] sm:$0xff] }
 0x278   : > { %3269 = vmatmul.mubr.bf16.gmra.mrb[12].mxu1 %v2512_v25  ;;  %13516 = vst [vmem:[#allocation21_spill] sm:$0xff] %v10590_v52  ;;  %v1824_v25 = vmul.f32 %v13519_v4, %v10590_v52  ;;  %v1469_v4 = vrot.slane %v10476_v34, 1  ;;  %v902_v54 = vadd.f32 %v13523_v30, %v10198_v6  ;;  %v13525_v30 = vld [vmem:[#allocation48_spill] sm:$0xff] }
 0x279   : > { %3276 = vmatprep.mubr.bf16.mxu1 %v2522_v58  ;;  %v1727_v3 = vpop.permute.xlu1 %1726  ;;  %v1662_v58 = vmul.f32 %v1563_v19, %v10598_v26  ;;  %v2521_v29 = vpack.c.bf16 %v1277_v0, %v1276_v63  ;;  %v13522_v19 = vld [vmem:[#allocation70_spill] sm:$0xff] }
 0x27a   : > { %8198 = vset.pattern.permute.xlu1 %v13407_v39  ;;  %7409 = vmatpush3.bf16.msra.mxu1 %v8356_v57  ;;  %v10630_v0 = vsel %vm1492_vm1, %v1468_v14, %v1469_v4 }
 0x27b   : > { %3430 = vmatmul.mubr.bf16.gmra.mrb[76].mxu0 %v2514_v2  ;;  %v13518_v2 = vld [vmem:[#allocation29_spill] sm:$0xff]  ;;  %1938 = vperm.xlu1 %8198, %v8664_v13   ;;  %v899_v13 = vadd.f32 %v13522_v19, %v10198_v6  ;;  %13524 = vst [vmem:[#allocation77_spill] sm:$0xff] %v10630_v0 }
 0x27c   : > { %3437 = vmatprep.mubr.bf16.mxu0 %v2524_v42  ;;  %v1439_v37 = vmul.f32 %v13518_v2, %v10476_v34  ;;  %v1823_v42 = vmul.f32 %v1727_v3, %v10584_v35  ;;  %7410 = vmatprep.subr.bf16.mxu1 %v8357_v60  ;;  %v13521_v2 = vrot.slane %v10389_v55, 1  ;;  %v13180_v60 = vrot.slane %v10521_v20, 1 }
 0x27e   : > { %v10614_v3 = vsel %vm1492_vm1, %v13521_v2, %v1467_v22  ;;  %v2531_v36 = vpack.c.bf16 %v1439_v37, %v1438_v11  ;;  %v2533_v18 = vpack.c.bf16 %v1824_v25, %v1823_v42  ;;  %v1567_v45 = vpop.permute.xlu1 %1566  ;;  %7411 = vmatpush3.bf16.msra.mxu1 %v8358_v33  ;;  %v1278_v11 = vmul.f32 %v13525_v30, %v10542_v16  ;;  %v13526_v37 = vld [vmem:[#allocation31_spill] sm:$0xff]  ;;  %v13530_v33 = vld [vmem:[#allocation26_spill] sm:$0xff] }
 0x27f   : > { %v1661_v57 = vmul.f32 %v10498_v43, %v10614_v3  ;;  %8199 = vset.pattern.permute.xlu1 %v13410_v44  ;;  %v8665_v43 = vld [vmem:[%s13137_s9 + $0xc0] sm:$0xff]  ;;  %v1279_v42 = vmul.f32 %v13526_v37, %v10538_v32  ;;  %v10636_v25 = vmax.f32 %v899_v13, 0.0  ;;  %v1663_v63 = vmul.f32 %v1567_v45, %v10630_v0 }
 0x280   : > { %3277 = vmatmul.mubr.bf16.gmra.mrb[16].mxu1 %v2521_v29  ;;  %1782 = vperm.xlu1 %8199, %v8665_v43   ;;  %v10638_v29 = vmax.f32 %v902_v54, 0.0  ;;  %v13533_v45 = vld [vmem:[#allocation76_spill] sm:$0xff] }
 0x281   : > { %v2523_v22 = vpack.c.bf16 %v1662_v58, %v1661_v57  ;;  %3284 = vmatprep.mubr.bf16.mxu1 %v2531_v36  ;;  %13527 = vst [vmem:[#allocation23_spill] sm:$0xff] %v10636_v25  ;;  %v10644_v36 = vsel %vm1492_vm1, %v1469_v4, %v13180_v60  ;;  %v1441_v58 = vmul.f32 %v13530_v33, %v10523_v48  ;;  %v13531_v57 = vld [vmem:[#allocation33_spill] sm:$0xff]  ;;  %v13536_v33 = vld [vmem:[#allocation28_spill] sm:$0xff]  ;;  %v13541_v60 = vrot.slane %v10523_v48, 7 }
 0x282   : > { %13528 = vst [vmem:[#allocation27_spill] sm:$0xff] %v10638_v29  ;;  %13529 = vst [vmem:[#allocation24_spill] sm:$0xff] %v10644_v36  ;;  %v1571_v14 = vpop.permute.xlu1 %1570  ;;  %v1440_v19 = vmul.f32 %v13531_v57, %v10521_v20  ;;  %v2530_v54 = vpack.c.bf16 %v1279_v42, %v1278_v11  ;;  %v1054_v4 = vrot.slane %v10638_v29, 7  ;;  %v910_v37 = vadd.f32 %v13533_v45, %v10198_v6  ;;  %v13538_v57 = vld [vmem:[#allocation74_spill] sm:$0xff] }
 0x283   : > { %3438 = vmatmul.mubr.bf16.gmra.mrb[80].mxu0 %v2523_v22  ;;  %v1664_v2 = vmul.f32 %v1571_v14, %v10644_v36  ;;  %v8666_v14 = vld [vmem:[%s13137_s9 + $0xc8] sm:$0xff] }
 0x284   : > { %3445 = vmatprep.mubr.bf16.mxu0 %v2533_v18  ;;  %8200 = vset.pattern.permute.xlu1 %v13413_v8  ;;  %v2540_v22 = vpack.c.bf16 %v1441_v58, %v1440_v19  ;;  %v1053_v18 = vrot.slane %v10636_v25, 7  ;;  %v1442_v58 = vmul.f32 %v13536_v33, %v10636_v25  ;;  %v907_v19 = vadd.f32 %v13538_v57, %v10198_v6 }
 0x285   : > { %v2532_v13 = vpack.c.bf16 %v1664_v2, %v1663_v63  ;;  %1622 = vperm.xlu1 %8200, %v8665_v43   ;;  %v13534_v43 = vld [vmem:[#allocation36_spill] sm:$0xff]  ;;  %v13537_v63 = vld [vmem:[#allocation38_spill] sm:$0xff]  ;;  %v10684_v33 = vmax.f32 %v910_v37, 0.0 }
 0x286   : > { %v1281_v11 = vmul.f32 %v13534_v43, %v10590_v52  ;;  %v10666_v42 = vsel %vm1075_vm0, %v1053_v18, %v1054_v4  ;;  %v1443_v2 = vmul.f32 %v13537_v63, %v10638_v29  ;;  %v10682_v52 = vsel %vm1075_vm0, %v13541_v60, %v1053_v18  ;;  %v13545_v60 = vld [vmem:[#allocation79_spill] sm:$0xff] }
 0x287   : > { %v10655_v30 = vpop.permute.xlu1 %1890  ;;  %13535 = vst [vmem:[#allocation81_spill] sm:$0xff] %v10666_v42  ;;  %13542 = vst [vmem:[#allocation25_spill] sm:$0xff] %v10682_v52  ;;  %v915_v18 = vadd.f32 %v13545_v60, %v10198_v6 }
 0x288   : > { %3285 = vmatmul.mubr.bf16.gmra.mrb[20].mxu1 %v2530_v54  ;;  %13532 = vst [vmem:[#allocation29_spill] sm:$0xff] %v10655_v30  ;;  %13543 = vst [vmem:[#allocation70_spill] sm:$0xff] %v10684_v33  ;;  %v2549_v16 = vpack.c.bf16 %v1443_v2, %v1442_v58  ;;  %v13548_v58 = vld [vmem:[#allocation30_spill] sm:$0xff] }
 0x289   : > { %3292 = vmatprep.mubr.bf16.mxu1 %v2540_v22  ;;  %1626 = vperm.xlu1 %8200, %v8666_v14   ;;  %v13540_v22 = vld [vmem:[#allocation34_spill] sm:$0xff]  ;;  %v1445_v2 = vmul.f32 %v13548_v58, %v10684_v33 }
 0x28a   : > { %v1280_v45 = vmul.f32 %v13540_v22, %v10584_v35  ;;  %v1471_v22 = vrot.slane %v10523_v48, 1  ;;  %v13190_v35 = vrot.slane %v10636_v25, 1 }
 0x28b   : > { %3446 = vmatmul.mubr.bf16.gmra.mrb[84].mxu0 %v2532_v13  ;;  %v13539_v13 = vld [vmem:[#allocation83_spill] sm:$0xff] }
 0x28c   : > { %v1826_v54 = vmul.f32 %v13539_v13, %v10666_v42  ;;  %v1735_v43 = vpop.permute.xlu1 %1734  ;;  %v2539_v57 = vpack.c.bf16 %v1281_v11, %v1280_v45  ;;  %v10688_v13 = vmax.f32 %v907_v19, 0.0  ;;  %v13549_v19 = vld [vmem:[#allocation80_spill] sm:$0xff]  ;;  %v10722_v58 = vsel %vm1492_vm1, %v1471_v22, %v13190_v35 }
 0x28d   : > { %8201 = vset.pattern.permute.xlu1 %v13407_v39  ;;  %v1825_v63 = vmul.f32 %v1735_v43, %v10682_v52  ;;  %v1282_v43 = vmul.f32 %v13546_v53, %v10682_v52  ;;  %v13550_v53 = vld [vmem:[#allocation42_spill] sm:$0xff]  ;;  %13553 = vst [vmem:[#allocation31_spill] sm:$0xff] %v10722_v58 }
 0x28e   : > { %1946 = vperm.xlu1 %8201, %v8666_v14   ;;  %13544 = vst [vmem:[#allocation72_spill] sm:$0xff] %v10688_v13  ;;  %v13547_v14 = vld [vmem:[#allocation40_spill] sm:$0xff]  ;;  %v1444_v45 = vmul.f32 %v13550_v53, %v10688_v13  ;;  %v1055_v60 = vrot.slane %v10688_v13, 7 }
 0x28f   : > { %v2542_v32 = vpack.c.bf16 %v1826_v54, %v1825_v63  ;;  %v1283_v11 = vmul.f32 %v13547_v14, %v10666_v42  ;;  %v918_v54 = vadd.f32 %v13549_v19, %v10198_v6  ;;  %v13551_v63 = vrot.slane %v10521_v20, 1 }
 0x290   : > { %3293 = vmatmul.mubr.bf16.gmra.mrb[24].mxu1 %v2539_v57  ;;  %v10716_v14 = vmax.f32 %v915_v18, 0.0  ;;  %v2558_v52 = vpack.c.bf16 %v1445_v2, %v1444_v45  ;;  %v13558_v2 = vld [vmem:[#allocation84_spill] sm:$0xff] }
 0x291   : > { %3300 = vmatprep.mubr.bf16.mxu1 %v2549_v16  ;;  %v1575_v37 = vpop.permute.xlu1 %1574  ;;  %3453 = vmatprep.mubr.bf16.mxu0 %v2542_v32  ;;  %v1056_v16 = vrot.slane %v10684_v33, 7  ;;  %v8667_v32 = vld [vmem:[%s13137_s9 + $0xd0] sm:$0xff]  ;;  %v10713_v57 = vsel %vm1492_vm1, %v13551_v63, %v1471_v22  ;;  %v2548_v42 = vpack.c.bf16 %v1283_v11, %v1282_v43  ;;  %v10724_v53 = vmax.f32 %v918_v54, 0.0 }
 0x292   : > { %8202 = vset.pattern.permute.xlu1 %v13410_v44  ;;  %13552 = vst [vmem:[#allocation48_spill] sm:$0xff] %v10713_v57  ;;  %v1665_v24 = vmul.f32 %v1575_v37, %v10713_v57  ;;  %v10735_v22 = vsel %vm1075_vm0, %v1054_v4, %v1055_v60  ;;  %v1057_v43 = vrot.slane %v10716_v14, 7  ;;  %v13557_v37 = vld [vmem:[#allocation45_spill] sm:$0xff]  ;;  %v926_v54 = vadd.f32 %v13558_v2, %v10198_v6  ;;  %v8668_v2 = vld [vmem:[%s13137_s9 + $0xd8] sm:$0xff] }
 0x293   : > { %1790 = vperm.xlu1 %8202, %v8667_v32   ;;  %13554 = vst [vmem:[#allocation26_spill] sm:$0xff] %v10724_v53  ;;  %v10730_v17 = vsel %vm1075_vm0, %v1055_v60, %v1056_v16  ;;  %13556 = vst [vmem:[#allocation76_spill] sm:$0xff] %v10735_v22  ;;  %v1058_v45 = vrot.slane %v10724_v53, 7 }
 0x294   : > { %13555 = vst [vmem:[#allocation33_spill] sm:$0xff] %v10730_v17  ;;  %v1285_v11 = vmul.f32 %v13557_v37, %v10730_v17  ;;  %v10758_v50 = vmax.f32 %v926_v54, 0.0  ;;  %v13567_v54 = vld [vmem:[#allocation86_spill] sm:$0xff] }
 0x295   : > { %v1579_v19 = vpop.permute.xlu1 %1578 }
 0x296   : > { %v1666_v63 = vmul.f32 %v1579_v19, %v10722_v58 }
 0x297   : > { %8203 = vset.pattern.permute.xlu1 %v13413_v8 }
 0x298   : > { %3301 = vmatmul.mubr.bf16.gmra.mrb[28].mxu1 %v2548_v42  ;;  %v2541_v18 = vpack.c.bf16 %v1666_v63, %v1665_v24  ;;  %1630 = vperm.xlu1 %8203, %v8667_v32   ;;  %v13560_v42 = vld [vmem:[#allocation32_spill] sm:$0xff]  ;;  %v13561_v24 = vld [vmem:[#allocation47_spill] sm:$0xff]  ;;  %v13563_v63 = vld [vmem:[#allocation82_spill] sm:$0xff] }
 0x299   : > { %3308 = vmatprep.mubr.bf16.mxu1 %v2558_v52  ;;  %v1446_v4 = vmul.f32 %v13560_v42, %v10716_v14  ;;  %v1447_v32 = vmul.f32 %v13561_v24, %v10724_v53  ;;  %v13562_v52 = vld [vmem:[#allocation43_spill] sm:$0xff]  ;;  %v923_v37 = vadd.f32 %v13563_v63, %v10198_v6  ;;  %v10762_v42 = vsel %vm1075_vm0, %v1057_v43, %v1058_v45 }
 0x29a   : > { %v10743_v19 = vpop.permute.xlu1 %1898  ;;  %3454 = vmatmul.mubr.bf16.gmra.mrb[88].mxu0 %v2541_v18  ;;  %v1284_v60 = vmul.f32 %v13562_v52, %v10735_v22  ;;  %v13564_v18 = vld [vmem:[#allocation85_spill] sm:$0xff]  ;;  %13565 = vst [vmem:[#allocation28_spill] sm:$0xff] %v10762_v42  ;;  %v10766_v52 = vsel %vm1075_vm0, %v1056_v16, %v1057_v43 }
 0x29b   : > { %13559 = vst [vmem:[#allocation36_spill] sm:$0xff] %v10743_v19  ;;  %v1828_v59 = vmul.f32 %v13564_v18, %v10730_v17  ;;  %v2567_v24 = vpack.c.bf16 %v1447_v32, %v1446_v4  ;;  %13566 = vst [vmem:[#allocation38_spill] sm:$0xff] %v10766_v52  ;;  %v10768_v15 = vmax.f32 %v923_v37, 0.0  ;;  %v13568_v18 = vld [vmem:[#allocation53_spill] sm:$0xff]  ;;  %v13571_v17 = vld [vmem:[#allocation35_spill] sm:$0xff] }
 0x29c   : > { %1634 = vperm.xlu1 %8203, %v8668_v2   ;;  %v2557_v35 = vpack.c.bf16 %v1285_v11, %v1284_v60  ;;  %v931_v60 = vadd.f32 %v13567_v54, %v10198_v6  ;;  %v1286_v4 = vmul.f32 %v13568_v18, %v10766_v52  ;;  %v13569_v32 = vld [vmem:[#allocation49_spill] sm:$0xff]  ;;  %v1449_v51 = vmul.f32 %v13571_v17, %v10758_v50  ;;  %v13572_v18 = vld [vmem:[#allocation51_spill] sm:$0xff] }
 0x29d   : > { %v1287_v16 = vmul.f32 %v13569_v32, %v10762_v42  ;;  %v1448_v32 = vmul.f32 %v13572_v18, %v10768_v15  ;;  %v8669_v17 = vld [vmem:[%s13137_s9 + $0xe0] sm:$0xff] }
 0x29e   : > { %v10788_v48 = vmax.f32 %v931_v60, 0.0  ;;  %v13584_v19 = vld [vmem:[#allocation91_spill] sm:$0xff] }
 0x29f   : > { %v1743_v63 = vpop.permute.xlu1 %1742 }
 0x2a0   : > { %3309 = vmatmul.mubr.bf16.gmra.mrb[32].mxu1 %v2557_v35  ;;  %8204 = vset.pattern.permute.xlu1 %v13407_v39  ;;  %v1827_v11 = vmul.f32 %v1743_v63, %v10735_v22  ;;  %v13570_v35 = vld [vmem:[#allocation88_spill] sm:$0xff]  ;;  %v1060_v63 = vrot.slane %v10758_v50, 7 }
 0x2a1   : > { %3316 = vmatprep.mubr.bf16.mxu1 %v2567_v24  ;;  %1954 = vperm.xlu1 %8204, %v8668_v2   ;;  %v934_v43 = vadd.f32 %v13570_v35, %v10198_v6  ;;  %v1473_v24 = vrot.slane %v10638_v29, 1  ;;  %v1059_v2 = vrot.slane %v10768_v15, 7  ;;  %v2576_v35 = vpack.c.bf16 %v1449_v51, %v1448_v32  ;;  %v13580_v29 = vld [vmem:[#allocation37_spill] sm:$0xff] }
 0x2a2   : > { %v2551_v37 = vpack.c.bf16 %v1828_v59, %v1827_v11  ;;  %v2566_v59 = vpack.c.bf16 %v1287_v16, %v1286_v4  ;;  %v13577_v16 = vrot.slane %v10688_v13, 1 }
 0x2a3   : > { %v10791_v11 = vmax.f32 %v934_v43, 0.0  ;;  %v10798_v54 = vsel %vm1075_vm0, %v1059_v2, %v1060_v63  ;;  %v10808_v4 = vsel %vm1075_vm0, %v1058_v45, %v1059_v2  ;;  %v13581_v45 = vld [vmem:[#allocation92_spill] sm:$0xff] }
 0x2a4   : > { %v1583_v22 = vpop.permute.xlu1 %1582  ;;  %3461 = vmatprep.mubr.bf16.mxu0 %v2551_v37  ;;  %13573 = vst [vmem:[#allocation74_spill] sm:$0xff] %v10798_v54  ;;  %v13574_v37 = vrot.slane %v10636_v25, 1  ;;  %13576 = vst [vmem:[#allocation34_spill] sm:$0xff] %v10808_v4  ;;  %v10814_v51 = vsel %vm1492_vm1, %v1473_v24, %v13577_v16  ;;  %v1450_v25 = vmul.f32 %v13580_v29, %v10788_v48 }
 0x2a5   : > { %8205 = vset.pattern.permute.xlu1 %v13410_v44  ;;  %13578 = vst [vmem:[#allocation79_spill] sm:$0xff] %v10814_v51  ;;  %v942_v2 = vadd.f32 %v13581_v45, %v10198_v6  ;;  %v939_v29 = vadd.f32 %v13584_v19, %v10198_v6 }
 0x2a6   : > { %1798 = vperm.xlu1 %8205, %v8669_v17   ;;  %v10804_v60 = vsel %vm1492_vm1, %v13574_v37, %v1473_v24  ;;  %v13582_v24 = vld [vmem:[#allocation56_spill] sm:$0xff] }
 0x2a7   : > { %13575 = vst [vmem:[#allocation83_spill] sm:$0xff] %v10804_v60  ;;  %v1667_v18 = vmul.f32 %v1583_v22, %v10804_v60  ;;  %v1451_v16 = vmul.f32 %v13582_v24, %v10791_v11  ;;  %v1062_v22 = vrot.slane %v10791_v11, 7  ;;  %v10835_v60 = vmax.f32 %v942_v2, 0.0  ;;  %v13593_v2 = vld [vmem:[#allocation58_spill] sm:$0xff] }
 0x2a8   : > { %3317 = vmatmul.mubr.bf16.gmra.mrb[36].mxu1 %v2566_v59  ;;  %v1587_v43 = vpop.permute.xlu1 %1586  ;;  %v13579_v59 = vld [vmem:[#allocation54_spill] sm:$0xff] }
 0x2a9   : > { %3324 = vmatprep.mubr.bf16.mxu1 %v2576_v35  ;;  %v1668_v32 = vmul.f32 %v1587_v43, %v10814_v51  ;;  %v1289_v37 = vmul.f32 %v13579_v59, %v10798_v54  ;;  %v1061_v35 = vrot.slane %v10788_v48, 7  ;;  %v13583_v43 = vld [vmem:[#allocation52_spill] sm:$0xff]  ;;  %13586 = vst [vmem:[#allocation40_spill] sm:$0xff] %v10835_v60  ;;  %v2585_v34 = vpack.c.bf16 %v1451_v16, %v1450_v25 }
 0x2aa   : > { %8206 = vset.pattern.permute.xlu1 %v13413_v8  ;;  %v1288_v59 = vmul.f32 %v13583_v43, %v10808_v4  ;;  %v13594_v43 = vld [vmem:[#allocation96_spill] sm:$0xff] }
 0x2ab   : > { %v2550_v20 = vpack.c.bf16 %v1668_v32, %v1667_v18  ;;  %1638 = vperm.xlu1 %8206, %v8669_v17   ;;  %v10839_v24 = vsel %vm1075_vm0, %v1061_v35, %v1062_v22  ;;  %v10843_v17 = vsel %vm1075_vm0, %v1060_v63, %v1061_v35  ;;  %v13589_v18 = vld [vmem:[#allocation108_spill] sm:$0xff]  ;;  %v10846_v32 = vmax.f32 %v939_v29, 0.0  ;;  %v13595_v35 = vld [vmem:[#allocation39_spill] sm:$0xff] }
 0x2ac   : > { %v2575_v45 = vpack.c.bf16 %v1289_v37, %v1288_v59  ;;  %13587 = vst [vmem:[#allocation30_spill] sm:$0xff] %v10839_v24  ;;  %13588 = vst [vmem:[#allocation80_spill] sm:$0xff] %v10843_v17  ;;  %v13592_v37 = vld [vmem:[#allocation55_spill] sm:$0xff]  ;;  %v1291_v16 = vmul.f32 %v13593_v2, %v10839_v24  ;;  %v950_v59 = vadd.f32 %v13594_v43, %v10198_v6  ;;  %v1064_v29 = vrot.slane %v10835_v60, 7  ;;  %v13597_v2 = vld [vmem:[#allocation60_spill] sm:$0xff] }
 0x2ad   : > { %v10833_v51 = vpop.permute.xlu1 %1906  ;;  %3462 = vmatmul.mubr.bf16.gmra.mrb[92].mxu0 %v2550_v20  ;;  %13590 = vst [vmem:[#allocation42_spill] sm:$0xff] %v10846_v32  ;;  %v13591_v20 = vld [vmem:[#allocation94_spill] sm:$0xff]  ;;  %v1290_v25 = vmul.f32 %v13592_v37, %v10843_v17  ;;  %v1063_v37 = vrot.slane %v10846_v32, 7  ;;  %v1452_v43 = vmul.f32 %v13597_v2, %v10846_v32 }
 0x2ae   : > { %13585 = vst [vmem:[#allocation50_spill] sm:$0xff] %v10833_v51  ;;  %v947_v19 = vadd.f32 %v13591_v20, %v10198_v6  ;;  %v1453_v51 = vmul.f32 %v13595_v35, %v10835_v60  ;;  %v10869_v58 = vmax.f32 %v950_v59, 0.0  ;;  %v13603_v59 = vld [vmem:[#allocation100_spill] sm:$0xff] }
 0x2af   : > { %1642 = vperm.xlu1 %8206, %v13589_v18   ;;  %v2584_v35 = vpack.c.bf16 %v1291_v16, %v1290_v25  ;;  %v13602_v25 = vld [vmem:[#allocation63_spill] sm:$0xff] }
 0x2b0   : > { %3325 = vmatmul.mubr.bf16.gmra.mrb[40].mxu1 %v2575_v45  ;;  %v13596_v45 = vld [vmem:[#allocation89_spill] sm:$0xff]  ;;  %v10867_v23 = vmax.f32 %v947_v19, 0.0  ;;  %13599 = vst [vmem:[#allocation84_spill] sm:$0xff] %v10869_v58  ;;  %v2594_v60 = vpack.c.bf16 %v1453_v51, %v1452_v43  ;;  %v10879_v19 = vsel %vm1075_vm0, %v1062_v22, %v1063_v37 }
 0x2b1   : > { %3332 = vmatprep.mubr.bf16.mxu1 %v2585_v34  ;;  %v1830_v20 = vmul.f32 %v13596_v45, %v10762_v42  ;;  %v1475_v45 = vrot.slane %v10684_v33, 1  ;;  %13601 = vst [vmem:[#allocation47_spill] sm:$0xff] %v10879_v19  ;;  %v13605_v22 = vld [vmem:[#allocation65_spill] sm:$0xff]  ;;  %v13610_v42 = vld [vmem:[#allocation99_spill] sm:$0xff] }
 0x2b2   : > { %v1751_v63 = vpop.permute.xlu1 %1750  ;;  %13598 = vst [vmem:[#allocation45_spill] sm:$0xff] %v10867_v23  ;;  %v1065_v51 = vrot.slane %v10867_v23, 7 }
 0x2b3   : > { %8207 = vset.pattern.permute.xlu1 %v13407_v39  ;;  %v1829_v34 = vmul.f32 %v1751_v63, %v10766_v52  ;;  %v10873_v63 = vsel %vm1075_vm0, %v1063_v37, %v1064_v29  ;;  %v1455_v37 = vmul.f32 %v13605_v22, %v10869_v58  ;;  %v8360_v22 = vld [vmem:[%s13131_s3 + $0x180] sm:$0xff]  }
 0x2b4   : > { %1962 = vperm.xlu1 %8207, %v13589_v18   ;;  %13600 = vst [vmem:[#allocation32_spill] sm:$0xff] %v10873_v63  ;;  %v13227_v18 = vrot.slane %v10716_v14, 1  ;;  %v1293_v16 = vmul.f32 %v13602_v25, %v10873_v63 }
 0x2b5   : > { %v2560_v30 = vpack.c.bf16 %v1830_v20, %v1829_v34  ;;  %v958_v34 = vadd.f32 %v13603_v59, %v10198_v6  ;;  %v1066_v20 = vrot.slane %v10869_v58, 7  ;;  %v13609_v59 = vld [vmem:[#allocation61_spill] sm:$0xff]  ;;  %v955_v58 = vadd.f32 %v13610_v42, %v10198_v6 }
 0x2b7   : > { %v1591_v52 = vpop.permute.xlu1 %1590  ;;  %3469 = vmatprep.mubr.bf16.mxu0 %v2560_v30  ;;  %v13604_v30 = vld [vmem:[#allocation41_spill] sm:$0xff] }
 0x2b8   : > { %3333 = vmatmul.mubr.bf16.gmra.mrb[44].mxu1 %v2584_v35  ;;  %8208 = vset.pattern.permute.xlu1 %v13410_v44  ;;  %v1454_v2 = vmul.f32 %v13604_v30, %v10867_v23  ;;  %v8359_v44 = vld [vmem:[%s13131_s3 + $0x1c0] sm:$0xff]   ;;  %v10906_v35 = vsel %vm1492_vm1, %v1475_v45, %v13227_v18  ;;  %v1292_v30 = vmul.f32 %v13609_v59, %v10879_v19  ;;  %v10922_v59 = vmax.f32 %v958_v34, 0.0 }
 0x2b9   : > { %3340 = vmatprep.mubr.bf16.mxu1 %v2594_v60  ;;  %1806 = vperm.xlu1 %8208, %v10318_v62   ;;  %v13606_v60 = vrot.slane %v10688_v13, 1  ;;  %13608 = vst [vmem:[#allocation82_spill] sm:$0xff] %v10906_v35  ;;  %v10920_v18 = vsel %vm1075_vm0, %v1064_v29, %v1065_v51  ;;  %v10926_v13 = vsel %vm1075_vm0, %v1065_v51, %v1066_v20  ;;  %v8362_v29 = vld [vmem:[%s13131_s3 + $0x188] sm:$0xff]  }
 0x2ba   : > { %7508 = vmatprep.subr.bf16.mxu0 %v8359_v44  ;;  %13611 = vst [vmem:[#allocation85_spill] sm:$0xff] %v10920_v18  ;;  %13612 = vst [vmem:[#allocation86_spill] sm:$0xff] %v10922_v59 }
 0x2bb   : > { %v10900_v43 = vsel %vm1492_vm1, %v13606_v60, %v1475_v45  ;;  %v1595_v25 = vpop.permute.xlu1 %1594  ;;  %v2593_v45 = vpack.c.bf16 %v1293_v16, %v1292_v30  ;;  %7509 = vmatpush3.bf16.msra.mxu0 %v8360_v22  ;;  %13613 = vst [vmem:[#allocation53_spill] sm:$0xff] %v10926_v13  ;;  %v10935_v16 = vmax.f32 %v955_v58, 0.0  ;;  %v13619_v58 = vld [vmem:[#allocation44_spill] sm:$0xff]  ;;  %v1068_v22 = vrot.slane %v10922_v59, 7 }
 0x2bc   : > { %13607 = vst [vmem:[#allocation43_spill] sm:$0xff] %v10900_v43  ;;  %v1669_v60 = vmul.f32 %v1591_v52, %v10900_v43  ;;  %v1670_v33 = vmul.f32 %v1595_v25, %v10906_v35  ;;  %v2603_v52 = vpack.c.bf16 %v1455_v37, %v1454_v2  ;;  %v13618_v37 = vld [vmem:[#allocation102_spill] sm:$0xff]  ;;  %v1457_v30 = vmul.f32 %v13619_v58, %v10922_v59 }
 0x2bd   : > { %8210 = vset.pattern.permute.xlu1 %v13413_v8  ;;  %v8361_v8 = vld [vmem:[%s13131_s3 + $0x1c8] sm:$0xff]   ;;  %13614 = vst [vmem:[#allocation49_spill] sm:$0xff] %v10935_v16  ;;  %v963_v44 = vadd.f32 %v13618_v37, %v10198_v6  ;;  %v8670_v25 = vld [vmem:[%s13137_s9 + $0xf8] sm:$0xff]  ;;  %v10960_v6 = vld [vmem:[%s13131_s3 + $0x200] sm:$0xff]  }
 0x2be   : > { %v2559_v42 = vpack.c.bf16 %v1670_v33, %v1669_v60  ;;  %1646 = vperm.xlu1 %8210, %v10318_v62   ;;  %v13616_v33 = vld [vmem:[#allocation57_spill] sm:$0xff]  ;;  %v13617_v62 = vld [vmem:[#allocation66_spill] sm:$0xff]  ;;  %7510 = vmatprep.subr.bf16.mxu0 %v8361_v8 }
 0x2bf   : > { %v1294_v51 = vmul.f32 %v13616_v33, %v10920_v18  ;;  %v1295_v2 = vmul.f32 %v13617_v62, %v10926_v13  ;;  %7511 = vmatpush3.bf16.msra.mxu0 %v8362_v29  ;;  %v8363_v60 = vld [vmem:[%s13131_s3 + $0x1d0] sm:$0xff]   ;;  %7903 = vmatprep.subr.bf16.mxu1 %v10960_v6  ;;  %v10968_v58 = vmax.f32 %v963_v44, 0.0  ;;  %v1477_v44 = vrot.slane %v10724_v53, 1 }
 0x2c0   : > { %3341 = vmatmul.mubr.bf16.gmra.mrb[48].mxu1 %v2593_v45  ;;  %v10937_v34 = vpop.permute.xlu1 %1914  ;;  %3470 = vmatmul.mubr.bf16.gmra.mrb[96].mxu0 %v2559_v42  ;;  %v8364_v45 = vld [vmem:[%s13131_s3 + $0x190] sm:$0xff]   ;;  %v1067_v42 = vrot.slane %v10935_v16, 7 }
 0x2c1   : > { %3348 = vmatprep.mubr.bf16.mxu1 %v2603_v52  ;;  %13615 = vst [vmem:[#allocation88_spill] sm:$0xff] %v10937_v34  ;;  %v13620_v52 = vld [vmem:[#allocation69_spill] sm:$0xff]  ;;  %7512 = vmatprep.subr.bf16.mxu0 %v8363_v60  ;;  %v2602_v37 = vpack.c.bf16 %v1295_v2, %v1294_v51  ;;  %13622 = vst [vmem:[#allocation35_spill] sm:$0xff] %v10968_v58  ;;  %v8366_v60 = vld [vmem:[%s13131_s3 + $0x1d8] sm:$0xff]  }
 0x2c2   : > { %1650 = vperm.xlu1 %8210, %v8670_v25   ;;  %v1456_v8 = vmul.f32 %v13620_v52, %v10935_v16  ;;  %v13621_v33 = vld [vmem:[#allocation93_spill] sm:$0xff]  ;;  %v10974_v43 = vsel %vm1075_vm0, %v1067_v42, %v1068_v22  ;;  %v8367_v51 = vld [vmem:[%s13131_s3 + $0x198] sm:$0xff]   ;;  %v13240_v52 = vrot.slane %v10768_v15, 1 }
 0x2c3   : > { %v1832_v62 = vmul.f32 %v13621_v33, %v10798_v54  ;;  %13623 = vst [vmem:[#allocation51_spill] sm:$0xff] %v10974_v43  ;;  %7513 = vmatpush3.bf16.msra.mxu0 %v8364_v45  ;;  %v13627_v33 = vld [vmem:[#allocation110_spill] sm:$0xff] }
 0x2c4   : > { %v2612_v34 = vpack.c.bf16 %v1457_v30, %v1456_v8  ;;  %7514 = vmatprep.subr.bf16.mxu0 %v8366_v60  ;;  %v13625_v30 = vld [vmem:[#allocation73_spill] sm:$0xff]  ;;  %v13626_v8 = vld [vmem:[#allocation46_spill] sm:$0xff] }
 0x2c5   : > { %v1759_v29 = vpop.permute.xlu1 %1758  ;;  %v1297_v45 = vmul.f32 %v13625_v30, %v10974_v43 }
 0x2c6   : > { %8211 = vset.pattern.permute.xlu1 %v13407_v39  ;;  %v1831_v59 = vmul.f32 %v1759_v29, %v10808_v4  ;;  %v10984_v39 = vsel %vm1075_vm0, %v1066_v20, %v1067_v42  ;;  %v1458_v29 = vmul.f32 %v13626_v8, %v10968_v58  ;;  %v1069_v20 = vrot.slane %v10968_v58, 7 }
 0x2c7   : > { %1970 = vperm.xlu1 %8211, %v8670_v25   ;;  %13624 = vst [vmem:[#allocation54_spill] sm:$0xff] %v10984_v39  ;;  %7515 = vmatpush3.bf16.msra.mxu0 %v8367_v51  ;;  %v13629_v42 = vmov 7   ;;  %v13631_v51 = vrot.slane %v10716_v14, 1  ;;  %v13634_v58 = vrot.slane %v13627_v33, 7 }
 0x2c8   : > { %3349 = vmatmul.mubr.bf16.gmra.mrb[52].mxu1 %v2602_v37  ;;  %v2569_v2 = vpack.c.bf16 %v1832_v62, %v1831_v59  ;;  %v13628_v37 = vld [vmem:[#allocation75_spill] sm:$0xff]  ;;  %v11027_v53 = vsel %vm1075_vm0, %v1068_v22, %v1069_v20 }
 0x2c9   : > { %3356 = vmatprep.mubr.bf16.mxu1 %v2612_v34  ;;  %v1459_v54 = vmul.f32 %v13628_v37, %v13627_v33  ;;  %v8369_v59 = vld [vmem:[%s13131_s3 + $0x1e0] sm:$0xff]   ;;  %v11011_v30 = vsel %vm1492_vm1, %v13631_v51, %v1477_v44  ;;  %v11017_v37 = vsel %vm1492_vm1, %v1477_v44, %v13240_v52  ;;  %13636 = vst [vmem:[#allocation52_spill] sm:$0xff] %v11027_v53  ;;  %v13639_v51 = vld [vmem:[#allocation62_spill] sm:$0xff] }
 0x2ca   : > { %v1599_v25 = vpop.permute.xlu1 %1598  ;;  %3477 = vmatprep.mubr.bf16.mxu0 %v2569_v2  ;;  %v8370_v34 = vld [vmem:[%s13131_s3 + $0x1a0] sm:$0xff]   ;;  %7516 = vmatprep.subr.bf16.mxu0 %v8369_v59  ;;  %13632 = vst [vmem:[#allocation37_spill] sm:$0xff] %v11011_v30  ;;  %13633 = vst [vmem:[#allocation92_spill] sm:$0xff] %v11017_v37  ;;  %v11023_v59 = vsel %vm1075_vm0, %v1069_v20, %v13634_v58  ;;  %v13638_v20 = vld [vmem:[#allocation78_spill] sm:$0xff] }
 0x2cb   : > { %8212 = vset.pattern.permute.xlu1 %v13629_v42  ;;  %v13630_v62 = vld [vmem:[#allocation71_spill] sm:$0xff]  ;;  %v2621_v4 = vpack.c.bf16 %v1459_v54, %v1458_v29  ;;  %13635 = vst [vmem:[#allocation56_spill] sm:$0xff] %v11023_v59  ;;  %7517 = vmatpush3.bf16.msra.mxu0 %v8370_v34  ;;  %v1671_v44 = vmul.f32 %v1599_v25, %v11011_v30  ;;  %v8373_v54 = vld [vmem:[%s13131_s3 + $0x1a8] sm:$0xff]   ;;  %v11042_v25 = vpop.permute.xlu0 %1870 }
 0x2cc   : > { %v1296_v60 = vmul.f32 %v13630_v62, %v10984_v39  ;;  %v8671_v2 = vld [vmem:[%s13137_s9] sm:$0xff]  ;;  %v1299_v34 = vmul.f32 %v13638_v20, %v11023_v59  ;;  %v8379_v20 = vld [vmem:[%s13131_s3 + $0x1b8] sm:$0xff]  }
 0x2cd   : > { %2166 = vperm.xlu1 %8212, %v8671_v2   ;;  %v13637_v22 = vld [vmem:[#allocation59_spill] sm:$0xff] }
 0x2ce   : > { %v2611_v8 = vpack.c.bf16 %v1297_v45, %v1296_v60  ;;  %v1603_v62 = vpop.permute.xlu1 %1602  ;;  %v8372_v45 = vld [vmem:[%s13131_s3 + $0x1e8] sm:$0xff]   ;;  %v1298_v29 = vmul.f32 %v13637_v22, %v11027_v53 }
 0x2cf   : > { %v1672_v60 = vmul.f32 %v1603_v62, %v11017_v37  ;;  %7518 = vmatprep.subr.bf16.mxu0 %v8372_v45  ;;  %v13640_v62 = vld [vmem:[#allocation87_spill] sm:$0xff]  ;;  %v8672_v45 = vld [vmem:[%s13137_s9 + $0x8] sm:$0xff] }
 0x2d0   : > { %3357 = vmatmul.mubr.bf16.gmra.mrb[56].mxu1 %v2611_v8  ;;  %v1973_v8 = vmul.f32 %v13639_v51, %v10387_v41  ;;  %v1974_v52 = vmul.f32 %v13640_v62, %v10395_v9  ;;  %7519 = vmatpush3.bf16.msra.mxu0 %v8373_v54  ;;  %v8378_v54 = vld [vmem:[%s13131_s3 + $0x1f8] sm:$0xff]   ;;  %v11065_v51 = vpop.permute.xlu0 %1878  ;;  %v13641_v62 = vmov 8  }
 0x2d1   : > { %8213 = vset.pattern.permute.xlu1 %v13456_v12  ;;  %3364 = vmatprep.mubr.bf16.mxu1 %v2621_v4  ;;  %v2568_v58 = vpack.c.bf16 %v1672_v60, %v1671_v44  ;;  %v8375_v4 = vld [vmem:[%s13131_s3 + $0x1f0] sm:$0xff]   ;;  %v2620_v60 = vpack.c.bf16 %v1299_v34, %v1298_v29 }
 0x2d2   : > { %2006 = vperm.xlu1 %8213, %v8671_v2   ;;  %v8376_v2 = vld [vmem:[%s13131_s3 + $0x1b0] sm:$0xff]   ;;  %7520 = vmatprep.subr.bf16.mxu0 %v8375_v4  ;;  %v2490_v22 = vpack.c.bf16 %v1974_v52, %v1973_v8  ;;  %v13642_v52 = vld [vmem:[#allocation95_spill] sm:$0xff]  ;;  %v13643_v8 = vld [vmem:[#allocation64_spill] sm:$0xff] }
 0x2d3   : > { %v11054_v44 = vpop.permute.xlu1 %1922  ;;  %3478 = vmatmul.mubr.bf16.gmra.mrb[100].mxu0 %v2568_v58  ;;  %v1834_v34 = vmul.f32 %v13642_v52, %v10839_v24  ;;  %v1975_v4 = vmul.f32 %v13643_v8, %v10491_v46  ;;  %v8368_v52 = vld [vmem:[%s13131_s3 + $0x208] sm:$0xff]  }
 0x2d4   : > { %7521 = vmatpush3.bf16.msra.mxu0 %v8376_v2  ;;  %v13644_v2 = vld [vmem:[#allocation97_spill] sm:$0xff]  ;;  %v11082_v8 = vpop.permute.xlu0 %1886 }
 0x2d5   : > { %7522 = vmatprep.subr.bf16.mxu0 %v8378_v54  ;;  %v13244_v54 = vrot.slane %v10788_v48, 1 }
 0x2d6   : > { %2010 = vperm.xlu1 %8213, %v8672_v45  }
 0x2d8   : > { %3365 = vmatmul.mubr.bf16.gmra.mrb[60].mxu1 %v2620_v60  ;;  %v1767_v58 = vpop.permute.xlu1 %1766  ;;  %v1976_v60 = vmul.f32 %v13644_v2, %v10463_v21  ;;  %7523 = vmatpush3.bf16.msra.mxu0 %v8379_v20 }
 0x2d9   : > { %3566 = vmatprep.mubr.bf16.mxu1 %v2490_v22  ;;  %v1833_v29 = vmul.f32 %v1767_v58, %v10843_v17  ;;  %v1479_v22 = vrot.slane %v10758_v50, 1  ;;  %v2489_v58 = vpack.c.bf16 %v10225_v40, %v10223_v47  ;;  %v13653_v17 = vld [vmem:[#allocation31_spill] sm:$0xff] }
 0x2da   : > { %8215 = vset.pattern.permute.xlu1 %v13641_v62  ;;  %v2499_v24 = vpack.c.bf16 %v1976_v60, %v1975_v4  ;;  %v13648_v4 = vld [vmem:[#allocation107_spill] sm:$0xff] }
 0x2db   : > { %2330 = vperm.xlu1 %8215, %v8672_v45   ;;  %v2578_v9 = vpack.c.bf16 %v1834_v34, %v1833_v29  ;;  %v8673_v45 = vld [vmem:[%s13137_s9 + $0x10] sm:$0xff]  ;;  %v11098_v29 = vsel %vm1492_vm1, %v1479_v22, %v13244_v54  ;;  %v1978_v2 = vmul.f32 %v13648_v4, %v10529_v31  ;;  %v2498_v54 = vpack.c.bf16 %v10233_v49, %v10227_v28  ;;  %v8377_v4 = vld [vmem:[%s13131_s3 + $0x220] sm:$0xff]  }
 0x2dc   : > { %13647 = vst [vmem:[#allocation108_spill] sm:$0xff] %v11098_v29 }
 0x2dd   : > { %3485 = vmatprep.mubr.bf16.mxu0 %v2578_v9  ;;  %v13645_v9 = vrot.slane %v10768_v15, 1 }
 0x2de   : > { %v1607_v41 = vpop.permute.xlu1 %1606 }
 0x2df   : > { %2334 = vperm.xlu1 %8215, %v8673_v45   ;;  %v11092_v20 = vsel %vm1492_vm1, %v13645_v9, %v1479_v22  ;;  %v11110_v22 = vpop.permute.xlu0 %1894 }
 0x2e0   : > { %3567 = vmatmul.mubr.bf16.vlgmr.msra.gmra.mrb[64].mxu1 %v2489_v58  ;;  %13646 = vst [vmem:[#allocation91_spill] sm:$0xff] %v11092_v20  ;;  %v1673_v60 = vmul.f32 %v1607_v41, %v11092_v20  ;;  %v8374_v41 = vld [vmem:[%s13131_s3 + $0x218] sm:$0xff]  }
 0x2e1   : > { %3574 = vmatprep.mubr.bf16.mxu1 %v2499_v24  ;;  %7904 = vmatpush3.bf16.msra.mxu1 %v10960_v6  ;;  %v8371_v24 = vld [vmem:[%s13131_s3 + $0x210] sm:$0xff]   ;;  %v1977_v6 = vmul.f32 %v10372_v10, %v10552_v56 }
 0x2e2   : > { %v1611_v34 = vpop.permute.xlu1 %1610  ;;  %7905 = vmatprep.subr.bf16.mxu1 %v8368_v52 }
 0x2e3   : > { %8217 = vset.pattern.permute.xlu1 %v13629_v42  ;;  %v1674_v58 = vmul.f32 %v1611_v34, %v11098_v29  ;;  %v2508_v40 = vpack.c.bf16 %v1978_v2, %v1977_v6  ;;  %v11122_v34 = vpop.permute.xlu0 %1902  ;;  %v1980_v6 = vmul.f32 %v10397_v38, %v10598_v26 }
 0x2e4   : > { %2174 = vperm.xlu1 %8217, %v8673_v45  }
 0x2e5   : > { %v2577_v9 = vpack.c.bf16 %v1674_v58, %v1673_v60  ;;  %7906 = vmatpush3.bf16.msra.mxu1 %v8368_v52  ;;  %v1979_v52 = vmul.f32 %v11042_v25, %v10614_v3  ;;  %v13649_v25 = vld [vmem:[#allocation98_spill] sm:$0xff]  ;;  %v8380_v58 = vld [vmem:[%s13131_s3 + $0x228] sm:$0xff]  }
 0x2e6   : > { %7907 = vmatprep.subr.bf16.mxu1 %v8371_v24 }
 0x2e7   : > { %v11114_v10 = vpop.permute.xlu1 %1930  ;;  %3486 = vmatmul.mubr.bf16.gmra.mrb[104].mxu0 %v2577_v9  ;;  %v2517_v38 = vpack.c.bf16 %v1980_v6, %v1979_v52  ;;  %v11140_v9 = vpop.permute.xlu0 %1910  ;;  %v1981_v6 = vmul.f32 %v11065_v51, %v10630_v0 }
 0x2e8   : > { %8218 = vset.pattern.permute.xlu1 %v13456_v12  ;;  %3575 = vmatmul.mubr.bf16.gmra.mrb[68].mxu1 %v2498_v54  ;;  %v8674_v54 = vld [vmem:[%s13137_s9 + $0x18] sm:$0xff] }
 0x2e9   : > { %2014 = vperm.xlu1 %8218, %v8673_v45   ;;  %3582 = vmatprep.mubr.bf16.mxu1 %v2508_v40  ;;  %v1836_v45 = vmul.f32 %v13649_v25, %v10873_v63  ;;  %v8381_v25 = vld [vmem:[%s13131_s3 + $0x230] sm:$0xff]  }
 0x2ea   : > { %7908 = vmatpush3.bf16.msra.mxu1 %v8371_v24  ;;  %v2507_v24 = vpack.c.bf16 %v10311_v7, %v10309_v61 }
 0x2eb   : > { %7909 = vmatprep.subr.bf16.mxu1 %v8374_v41 }
 0x2ec   : > { %v1775_v2 = vpop.permute.xlu1 %1774 }
 0x2ed   : > { %2018 = vperm.xlu1 %8218, %v8674_v54   ;;  %v1835_v40 = vmul.f32 %v1775_v2, %v10879_v19  ;;  %v1481_v2 = vrot.slane %v10791_v11, 1  ;;  %v1482_v54 = vrot.slane %v10846_v32, 1  ;;  %v1983_v19 = vmul.f32 %v11082_v8, %v10713_v57 }
 0x2ee   : > { %7910 = vmatpush3.bf16.msra.mxu1 %v8374_v41  ;;  %v8675_v41 = vld [vmem:[%s13137_s9 + $0x28] sm:$0xff] }
 0x2ef   : > { %v2587_v60 = vpack.c.bf16 %v1836_v45, %v1835_v40  ;;  %7911 = vmatprep.subr.bf16.mxu1 %v8377_v4  ;;  %v1982_v40 = vmul.f32 %v10563_v27, %v10644_v36  ;;  %v13650_v45 = vrot.slane %v10788_v48, 1  ;;  %v2516_v27 = vpack.c.bf16 %v10406_v5, %v10389_v55  ;;  %v13654_v36 = vld [vmem:[#allocation29_spill] sm:$0xff] }
 0x2f0   : > { %3583 = vmatmul.mubr.bf16.gmra.mrb[72].mxu1 %v2507_v24 }
 0x2f1   : > { %8219 = vset.pattern.permute.xlu1 %v13629_v42  ;;  %3590 = vmatprep.mubr.bf16.mxu1 %v2517_v38  ;;  %v1615_v52 = vpop.permute.xlu1 %1614  ;;  %v11159_v24 = vsel %vm1492_vm1, %v13650_v45, %v1481_v2  ;;  %v11163_v38 = vsel %vm1492_vm1, %v1481_v2, %v1482_v54  ;;  %v8382_v2 = vld [vmem:[%s13131_s3 + $0x238] sm:$0xff]  }
 0x2f2   : > { %2186 = vperm.xlu1 %8219, %v8675_v41   ;;  %3493 = vmatprep.mubr.bf16.mxu0 %v2587_v60  ;;  %13651 = vst [vmem:[#allocation94_spill] sm:$0xff] %v11159_v24  ;;  %13652 = vst [vmem:[#allocation55_spill] sm:$0xff] %v11163_v38  ;;  %v2526_v60 = vpack.c.bf16 %v1982_v40, %v1981_v6  ;;  %v1675_v47 = vmul.f32 %v1615_v52, %v11159_v24 }
 0x2f3   : > { %7912 = vmatpush3.bf16.msra.mxu1 %v8377_v4  ;;  %v11168_v4 = vpop.permute.xlu0 %1918  ;;  %v1984_v6 = vmul.f32 %v13654_v36, %v13653_v17  ;;  %v8677_v36 = vld [vmem:[%s13137_s9 + $0x30] sm:$0xff] }
 0x2f4   : > { %7913 = vmatprep.subr.bf16.mxu1 %v8380_v58 }
 0x2f5   : > { %v1619_v51 = vpop.permute.xlu1 %1618  ;;  %v2535_v40 = vpack.c.bf16 %v1984_v6, %v1983_v19  ;;  %v13659_v19 = vld [vmem:[#allocation79_spill] sm:$0xff]  ;;  %v13660_v6 = vld [vmem:[#allocation36_spill] sm:$0xff] }
 0x2f6   : > { %8220 = vset.pattern.permute.xlu1 %v13456_v12  ;;  %v1676_v63 = vmul.f32 %v1619_v51, %v11163_v38  ;;  %v1986_v57 = vmul.f32 %v13660_v6, %v13659_v19 }
 0x2f7   : > { %2026 = vperm.xlu1 %8220, %v8675_v41   ;;  %7914 = vmatpush3.bf16.msra.mxu1 %v8380_v58  ;;  %v13655_v58 = vld [vmem:[#allocation127_spill] sm:$0xff]  ;;  %v13656_v41 = vld [vmem:[#allocation128_spill] sm:$0xff] }
 0x2f8   : > { %3591 = vmatmul.mubr.bf16.gmra.mrb[76].mxu1 %v2516_v27  ;;  %7915 = vmatprep.subr.bf16.mxu1 %v8381_v25  ;;  %v2586_v45 = vpack.c.bf16 %v1676_v63, %v1675_v47  ;;  %v8676_v47 = vld [vmem:[%s13137_s9 + $0x20] sm:$0xff]  ;;  %v11185_v63 = vpop.permute.xlu0 %1926  ;;  %v2525_v8 = vpack.c.bf16 %v13656_v41, %v13655_v58 }
 0x2f9   : > { %3598 = vmatprep.mubr.bf16.mxu1 %v2526_v60  ;;  %v13657_v60 = vld [vmem:[#allocation101_spill] sm:$0xff] }
 0x2fa   : > { %v11180_v52 = vpop.permute.xlu1 %1938  ;;  %3494 = vmatmul.mubr.bf16.gmra.mrb[108].mxu0 %v2586_v45  ;;  %v1838_v45 = vmul.f32 %v13657_v60, %v10926_v13  ;;  %v1484_v60 = vrot.slane %v10867_v23, 1  ;;  %v13663_v13 = vld [vmem:[#allocation67_spill] sm:$0xff] }
 0x2fb   : > { %8221 = vset.pattern.permute.xlu1 %v13641_v62  ;;  %7916 = vmatpush3.bf16.msra.mxu1 %v8381_v25  ;;  %v13658_v25 = vld [vmem:[#allocation83_spill] sm:$0xff] }
 0x2fc   : > { %2342 = vperm.xlu1 %8221, %v8676_v47   ;;  %7917 = vmatprep.subr.bf16.mxu1 %v8382_v2  ;;  %v1985_v47 = vmul.f32 %v11110_v22, %v13658_v25  ;;  %v11197_v17 = vpop.permute.xlu0 %1934 }
 0x2fe   : > { %v2544_v25 = vpack.c.bf16 %v1986_v57, %v1985_v47  ;;  %v13666_v47 = vld [vmem:[#allocation50_spill] sm:$0xff] }
 0x2ff   : > { %v1783_v51 = vpop.permute.xlu1 %1782  ;;  %7918 = vmatpush3.bf16.msra.mxu1 %v8382_v2  ;;  %v13662_v2 = vld [vmem:[#allocation90_spill] sm:$0xff] }
 0x300   : > { %2350 = vperm.xlu1 %8221, %v8677_v36   ;;  %3599 = vmatmul.mubr.bf16.gmra.mrb[80].mxu1 %v2525_v8  ;;  %v1837_v27 = vmul.f32 %v1783_v51, %v10920_v18  ;;  %v8678_v8 = vld [vmem:[%s13137_s9 + $0x38] sm:$0xff]  ;;  %v13661_v51 = vld [vmem:[#allocation40_spill] sm:$0xff]  ;;  %v2534_v22 = vpack.c.bf16 %v13663_v13, %v13662_v2 }
 0x301   : > { %3606 = vmatprep.mubr.bf16.mxu1 %v2535_v40  ;;  %v1483_v18 = vrot.slane %v13661_v51, 1  ;;  %v13667_v2 = vld [vmem:[#allocation43_spill] sm:$0xff] }
 0x302   : > { %v2596_v41 = vpack.c.bf16 %v1838_v45, %v1837_v27  ;;  %v11213_v45 = vpop.permute.xlu0 %1942 }
 0x303   : > { %v11211_v27 = vsel %vm1492_vm1, %v1482_v54, %v1483_v18  ;;  %v11217_v6 = vsel %vm1492_vm1, %v1483_v18, %v1484_v60  ;;  %v1987_v54 = vmul.f32 %v11122_v34, %v13667_v2  ;;  %v13668_v18 = vld [vmem:[#allocation23_spill] sm:$0xff]  ;;  %v13673_v2 = vld [vmem:[#allocation70_spill] sm:$0xff] }
 0x304   : > { %2354 = vperm.xlu1 %8221, %v8678_v8   ;;  %v1623_v40 = vpop.permute.xlu1 %1622  ;;  %3501 = vmatprep.mubr.bf16.mxu0 %v2596_v41  ;;  %13664 = vst [vmem:[#allocation58_spill] sm:$0xff] %v11211_v27  ;;  %13665 = vst [vmem:[#allocation96_spill] sm:$0xff] %v11217_v6  ;;  %v8679_v34 = vld [vmem:[%s13137_s9 + $0x40] sm:$0xff] }
 0x305   : > { %v1677_v41 = vmul.f32 %v1623_v40, %v11211_v27 }
 0x306   : > { %v11230_v0 = vpop.permute.xlu0 %1950 }
 0x308   : > { %8222 = vset.pattern.permute.xlu1 %v13629_v42  ;;  %3607 = vmatmul.mubr.bf16.gmra.mrb[84].mxu1 %v2534_v22  ;;  %v1627_v19 = vpop.permute.xlu1 %1626  ;;  %v1988_v22 = vmul.f32 %v13666_v47, %v10906_v35  ;;  %v13674_v35 = vld [vmem:[#allocation84_spill] sm:$0xff] }
 0x309   : > { %2194 = vperm.xlu1 %8222, %v8678_v8   ;;  %3614 = vmatprep.mubr.bf16.mxu1 %v2544_v25  ;;  %v1678_v57 = vmul.f32 %v1627_v19, %v11217_v6  ;;  %v13669_v8 = vld [vmem:[#allocation27_spill] sm:$0xff]  ;;  %v13670_v19 = vld [vmem:[#allocation88_spill] sm:$0xff] }
 0x30a   : > { %v2543_v25 = vpack.c.bf16 %v13669_v8, %v13668_v18  ;;  %v2553_v40 = vpack.c.bf16 %v1988_v22, %v1987_v54  ;;  %v1989_v22 = vmul.f32 %v11140_v9, %v11011_v30  ;;  %v11243_v54 = vpop.permute.xlu0 %1958 }
 0x30b   : > { %v2595_v13 = vpack.c.bf16 %v1678_v57, %v1677_v41  ;;  %v1990_v41 = vmul.f32 %v13670_v19, %v11017_v37  ;;  %v13671_v57 = vld [vmem:[#allocation103_spill] sm:$0xff] }
 0x30c   : > { %v1840_v47 = vmul.f32 %v13671_v57, %v10974_v43  ;;  %v13677_v43 = vld [vmem:[#allocation26_spill] sm:$0xff] }
 0x30d   : > { %8223 = vset.pattern.permute.xlu1 %v13456_v12  ;;  %v11226_v58 = vpop.permute.xlu1 %1946  ;;  %3502 = vmatmul.mubr.bf16.gmra.mrb[112].mxu0 %v2595_v13  ;;  %v2562_v37 = vpack.c.bf16 %v1990_v41, %v1989_v22 }
 0x30e   : > { %2030 = vperm.xlu1 %8223, %v8677_v36   ;;  %v11252_v9 = vpop.permute.xlu0 %1966 }
 0x310   : > { %3615 = vmatmul.mubr.bf16.gmra.mrb[88].mxu1 %v2543_v25 }
 0x311   : > { %3622 = vmatprep.mubr.bf16.mxu1 %v2553_v40  ;;  %v13672_v40 = vld [vmem:[#allocation72_spill] sm:$0xff] }
 0x312   : > { %8224 = vset.pattern.permute.xlu1 %v13629_v42  ;;  %v1791_v36 = vpop.permute.xlu1 %1790  ;;  %v2552_v19 = vpack.c.bf16 %v13673_v2, %v13672_v40 }
 0x313   : > { %2198 = vperm.xlu1 %8224, %v8679_v34   ;;  %v1839_v13 = vmul.f32 %v1791_v36, %v10984_v39  ;;  %v8680_v34 = vld [vmem:[%s13137_s9 + $0x48] sm:$0xff]  ;;  %v1485_v36 = vrot.slane %v13674_v35, 1  ;;  %v1486_v39 = vrot.slane %v10935_v16, 1 }
 0x315   : > { %v2605_v25 = vpack.c.bf16 %v1840_v47, %v1839_v13  ;;  %v11257_v41 = vsel %vm1492_vm1, %v1484_v60, %v1485_v36  ;;  %v1992_v13 = vmul.f32 %v11054_v44, %v11098_v29  ;;  %v11263_v47 = vsel %vm1492_vm1, %v1485_v36, %v1486_v39  ;;  %v11272_v44 = vpop.permute.xlu0 %2326 }
 0x316   : > { %13675 = vst [vmem:[#allocation39_spill] sm:$0xff] %v11257_v41  ;;  %13676 = vst [vmem:[#allocation89_spill] sm:$0xff] %v11263_v47  ;;  %v2561_v60 = vpack.c.bf16 %v13677_v43, %v10716_v14 }
 0x317   : > { %2202 = vperm.xlu1 %8224, %v8680_v34   ;;  %v1631_v57 = vpop.permute.xlu1 %1630  ;;  %3509 = vmatprep.mubr.bf16.mxu0 %v2605_v25 }
 0x318   : > { %3623 = vmatmul.mubr.bf16.gmra.mrb[92].mxu1 %v2552_v19  ;;  %v1679_v25 = vmul.f32 %v1631_v57, %v11257_v41  ;;  %v1991_v19 = vmul.f32 %v11168_v4, %v11092_v20  ;;  %v1994_v57 = vmul.f32 %v11114_v10, %v11163_v38  ;;  %v1993_v4 = vmul.f32 %v11185_v63, %v11159_v24  ;;  %v13679_v63 = vld [vmem:[#allocation86_spill] sm:$0xff]  ;;  %v13680_v38 = vld [vmem:[#allocation35_spill] sm:$0xff] }
 0x319   : > { %3630 = vmatprep.mubr.bf16.mxu1 %v2562_v37  ;;  %v1996_v24 = vmul.f32 %v11180_v52, %v11217_v6  ;;  %v13264_v29 = vrot.slane %v13680_v38, 1 }
 0x31a   : > { %v2571_v2 = vpack.c.bf16 %v1992_v13, %v1991_v19  ;;  %v8681_v13 = vld [vmem:[%s13137_s9 + $0x50] sm:$0xff] }
 0x31b   : > { %8225 = vset.pattern.permute.xlu1 %v13456_v12  ;;  %v1635_v22 = vpop.permute.xlu1 %1634 }
 0x31c   : > { %2042 = vperm.xlu1 %8225, %v8680_v34   ;;  %v1680_v37 = vmul.f32 %v1635_v22, %v11263_v47 }
 0x31e   : > { %v2604_v30 = vpack.c.bf16 %v1680_v37, %v1679_v25  ;;  %v2570_v25 = vpack.c.bf16 %v10758_v50, %v10768_v15  ;;  %v2580_v37 = vpack.c.bf16 %v1994_v57, %v1993_v4  ;;  %v1995_v57 = vmul.f32 %v11197_v17, %v11211_v27 }
 0x320   : > { %8226 = vset.pattern.permute.xlu1 %v13641_v62  ;;  %3631 = vmatmul.mubr.bf16.gmra.mrb[96].mxu1 %v2561_v60  ;;  %v11274_v36 = vpop.permute.xlu1 %1954  ;;  %v1487_v60 = vrot.slane %v13679_v63, 1 }
 0x321   : > { %2362 = vperm.xlu1 %8226, %v8680_v34   ;;  %3510 = vmatmul.mubr.bf16.gmra.mrb[116].mxu0 %v2604_v30  ;;  %v11285_v34 = vpop.permute.xlu0 %2338 }
 0x322   : > { %3638 = vmatprep.mubr.bf16.mxu1 %v2571_v2  ;;  %v13678_v2 = vld [vmem:[#allocation109_spill] sm:$0xff]  ;;  %v11310_v52 = vsel %vm1492_vm1, %v1487_v60, %v13264_v29  ;;  %v2588_v29 = vpack.c.bf16 %v13661_v51, %v10846_v32 }
 0x323   : > { %v1842_v10 = vmul.f32 %v13678_v2, %v11023_v59  ;;  %13682 = vst [vmem:[#allocation63_spill] sm:$0xff] %v11310_v52  ;;  %v2000_v6 = vmul.f32 %v11274_v36, %v11310_v52 }
 0x325   : > { %2366 = vperm.xlu1 %8226, %v8681_v13   ;;  %v1799_v22 = vpop.permute.xlu1 %1798  ;;  %v11297_v4 = vpop.permute.xlu0 %2170 }
 0x326   : > { %v1841_v30 = vmul.f32 %v1799_v22, %v11027_v53  ;;  %v2579_v22 = vpack.c.bf16 %v10791_v11, %v10788_v48 }
 0x328   : > { %3639 = vmatmul.mubr.bf16.gmra.mrb[100].mxu1 %v2570_v25  ;;  %v2614_v19 = vpack.c.bf16 %v1842_v10, %v1841_v30  ;;  %v11304_v25 = vsel %vm1492_vm1, %v1486_v39, %v1487_v60  ;;  %v1998_v39 = vmul.f32 %v11226_v58, %v11263_v47 }
 0x329   : > { %8227 = vset.pattern.permute.xlu1 %v13629_v42  ;;  %3646 = vmatprep.mubr.bf16.mxu1 %v2580_v37  ;;  %13681 = vst [vmem:[#allocation60_spill] sm:$0xff] %v11304_v25  ;;  %v2589_v37 = vpack.c.bf16 %v1996_v24, %v1995_v57  ;;  %v8682_v24 = vld [vmem:[%s13137_s9 + $0x58] sm:$0xff] }
 0x32a   : > { %2206 = vperm.xlu1 %8227, %v8681_v13   ;;  %v1639_v20 = vpop.permute.xlu1 %1638  ;;  %3517 = vmatprep.mubr.bf16.mxu0 %v2614_v19  ;;  %v11314_v19 = vpop.permute.xlu0 %2178 }
 0x32b   : > { %v1681_v30 = vmul.f32 %v1639_v20, %v11304_v25  ;;  %v11323_v20 = vld [vmem:[#allocation8] ss:$0 sm:$0xff] }
 0x32e   : > { %8229 = vset.pattern.permute.xlu1 %v13456_v12  ;;  %v1643_v17 = vpop.permute.xlu1 %1642 }
 0x32f   : > { %2046 = vperm.xlu1 %8229, %v8681_v13   ;;  %v1682_v2 = vmul.f32 %v1643_v17, %v11310_v52 }
 0x330   : > { %3647 = vmatmul.mubr.bf16.gmra.mrb[104].mxu1 %v2579_v22  ;;  %v1997_v22 = vmul.f32 %v11213_v45, %v11257_v41  ;;  %v8683_v45 = vld [vmem:[%s13137_s9 + $0x68] sm:$0xff] }
 0x331   : > { %3654 = vmatprep.mubr.bf16.mxu1 %v2589_v37  ;;  %v2613_v10 = vpack.c.bf16 %v1682_v2, %v1681_v30 }
 0x332   : > { %v2598_v59 = vpack.c.bf16 %v1998_v39, %v1997_v22  ;;  %v13683_v22 = vld [vmem:[#allocation117_spill] sm:$0xff] }
 0x333   : > { %2050 = vperm.xlu1 %8229, %v8682_v24   ;;  %v7188_v60 = vpop.f32.mrb[0].mxu1  ;;  %v11321_v13 = vpop.permute.xlu1 %1962  ;;  %3518 = vmatmul.mubr.bf16.gmra.mrb[120].mxu0 %v2613_v10 }
 0x334   : > { %v7189_v57 = vpop.f32.mrb[1].mxu1 }
 0x335   : > { %v7190_v37 = vadd.f32 %v7189_v57, %v7188_v60  ;;  %v7191_v30 = vpop.f32.mrb[2].mxu1 }
 0x336   : > { %v7300_v17 = vpop.f32.mrb[64].mxu0  ;;  %v7192_v58 = vpop.f32.mrb[3].mxu1 }
 0x337   : > { %v7301_v2 = vpop.f32.mrb[65].mxu0  ;;  %v3247_v24 = vadd.f32 %v7190_v37, %v11323_v20  ;;  %v7193_v47 = vadd.f32 %v7192_v58, %v7191_v30  ;;  %8230 = vset.pattern.permute.xlu1 %v13629_v42  ;;  %v13685_v30 = vld [vmem:[#allocation116_spill] sm:$0xff]  ;;  %v11340_v58 = vpop.permute.xlu0 %2182 }
 0x338   : > { %v7302_v53 = vadd.f32 %v7301_v2, %v7300_v17  ;;  %v7303_v27 = vpop.f32.mrb[66].mxu0  ;;  %2218 = vperm.xlu1 %8230, %v8683_v45   ;;  %3655 = vmatmul.mubr.bf16.gmra.mrb[108].mxu1 %v2588_v29  ;;  %v1807_v39 = vpop.permute.xlu1 %1806  ;;  %v13684_v17 = vld [vmem:[#allocation118_spill] sm:$0xff] }
 0x339   : > { %v7304_v10 = vpop.f32.mrb[67].mxu0  ;;  %v3250_v57 = vadd.f32 %v7193_v47, %v11323_v20  ;;  %3662 = vmatprep.mubr.bf16.mxu1 %v2598_v59  ;;  %v1843_v37 = vmul.f32 %v1807_v39, %v13683_v22  ;;  %v1844_v2 = vmul.f32 %v13685_v30, %v13684_v17  ;;  %v1999_v59 = vmul.f32 %v11230_v0, %v11304_v25 }
 0x33a   : > { %v11334_v60 = vadd.f32 %v7302_v53, %v3247_v24  ;;  %v7305_v41 = vadd.f32 %v7304_v10, %v7303_v27  ;;  %v1489_v30 = vrot.slane %v13627_v33, 1 }
 0x33b   : > { %v7194_v29 = vpop.f32.mrb[4].mxu1  ;;  %v2623_v53 = vpack.c.bf16 %v1844_v2, %v1843_v37 }
 0x33c   : > { %v11344_v51 = vadd.f32 %v7305_v41, %v3250_v57  ;;  %8231 = vset.pattern.permute.xlu1 %v13456_v12  ;;  %v7195_v47 = vpop.f32.mrb[5].mxu1  ;;  %v2597_v41 = vpack.c.bf16 %v13674_v35, %v10867_v23  ;;  %v2607_v57 = vpack.c.bf16 %v2000_v6, %v1999_v59  ;;  %v13689_v6 = vrot.slane %v13680_v38, 1 }
 0x33d   : > { %v7196_v24 = vadd.f32 %v7195_v47, %v7194_v29  ;;  %2058 = vperm.xlu1 %8231, %v8683_v45   ;;  %v7197_v10 = vpop.f32.mrb[6].mxu1  ;;  %v1647_v22 = vpop.permute.xlu1 %1646  ;;  %3525 = vmatprep.mubr.bf16.mxu0 %v2623_v53  ;;  %v13686_v47 = vld [vmem:[#allocation111_spill] sm:$0xff] }
 0x33e   : > { %v7306_v27 = vpop.f32.mrb[68].mxu0  ;;  %v7198_v36 = vpop.f32.mrb[7].mxu1  ;;  %v13687_v53 = vrot.slane %v13686_v47, 1  ;;  %v11367_v59 = vsel %vm1492_vm1, %v13689_v6, %v1489_v30 }
 0x33f   : > { %v7307_v39 = vpop.f32.mrb[69].mxu0  ;;  %v3255_v37 = vadd.f32 %v7196_v24, %v11323_v20  ;;  %v7199_v2 = vadd.f32 %v7198_v36, %v7197_v10  ;;  %13690 = vst [vmem:[#allocation41_spill] sm:$0xff] %v11367_v59  ;;  %v1683_v10 = vmul.f32 %v1647_v22, %v11367_v59 }
 0x340   : > { %v7308_v17 = vadd.f32 %v7307_v39, %v7306_v27  ;;  %v7309_v52 = vpop.f32.mrb[70].mxu0  ;;  %3663 = vmatmul.mubr.bf16.gmra.mrb[112].mxu1 %v2597_v41  ;;  %v11361_v27 = vsel %vm1492_vm1, %v1489_v30, %v13687_v53 }
 0x341   : > { %v7310_v32 = vpop.f32.mrb[71].mxu0  ;;  %v3258_v45 = vadd.f32 %v7199_v2, %v11323_v20  ;;  %8232 = vset.pattern.permute.xlu1 %v13641_v62  ;;  %3670 = vmatprep.mubr.bf16.mxu1 %v2607_v57  ;;  %13688 = vst [vmem:[#allocation100_spill] sm:$0xff] %v11361_v27  ;;  %v2002_v24 = vmul.f32 %v11321_v13, %v11361_v27  ;;  %v8685_v13 = vld [vmem:[%s13137_s9 + $0x70] sm:$0xff] }
 0x342   : > { %v11353_v0 = vadd.f32 %v7308_v17, %v3255_v37  ;;  %v7311_v29 = vadd.f32 %v7310_v32, %v7309_v52  ;;  %v8684_v17 = vld [vmem:[%s13137_s9 + $0x60] sm:$0xff]  ;;  %v1651_v32 = vpop.permute.xlu1 %1650  ;;  %v11372_v52 = vpop.permute.xlu0 %2190  ;;  %v2001_v37 = vmul.f32 %v11243_v54, %v11367_v59  ;;  %v8686_v59 = vld [vmem:[%s13137_s9 + $0x78] sm:$0xff] }
 0x343   : > { %2374 = vperm.xlu1 %8232, %v8684_v17   ;;  %v1684_v36 = vmul.f32 %v1651_v32, %v11361_v27  ;;  %v7200_v41 = vpop.f32.mrb[8].mxu1 }
 0x344   : > { %v11377_v39 = vadd.f32 %v7311_v29, %v3258_v45  ;;  %v7201_v30 = vpop.f32.mrb[9].mxu1  ;;  %v2606_v29 = vpack.c.bf16 %v13679_v63, %v10935_v16  ;;  %v2616_v32 = vpack.c.bf16 %v2002_v24, %v2001_v37 }
 0x345   : > { %v2622_v2 = vpack.c.bf16 %v1684_v36, %v1683_v10  ;;  %v7202_v53 = vadd.f32 %v7201_v30, %v7200_v41  ;;  %v7203_v6 = vpop.f32.mrb[10].mxu1 }
 0x346   : > { %v7312_v57 = vpop.f32.mrb[72].mxu0  ;;  %v7204_v22 = vpop.f32.mrb[11].mxu1 }
 0x347   : > { %v7313_v17 = vpop.f32.mrb[73].mxu0  ;;  %2382 = vperm.xlu1 %8232, %v8685_v13   ;;  %v3263_v27 = vadd.f32 %v7202_v53, %v11323_v20  ;;  %v7205_v25 = vadd.f32 %v7204_v22, %v7203_v6  ;;  %v1971_v54 = vpop.permute.xlu1 %1970  ;;  %3526 = vmatmul.mubr.bf16.gmra.mrb[124].mxu0 %v2622_v2  ;;  %v13692_v2 = vld [vmem:[#allocation120_spill] sm:$0xff] }
 0x348   : > { %v7314_v1 = vadd.f32 %v7313_v17, %v7312_v57  ;;  %v7315_v45 = vpop.f32.mrb[74].mxu0  ;;  %3671 = vmatmul.mubr.bf16.gmra.mrb[116].mxu1 %v2606_v29  ;;  %v13691_v57 = vld [vmem:[#allocation121_spill] sm:$0xff]  ;;  %v11395_v24 = vpop.permute.xlu0 %2210  ;;  %v2003_v6 = vmul.f32 %v11252_v9, %v13692_v2 }
 0x349   : > { %v7316_v10 = vpop.f32.mrb[75].mxu0  ;;  %v3266_v30 = vadd.f32 %v7205_v25, %v11323_v20  ;;  %3678 = vmatprep.mubr.bf16.mxu1 %v2616_v32  ;;  %v2004_v17 = vmul.f32 %v1971_v54, %v13691_v57  ;;  %v2294_v25 = vmul.f32 %v11297_v4, %v10233_v49 }
 0x34a   : > { %v7317_v36 = vadd.f32 %v7316_v10, %v7315_v45  ;;  %v11388_v41 = vadd.f32 %v7314_v1, %v3263_v27 }
 0x34b   : > { %2386 = vperm.xlu1 %8232, %v8686_v59   ;;  %v7206_v53 = vpop.f32.mrb[12].mxu1  ;;  %v2625_v54 = vpack.c.bf16 %v2004_v17, %v2003_v6 }
 0x34c   : > { %v11397_v37 = vadd.f32 %v7317_v36, %v3266_v30  ;;  %v2167_v1 = vpop.permute.xlu1 %2166  ;;  %v7207_v27 = vpop.f32.mrb[13].mxu1  ;;  %v2615_v30 = vpack.c.bf16 %v13627_v33, %v13680_v38 }
 0x34d   : > { %v2293_v22 = vmul.f32 %v2167_v1, %v10227_v28  ;;  %v7208_v45 = vadd.f32 %v7207_v27, %v7206_v53  ;;  %v7209_v32 = vpop.f32.mrb[14].mxu1  ;;  %v11414_v27 = vpop.permute.xlu0 %2022 }
 0x34e   : > { %v7318_v29 = vpop.f32.mrb[76].mxu0  ;;  %v7210_v36 = vpop.f32.mrb[15].mxu1 }
 0x34f   : > { %v7319_v10 = vpop.f32.mrb[77].mxu0  ;;  %8233 = vset.pattern.permute.xlu1 %v13629_v42  ;;  %v2492_v57 = vpack.c.bf16 %v2294_v25, %v2293_v22  ;;  %v3271_v9 = vadd.f32 %v7208_v45, %v11323_v20  ;;  %v7211_v63 = vadd.f32 %v7210_v36, %v7209_v32  ;;  %v13694_v32 = vld [vmem:[#allocation115_spill] sm:$0xff] }
 0x350   : > { %v7320_v2 = vadd.f32 %v7319_v10, %v7318_v29  ;;  %v7321_v16 = vpop.f32.mrb[78].mxu0  ;;  %2226 = vperm.xlu1 %8233, %v8686_v59   ;;  %3679 = vmatmul.mubr.bf16.gmra.mrb[120].mxu1 %v2615_v30 }
 0x351   : > { %v7322_v49 = vpop.f32.mrb[79].mxu0  ;;  %v3274_v4 = vadd.f32 %v7211_v63, %v11323_v20  ;;  %v2007_v53 = vpop.permute.xlu1 %2006  ;;  %3686 = vmatprep.mubr.bf16.mxu1 %v2625_v54  ;;  %3727 = vmatprep.mubr.bf16.mxu0 %v2492_v57  ;;  %v13695_v57 = vld [vmem:[#allocation114_spill] sm:$0xff] }
 0x352   : > { %v11408_v28 = vadd.f32 %v7320_v2, %v3271_v9  ;;  %v7323_v17 = vadd.f32 %v7322_v49, %v7321_v16  ;;  %v13693_v2 = vld [vmem:[#allocation113_spill] sm:$0xff]  ;;  %v2624_v54 = vpack.c.bf16 %v13695_v57, %v13686_v47 }
 0x353   : > { %v7212_v1 = vpop.f32.mrb[16].mxu1  ;;  %v2133_v29 = vmul.f32 %v2007_v53, %v13693_v2  ;;  %v11430_v2 = vpop.permute.xlu0 %2034 }
 0x354   : > { %v11411_v6 = vadd.f32 %v7323_v17, %v3274_v4  ;;  %8234 = vset.pattern.permute.xlu1 %v13456_v12  ;;  %v7213_v25 = vpop.f32.mrb[17].mxu1 }
 0x355   : > { %2062 = vperm.xlu1 %8234, %v8685_v13   ;;  %v7214_v59 = vadd.f32 %v7213_v25, %v7212_v1  ;;  %v2011_v45 = vpop.permute.xlu1 %2010  ;;  %v7215_v16 = vpop.f32.mrb[18].mxu1  ;;  %v8687_v25 = vld [vmem:[%s13137_s9 + $0x80] sm:$0xff] }
 0x356   : > { %v7324_v22 = vpop.f32.mrb[80].mxu0  ;;  %v2134_v63 = vmul.f32 %v2011_v45, %v13694_v32  ;;  %v7216_v9 = vpop.f32.mrb[19].mxu1 }
 0x357   : > { %v7325_v10 = vpop.f32.mrb[81].mxu0  ;;  %v3279_v36 = vadd.f32 %v7214_v59, %v11323_v20  ;;  %v7217_v13 = vadd.f32 %v7216_v9, %v7215_v16 }
 0x358   : > { %v7326_v30 = vadd.f32 %v7325_v10, %v7324_v22  ;;  %v7327_v49 = vpop.f32.mrb[82].mxu0  ;;  %v2491_v4 = vpack.c.bf16 %v2134_v63, %v2133_v29  ;;  %3687 = vmatmul.mubr.bf16.gmra.mrb[124].mxu1 %v2624_v54  ;;  %v2453_v22 = vmul.f32 %v11272_v44, %v10491_v46  ;;  %v2456_v46 = vmul.f32 %v11285_v34, %v10529_v31 }
 0x359   : > { %v7328_v17 = vpop.f32.mrb[83].mxu0  ;;  %8235 = vset.pattern.permute.xlu1 %v13629_v42  ;;  %v3282_v45 = vadd.f32 %v7217_v13, %v11323_v20 }
 0x35a   : > { %v11422_v1 = vadd.f32 %v7326_v30, %v3279_v36  ;;  %v7329_v53 = vadd.f32 %v7328_v17, %v7327_v49  ;;  %2230 = vperm.xlu1 %8235, %v8687_v25   ;;  %v2331_v59 = vpop.permute.xlu1 %2330  ;;  %3728 = vmatmul.mubr.bf16.vlgmr.msra.gmra.mrb[128].mxu0 %v2491_v4  ;;  %v8688_v30 = vld [vmem:[%s13137_s9 + $0x88] sm:$0xff] }
 0x35b   : > { %v2454_v29 = vmul.f32 %v2331_v59, %v10463_v21  ;;  %v7218_v32 = vpop.f32.mrb[20].mxu1  ;;  %v11442_v59 = vpop.permute.xlu0 %2038 }
 0x35c   : > { %v11433_v63 = vadd.f32 %v7329_v53, %v3282_v45  ;;  %v7219_v16 = vpop.f32.mrb[21].mxu1 }
 0x35d   : > { %v2493_v10 = vpack.c.bf16 %v2454_v29, %v2453_v22  ;;  %v7220_v54 = vadd.f32 %v7219_v16, %v7218_v32  ;;  %v7221_v9 = vpop.f32.mrb[22].mxu1 }
 0x35e   : > { %v7330_v36 = vpop.f32.mrb[84].mxu0  ;;  %2234 = vperm.xlu1 %8235, %v8688_v30   ;;  %v2335_v4 = vpop.permute.xlu1 %2334 }
 0x35f   : > { %v7331_v49 = vpop.f32.mrb[85].mxu0  ;;  %v3287_v21 = vadd.f32 %v7220_v54, %v11323_v20  ;;  %v2455_v13 = vmul.f32 %v2335_v4, %v10552_v56  ;;  %v7222_v17 = vpop.f32.mrb[23].mxu1  ;;  %7919 = vmatprep.mubr.bf16.mxu1 %v2493_v10  ;;  %v2296_v56 = vmul.f32 %v11314_v19, %v10311_v7  ;;  %v8689_v7 = vld [vmem:[%s13137_s9 + $0x90] sm:$0xff] }
 0x360   : > { %v7332_v44 = vadd.f32 %v7331_v49, %v7330_v36  ;;  %v7333_v53 = vpop.f32.mrb[86].mxu0  ;;  %v7223_v25 = vadd.f32 %v7222_v17, %v7221_v9 }
 0x361   : > { %v7334_v45 = vpop.f32.mrb[87].mxu0  ;;  %v2502_v29 = vpack.c.bf16 %v2456_v46, %v2455_v13 }
 0x362   : > { %v11444_v22 = vadd.f32 %v7332_v44, %v3287_v21  ;;  %v7335_v32 = vadd.f32 %v7334_v45, %v7333_v53  ;;  %8237 = vset.pattern.permute.xlu1 %v13456_v12  ;;  %v3290_v31 = vadd.f32 %v7223_v25, %v11323_v20  ;;  %v11454_v21 = vpop.permute.xlu0 %2054  ;;  %v13696_v25 = vld [vmem:[#allocation125_spill] sm:$0xff] }
 0x363   : > { %2074 = vperm.xlu1 %8237, %v8688_v30   ;;  %v2175_v34 = vpop.permute.xlu1 %2174  ;;  %v7224_v16 = vpop.f32.mrb[24].mxu1  ;;  %7920 = vmatmul.mubr.bf16.vlgmr.msra.gmra.mrb[128].mxu1 %v2502_v29  ;;  %v13697_v29 = vld [vmem:[#allocation124_spill] sm:$0xff] }
 0x364   : > { %v11450_v10 = vadd.f32 %v7335_v32, %v3290_v31  ;;  %v2295_v54 = vmul.f32 %v2175_v34, %v10309_v61  ;;  %v7225_v36 = vpop.f32.mrb[25].mxu1 }
 0x365   : > { %v7226_v9 = vadd.f32 %v7225_v36, %v7224_v16  ;;  %v7227_v49 = vpop.f32.mrb[26].mxu1 }
 0x366   : > { %v2501_v4 = vpack.c.bf16 %v2296_v56, %v2295_v54  ;;  %v7228_v46 = vpop.f32.mrb[27].mxu1  ;;  %v11459_v53 = vpop.permute.xlu0 %2066 }
 0x367   : > { %8238 = vset.pattern.permute.xlu1 %v13641_v62  ;;  %v7229_v44 = vadd.f32 %v7228_v46, %v7227_v49  ;;  %v3295_v49 = vadd.f32 %v7226_v9, %v11323_v20 }
 0x368   : > { %2394 = vperm.xlu1 %8238, %v8688_v30   ;;  %v2015_v13 = vpop.permute.xlu1 %2014  ;;  %3735 = vmatprep.mubr.bf16.mxu0 %v2501_v4 }
 0x369   : > { %v2135_v45 = vmul.f32 %v2015_v13, %v13696_v25  ;;  %v2297_v13 = vmul.f32 %v11340_v58, %v10389_v55 }
 0x36b   : > { %v7230_v19 = vpop.f32.mrb[28].mxu1 }
 0x36c   : > { %2398 = vperm.xlu1 %8238, %v8689_v7   ;;  %v2019_v61 = vpop.permute.xlu1 %2018  ;;  %v7231_v17 = vpop.f32.mrb[29].mxu1 }
 0x36d   : > { %v2136_v32 = vmul.f32 %v2019_v61, %v13697_v29  ;;  %v7232_v31 = vadd.f32 %v7231_v17, %v7230_v19  ;;  %v7233_v34 = vpop.f32.mrb[30].mxu1  ;;  %v7336_v30 = vpop.f32.mrb[88].mxu0 }
 0x36e   : > { %v7234_v16 = vpop.f32.mrb[31].mxu1  ;;  %v7337_v36 = vpop.f32.mrb[89].mxu0 }
 0x36f   : > { %v2500_v56 = vpack.c.bf16 %v2136_v32, %v2135_v45  ;;  %v11463_v54 = vadd.f32 %v7234_v16, %v7233_v34  ;;  %v7338_v4 = vadd.f32 %v7337_v36, %v7336_v30  ;;  %v7339_v46 = vpop.f32.mrb[90].mxu0  ;;  %v3298_v45 = vadd.f32 %v7229_v44, %v11323_v20  ;;  %v11473_v34 = vpop.permute.xlu0 %2070 }
 0x370   : > { %8239 = vset.pattern.permute.xlu1 %v13629_v42  ;;  %v7340_v19 = vpop.f32.mrb[91].mxu0 }
 0x371   : > { %2238 = vperm.xlu1 %8239, %v8689_v7   ;;  %v2187_v25 = vpop.permute.xlu1 %2186  ;;  %3736 = vmatmul.mubr.bf16.gmra.mrb[132].mxu0 %v2500_v56  ;;  %v11469_v61 = vadd.f32 %v7338_v4, %v3295_v49  ;;  %v7341_v29 = vadd.f32 %v7340_v19, %v7339_v46  ;;  %v13699_v49 = vld [vmem:[#allocation129_spill] sm:$0xff]  ;;  %v3306_v57 = vadd.f32 %v11463_v54, %v11323_v20  ;;  %v13704_v54 = vld [vmem:[#allocation128_spill] sm:$0xff] }
 0x372   : > { %v2298_v17 = vmul.f32 %v2187_v25, %v10406_v5  ;;  %v13698_v5 = vld [vmem:[#allocation126_spill] sm:$0xff] }
 0x373   : > { %v7236_v32 = vpop.f32.mrb[32].mxu1  ;;  %v11475_v9 = vadd.f32 %v7341_v29, %v3298_v45  ;;  %v2137_v44 = vmul.f32 %v11414_v27, %v13698_v5  ;;  %v8690_v25 = vld [vmem:[%s13137_s9 + $0x98] sm:$0xff]  ;;  %v2347_v19 = vpop.permute.xlu0 %2346 }
 0x374   : > { %v2510_v16 = vpack.c.bf16 %v2298_v17, %v2297_v13  ;;  %v7237_v30 = vpop.f32.mrb[33].mxu1  ;;  %v2458_v45 = vmul.f32 %v2347_v19, %v10598_v26 }
 0x375   : > { %8240 = vset.pattern.permute.xlu1 %v13456_v12  ;;  %v11478_v55 = vadd.f32 %v7237_v30, %v7236_v32  ;;  %v7239_v58 = vpop.f32.mrb[34].mxu1 }
 0x376   : > { %2078 = vperm.xlu1 %8240, %v8689_v7   ;;  %v2027_v56 = vpop.permute.xlu1 %2026  ;;  %v7240_v36 = vpop.f32.mrb[35].mxu1  ;;  %3743 = vmatprep.mubr.bf16.mxu0 %v2510_v16 }
 0x377   : > { %v2138_v4 = vmul.f32 %v2027_v56, %v13699_v49  ;;  %v11483_v46 = vadd.f32 %v7240_v36, %v7239_v58  ;;  %v8691_v58 = vld [vmem:[%s13137_s9 + $0xa8] sm:$0xff] }
 0x379   : > { %v2509_v13 = vpack.c.bf16 %v2138_v4, %v2137_v44  ;;  %v3303_v44 = vadd.f32 %v7232_v31, %v11323_v20 }
 0x37a   : > { %2082 = vperm.xlu1 %8240, %v8690_v25   ;;  %v13700_v25 = vld [vmem:[#allocation77_spill] sm:$0xff] }
 0x37b   : > { %v2343_v17 = vpop.permute.xlu1 %2342  ;;  %v7242_v7 = vpop.f32.mrb[36].mxu1  ;;  %3744 = vmatmul.mubr.bf16.gmra.mrb[136].mxu0 %v2509_v13 }
 0x37c   : > { %v2457_v29 = vmul.f32 %v2343_v17, %v10614_v3  ;;  %v7243_v32 = vpop.f32.mrb[37].mxu1  ;;  %v13701_v17 = vld [vmem:[#allocation24_spill] sm:$0xff] }
 0x37d   : > { %v11490_v27 = vadd.f32 %v7243_v32, %v7242_v7  ;;  %v7245_v16 = vpop.f32.mrb[38].mxu1 }
 0x37e   : > { %8241 = vset.pattern.permute.xlu1 %v13629_v42  ;;  %v2511_v30 = vpack.c.bf16 %v2458_v45, %v2457_v29  ;;  %v7246_v56 = vpop.f32.mrb[39].mxu1 }
 0x37f   : > { %2250 = vperm.xlu1 %8241, %v8691_v58   ;;  %v11496_v36 = vadd.f32 %v7246_v56, %v7245_v16  ;;  %v2351_v5 = vpop.permute.xlu1 %2350 }
 0x380   : > { %7923 = vmatprep.mubr.bf16.mxu1 %v2511_v30  ;;  %v7342_v26 = vpop.f32.mrb[92].mxu0  ;;  %v2459_v19 = vmul.f32 %v2351_v5, %v13700_v25 }
 0x381   : > { %v7343_v3 = vpop.f32.mrb[93].mxu0 }
 0x382   : > { %v7344_v13 = vadd.f32 %v7343_v3, %v7342_v26  ;;  %v7345_v29 = vpop.f32.mrb[94].mxu0  ;;  %v8692_v26 = vld [vmem:[%s13137_s9 + $0xa0] sm:$0xff] }
 0x383   : > { %8242 = vset.pattern.permute.xlu1 %v13456_v12  ;;  %v2355_v49 = vpop.permute.xlu1 %2354  ;;  %v7248_v4 = vpop.f32.mrb[40].mxu1 }
 0x384   : > { %2090 = vperm.xlu1 %8242, %v8691_v58   ;;  %v2460_v7 = vmul.f32 %v2355_v49, %v13701_v17  ;;  %v7249_v45 = vpop.f32.mrb[41].mxu1  ;;  %v11502_v32 = vadd.f32 %v7344_v13, %v3303_v44  ;;  %v7346_v56 = vpop.f32.mrb[95].mxu0  ;;  %v13703_v44 = vld [vmem:[#allocation127_spill] sm:$0xff] }
 0x385   : > { %v11504_v16 = vadd.f32 %v7249_v45, %v7248_v4  ;;  %v7251_v30 = vpop.f32.mrb[42].mxu1  ;;  %v7347_v58 = vadd.f32 %v7346_v56, %v7345_v29  ;;  %v2299_v49 = vmul.f32 %v11372_v52, %v13703_v44  ;;  %v13705_v45 = vld [vmem:[#allocation68_spill] sm:$0xff]  ;;  %v2359_v44 = vpop.permute.xlu0 %2358 }
 0x386   : > { %v2520_v31 = vpack.c.bf16 %v2460_v7, %v2459_v19  ;;  %v7252_v47 = vpop.f32.mrb[43].mxu1  ;;  %v2140_v29 = vmul.f32 %v11430_v2, %v13705_v45 }
 0x387   : > { %v11508_v38 = vadd.f32 %v7252_v47, %v7251_v30  ;;  %v11511_v5 = vadd.f32 %v7347_v58, %v3306_v57  ;;  %v8693_v47 = vld [vmem:[%s13137_s9 + $0xb0] sm:$0xff]  ;;  %v13706_v30 = vld [vmem:[#allocation20_spill] sm:$0xff] }
 0x388   : > { %8243 = vset.pattern.permute.xlu1 %v13641_v62  ;;  %v2195_v3 = vpop.permute.xlu1 %2194  ;;  %7924 = vmatmul.mubr.bf16.gmra.mrb[132].mxu1 %v2520_v31 }
 0x389   : > { %13702 = vst [vmem:[#allocation65_spill] sm:$0xff] %v11511_v5  ;;  %2406 = vperm.xlu1 %8243, %v8692_v26   ;;  %v2300_v4 = vmul.f32 %v2195_v3, %v13704_v54  ;;  %v8694_v26 = vld [vmem:[%s13137_s9 + $0xb8] sm:$0xff] }
 0x38b   : > { %v2519_v13 = vpack.c.bf16 %v2300_v4, %v2299_v49  ;;  %v7254_v25 = vpop.f32.mrb[44].mxu1 }
 0x38c   : > { %v7255_v57 = vpop.f32.mrb[45].mxu1 }
 0x38d   : > { %2414 = vperm.xlu1 %8243, %v8693_v47   ;;  %v11522_v19 = vadd.f32 %v7255_v57, %v7254_v25  ;;  %v2031_v17 = vpop.permute.xlu1 %2030  ;;  %v7257_v7 = vpop.f32.mrb[46].mxu1  ;;  %3751 = vmatprep.mubr.bf16.mxu0 %v2519_v13  ;;  %v3311_v57 = vadd.f32 %v11478_v55, %v11323_v20 }
 0x38e   : > { %v2139_v52 = vmul.f32 %v2031_v17, %v13706_v30  ;;  %v7258_v56 = vpop.f32.mrb[47].mxu1 }
 0x38f   : > { %v11527_v31 = vadd.f32 %v7258_v56, %v7257_v7 }
 0x390   : > { %v2518_v58 = vpack.c.bf16 %v2140_v29, %v2139_v52  ;;  %v13707_v29 = vld [vmem:[#allocation90_spill] sm:$0xff]  ;;  %v13708_v52 = vld [vmem:[#allocation67_spill] sm:$0xff] }
 0x391   : > { %2418 = vperm.xlu1 %8243, %v8694_v26  }
 0x392   : > { %v2199_v3 = vpop.permute.xlu1 %2198  ;;  %3752 = vmatmul.mubr.bf16.gmra.mrb[140].mxu0 %v2518_v58 }
 0x393   : > { %v7260_v49 = vpop.f32.mrb[48].mxu1  ;;  %v7348_v4 = vpop.f32.mrb[96].mxu0  ;;  %v2301_v30 = vmul.f32 %v2199_v3, %v13707_v29 }
 0x394   : > { %v7261_v54 = vpop.f32.mrb[49].mxu1  ;;  %v7349_v25 = vpop.f32.mrb[97].mxu0 }
 0x395   : > { %8245 = vset.pattern.permute.xlu1 %v13629_v42  ;;  %v11533_v2 = vadd.f32 %v7261_v54, %v7260_v49  ;;  %v7263_v13 = vpop.f32.mrb[50].mxu1  ;;  %v7350_v45 = vadd.f32 %v7349_v25, %v7348_v4  ;;  %v7351_v33 = vpop.f32.mrb[98].mxu0 }
 0x396   : > { %2258 = vperm.xlu1 %8245, %v8694_v26   ;;  %v2203_v17 = vpop.permute.xlu1 %2202  ;;  %v7264_v7 = vpop.f32.mrb[51].mxu1  ;;  %v3314_v26 = vadd.f32 %v11483_v46, %v11323_v20 }
 0x397   : > { %v2302_v56 = vmul.f32 %v2203_v17, %v13708_v52  ;;  %v11539_v58 = vadd.f32 %v7264_v7, %v7263_v13  ;;  %v11541_v35 = vadd.f32 %v7350_v45, %v3311_v57  ;;  %v7352_v49 = vpop.f32.mrb[99].mxu0  ;;  %v2371_v54 = vpop.permute.xlu0 %2370  ;;  %v13709_v13 = vld [vmem:[#allocation22_spill] sm:$0xff]  ;;  %v13710_v57 = vld [vmem:[#allocation21_spill] sm:$0xff] }
 0x398   : > { %v7353_v5 = vadd.f32 %v7352_v49, %v7351_v33  ;;  %v2141_v25 = vmul.f32 %v11442_v59, %v13709_v13 }
 0x399   : > { %v2528_v23 = vpack.c.bf16 %v2302_v56, %v2301_v30  ;;  %v13712_v56 = vld [vmem:[#allocation31_spill] sm:$0xff] }
 0x39a   : > { %8246 = vset.pattern.permute.xlu1 %v13456_v12  ;;  %v11546_v55 = vadd.f32 %v7353_v5, %v3314_v26 }
 0x39b   : > { %2094 = vperm.xlu1 %8246, %v8693_v47   ;;  %v2043_v3 = vpop.permute.xlu1 %2042  ;;  %v7266_v4 = vpop.f32.mrb[52].mxu1  ;;  %3759 = vmatprep.mubr.bf16.mxu0 %v2528_v23  ;;  %v8695_v23 = vld [vmem:[%s13137_s9 + $0xc0] sm:$0xff] }
 0x39c   : > { %v2142_v17 = vmul.f32 %v2043_v3, %v13710_v57  ;;  %v7267_v7 = vpop.f32.mrb[53].mxu1  ;;  %v11554_v30 = vpop.permute.xlu0 %2378  ;;  %v13711_v47 = vld [vmem:[#allocation48_spill] sm:$0xff]  ;;  %v13713_v57 = vld [vmem:[#allocation79_spill] sm:$0xff] }
 0x39d   : > { %v11551_v45 = vadd.f32 %v7267_v7, %v7266_v4  ;;  %v7269_v29 = vpop.f32.mrb[54].mxu1  ;;  %v2461_v52 = vmul.f32 %v2359_v44, %v13711_v47  ;;  %v8696_v3 = vld [vmem:[%s13137_s9 + $0xc8] sm:$0xff] }
 0x39e   : > { %v2527_v46 = vpack.c.bf16 %v2142_v17, %v2141_v25  ;;  %v7270_v33 = vpop.f32.mrb[55].mxu1  ;;  %v2464_v17 = vmul.f32 %v2371_v54, %v13713_v57  ;;  %v3319_v54 = vadd.f32 %v11490_v27, %v11323_v20 }
 0x39f   : > { %8247 = vset.pattern.permute.xlu1 %v13629_v42  ;;  %v11556_v5 = vadd.f32 %v7270_v33, %v7269_v29  ;;  %v13714_v29 = vld [vmem:[#allocation83_spill] sm:$0xff] }
 0x3a0   : > { %2262 = vperm.xlu1 %8247, %v8695_v23   ;;  %v2363_v59 = vpop.permute.xlu1 %2362  ;;  %3760 = vmatmul.mubr.bf16.gmra.mrb[144].mxu0 %v2527_v46  ;;  %v11567_v7 = vpop.permute.xlu0 %2390 }
 0x3a1   : > { %v2462_v49 = vmul.f32 %v2363_v59, %v13712_v56 }
 0x3a3   : > { %v2529_v26 = vpack.c.bf16 %v2462_v49, %v2461_v52  ;;  %v7272_v4 = vpop.f32.mrb[56].mxu1 }
 0x3a4   : > { %2266 = vperm.xlu1 %8247, %v8696_v3   ;;  %v2367_v13 = vpop.permute.xlu1 %2366  ;;  %v7273_v25 = vpop.f32.mrb[57].mxu1 }
 0x3a5   : > { %v2463_v33 = vmul.f32 %v2367_v13, %v13714_v29  ;;  %v11570_v46 = vadd.f32 %v7273_v25, %v7272_v4  ;;  %v7275_v44 = vpop.f32.mrb[58].mxu1  ;;  %7927 = vmatprep.mubr.bf16.mxu1 %v2529_v26  ;;  %v2304_v4 = vmul.f32 %v11395_v24, %v13669_v8  ;;  %v3322_v29 = vadd.f32 %v11496_v36, %v11323_v20 }
 0x3a6   : > { %v7276_v23 = vpop.f32.mrb[59].mxu1  ;;  %v7354_v52 = vpop.f32.mrb[100].mxu0 }
 0x3a7   : > { %v2538_v59 = vpack.c.bf16 %v2464_v17, %v2463_v33  ;;  %v11572_v47 = vadd.f32 %v7276_v23, %v7275_v44  ;;  %v7355_v56 = vpop.f32.mrb[101].mxu0  ;;  %v11580_v17 = vpop.permute.xlu0 %2402 }
 0x3a8   : > { %8248 = vset.pattern.permute.xlu1 %v13456_v12  ;;  %v7356_v57 = vadd.f32 %v7355_v56, %v7354_v52  ;;  %v7357_v13 = vpop.f32.mrb[102].mxu0 }
 0x3a9   : > { %2106 = vperm.xlu1 %8248, %v8696_v3   ;;  %v2207_v49 = vpop.permute.xlu1 %2206  ;;  %7928 = vmatmul.mubr.bf16.gmra.mrb[136].mxu1 %v2538_v59  ;;  %v7358_v25 = vpop.f32.mrb[103].mxu0 }
 0x3aa   : > { %v2303_v26 = vmul.f32 %v2207_v49, %v13668_v18  ;;  %v11584_v33 = vadd.f32 %v7356_v57, %v3319_v54  ;;  %v7359_v23 = vadd.f32 %v7358_v25, %v7357_v13  ;;  %v8697_v54 = vld [vmem:[%s13137_s9 + $0xd0] sm:$0xff] }
 0x3ab   : > { %v7278_v44 = vpop.f32.mrb[60].mxu1  ;;  %v11593_v36 = vpop.permute.xlu0 %2410  ;;  %v13717_v13 = vld [vmem:[#allocation25_spill] sm:$0xff] }
 0x3ac   : > { %v2537_v27 = vpack.c.bf16 %v2304_v4, %v2303_v26  ;;  %v7279_v59 = vpop.f32.mrb[61].mxu1  ;;  %v11587_v52 = vadd.f32 %v7359_v23, %v3322_v29  ;;  %v13718_v26 = vld [vmem:[#allocation81_spill] sm:$0xff] }
 0x3ad   : > { %8249 = vset.pattern.permute.xlu1 %v13641_v62  ;;  %v11589_v56 = vadd.f32 %v7279_v59, %v7278_v44  ;;  %v7281_v18 = vpop.f32.mrb[62].mxu1 }
 0x3ae   : > { %2426 = vperm.xlu1 %8249, %v8696_v3   ;;  %v2047_v8 = vpop.permute.xlu1 %2046  ;;  %v7282_v24 = vpop.f32.mrb[63].mxu1  ;;  %3767 = vmatprep.mubr.bf16.mxu0 %v2537_v27 }
 0x3af   : > { %13715 = vst [vmem:[#allocation61_spill] sm:$0xff] %v11589_v56  ;;  %v11591_v49 = vadd.f32 %v7282_v24, %v7281_v18  ;;  %v2143_v4 = vmul.f32 %v2047_v8, %v13717_v13  ;;  %v2215_v18 = vpop.permute.xlu0 %2214  ;;  %v13719_v13 = vld [vmem:[#allocation70_spill] sm:$0xff] }
 0x3b0   : > { %v2305_v8 = vmul.f32 %v2215_v18, %v13672_v40  ;;  %v13721_v40 = vld [vmem:[#allocation76_spill] sm:$0xff] }
 0x3b1   : > { %13716 = vst [vmem:[#allocation99_spill] sm:$0xff] %v11591_v49 }
 0x3b2   : > { %2430 = vperm.xlu1 %8249, %v8697_v54   ;;  %v2051_v57 = vpop.permute.xlu1 %2050 }
 0x3b3   : > { %v2144_v25 = vmul.f32 %v2051_v57, %v13718_v26  ;;  %v7412_v29 = vpop.f32.mrb[64].mxu1 }
 0x3b4   : > { %v7413_v3 = vpop.f32.mrb[65].mxu1 }
 0x3b5   : > { %v2536_v44 = vpack.c.bf16 %v2144_v25, %v2143_v4  ;;  %v7414_v23 = vadd.f32 %v7413_v3, %v7412_v29  ;;  %v7415_v27 = vpop.f32.mrb[66].mxu1 }
 0x3b6   : > { %8250 = vset.pattern.permute.xlu1 %v13629_v42  ;;  %v7416_v59 = vpop.f32.mrb[67].mxu1 }
 0x3b7   : > { %2270 = vperm.xlu1 %8250, %v8697_v54   ;;  %v11602_v24 = vadd.f32 %v7414_v23, %v11334_v60  ;;  %v7417_v49 = vadd.f32 %v7416_v59, %v7415_v27  ;;  %v2219_v56 = vpop.permute.xlu1 %2218  ;;  %3768 = vmatmul.mubr.bf16.gmra.mrb[148].mxu0 %v2536_v44  ;;  %v3327_v60 = vadd.f32 %v11504_v16, %v11323_v20  ;;  %v13722_v59 = vld [vmem:[#allocation33_spill] sm:$0xff] }
 0x3b8   : > { %v2306_v57 = vmul.f32 %v2219_v56, %v13719_v13  ;;  %v2145_v56 = vmul.f32 %v11454_v21, %v13721_v40  ;;  %v8698_v21 = vld [vmem:[%s13137_s9 + $0xd8] sm:$0xff] }
 0x3b9   : > { %v11607_v26 = vadd.f32 %v7417_v49, %v11344_v51  ;;  %v13724_v40 = vld [vmem:[#allocation43_spill] sm:$0xff] }
 0x3ba   : > { %v2546_v4 = vpack.c.bf16 %v2306_v57, %v2305_v8  ;;  %v7360_v25 = vpop.f32.mrb[104].mxu0 }
 0x3bb   : > { %13720 = vst [vmem:[#allocation57_spill] sm:$0xff] %v11607_v26  ;;  %8252 = vset.pattern.permute.xlu1 %v13456_v12  ;;  %v7418_v29 = vpop.f32.mrb[68].mxu1  ;;  %v7361_v3 = vpop.f32.mrb[105].mxu0 }
 0x3bc   : > { %2110 = vperm.xlu1 %8252, %v8697_v54   ;;  %v2059_v23 = vpop.permute.xlu1 %2058  ;;  %v7362_v27 = vadd.f32 %v7361_v3, %v7360_v25  ;;  %v7419_v44 = vpop.f32.mrb[69].mxu1  ;;  %3775 = vmatprep.mubr.bf16.mxu0 %v2546_v4  ;;  %v3330_v54 = vadd.f32 %v11508_v38, %v11323_v20 }
 0x3bd   : > { %v2146_v51 = vmul.f32 %v2059_v23, %v13722_v59  ;;  %v7420_v49 = vadd.f32 %v7419_v44, %v7418_v29  ;;  %v7363_v18 = vpop.f32.mrb[106].mxu0  ;;  %v7421_v8 = vpop.f32.mrb[70].mxu1  ;;  %v13723_v44 = vld [vmem:[#allocation82_spill] sm:$0xff] }
 0x3be   : > { %v11617_v13 = vadd.f32 %v7362_v27, %v3327_v60  ;;  %v7364_v57 = vpop.f32.mrb[107].mxu0  ;;  %v7422_v26 = vpop.f32.mrb[71].mxu1  ;;  %v8383_v60 = vld [vmem:[#allocation10] ss:$8 sps:$4 sm:$0xff]   ;;  %v8385_v27 = vld [vmem:[#allocation10 + $0x4] ss:$8 sps:$4 sm:$0xff]  }
 0x3bf   : > { %v2545_v16 = vpack.c.bf16 %v2146_v51, %v2145_v56  ;;  %v11620_v25 = vadd.f32 %v7420_v49, %v11353_v0  ;;  %v7365_v4 = vadd.f32 %v7364_v57, %v7363_v18  ;;  %v7423_v3 = vadd.f32 %v7422_v26, %v7421_v8  ;;  %4173 = vmatprep.subr.bf16.mxu1 %v8385_v27  ;;  %v8699_v51 = vld [vmem:[%s13137_s9 + $0xe8] sm:$0xff] }
 0x3c0   : > { %2114 = vperm.xlu1 %8252, %v8698_v21   ;;  %v2466_v0 = vmul.f32 %v11554_v30, %v13723_v44  ;;  %4174 = vmatpush1.bf16.msra.mxu1 %v8383_v60  ;;  %v13726_v27 = vld [vmem:[#allocation92_spill] sm:$0xff] }
 0x3c1   : > { %v11625_v29 = vadd.f32 %v7365_v4, %v3330_v54  ;;  %v11628_v23 = vadd.f32 %v7423_v3, %v11377_v39  ;;  %3776 = vmatmul.mubr.bf16.gmra.mrb[152].mxu0 %v2545_v16  ;;  %v8388_v16 = vld [vmem:[#allocation10 + $0x14] ss:$8 sps:$4 sm:$0xff]   ;;  %v8386_v4 = vld [vmem:[#allocation10 + $0x10] ss:$8 sps:$4 sm:$0xff]  }
 0x3c2   : > { %v2375_v38 = vpop.permute.xlu1 %2374  ;;  %4175 = vmatprep.subr.bf16.mxu1 %v8388_v16 }
 0x3c3   : > { %v2465_v56 = vmul.f32 %v2375_v38, %v13724_v40  ;;  %v7424_v26 = vpop.f32.mrb[72].mxu1  ;;  %v13725_v38 = vld [vmem:[#allocation37_spill] sm:$0xff] }
 0x3c4   : > { %8253 = vset.pattern.permute.xlu1 %v13629_v42  ;;  %v7425_v39 = vpop.f32.mrb[73].mxu1  ;;  %4176 = vmatpush1.bf16.msra.mxu1 %v8386_v4  ;;  %v8391_v40 = vld [vmem:[#allocation10 + $0x24] ss:$8 sps:$4 sm:$0xff]  }
 0x3c5   : > { %v2547_v59 = vpack.c.bf16 %v2466_v0, %v2465_v56  ;;  %2282 = vperm.xlu1 %8253, %v8699_v51   ;;  %v7426_v49 = vadd.f32 %v7425_v39, %v7424_v26  ;;  %v7427_v8 = vpop.f32.mrb[74].mxu1  ;;  %v8389_v26 = vld [vmem:[#allocation10 + $0x20] ss:$8 sps:$4 sm:$0xff]   ;;  %4177 = vmatprep.subr.bf16.mxu1 %v8391_v40 }
 0x3c6   : > { %v2383_v18 = vpop.permute.xlu1 %2382  ;;  %v7428_v54 = vpop.f32.mrb[75].mxu1 }
 0x3c7   : > { %7931 = vmatprep.mubr.bf16.mxu1 %v2547_v59  ;;  %v11638_v30 = vadd.f32 %v7426_v49, %v11388_v41  ;;  %v7429_v57 = vadd.f32 %v7428_v54, %v7427_v8  ;;  %v2467_v60 = vmul.f32 %v2383_v18, %v13725_v38  ;;  %v2223_v59 = vpop.permute.xlu0 %2222 }
 0x3c8   : > { %v2307_v8 = vmul.f32 %v2223_v59, %v10716_v14  ;;  %4178 = vmatpush1.bf16.msra.mxu1 %v8389_v26  ;;  %v3338_v14 = vadd.f32 %v11527_v31, %v11323_v20 }
 0x3c9   : > { %8255 = vset.pattern.permute.xlu1 %v13456_v12  ;;  %v11642_v3 = vadd.f32 %v7429_v57, %v11397_v37  ;;  %v8700_v37 = vld [vmem:[%s13137_s9 + $0xe0] sm:$0xff] }
 0x3ca   : > { %2122 = vperm.xlu1 %8255, %v8699_v51   ;;  %v2387_v21 = vpop.permute.xlu1 %2386 }
 0x3cb   : > { %v2468_v44 = vmul.f32 %v2387_v21, %v13726_v27  ;;  %v7430_v0 = vpop.f32.mrb[76].mxu1  ;;  %v3335_v21 = vadd.f32 %v11522_v19, %v11323_v20  ;;  %v8701_v19 = vld [vmem:[%s13137_s9 + $0xf0] sm:$0xff] }
 0x3cc   : > { %v7431_v56 = vpop.f32.mrb[77].mxu1 }
 0x3cd   : > { %v2556_v41 = vpack.c.bf16 %v2468_v44, %v2467_v60  ;;  %v7432_v39 = vadd.f32 %v7431_v56, %v7430_v0  ;;  %v7433_v49 = vpop.f32.mrb[78].mxu1  ;;  %v7366_v18 = vpop.f32.mrb[108].mxu0  ;;  %v8392_v44 = vld [vmem:[#allocation10 + $0x30] ss:$8 sps:$4 sm:$0xff]   ;;  %v8397_v56 = vld [vmem:[#allocation10 + $0x44] ss:$8 sps:$4 sm:$0xff]  }
 0x3ce   : > { %8256 = vset.pattern.permute.xlu1 %v13641_v62  ;;  %v7434_v16 = vpop.f32.mrb[79].mxu1  ;;  %v7367_v4 = vpop.f32.mrb[109].mxu0  ;;  %v8394_v62 = vld [vmem:[#allocation10 + $0x34] ss:$8 sps:$4 sm:$0xff]  }
 0x3cf   : > { %2438 = vperm.xlu1 %8256, %v8700_v37   ;;  %v2227_v51 = vpop.permute.xlu1 %2226  ;;  %7932 = vmatmul.mubr.bf16.gmra.mrb[140].mxu1 %v2556_v41  ;;  %v11652_v54 = vadd.f32 %v7432_v39, %v11408_v28  ;;  %v7435_v38 = vadd.f32 %v7434_v16, %v7433_v49  ;;  %v7368_v60 = vadd.f32 %v7367_v4, %v7366_v18  ;;  %v7369_v27 = vpop.f32.mrb[110].mxu0  ;;  %v8395_v39 = vld [vmem:[#allocation10 + $0x40] ss:$8 sps:$4 sm:$0xff]   ;;  %v8702_v16 = vld [vmem:[%s13137_s9 + $0xf8] sm:$0xff] }
 0x3d0   : > { %v2308_v57 = vmul.f32 %v2227_v51, %v13677_v43  ;;  %v7370_v40 = vpop.f32.mrb[111].mxu0  ;;  %4179 = vmatprep.subr.bf16.mxu1 %v8394_v62  ;;  %v13727_v49 = vld [vmem:[#allocation28_spill] sm:$0xff] }
 0x3d1   : > { %v11660_v28 = vadd.f32 %v7435_v38, %v11411_v6  ;;  %v11662_v43 = vadd.f32 %v7368_v60, %v3335_v21  ;;  %v7371_v41 = vadd.f32 %v7370_v40, %v7369_v27  ;;  %4180 = vmatpush1.bf16.msra.mxu1 %v8392_v44  ;;  %v2148_v20 = vmul.f32 %v11459_v53, %v13727_v49  ;;  %v13728_v6 = vld [vmem:[#allocation38_spill] sm:$0xff] }
 0x3d2   : > { %v2555_v0 = vpack.c.bf16 %v2308_v57, %v2307_v8  ;;  %4181 = vmatprep.subr.bf16.mxu1 %v8397_v56  ;;  %v8400_v53 = vld [vmem:[#allocation10 + $0x54] ss:$8 sps:$4 sm:$0xff]   ;;  %v8398_v60 = vld [vmem:[#allocation10 + $0x50] ss:$8 sps:$4 sm:$0xff]  }
 0x3d3   : > { %2446 = vperm.xlu1 %8256, %v8701_v19   ;;  %v7436_v59 = vpop.f32.mrb[80].mxu1  ;;  %v11669_v31 = vadd.f32 %v7371_v41, %v3338_v14 }
 0x3d4   : > { %v2063_v26 = vpop.permute.xlu1 %2062  ;;  %3783 = vmatprep.mubr.bf16.mxu0 %v2555_v0  ;;  %v7437_v51 = vpop.f32.mrb[81].mxu1  ;;  %v8403_v0 = vld [vmem:[#allocation10 + $0x64] ss:$8 sps:$4 sm:$0xff]  }
 0x3d5   : > { %v2147_v37 = vmul.f32 %v2063_v26, %v13728_v6  ;;  %v7438_v18 = vadd.f32 %v7437_v51, %v7436_v59  ;;  %v7439_v8 = vpop.f32.mrb[82].mxu1  ;;  %4182 = vmatpush1.bf16.msra.mxu1 %v8395_v39  ;;  %v8404_v6 = vld [vmem:[#allocation10 + $0x70] ss:$8 sps:$4 sm:$0xff]  }
 0x3d6   : > { %v7440_v4 = vpop.f32.mrb[83].mxu1  ;;  %4183 = vmatprep.subr.bf16.mxu1 %v8400_v53  ;;  %v13729_v51 = vld [vmem:[#allocation34_spill] sm:$0xff] }
 0x3d7   : > { %v2554_v57 = vpack.c.bf16 %v2148_v20, %v2147_v37  ;;  %2450 = vperm.xlu1 %8256, %v8702_v16   ;;  %v11676_v62 = vadd.f32 %v7438_v18, %v11422_v1  ;;  %v7441_v21 = vadd.f32 %v7440_v4, %v7439_v8  ;;  %v8401_v1 = vld [vmem:[#allocation10 + $0x60] ss:$8 sps:$4 sm:$0xff]   ;;  %v8406_v20 = vld [vmem:[#allocation10 + $0x74] ss:$8 sps:$4 sm:$0xff]   ;;  %v2149_v18 = vmul.f32 %v11473_v34, %v13729_v51 }
 0x3d8   : > { %v13730_v8 = vld [vmem:[#allocation74_spill] sm:$0xff] }
 0x3d9   : > { %v2231_v38 = vpop.permute.xlu1 %2230  ;;  %3784 = vmatmul.mubr.bf16.gmra.mrb[156].mxu0 %v2554_v57  ;;  %v11679_v27 = vadd.f32 %v7441_v21, %v11433_v63  ;;  %4184 = vmatpush1.bf16.msra.mxu1 %v8398_v60  ;;  %v13731_v60 = vmov 0   ;;  %v13735_v51 = vld [vmem:[#allocation94_spill] sm:$0xff] }
 0x3da   : > { %v2309_v41 = vmul.f32 %v2231_v38, %v10768_v15  ;;  %4185 = vmatprep.subr.bf16.mxu1 %v8403_v0 }
 0x3db   : > { %8258 = vset.pattern.permute.xlu1 %v13629_v42  ;;  %v7442_v44 = vpop.f32.mrb[84].mxu1 }
 0x3dc   : > { %2290 = vperm.xlu1 %8258, %v8702_v16   ;;  %v7443_v14 = vpop.f32.mrb[85].mxu1  ;;  %v11694_v16 = vld [vmem:[#allocation8] ss:$0 sm:$0xff] }
 0x3dd   : > { %v2235_v40 = vpop.permute.xlu1 %2234  ;;  %v7444_v26 = vadd.f32 %v7443_v14, %v7442_v44  ;;  %v7445_v59 = vpop.f32.mrb[86].mxu1  ;;  %4186 = vmatpush1.bf16.msra.mxu1 %v8401_v1  ;;  %v3346_v34 = vadd.f32 %v11694_v16, %v11539_v58  ;;  %v13732_v1 = vld [vmem:[#allocation91_spill] sm:$0xff] }
 0x3de   : > { %v2310_v56 = vmul.f32 %v2235_v40, %v10758_v50  ;;  %v7446_v39 = vpop.f32.mrb[87].mxu1  ;;  %4187 = vmatprep.subr.bf16.mxu1 %v8406_v20 }
 0x3df   : > { %v11685_v49 = vadd.f32 %v7444_v26, %v11444_v22  ;;  %v7447_v42 = vadd.f32 %v7446_v39, %v7445_v59  ;;  %v2243_v26 = vpop.permute.xlu0 %2242 }
 0x3e0   : > { %v2564_v63 = vpack.c.bf16 %v2310_v56, %v2309_v41  ;;  %8259 = vset.pattern.permute.xlu1 %v13456_v12  ;;  %v7372_v50 = vpop.f32.mrb[112].mxu0  ;;  %v3343_v12 = vadd.f32 %v11694_v16, %v11533_v2  ;;  %v2469_v2 = vmul.f32 %v11567_v7, %v13732_v1 }
 0x3e1   : > { %2126 = vperm.xlu1 %8259, %v8701_v19   ;;  %v11689_v37 = vadd.f32 %v7447_v42, %v11450_v10  ;;  %v7373_v57 = vpop.f32.mrb[113].mxu0  ;;  %4188 = vmatpush1.bf16.msra.mxu1 %v8404_v6 }
 0x3e2   : > { %v2075_v15 = vpop.permute.xlu1 %2074  ;;  %3791 = vmatprep.mubr.bf16.mxu0 %v2564_v63  ;;  %v7374_v19 = vadd.f32 %v7373_v57, %v7372_v50  ;;  %v7375_v4 = vpop.f32.mrb[114].mxu0  ;;  %v13733_v63 = vld [vmem:[#allocation108_spill] sm:$0xff]  ;;  %v13734_v50 = vld [vmem:[#allocation55_spill] sm:$0xff] }
 0x3e3   : > { %v2150_v22 = vmul.f32 %v2075_v15, %v13730_v8  ;;  %v7448_v21 = vpop.f32.mrb[88].mxu1  ;;  %v7376_v53 = vpop.f32.mrb[115].mxu0  ;;  %v2472_v7 = vmul.f32 %v11580_v17, %v13734_v50 }
 0x3e4   : > { %v7449_v38 = vpop.f32.mrb[89].mxu1  ;;  %v11701_v44 = vadd.f32 %v7374_v19, %v3343_v12  ;;  %v7377_v0 = vadd.f32 %v7376_v53, %v7375_v4  ;;  %v2247_v57 = vpop.permute.xlu0 %2246  ;;  %v2312_v53 = vmul.f32 %v2243_v26, %v10791_v11 }
 0x3e5   : > { %v2563_v10 = vpack.c.bf16 %v2150_v22, %v2149_v18  ;;  %8261 = vset.pattern.permute.xlu1 %v13731_v60  ;;  %v7450_v40 = vadd.f32 %v7449_v38, %v7448_v21  ;;  %v7451_v14 = vpop.f32.mrb[90].mxu1  ;;  %v13736_v38 = vld [vmem:[#allocation65_spill] sm:$0xff] }
 0x3e6   : > { %v7452_v56 = vpop.f32.mrb[91].mxu1  ;;  %v11705_v59 = vadd.f32 %v7377_v0, %v3346_v34 }
 0x3e7   : > { %v2395_v41 = vpop.permute.xlu1 %2394  ;;  %3792 = vmatmul.mubr.bf16.gmra.mrb[160].mxu0 %v2563_v10  ;;  %v11708_v39 = vadd.f32 %v7450_v40, %v11469_v61  ;;  %v7453_v58 = vadd.f32 %v7452_v56, %v7451_v14  ;;  %v3351_v56 = vadd.f32 %v11694_v16, %v11551_v45  ;;  %v13738_v45 = vld [vmem:[#allocation30_spill] sm:$0xff] }
 0x3e8   : > { %v2470_v42 = vmul.f32 %v2395_v41, %v13733_v63  ;;  %v11725_v40 = vpop.permute.xlu0 %2254 }
 0x3e9   : > { %v11712_v6 = vadd.f32 %v7453_v58, %v11475_v9 }
 0x3ea   : > { %v2565_v20 = vpack.c.bf16 %v2470_v42, %v2469_v2 }
 0x3eb   : > { %v2399_v15 = vpop.permute.xlu1 %2398  ;;  %v7454_v8 = vpop.f32.mrb[92].mxu1 }
 0x3ec   : > { %v2471_v18 = vmul.f32 %v2399_v15, %v13735_v51  ;;  %7935 = vmatprep.mubr.bf16.mxu1 %v2565_v20  ;;  %v7455_v22 = vpop.f32.mrb[93].mxu1 }
 0x3ed   : > { %v7456_v61 = vadd.f32 %v7455_v22, %v7454_v8  ;;  %v7457_v19 = vpop.f32.mrb[94].mxu1  ;;  %v13737_v8 = vld [vmem:[#allocation80_spill] sm:$0xff] }
 0x3ee   : > { %v2574_v12 = vpack.c.bf16 %v2472_v7, %v2471_v18  ;;  %v7458_v4 = vpop.f32.mrb[95].mxu1 }
 0x3ef   : > { %v11718_v21 = vadd.f32 %v7456_v61, %v11502_v32  ;;  %v7459_v10 = vadd.f32 %v7458_v4, %v7457_v19 }
 0x3f0   : > { %v2239_v9 = vpop.permute.xlu1 %2238  ;;  %7936 = vmatmul.mubr.bf16.gmra.mrb[144].mxu1 %v2574_v12 }
 0x3f1   : > { %v2311_v17 = vmul.f32 %v2239_v9, %v10788_v48  ;;  %v11723_v34 = vadd.f32 %v7459_v10, %v13736_v38  ;;  %v3354_v48 = vadd.f32 %v11694_v16, %v11556_v5  ;;  %v11743_v10 = vpop.permute.xlu0 %2274  ;;  %v13739_v38 = vld [vmem:[#allocation42_spill] sm:$0xff] }
 0x3f3   : > { %v2573_v0 = vpack.c.bf16 %v2312_v53, %v2311_v17  ;;  %v7460_v14 = vpop.f32.mrb[96].mxu1 }
 0x3f4   : > { %v7378_v2 = vpop.f32.mrb[116].mxu0  ;;  %v7461_v41 = vpop.f32.mrb[97].mxu1 }
 0x3f5   : > { %v2079_v1 = vpop.permute.xlu1 %2078  ;;  %3799 = vmatprep.mubr.bf16.mxu0 %v2573_v0  ;;  %v7379_v32 = vpop.f32.mrb[117].mxu0  ;;  %v7462_v63 = vadd.f32 %v7461_v41, %v7460_v14  ;;  %v2313_v0 = vmul.f32 %v2247_v57, %v13739_v38  ;;  %v13740_v14 = vld [vmem:[#allocation40_spill] sm:$0xff] }
 0x3f6   : > { %v7380_v42 = vadd.f32 %v7379_v32, %v7378_v2  ;;  %v7463_v11 = vpop.f32.mrb[98].mxu1  ;;  %v7381_v26 = vpop.f32.mrb[118].mxu0  ;;  %v2151_v22 = vmul.f32 %v2079_v1, %v13737_v8 }
 0x3f7   : > { %v7464_v58 = vpop.f32.mrb[99].mxu1  ;;  %v7382_v20 = vpop.f32.mrb[119].mxu0  ;;  %v11732_v15 = vadd.f32 %v7462_v63, %v11541_v35 }
 0x3f8   : > { %v11734_v50 = vadd.f32 %v7380_v42, %v3351_v56  ;;  %v7465_v7 = vadd.f32 %v7464_v58, %v7463_v11  ;;  %v7383_v51 = vadd.f32 %v7382_v20, %v7381_v26  ;;  %v2087_v63 = vpop.permute.xlu0 %2086  ;;  %v13741_v11 = vld [vmem:[#allocation47_spill] sm:$0xff] }
 0x3f9   : > { %v2083_v18 = vpop.permute.xlu1 %2082  ;;  %v2153_v26 = vmul.f32 %v2087_v63, %v13741_v11 }
 0x3fa   : > { %v2152_v12 = vmul.f32 %v2083_v18, %v13738_v45  ;;  %v11739_v61 = vadd.f32 %v7465_v7, %v11546_v55  ;;  %v11741_v19 = vadd.f32 %v7383_v51, %v3354_v48  ;;  %v13742_v48 = vld [vmem:[#allocation32_spill] sm:$0xff] }
 0x3fb   : > { %v7466_v4 = vpop.f32.mrb[100].mxu1 }
 0x3fc   : > { %v2572_v5 = vpack.c.bf16 %v2152_v12, %v2151_v22  ;;  %v7467_v35 = vpop.f32.mrb[101].mxu1  ;;  %v13743_v12 = vld [vmem:[#allocation96_spill] sm:$0xff] }
 0x3fd   : > { %v7468_v9 = vadd.f32 %v7467_v35, %v7466_v4  ;;  %v7469_v17 = vpop.f32.mrb[102].mxu1  ;;  %v13744_v4 = vld [vmem:[#allocation58_spill] sm:$0xff] }
 0x3fe   : > { %v2251_v53 = vpop.permute.xlu1 %2250  ;;  %3800 = vmatmul.mubr.bf16.gmra.mrb[164].mxu0 %v2572_v5  ;;  %v7470_v2 = vpop.f32.mrb[103].mxu1  ;;  %v2474_v5 = vmul.f32 %v11593_v36, %v13743_v12  ;;  %v13747_v12 = vld [vmem:[#allocation45_spill] sm:$0xff] }
 0x3ff   : > { %v2314_v1 = vmul.f32 %v2251_v53, %v13740_v14  ;;  %v11748_v41 = vadd.f32 %v7468_v9, %v11584_v33  ;;  %v7471_v55 = vadd.f32 %v7470_v2, %v7469_v17  ;;  %v3359_v53 = vadd.f32 %v11694_v16, %v11570_v46 }
 0x401   : > { %v2582_v32 = vpack.c.bf16 %v2314_v1, %v2313_v0  ;;  %v11751_v56 = vadd.f32 %v7471_v55, %v11587_v52  ;;  %v3362_v1 = vadd.f32 %v11694_v16, %v11572_v47  ;;  %v13746_v47 = vld [vmem:[#allocation89_spill] sm:$0xff] }
 0x403   : > { %v2091_v42 = vpop.permute.xlu1 %2090  ;;  %3807 = vmatprep.mubr.bf16.mxu0 %v2582_v32  ;;  %v7472_v20 = vpop.f32.mrb[104].mxu1 }
 0x404   : > { %v2154_v58 = vmul.f32 %v2091_v42, %v13742_v48  ;;  %v7473_v57 = vpop.f32.mrb[105].mxu1 }
 0x405   : > { %v7474_v51 = vadd.f32 %v7473_v57, %v7472_v20  ;;  %v7475_v18 = vpop.f32.mrb[106].mxu1  ;;  %v13745_v20 = vld [vmem:[#allocation39_spill] sm:$0xff] }
 0x406   : > { %v2581_v7 = vpack.c.bf16 %v2154_v58, %v2153_v26  ;;  %v7476_v8 = vpop.f32.mrb[107].mxu1  ;;  %v7384_v52 = vpop.f32.mrb[120].mxu0 }
 0x407   : > { %v11756_v33 = vadd.f32 %v7474_v51, %v11617_v13  ;;  %v7477_v22 = vadd.f32 %v7476_v8, %v7475_v18  ;;  %v7385_v9 = vpop.f32.mrb[121].mxu0  ;;  %v2099_v8 = vpop.permute.xlu0 %2098 }
 0x408   : > { %v2407_v45 = vpop.permute.xlu1 %2406  ;;  %3808 = vmatmul.mubr.bf16.gmra.mrb[168].mxu0 %v2581_v7  ;;  %v7386_v38 = vadd.f32 %v7385_v9, %v7384_v52  ;;  %v7387_v0 = vpop.f32.mrb[122].mxu0 }
 0x409   : > { %v2473_v35 = vmul.f32 %v2407_v45, %v13744_v4  ;;  %v11764_v17 = vadd.f32 %v7477_v22, %v11625_v29  ;;  %v7388_v14 = vpop.f32.mrb[123].mxu0 }
 0x40a   : > { %v11768_v2 = vadd.f32 %v7386_v38, %v3359_v53  ;;  %v7389_v55 = vadd.f32 %v7388_v14, %v7387_v0 }
 0x40b   : > { %v2583_v13 = vpack.c.bf16 %v2474_v5, %v2473_v35  ;;  %v7478_v32 = vpop.f32.mrb[108].mxu1  ;;  %v2315_v5 = vmul.f32 %v11725_v40, %v13747_v12 }
 0x40c   : > { %v2415_v36 = vpop.permute.xlu1 %2414  ;;  %v7479_v63 = vpop.f32.mrb[109].mxu1  ;;  %v11770_v42 = vadd.f32 %v7389_v55, %v3362_v1  ;;  %v13749_v1 = vld [vmem:[#allocation53_spill] sm:$0xff] }
 0x40d   : > { %7939 = vmatprep.mubr.bf16.mxu1 %v2583_v13  ;;  %v7480_v46 = vadd.f32 %v7479_v63, %v7478_v32  ;;  %v7481_v11 = vpop.f32.mrb[110].mxu1  ;;  %v2475_v57 = vmul.f32 %v2415_v36, %v13745_v20  ;;  %v2156_v55 = vmul.f32 %v2099_v8, %v13749_v1  ;;  %v2103_v36 = vpop.permute.xlu0 %2102  ;;  %v13750_v32 = vld [vmem:[#allocation85_spill] sm:$0xff] }
 0x40e   : > { %v7482_v29 = vpop.f32.mrb[111].mxu1 }
 0x40f   : > { %v11773_v26 = vadd.f32 %v7480_v46, %v11662_v43  ;;  %v7483_v48 = vadd.f32 %v7482_v29, %v7481_v11  ;;  %v13748_v43 = vld [vmem:[#allocation84_spill] sm:$0xff]  ;;  %v13751_v29 = vld [vmem:[#allocation61_spill] sm:$0xff] }
 0x410   : > { %v2419_v58 = vpop.permute.xlu1 %2418 }
 0x411   : > { %v2476_v7 = vmul.f32 %v2419_v58, %v13746_v47  ;;  %v11778_v51 = vadd.f32 %v7483_v48, %v11669_v31  ;;  %v3367_v48 = vadd.f32 %v11694_v16, %v13751_v29 }
 0x413   : > { %v2592_v18 = vpack.c.bf16 %v2476_v7, %v2475_v57  ;;  %v7484_v22 = vpop.f32.mrb[112].mxu1 }
 0x414   : > { %v7485_v52 = vpop.f32.mrb[113].mxu1 }
 0x415   : > { %v2259_v45 = vpop.permute.xlu1 %2258  ;;  %7940 = vmatmul.mubr.bf16.gmra.mrb[148].mxu1 %v2592_v18  ;;  %v7486_v35 = vadd.f32 %v7485_v52, %v7484_v22  ;;  %v7487_v9 = vpop.f32.mrb[114].mxu1  ;;  %v13752_v18 = vld [vmem:[#allocation99_spill] sm:$0xff] }
 0x416   : > { %v2316_v4 = vmul.f32 %v2259_v45, %v13748_v43  ;;  %v7488_v53 = vpop.f32.mrb[115].mxu1  ;;  %v3370_v22 = vadd.f32 %v11694_v16, %v13752_v18 }
 0x417   : > { %v11784_v0 = vadd.f32 %v7486_v35, %v11701_v44  ;;  %v7489_v31 = vadd.f32 %v7488_v53, %v7487_v9  ;;  %v11801_v53 = vpop.permute.xlu0 %2118 }
 0x418   : > { %v2591_v38 = vpack.c.bf16 %v2316_v4, %v2315_v5 }
 0x419   : > { %v11787_v13 = vadd.f32 %v7489_v31, %v11705_v59 }
 0x41a   : > { %v2095_v14 = vpop.permute.xlu1 %2094  ;;  %3815 = vmatprep.mubr.bf16.mxu0 %v2591_v38  ;;  %v7390_v63 = vpop.f32.mrb[124].mxu0  ;;  %v13753_v38 = vld [vmem:[#allocation49_spill] sm:$0xff] }
 0x41b   : > { %v2155_v40 = vmul.f32 %v2095_v14, %v13750_v32  ;;  %v7391_v46 = vpop.f32.mrb[125].mxu0  ;;  %v7490_v11 = vpop.f32.mrb[116].mxu1  ;;  %v13754_v14 = vld [vmem:[#allocation86_spill] sm:$0xff] }
 0x41c   : > { %v7392_v44 = vadd.f32 %v7391_v46, %v7390_v63  ;;  %v7393_v20 = vpop.f32.mrb[126].mxu0  ;;  %v7491_v57 = vpop.f32.mrb[117].mxu1 }
 0x41d   : > { %v2590_v58 = vpack.c.bf16 %v2156_v55, %v2155_v40  ;;  %v7492_v47 = vadd.f32 %v7491_v57, %v7490_v11  ;;  %v7394_v59 = vpop.f32.mrb[127].mxu0  ;;  %v7493_v7 = vpop.f32.mrb[118].mxu1 }
 0x41e   : > { %v3528_v8 = vadd.f32 %v7392_v44, %v3367_v48  ;;  %v7395_v45 = vadd.f32 %v7394_v59, %v7393_v20  ;;  %v7494_v12 = vpop.f32.mrb[119].mxu1  ;;  %v2423_v20 = vpop.permute.xlu0 %2422 }
 0x41f   : > { %v2263_v52 = vpop.permute.xlu1 %2262  ;;  %3816 = vmatmul.mubr.bf16.gmra.mrb[172].mxu0 %v2590_v58  ;;  %v11796_v5 = vadd.f32 %v7492_v47, %v11734_v50  ;;  %v7495_v43 = vadd.f32 %v7494_v12, %v7493_v7  ;;  %v13756_v58 = vld [vmem:[#allocation51_spill] sm:$0xff] }
 0x420   : > { %v3531_v4 = vadd.f32 %v7395_v45, %v3370_v22  ;;  %v2317_v31 = vmul.f32 %v2263_v52, %v13753_v38  ;;  %v13757_v22 = vld [vmem:[#allocation60_spill] sm:$0xff] }
 0x421   : > { %v11799_v35 = vadd.f32 %v7495_v43, %v11741_v19  ;;  %v13755_v19 = vld [vmem:[#allocation54_spill] sm:$0xff]  ;;  %v2477_v45 = vmul.f32 %v2423_v20, %v13757_v22  ;;  %v13761_v20 = vld [vmem:[#allocation57_spill] sm:$0xff] }
 0x422   : > { %v2157_v48 = vmul.f32 %v2103_v36, %v13755_v19 }
 0x423   : > { %v2267_v9 = vpop.permute.xlu1 %2266  ;;  %v7496_v1 = vpop.f32.mrb[120].mxu1 }
 0x424   : > { %v2318_v16 = vmul.f32 %v2267_v9, %v13754_v14  ;;  %v7497_v55 = vpop.f32.mrb[121].mxu1 }
 0x425   : > { %v7498_v40 = vadd.f32 %v7497_v55, %v7496_v1  ;;  %v7499_v63 = vpop.f32.mrb[122].mxu1 }
 0x426   : > { %v2600_v32 = vpack.c.bf16 %v2318_v16, %v2317_v31  ;;  %v7500_v46 = vpop.f32.mrb[123].mxu1  ;;  %v2435_v31 = vpop.permute.xlu0 %2434 }
 0x427   : > { %v11806_v50 = vadd.f32 %v7498_v40, %v11768_v2  ;;  %v7501_v11 = vadd.f32 %v7500_v46, %v7499_v63  ;;  %v13758_v2 = vld [vmem:[#allocation63_spill] sm:$0xff] }
 0x428   : > { %v2107_v29 = vpop.permute.xlu1 %2106  ;;  %3823 = vmatprep.mubr.bf16.mxu0 %v2600_v32  ;;  %v13759_v32 = vld [vmem:[#allocation100_spill] sm:$0xff] }
 0x429   : > { %v2158_v44 = vmul.f32 %v2107_v29, %v13756_v58  ;;  %v11811_v57 = vadd.f32 %v7501_v11, %v11770_v42  ;;  %v2480_v40 = vmul.f32 %v2435_v31, %v13759_v32  ;;  %v13760_v29 = vld [vmem:[#allocation41_spill] sm:$0xff] }
 0x42a   : > { %v2443_v31 = vpop.permute.xlu0 %2442 }
 0x42b   : > { %v2599_v47 = vpack.c.bf16 %v2158_v44, %v2157_v48  ;;  %v7502_v59 = vpop.f32.mrb[124].mxu1 }
 0x42c   : > { %v7503_v18 = vpop.f32.mrb[125].mxu1 }
 0x42d   : > { %v2427_v7 = vpop.permute.xlu1 %2426  ;;  %3824 = vmatmul.mubr.bf16.gmra.mrb[176].mxu0 %v2599_v47  ;;  %v7504_v12 = vadd.f32 %v7503_v18, %v7502_v59  ;;  %v7505_v43 = vpop.f32.mrb[126].mxu1  ;;  %v13762_v59 = vld [vmem:[#allocation110_spill] sm:$0xff]  ;;  %v13763_v18 = vld [vmem:[#allocation35_spill] sm:$0xff] }
 0x42e   : > { %v2478_v52 = vmul.f32 %v2427_v7, %v13758_v2  ;;  %v7524_v9 = vpop.f32.mrb[128].mxu0  ;;  %v7506_v38 = vpop.f32.mrb[127].mxu1  ;;  %v2320_v7 = vmul.f32 %v11743_v10, %v13762_v59  ;;  %v13765_v10 = vld [vmem:[#allocation56_spill] sm:$0xff] }
 0x42f   : > { %v7525_v36 = vpop.f32.mrb[129].mxu0  ;;  %v11815_v16 = vadd.f32 %v7504_v12, %v3528_v8  ;;  %v7507_v42 = vadd.f32 %v7506_v38, %v7505_v43 }
 0x430   : > { %v2601_v14 = vpack.c.bf16 %v2478_v52, %v2477_v45  ;;  %v7526_v1 = vadd.f32 %v7525_v36, %v7524_v9  ;;  %v7527_v55 = vpop.f32.mrb[130].mxu0 }
 0x431   : > { %v2431_v63 = vpop.permute.xlu1 %2430  ;;  %v7528_v46 = vpop.f32.mrb[131].mxu0  ;;  %v11818_v11 = vadd.f32 %v7507_v42, %v3531_v4 }
 0x432   : > { %v2479_v19 = vmul.f32 %v2431_v63, %v13760_v29  ;;  %v7529_v48 = vadd.f32 %v7528_v46, %v7527_v55  ;;  %7943 = vmatprep.mubr.bf16.mxu1 %v2601_v14  ;;  %v3730_v58 = vadd.f32 %v7526_v1, %v11602_v24  ;;  %v13764_v1 = vld [vmem:[#allocation52_spill] sm:$0xff]  ;;  %v2279_v63 = vpop.permute.xlu0 %2278  ;;  %v13766_v29 = vld [vmem:[#allocation111_spill] sm:$0xff] }
 0x434   : > { %v2610_v44 = vpack.c.bf16 %v2480_v40, %v2479_v19  ;;  %v3733_v47 = vadd.f32 %v7529_v48, %v13761_v20  ;;  %v2321_v19 = vmul.f32 %v2279_v63, %v13766_v29  ;;  %v13767_v48 = vld [vmem:[#allocation114_spill] sm:$0xff] }
 0x436   : > { %v2271_v8 = vpop.permute.xlu1 %2270  ;;  %7944 = vmatmul.mubr.bf16.gmra.mrb[152].mxu1 %v2610_v44  ;;  %v7921_v45 = vpop.f32.mrb[128].mxu1 }
 0x437   : > { %v2319_v22 = vmul.f32 %v2271_v8, %v13763_v18  ;;  %v3890_v2 = vpop.f32.mrb[129].mxu1 }
 0x438   : > { %v3891_v52 = vadd.f32 %v3890_v2, %v3730_v58  ;;  %v7922_v12 = vpop.f32.mrb[130].mxu1 }
 0x439   : > { %v2609_v4 = vpack.c.bf16 %v2320_v7, %v2319_v22  ;;  %v3893_v43 = vpop.f32.mrb[131].mxu1 }
 0x43a   : > { %v3894_v9 = vadd.f32 %v3893_v43, %v3733_v47  ;;  %v4017_v24 = vmax.f32 %v3891_v52, 0.0  ;;  %v13769_v43 = vld [vmem:[#allocation118_spill] sm:$0xff] }
 0x43b   : > { %v2111_v38 = vpop.permute.xlu1 %2110  ;;  %3831 = vmatprep.mubr.bf16.mxu0 %v2609_v4  ;;  %v13768_v4 = vld [vmem:[#allocation117_spill] sm:$0xff] }
 0x43c   : > { %v4018_v36 = vmax.f32 %v3894_v9, 0.0  ;;  %v2159_v55 = vmul.f32 %v2111_v38, %v13764_v1  ;;  %v2161_v52 = vmul.f32 %v11801_v53, %v13768_v4  ;;  %v13774_v4 = vld [vmem:[#allocation104_spill] sm:$0xff] }
 0x43e   : > { %v11826_v14 = vpack.c.bf16 %v4018_v36, %v4017_v24 }
 0x43f   : > { %v2115_v42 = vpop.permute.xlu1 %2114 }
 0x440   : > { %v2160_v32 = vmul.f32 %v2115_v42, %v13765_v10 }
 0x442   : > { %v2608_v40 = vpack.c.bf16 %v2160_v32, %v2159_v55  ;;  %v13770_v55 = vld [vmem:[#allocation121_spill] sm:$0xff] }
 0x443   : > { %v2482_v10 = vmul.f32 %v2443_v31, %v13770_v55  ;;  %v13772_v31 = vld [vmem:[#allocation122_spill] sm:$0xff] }
 0x444   : > { %v2283_v46 = vpop.permute.xlu1 %2282  ;;  %3832 = vmatmul.mubr.bf16.gmra.mrb[180].mxu0 %v2608_v40  ;;  %v7530_v44 = vpop.f32.mrb[132].mxu0 }
 0x445   : > { %v2322_v58 = vmul.f32 %v2283_v46, %v13767_v48  ;;  %v7531_v20 = vpop.f32.mrb[133].mxu0 }
 0x446   : > { %v7532_v8 = vadd.f32 %v7531_v20, %v7530_v44  ;;  %v7533_v59 = vpop.f32.mrb[134].mxu0 }
 0x447   : > { %v2618_v47 = vpack.c.bf16 %v2322_v58, %v2321_v19  ;;  %v7534_v7 = vpop.f32.mrb[135].mxu0 }
 0x448   : > { %v3738_v18 = vadd.f32 %v7532_v8, %v11620_v25  ;;  %v7535_v22 = vadd.f32 %v7534_v7, %v7533_v59  ;;  %v13771_v25 = vld [vmem:[#allocation120_spill] sm:$0xff]  ;;  %v13773_v59 = vld [vmem:[#allocation123_spill] sm:$0xff] }
 0x449   : > { %v2123_v2 = vpop.permute.xlu1 %2122  ;;  %3839 = vmatprep.mubr.bf16.mxu0 %v2618_v47 }
 0x44a   : > { %v2162_v9 = vmul.f32 %v2123_v2, %v13769_v43  ;;  %v3899_v38 = vadd.f32 %v7921_v45, %v3738_v18  ;;  %v3741_v24 = vadd.f32 %v7535_v22, %v11628_v23  ;;  %v2287_v18 = vpop.permute.xlu0 %2286  ;;  %v13775_v43 = vld [vmem:[#allocation105_spill] sm:$0xff] }
 0x44c   : > { %v2617_v36 = vpack.c.bf16 %v2162_v9, %v2161_v52  ;;  %v3902_v42 = vadd.f32 %v7922_v12, %v3741_v24  ;;  %v4019_v32 = vmax.f32 %v3899_v38, 0.0  ;;  %v2323_v52 = vmul.f32 %v2287_v18, %v13774_v4 }
 0x44e   : > { %v2439_v1 = vpop.permute.xlu1 %2438  ;;  %3840 = vmatmul.mubr.bf16.gmra.mrb[184].mxu0 %v2617_v36  ;;  %v4020_v40 = vmax.f32 %v3902_v42, 0.0  ;;  %v7536_v46 = vpop.f32.mrb[136].mxu0 }
 0x44f   : > { %v2481_v63 = vmul.f32 %v2439_v1, %v13771_v25  ;;  %v7537_v29 = vpop.f32.mrb[137].mxu0  ;;  %v13777_v25 = vld [vmem:[#allocation119_spill] sm:$0xff] }
 0x450   : > { %v7538_v48 = vadd.f32 %v7537_v29, %v7536_v46  ;;  %v7539_v53 = vpop.f32.mrb[138].mxu0  ;;  %v4050_v58 = vpack.c.bf16 %v4020_v40, %v4019_v32  ;;  %v13776_v32 = vld [vmem:[#allocation112_spill] sm:$0xff] }
 0x451   : > { %v2619_v19 = vpack.c.bf16 %v2482_v10, %v2481_v63  ;;  %v7540_v45 = vpop.f32.mrb[139].mxu0 }
 0x452   : > { %v2447_v44 = vpop.permute.xlu1 %2446  ;;  %v7541_v20 = vadd.f32 %v7540_v45, %v7539_v53  ;;  %v3746_v23 = vadd.f32 %v7538_v48, %v11638_v30  ;;  %v2131_v30 = vpop.permute.xlu0 %2130 }
 0x453   : > { %7947 = vmatprep.mubr.bf16.mxu1 %v2619_v19  ;;  %v2483_v8 = vmul.f32 %v2447_v44, %v13772_v31  ;;  %v2164_v40 = vmul.f32 %v2131_v30, %v13776_v32 }
 0x454   : > { %v3749_v12 = vadd.f32 %v7541_v20, %v11642_v3 }
 0x456   : > { %v2451_v47 = vpop.permute.xlu1 %2450 }
 0x457   : > { %v2484_v7 = vmul.f32 %v2451_v47, %v13773_v59 }
 0x459   : > { %v2628_v22 = vpack.c.bf16 %v2484_v7, %v2483_v8 }
 0x45b   : > { %v2291_v2 = vpop.permute.xlu1 %2290  ;;  %7948 = vmatmul.mubr.bf16.gmra.mrb[156].mxu1 %v2628_v22  ;;  %v7925_v38 = vpop.f32.mrb[132].mxu1 }
 0x45c   : > { %v2324_v9 = vmul.f32 %v2291_v2, %v13775_v43  ;;  %4205 = vmatprep.mubr.bf16.mxu1 %v13731_v60  ;;  %v3906_v24 = vpop.f32.mrb[133].mxu1 }
 0x45d   : > { %v3907_v3 = vadd.f32 %v3906_v24, %v3746_v23  ;;  %v7926_v42 = vpop.f32.mrb[134].mxu1 }
 0x45e   : > { %v2627_v36 = vpack.c.bf16 %v2324_v9, %v2323_v52  ;;  %v3909_v1 = vpop.f32.mrb[135].mxu1 }
 0x45f   : > { %v3910_v55 = vadd.f32 %v3909_v1, %v3749_v12  ;;  %v4021_v46 = vmax.f32 %v3907_v3, 0.0 }
 0x460   : > { %v2127_v10 = vpop.permute.xlu1 %2126  ;;  %3847 = vmatprep.mubr.bf16.mxu0 %v2627_v36 }
 0x461   : > { %v2163_v63 = vmul.f32 %v2127_v10, %v13777_v25  ;;  %v4022_v29 = vmax.f32 %v3910_v55, 0.0 }
 0x463   : > { %v2626_v19 = vpack.c.bf16 %v2164_v40, %v2163_v63  ;;  %4206 = vmatmul.mubr.bf16.vlgmr.msra.gmra.mrb[160].mxu1 %v11826_v14  ;;  %v4051_v48 = vpack.c.bf16 %v4022_v29, %v4021_v46 }
 0x464   : > { %4215 = vmatprep.mubr.bf16.mxu1 %v13731_v60 }
 0x465   : > { %3848 = vmatmul.mubr.bf16.gmra.mrb[188].mxu0 %v2626_v19  ;;  %v7542_v53 = vpop.f32.mrb[140].mxu0 }
 0x466   : > { %v7543_v44 = vpop.f32.mrb[141].mxu0 }
 0x467   : > { %v7544_v45 = vadd.f32 %v7543_v44, %v7542_v53  ;;  %v7545_v20 = vpop.f32.mrb[142].mxu0 }
 0x468   : > { %v7546_v23 = vpop.f32.mrb[143].mxu0 }
 0x469   : > { %v3754_v12 = vadd.f32 %v7544_v45, %v11652_v54  ;;  %v7547_v47 = vadd.f32 %v7546_v23, %v7545_v20 }
 0x46b   : > { %4216 = vmatmul.mubr.bf16.gmra.mrb[164].mxu1 %v4050_v58  ;;  %v3915_v31 = vadd.f32 %v7925_v38, %v3754_v12  ;;  %v3757_v8 = vadd.f32 %v7547_v47, %v11660_v28 }
 0x46c   : > { %4225 = vmatprep.mubr.bf16.mxu1 %v13731_v60 }
 0x46d   : > { %v3918_v59 = vadd.f32 %v7926_v42, %v3757_v8  ;;  %v4023_v14 = vmax.f32 %v3915_v31, 0.0 }
 0x46f   : > { %v4024_v7 = vmax.f32 %v3918_v59, 0.0 }
 0x471   : > { %v4052_v18 = vpack.c.bf16 %v4024_v7, %v4023_v14 }
 0x473   : > { %4226 = vmatmul.mubr.bf16.gmra.mrb[168].mxu1 %v4051_v48  ;;  %v7548_v22 = vpop.f32.mrb[144].mxu0 }
 0x474   : > { %4235 = vmatprep.mubr.bf16.mxu1 %v13731_v60  ;;  %v7549_v2 = vpop.f32.mrb[145].mxu0 }
 0x475   : > { %v7550_v4 = vadd.f32 %v7549_v2, %v7548_v22  ;;  %v7551_v52 = vpop.f32.mrb[146].mxu0 }
 0x476   : > { %v7552_v43 = vpop.f32.mrb[147].mxu0 }
 0x477   : > { %v7553_v54 = vadd.f32 %v7552_v43, %v7551_v52  ;;  %v3762_v58 = vadd.f32 %v7550_v4, %v11676_v62 }
 0x479   : > { %v3765_v9 = vadd.f32 %v7553_v54, %v11679_v27 }
 0x47b   : > { %4236 = vmatmul.mubr.bf16.gmra.mrb[172].mxu1 %v4052_v18 }
 0x47c   : > { %4245 = vmatprep.mubr.bf16.mxu1 %v13731_v60  ;;  %v7929_v28 = vpop.f32.mrb[136].mxu1 }
 0x47d   : > { %v3922_v38 = vpop.f32.mrb[137].mxu1 }
 0x47e   : > { %v3923_v24 = vadd.f32 %v3922_v38, %v3762_v58  ;;  %v7930_v30 = vpop.f32.mrb[138].mxu1 }
 0x47f   : > { %v3925_v36 = vpop.f32.mrb[139].mxu1 }
 0x480   : > { %v3926_v3 = vadd.f32 %v3925_v36, %v3765_v9  ;;  %v4025_v42 = vmax.f32 %v3923_v24, 0.0 }
 0x482   : > { %v4026_v1 = vmax.f32 %v3926_v3, 0.0 }
 0x484   : > { %v4053_v55 = vpack.c.bf16 %v4026_v1, %v4025_v42 }
 0x486   : > { %4246 = vmatmul.mubr.bf16.gmra.mrb[176].mxu1 %v4053_v55 }
 0x487   : > { %4255 = vmatprep.mubr.bf16.mxu1 %v13731_v60 }
 0x48a   : > { %v7554_v10 = vpop.f32.mrb[148].mxu0 }
 0x48b   : > { %v7555_v32 = vpop.f32.mrb[149].mxu0 }
 0x48c   : > { %v7556_v62 = vadd.f32 %v7555_v32, %v7554_v10  ;;  %v7557_v40 = vpop.f32.mrb[150].mxu0 }
 0x48d   : > { %v7558_v27 = vpop.f32.mrb[151].mxu0 }
 0x48e   : > { %v3770_v25 = vadd.f32 %v7556_v62, %v11685_v49  ;;  %v7559_v63 = vadd.f32 %v7558_v27, %v7557_v40 }
 0x490   : > { %v3931_v46 = vadd.f32 %v7929_v28, %v3770_v25  ;;  %v3773_v29 = vadd.f32 %v7559_v63, %v11689_v37 }
 0x492   : > { %v3934_v19 = vadd.f32 %v7930_v30, %v3773_v29  ;;  %v4027_v48 = vmax.f32 %v3931_v46, 0.0 }
 0x494   : > { %v4028_v53 = vmax.f32 %v3934_v19, 0.0  ;;  %v7560_v44 = vpop.f32.mrb[152].mxu0 }
 0x495   : > { %v7561_v45 = vpop.f32.mrb[153].mxu0 }
 0x496   : > { %v7562_v20 = vadd.f32 %v7561_v45, %v7560_v44  ;;  %v7563_v23 = vpop.f32.mrb[154].mxu0  ;;  %v4054_v12 = vpack.c.bf16 %v4028_v53, %v4027_v48 }
 0x497   : > { %v7564_v47 = vpop.f32.mrb[155].mxu0 }
 0x498   : > { %v7565_v31 = vadd.f32 %v7564_v47, %v7563_v23  ;;  %4256 = vmatmul.mubr.bf16.gmra.mrb[180].mxu1 %v4054_v12  ;;  %v3778_v8 = vadd.f32 %v7562_v20, %v11708_v39 }
 0x499   : > { %4265 = vmatprep.mubr.bf16.mxu1 %v13731_v60 }
 0x49a   : > { %v3781_v49 = vadd.f32 %v7565_v31, %v11712_v6 }
 0x4a2   : > { %v7933_v59 = vpop.f32.mrb[140].mxu1 }
 0x4a3   : > { %v3938_v14 = vpop.f32.mrb[141].mxu1 }
 0x4a4   : > { %v3939_v37 = vadd.f32 %v3938_v14, %v3778_v8  ;;  %v7934_v7 = vpop.f32.mrb[142].mxu1 }
 0x4a5   : > { %v3941_v18 = vpop.f32.mrb[143].mxu1 }
 0x4a6   : > { %v3942_v22 = vadd.f32 %v3941_v18, %v3781_v49  ;;  %v4029_v2 = vmax.f32 %v3939_v37, 0.0 }
 0x4a8   : > { %v4030_v4 = vmax.f32 %v3942_v22, 0.0 }
 0x4aa   : > { %v4055_v52 = vpack.c.bf16 %v4030_v4, %v4029_v2 }
 0x4ac   : > { %v7566_v43 = vpop.f32.mrb[156].mxu0  ;;  %4266 = vmatmul.mubr.bf16.gmra.mrb[184].mxu1 %v4055_v52 }
 0x4ad   : > { %v7567_v54 = vpop.f32.mrb[157].mxu0  ;;  %4275 = vmatprep.mubr.bf16.mxu1 %v13731_v60 }
 0x4ae   : > { %v7568_v58 = vadd.f32 %v7567_v54, %v7566_v43  ;;  %v7569_v39 = vpop.f32.mrb[158].mxu0 }
 0x4af   : > { %v7570_v9 = vpop.f32.mrb[159].mxu0 }
 0x4b0   : > { %v3786_v28 = vadd.f32 %v7568_v58, %v11718_v21  ;;  %v7571_v6 = vadd.f32 %v7570_v9, %v7569_v39 }
 0x4b2   : > { %v3947_v38 = vadd.f32 %v7933_v59, %v3786_v28  ;;  %v3789_v24 = vadd.f32 %v7571_v6, %v11723_v34 }
 0x4b4   : > { %v3950_v30 = vadd.f32 %v7934_v7, %v3789_v24  ;;  %v4031_v36 = vmax.f32 %v3947_v38, 0.0 }
 0x4b6   : > { %v4032_v3 = vmax.f32 %v3950_v30, 0.0 }
 0x4b8   : > { %v4056_v42 = vpack.c.bf16 %v4032_v3, %v4031_v36 }
 0x4ba   : > { %v7572_v1 = vpop.f32.mrb[160].mxu0  ;;  %4276 = vmatmul.mubr.bf16.gmra.mrb[188].mxu1 %v4056_v42 }
 0x4bb   : > { %v7573_v55 = vpop.f32.mrb[161].mxu0  ;;  %4285 = vmatprep.mubr.bf16.mxu1 %v13731_v60 }
 0x4bc   : > { %v7574_v10 = vadd.f32 %v7573_v55, %v7572_v1  ;;  %v7575_v32 = vpop.f32.mrb[162].mxu0 }
 0x4bd   : > { %v7576_v62 = vpop.f32.mrb[163].mxu0 }
 0x4be   : > { %v7577_v40 = vadd.f32 %v7576_v62, %v7575_v32  ;;  %v3794_v27 = vadd.f32 %v7574_v10, %v11732_v15 }
 0x4c0   : > { %v3797_v21 = vadd.f32 %v7577_v40, %v11739_v61 }
 0x4c3   : > { %v7937_v25 = vpop.f32.mrb[144].mxu1 }
 0x4c4   : > { %v3954_v63 = vpop.f32.mrb[145].mxu1 }
 0x4c5   : > { %v3955_v34 = vadd.f32 %v3954_v63, %v3794_v27  ;;  %v7938_v46 = vpop.f32.mrb[146].mxu1 }
 0x4c6   : > { %v3957_v29 = vpop.f32.mrb[147].mxu1 }
 0x4c7   : > { %v3958_v19 = vadd.f32 %v3957_v29, %v3797_v21  ;;  %v4033_v48 = vmax.f32 %v3955_v34, 0.0 }
 0x4c9   : > { %v4034_v53 = vmax.f32 %v3958_v19, 0.0 }
 0x4cb   : > { %v4057_v44 = vpack.c.bf16 %v4034_v53, %v4033_v48 }
 0x4cd   : > { %4286 = vmatmul.mubr.bf16.gmra.mrb[192].mxu1 %v4057_v44 }
 0x4ce   : > { %4295 = vmatprep.mubr.bf16.mxu1 %v13731_v60 }
 0x4d1   : > { %v7578_v45 = vpop.f32.mrb[164].mxu0 }
 0x4d2   : > { %v7579_v20 = vpop.f32.mrb[165].mxu0 }
 0x4d3   : > { %v7580_v23 = vadd.f32 %v7579_v20, %v7578_v45  ;;  %v7581_v12 = vpop.f32.mrb[166].mxu0 }
 0x4d4   : > { %v7582_v47 = vpop.f32.mrb[167].mxu0 }
 0x4d5   : > { %v3802_v15 = vadd.f32 %v7580_v23, %v11748_v41  ;;  %v7583_v61 = vadd.f32 %v7582_v47, %v7581_v12 }
 0x4d7   : > { %v3963_v31 = vadd.f32 %v7937_v25, %v3802_v15  ;;  %v3805_v8 = vadd.f32 %v7583_v61, %v11751_v56 }
 0x4d9   : > { %v3966_v49 = vadd.f32 %v7938_v46, %v3805_v8  ;;  %v4035_v59 = vmax.f32 %v3963_v31, 0.0 }
 0x4db   : > { %v4036_v14 = vmax.f32 %v3966_v49, 0.0  ;;  %v7584_v37 = vpop.f32.mrb[168].mxu0 }
 0x4dc   : > { %v7585_v7 = vpop.f32.mrb[169].mxu0 }
 0x4dd   : > { %v7586_v18 = vadd.f32 %v7585_v7, %v7584_v37  ;;  %v7587_v22 = vpop.f32.mrb[170].mxu0  ;;  %v4058_v2 = vpack.c.bf16 %v4036_v14, %v4035_v59 }
 0x4de   : > { %v7588_v4 = vpop.f32.mrb[171].mxu0 }
 0x4df   : > { %v7589_v52 = vadd.f32 %v7588_v4, %v7587_v22  ;;  %4296 = vmatmul.mubr.bf16.gmra.mrb[196].mxu1 %v4058_v2  ;;  %v3810_v43 = vadd.f32 %v7586_v18, %v11756_v33 }
 0x4e0   : > { %4305 = vmatprep.mubr.bf16.mxu1 %v13731_v60 }
 0x4e1   : > { %v3813_v41 = vadd.f32 %v7589_v52, %v11764_v17 }
 0x4e8   : > { %v7941_v54 = vpop.f32.mrb[148].mxu1 }
 0x4e9   : > { %v3970_v58 = vpop.f32.mrb[149].mxu1 }
 0x4ea   : > { %v3971_v56 = vadd.f32 %v3970_v58, %v3810_v43  ;;  %v7942_v39 = vpop.f32.mrb[150].mxu1 }
 0x4eb   : > { %v3973_v9 = vpop.f32.mrb[151].mxu1 }
 0x4ec   : > { %v3974_v28 = vadd.f32 %v3973_v9, %v3813_v41  ;;  %v4037_v6 = vmax.f32 %v3971_v56, 0.0 }
 0x4ee   : > { %v4038_v38 = vmax.f32 %v3974_v28, 0.0 }
 0x4f0   : > { %v4059_v24 = vpack.c.bf16 %v4038_v38, %v4037_v6 }
 0x4f2   : > { %v7590_v30 = vpop.f32.mrb[172].mxu0  ;;  %4306 = vmatmul.mubr.bf16.gmra.mrb[200].mxu1 %v4059_v24 }
 0x4f3   : > { %v7591_v36 = vpop.f32.mrb[173].mxu0  ;;  %4315 = vmatprep.mubr.bf16.mxu1 %v13731_v60 }
 0x4f4   : > { %v7592_v3 = vadd.f32 %v7591_v36, %v7590_v30  ;;  %v7593_v33 = vpop.f32.mrb[174].mxu0 }
 0x4f5   : > { %v7594_v42 = vpop.f32.mrb[175].mxu0 }
 0x4f6   : > { %v3818_v1 = vadd.f32 %v7592_v3, %v11773_v26  ;;  %v7595_v17 = vadd.f32 %v7594_v42, %v7593_v33 }
 0x4f8   : > { %v3979_v55 = vadd.f32 %v7941_v54, %v3818_v1  ;;  %v3821_v10 = vadd.f32 %v7595_v17, %v11778_v51 }
 0x4fa   : > { %v3982_v32 = vadd.f32 %v7942_v39, %v3821_v10  ;;  %v4039_v62 = vmax.f32 %v3979_v55, 0.0 }
 0x4fc   : > { %v4040_v40 = vmax.f32 %v3982_v32, 0.0 }
 0x4fe   : > { %v4060_v27 = vpack.c.bf16 %v4040_v40, %v4039_v62 }
 0x500   : > { %v7596_v21 = vpop.f32.mrb[176].mxu0  ;;  %4316 = vmatmul.mubr.bf16.gmra.mrb[204].mxu1 %v4060_v27 }
 0x501   : > { %v7597_v25 = vpop.f32.mrb[177].mxu0  ;;  %4325 = vmatprep.mubr.bf16.mxu1 %v13731_v60 }
 0x502   : > { %v7598_v63 = vadd.f32 %v7597_v25, %v7596_v21  ;;  %v7599_v34 = vpop.f32.mrb[178].mxu0 }
 0x503   : > { %v7600_v46 = vpop.f32.mrb[179].mxu0 }
 0x504   : > { %v7601_v29 = vadd.f32 %v7600_v46, %v7599_v34  ;;  %v3826_v19 = vadd.f32 %v7598_v63, %v11784_v0 }
 0x506   : > { %v3829_v26 = vadd.f32 %v7601_v29, %v11787_v13 }
 0x509   : > { %v7945_v48 = vpop.f32.mrb[152].mxu1 }
 0x50a   : > { %v3986_v53 = vpop.f32.mrb[153].mxu1 }
 0x50b   : > { %v3987_v51 = vadd.f32 %v3986_v53, %v3826_v19  ;;  %v7946_v44 = vpop.f32.mrb[154].mxu1 }
 0x50c   : > { %v3989_v45 = vpop.f32.mrb[155].mxu1 }
 0x50d   : > { %v3990_v20 = vadd.f32 %v3989_v45, %v3829_v26  ;;  %v4041_v23 = vmax.f32 %v3987_v51, 0.0  ;;  %v4536_v45 = vld [vmem:[%s13778_s29 + $0x80] sm:$0xff] }
 0x50f   : > { %v4042_v12 = vmax.f32 %v3990_v20, 0.0  ;;  %v4537_v20 = vld [vmem:[%s13778_s29 + $0x88] sm:$0xff] }
 0x511   : > { %v4061_v47 = vpack.c.bf16 %v4042_v12, %v4041_v23  ;;  %v4520_v23 = vld [vmem:[%s13778_s29] sm:$0xff] }
 0x513   : > { %4326 = vmatmul.mubr.bf16.gmra.mrb[208].mxu1 %v4061_v47  ;;  %v7951_v47 = vpack.c.bf16 %v4537_v20, %v4536_v45 }
 0x514   : > { %4335 = vmatprep.mubr.bf16.mxu1 %v13731_v60 }
 0x515   : > { %7952 = vmatprep.subr.bf16.mxu0 %v7951_v47  ;;  %v4547_v47 = vld [vmem:[%s13778_s29 + $0xd8] sm:$0xff] }
 0x517   : > { %v7602_v15 = vpop.f32.mrb[180].mxu0 }
 0x518   : > { %v7603_v61 = vpop.f32.mrb[181].mxu0 }
 0x519   : > { %v7604_v31 = vadd.f32 %v7603_v61, %v7602_v15  ;;  %v7605_v8 = vpop.f32.mrb[182].mxu0  ;;  %v4521_v15 = vld [vmem:[%s13778_s29 + $0x8] sm:$0xff] }
 0x51a   : > { %v7606_v49 = vpop.f32.mrb[183].mxu0 }
 0x51b   : > { %v3834_v0 = vadd.f32 %v7604_v31, %v11796_v5  ;;  %v7607_v13 = vadd.f32 %v7606_v49, %v7605_v8  ;;  %v7953_v31 = vpack.c.bf16 %v4521_v15, %v4520_v23  ;;  %v4546_v23 = vld [vmem:[%s13778_s29 + $0xd0] sm:$0xff] }
 0x51c   : > { %v7971_v15 = vpack.c.bf16 %v4547_v47, %v4546_v23 }
 0x51d   : > { %v3995_v59 = vadd.f32 %v7945_v48, %v3834_v0  ;;  %v3837_v14 = vadd.f32 %v7607_v13, %v11799_v35  ;;  %7954 = vmatpush3.bf16.msra.mxu0 %v7953_v31  ;;  %v4538_v13 = vld [vmem:[%s13778_s29 + $0x90] sm:$0xff] }
 0x51e   : > { %v4530_v31 = vld [vmem:[%s13778_s29 + $0x50] sm:$0xff] }
 0x51f   : > { %v3998_v37 = vadd.f32 %v7946_v44, %v3837_v14  ;;  %v4043_v7 = vmax.f32 %v3995_v59, 0.0  ;;  %v4539_v59 = vld [vmem:[%s13778_s29 + $0x98] sm:$0xff]  ;;  %v4522_v14 = vld [vmem:[%s13778_s29 + $0x10] sm:$0xff] }
 0x521   : > { %v4044_v18 = vmax.f32 %v3998_v37, 0.0  ;;  %v7608_v22 = vpop.f32.mrb[184].mxu0 }
 0x522   : > { %v7609_v2 = vpop.f32.mrb[185].mxu0 }
 0x523   : > { %v7610_v4 = vadd.f32 %v7609_v2, %v7608_v22  ;;  %v7611_v52 = vpop.f32.mrb[186].mxu0  ;;  %v4062_v43 = vpack.c.bf16 %v4044_v18, %v4043_v7  ;;  %v7955_v7 = vpack.c.bf16 %v4539_v59, %v4538_v13  ;;  %v4523_v18 = vld [vmem:[%s13778_s29 + $0x18] sm:$0xff] }
 0x524   : > { %v7612_v41 = vpop.f32.mrb[187].mxu0  ;;  %v7957_v2 = vpack.c.bf16 %v4523_v18, %v4522_v14  ;;  %v4531_v13 = vld [vmem:[%s13778_s29 + $0x58] sm:$0xff]  ;;  %v4548_v14 = vld [vmem:[%s13778_s29 + $0xe0] sm:$0xff] }
 0x525   : > { %v7613_v54 = vadd.f32 %v7612_v41, %v7611_v52  ;;  %4336 = vmatmul.mubr.bf16.gmra.mrb[212].mxu1 %v4062_v43  ;;  %v3842_v58 = vadd.f32 %v7610_v4, %v11806_v50  ;;  %7956 = vmatprep.subr.bf16.mxu0 %v7955_v7  ;;  %v4540_v52 = vld [vmem:[%s13778_s29 + $0xa0] sm:$0xff]  ;;  %v4541_v43 = vld [vmem:[%s13778_s29 + $0xa8] sm:$0xff]  ;;  %v7973_v59 = vpack.c.bf16 %v4531_v13, %v4530_v31 }
 0x526   : > { %4345 = vmatprep.mubr.bf16.mxu1 %v13731_v60  ;;  %7958 = vmatpush3.bf16.msra.mxu0 %v7957_v2  ;;  %v4524_v41 = vld [vmem:[%s13778_s29 + $0x20] sm:$0xff]  ;;  %v4549_v7 = vld [vmem:[%s13778_s29 + $0xe8] sm:$0xff] }
 0x527   : > { %v3845_v5 = vadd.f32 %v7613_v54, %v11811_v57  ;;  %v4532_v18 = vld [vmem:[%s13778_s29 + $0x60] sm:$0xff]  ;;  %v7975_v2 = vpack.c.bf16 %v4549_v7, %v4548_v14 }
 0x52e   : > { %v7949_v56 = vpop.f32.mrb[156].mxu1 }
 0x52f   : > { %v4002_v39 = vpop.f32.mrb[157].mxu1 }
 0x530   : > { %v4003_v35 = vadd.f32 %v4002_v39, %v3842_v58  ;;  %v7950_v9 = vpop.f32.mrb[158].mxu1  ;;  %v7959_v58 = vpack.c.bf16 %v4541_v43, %v4540_v52  ;;  %v4533_v52 = vld [vmem:[%s13778_s29 + $0x68] sm:$0xff]  ;;  %v4550_v43 = vld [vmem:[%s13778_s29 + $0xf0] sm:$0xff] }
 0x531   : > { %v4005_v28 = vpop.f32.mrb[159].mxu1 }
 0x532   : > { %v4006_v6 = vadd.f32 %v4005_v28, %v3845_v5  ;;  %v4045_v38 = vmax.f32 %v4003_v35, 0.0  ;;  %v4525_v5 = vld [vmem:[%s13778_s29 + $0x28] sm:$0xff]  ;;  %7960 = vmatprep.subr.bf16.mxu0 %v7959_v58  ;;  %v7977_v58 = vpack.c.bf16 %v4533_v52, %v4532_v18 }
 0x533   : > { %v7961_v39 = vpack.c.bf16 %v4525_v5, %v4524_v41  ;;  %v4551_v41 = vld [vmem:[%s13778_s29 + $0xf8] sm:$0xff] }
 0x534   : > { %v4046_v24 = vmax.f32 %v4006_v6, 0.0  ;;  %v7979_v5 = vpack.c.bf16 %v4551_v41, %v4550_v43 }
 0x535   : > { %7962 = vmatpush3.bf16.msra.mxu0 %v7961_v39  ;;  %v4534_v39 = vld [vmem:[%s13778_s29 + $0x70] sm:$0xff] }
 0x536   : > { %v4063_v30 = vpack.c.bf16 %v4046_v24, %v4045_v38  ;;  %v11887_v36 = vpop.f32.mrb[160].mxu1 }
 0x537   : > { %v11889_v3 = vpop.f32.mrb[161].mxu1 }
 0x538   : > { %v7614_v33 = vpop.f32.mrb[188].mxu0  ;;  %v11891_v42 = vpop.f32.mrb[162].mxu1  ;;  %4346 = vmatmul.mubr.bf16.gmra.mrb[216].mxu1 %v4063_v30  ;;  %v4542_v30 = vld [vmem:[%s13778_s29 + $0xb0] sm:$0xff] }
 0x539   : > { %v7615_v50 = vpop.f32.mrb[189].mxu0  ;;  %v11893_v1 = vpop.f32.mrb[163].mxu1  ;;  %4355 = vmatprep.mubr.bf16.mxu1 %v13731_v60 }
 0x53a   : > { %v7616_v57 = vadd.f32 %v7615_v50, %v7614_v33  ;;  %v7617_v17 = vpop.f32.mrb[190].mxu0  ;;  %v4543_v33 = vld [vmem:[%s13778_s29 + $0xb8] sm:$0xff] }
 0x53b   : > { %v7618_v55 = vpop.f32.mrb[191].mxu0  ;;  %v7963_v50 = vpack.c.bf16 %v4543_v33, %v4542_v30  ;;  %v4535_v30 = vld [vmem:[%s13778_s29 + $0x78] sm:$0xff] }
 0x53c   : > { %v3850_v10 = vadd.f32 %v7616_v57, %v11815_v16  ;;  %v7619_v32 = vadd.f32 %v7618_v55, %v7617_v17  ;;  %v4526_v57 = vld [vmem:[%s13778_s29 + $0x30] sm:$0xff]  ;;  %v4527_v17 = vld [vmem:[%s13778_s29 + $0x38] sm:$0xff]  ;;  %v7981_v33 = vpack.c.bf16 %v4535_v30, %v4534_v39 }
 0x53d   : > { %v7965_v55 = vpack.c.bf16 %v4527_v17, %v4526_v57  ;;  %7964 = vmatprep.subr.bf16.mxu0 %v7963_v50 }
 0x53e   : > { %v4011_v62 = vadd.f32 %v7949_v56, %v3850_v10  ;;  %v3853_v40 = vadd.f32 %v7619_v32, %v11818_v11  ;;  %v11898_v27 = vpop.f32.mrb[164].mxu1 }
 0x53f   : > { %v11900_v21 = vpop.f32.mrb[165].mxu1  ;;  %7966 = vmatpush3.bf16.msra.mxu0 %v7965_v55 }
 0x540   : > { %v4014_v25 = vadd.f32 %v7950_v9, %v3853_v40  ;;  %v11902_v63 = vpop.f32.mrb[166].mxu1  ;;  %v4047_v46 = vmax.f32 %v4011_v62, 0.0  ;;  %v4544_v62 = vld [vmem:[%s13778_s29 + $0xc0] sm:$0xff]  ;;  %v4545_v40 = vld [vmem:[%s13778_s29 + $0xc8] sm:$0xff] }
 0x541   : > { %v11904_v34 = vpop.f32.mrb[167].mxu1 }
 0x542   : > { %v4048_v60 = vmax.f32 %v4014_v25, 0.0 }
 0x544   : > { %v4064_v29 = vpack.c.bf16 %v4048_v60, %v4047_v46  ;;  %v7967_v46 = vpack.c.bf16 %v4545_v40, %v4544_v62  ;;  %v4528_v60 = vld [vmem:[%s13778_s29 + $0x40] sm:$0xff]  ;;  %v13779_v62 = vld [vmem:[#allocation106_spill] sm:$0xff] }
 0x545   : > { %v4085_v40 = vsub.s32 0, %v13779_v62 }
 0x546   : > { %v11906_v19 = vpop.f32.mrb[168].mxu1  ;;  %4356 = vmatmul.mubr.bf16.gmra.mrb[220].mxu1 %v4064_v29  ;;  %v4529_v29 = vld [vmem:[%s13778_s29 + $0x48] sm:$0xff]  ;;  %7968 = vmatprep.subr.bf16.mxu0 %v7967_v46  ;;  %v4081_v46 = vld [vmem:[%s13780_s24] sm:$0x3] }
 0x547   : > { %v11908_v16 = vpop.f32.mrb[169].mxu1  ;;  %v7969_v20 = vpack.c.bf16 %v4529_v29, %v4528_v60  ;;  %v4089_v60 = vsub.s32 1, %v13779_v62  ;;  %v12071_v29 = vrot.slane %v4081_v46, %v4085_v40 }
 0x548   : > { %v11910_v26 = vpop.f32.mrb[170].mxu1 }
 0x549   : > { %v11912_v11 = vpop.f32.mrb[171].mxu1  ;;  %7970 = vmatpush3.bf16.msra.mxu0 %v7969_v20  ;;  %v12073_v20 = vrot.slane %v4081_v46, %v4089_v60  ;;  %v12077_v23 = vadd.f32 %v11891_v42, %v12071_v29  ;;  %v12089_v31 = vadd.f32 %v11898_v27, %v12071_v29  ;;  %v12123_v52 = vadd.f32 %v11906_v19, %v12071_v29 }
 0x54a   : > { %7972 = vmatprep.subr.bf16.mxu0 %v7971_v15  ;;  %v12085_v15 = vadd.f32 %v11887_v36, %v12071_v29 }
 0x54b   : > { %v12081_v47 = vadd.f32 %v11893_v1, %v12073_v20  ;;  %13781 = vst [vmem:[#allocation66_spill] sm:$0xff] %v12089_v31  ;;  %v12093_v13 = vadd.f32 %v11889_v3, %v12073_v20  ;;  %v12097_v42 = vadd.f32 %v11900_v21, %v12073_v20  ;;  %v12112_v3 = vadd.f32 %v11902_v63, %v12071_v29 }
 0x54c   : > { %v4366_v1 = vadd.f32 %v12077_v23, %v12085_v15  ;;  %v12127_v43 = vadd.f32 %v11908_v16, %v12073_v20  ;;  %v12139_v19 = vadd.f32 %v11912_v11, %v12073_v20 }
 0x54d   : > { %7974 = vmatpush3.bf16.msra.mxu0 %v7973_v59  ;;  %13782 = vst [vmem:[#allocation102_spill] sm:$0xff] %v12097_v42  ;;  %v4403_v36 = vadd.f32 %v12081_v47, %v12093_v13  ;;  %13783 = vst [vmem:[#allocation44_spill] sm:$0xff] %v12112_v3 }
 0x54e   : > { %v11914_v48 = vpop.f32.mrb[172].mxu1  ;;  %7976 = vmatprep.subr.bf16.mxu0 %v7975_v2  ;;  %v4367_v7 = vadd.f32 %v4366_v1, %v12089_v31  ;;  %v12119_v2 = vadd.f32 %v11904_v34, %v12073_v20 }
 0x54f   : > { %v11916_v53 = vpop.f32.mrb[173].mxu1  ;;  %v4404_v18 = vadd.f32 %v4403_v36, %v12097_v42  ;;  %v12143_v16 = vadd.f32 %v11914_v48, %v12071_v29 }
 0x550   : > { %v11918_v51 = vpop.f32.mrb[174].mxu1  ;;  %13784 = vst [vmem:[#allocation69_spill] sm:$0xff] %v12119_v2  ;;  %v4368_v41 = vadd.f32 %v4367_v7, %v12112_v3  ;;  %v12147_v39 = vadd.f32 %v11916_v53, %v12073_v20 }
 0x551   : > { %v11920_v44 = vpop.f32.mrb[175].mxu1  ;;  %7978 = vmatpush3.bf16.msra.mxu0 %v7977_v58  ;;  %v4405_v63 = vadd.f32 %v4404_v18, %v12119_v2  ;;  %v12156_v11 = vadd.f32 %v11918_v51, %v12071_v29 }
 0x552   : > { %7980 = vmatprep.subr.bf16.mxu0 %v7979_v5  ;;  %v4369_v58 = vadd.f32 %v4368_v41, %v12123_v52  ;;  %v12134_v5 = vadd.f32 %v11910_v26, %v12071_v29  ;;  %v12163_v53 = vadd.f32 %v11920_v44, %v12073_v20 }
 0x553   : > { %v4406_v34 = vadd.f32 %v4405_v63, %v12127_v43  ;;  %13785 = vst [vmem:[#allocation93_spill] sm:$0xff] %v12156_v11 }
 0x554   : > { %v4370_v30 = vadd.f32 %v4369_v58, %v12134_v5 }
 0x555   : > { %7982 = vmatpush3.bf16.msra.mxu0 %v7981_v33  ;;  %v4407_v33 = vadd.f32 %v4406_v34, %v12139_v19 }
 0x556   : > { %v4371_v62 = vadd.f32 %v4370_v30, %v12143_v16 }
 0x557   : > { %v4408_v48 = vadd.f32 %v4407_v33, %v12147_v39 }
 0x558   : > { %v4372_v36 = vadd.f32 %v4371_v62, %v12156_v11 }
 0x559   : > { %v11931_v12 = vpop.f32.mrb[176].mxu1  ;;  %v4409_v7 = vadd.f32 %v4408_v48, %v12163_v53 }
 0x55a   : > { %v11936_v61 = vpop.f32.mrb[177].mxu1  ;;  %v12169_v60 = vadd.f32 %v11931_v12, %v12071_v29 }
 0x55b   : > { %v11938_v8 = vpop.f32.mrb[178].mxu1  ;;  %v12175_v51 = vadd.f32 %v11936_v61, %v12073_v20 }
 0x55c   : > { %v11940_v49 = vpop.f32.mrb[179].mxu1  ;;  %v4373_v18 = vadd.f32 %v4372_v36, %v12169_v60  ;;  %v12182_v44 = vadd.f32 %v11938_v8, %v12071_v29 }
 0x55d   : > { %v4410_v41 = vadd.f32 %v4409_v7, %v12175_v51  ;;  %v12187_v12 = vadd.f32 %v11940_v49, %v12073_v20 }
 0x55e   : > { %v4374_v58 = vadd.f32 %v4373_v18, %v12182_v44 }
 0x55f   : > { %v4411_v34 = vadd.f32 %v4410_v41, %v12187_v12 }
 0x56b   : > { %v11942_v0 = vpop.f32.mrb[180].mxu1 }
 0x56c   : > { %v11953_v37 = vpop.f32.mrb[181].mxu1  ;;  %v12191_v61 = vadd.f32 %v11942_v0, %v12071_v29 }
 0x56d   : > { %v11958_v22 = vpop.f32.mrb[182].mxu1  ;;  %v12195_v63 = vadd.f32 %v11953_v37, %v12073_v20 }
 0x56e   : > { %v11960_v4 = vpop.f32.mrb[183].mxu1  ;;  %13786 = vst [vmem:[#allocation73_spill] sm:$0xff] %v12191_v61  ;;  %v4375_v8 = vadd.f32 %v4374_v58, %v12191_v61  ;;  %v12202_v30 = vadd.f32 %v11958_v22, %v12071_v29 }
 0x56f   : > { %13787 = vst [vmem:[#allocation46_spill] sm:$0xff] %v12195_v63  ;;  %v4412_v49 = vadd.f32 %v4411_v34, %v12195_v63  ;;  %v12207_v0 = vadd.f32 %v11960_v4, %v12073_v20 }
 0x570   : > { %13788 = vst [vmem:[#allocation75_spill] sm:$0xff] %v12202_v30  ;;  %v4376_v62 = vadd.f32 %v4375_v8, %v12202_v30 }
 0x571   : > { %13789 = vst [vmem:[#allocation71_spill] sm:$0xff] %v12207_v0  ;;  %v4413_v48 = vadd.f32 %v4412_v49, %v12207_v0 }
 0x57f   : > { %v11971_v54 = vpop.f32.mrb[184].mxu1 }
 0x580   : > { %v11976_v56 = vpop.f32.mrb[185].mxu1  ;;  %v12211_v37 = vadd.f32 %v11971_v54, %v12071_v29 }
 0x581   : > { %v11978_v35 = vpop.f32.mrb[186].mxu1  ;;  %v12215_v33 = vadd.f32 %v11976_v56, %v12073_v20 }
 0x582   : > { %v11980_v9 = vpop.f32.mrb[187].mxu1  ;;  %13790 = vst [vmem:[#allocation59_spill] sm:$0xff] %v12211_v37  ;;  %v4377_v22 = vadd.f32 %v4376_v62, %v12211_v37  ;;  %v12222_v36 = vadd.f32 %v11978_v35, %v12071_v29 }
 0x583   : > { %13791 = vst [vmem:[#allocation78_spill] sm:$0xff] %v12215_v33  ;;  %v4414_v7 = vadd.f32 %v4413_v48, %v12215_v33  ;;  %v12227_v54 = vadd.f32 %v11980_v9, %v12073_v20 }
 0x584   : > { %13792 = vst [vmem:[#allocation62_spill] sm:$0xff] %v12222_v36  ;;  %v4378_v34 = vadd.f32 %v4377_v22, %v12222_v36 }
 0x585   : > { %13793 = vst [vmem:[#allocation87_spill] sm:$0xff] %v12227_v54  ;;  %v4415_v8 = vadd.f32 %v4414_v7, %v12227_v54 }
 0x58d   : > { %v11982_v28 = vpop.f32.mrb[188].mxu1 }
 0x58e   : > { %v11984_v6 = vpop.f32.mrb[189].mxu1  ;;  %v12231_v56 = vadd.f32 %v11982_v28, %v12071_v29 }
 0x58f   : > { %v11986_v38 = vpop.f32.mrb[190].mxu1  ;;  %v12237_v58 = vadd.f32 %v11984_v6, %v12073_v20 }
 0x590   : > { %v11988_v24 = vpop.f32.mrb[191].mxu1  ;;  %13794 = vst [vmem:[#allocation95_spill] sm:$0xff] %v12231_v56  ;;  %v4379_v9 = vadd.f32 %v4378_v34, %v12231_v56  ;;  %v12246_v49 = vadd.f32 %v11986_v38, %v12071_v29 }
 0x591   : > { %13795 = vst [vmem:[#allocation64_spill] sm:$0xff] %v12237_v58  ;;  %v4416_v28 = vadd.f32 %v4415_v8, %v12237_v58  ;;  %v12251_v62 = vadd.f32 %v11988_v24, %v12073_v20 }
 0x592   : > { %13796 = vst [vmem:[#allocation97_spill] sm:$0xff] %v12246_v49  ;;  %v4380_v22 = vadd.f32 %v4379_v9, %v12246_v49 }
 0x593   : > { %13797 = vst [vmem:[#allocation107_spill] sm:$0xff] %v12251_v62  ;;  %v4417_v7 = vadd.f32 %v4416_v28, %v12251_v62 }
 0x5a0   : > { %v12002_v10 = vpop.f32.mrb[192].mxu1 }
 0x5a1   : > { %v12004_v32 = vpop.f32.mrb[193].mxu1  ;;  %v12255_v6 = vadd.f32 %v12002_v10, %v12071_v29 }
 0x5a2   : > { %v12012_v25 = vpop.f32.mrb[194].mxu1  ;;  %v12259_v48 = vadd.f32 %v12004_v32, %v12073_v20 }
 0x5a3   : > { %v12020_v45 = vpop.f32.mrb[195].mxu1  ;;  %v4381_v38 = vadd.f32 %v4380_v22, %v12255_v6  ;;  %v12266_v34 = vadd.f32 %v12012_v25, %v12071_v29 }
 0x5a4   : > { %13798 = vst [vmem:[#allocation98_spill] sm:$0xff] %v12259_v48  ;;  %v4418_v24 = vadd.f32 %v4417_v7, %v12259_v48  ;;  %v12271_v10 = vadd.f32 %v12020_v45, %v12073_v20 }
 0x5a5   : > { %v4382_v9 = vadd.f32 %v4381_v38, %v12266_v34 }
 0x5a6   : > { %v4419_v28 = vadd.f32 %v4418_v24, %v12271_v10 }
 0x5b2   : > { %v12058_v50 = vpop.f32.mrb[196].mxu1 }
 0x5b3   : > { %v12060_v57 = vpop.f32.mrb[197].mxu1  ;;  %v12275_v32 = vadd.f32 %v12058_v50, %v12071_v29 }
 0x5b4   : > { %v12062_v17 = vpop.f32.mrb[198].mxu1  ;;  %v12279_v8 = vadd.f32 %v12060_v57, %v12073_v20 }
 0x5b5   : > { %v12064_v55 = vpop.f32.mrb[199].mxu1  ;;  %13799 = vst [vmem:[#allocation29_spill] sm:$0xff] %v12275_v32  ;;  %v4383_v25 = vadd.f32 %v4382_v9, %v12275_v32  ;;  %v12286_v22 = vadd.f32 %v12062_v17, %v12071_v29 }
 0x5b6   : > { %13800 = vst [vmem:[#allocation101_spill] sm:$0xff] %v12279_v8  ;;  %v4420_v7 = vadd.f32 %v4419_v28, %v12279_v8  ;;  %v12291_v50 = vadd.f32 %v12064_v55, %v12073_v20 }
 0x5b7   : > { %v4384_v9 = vadd.f32 %v4383_v25, %v12286_v22 }
 0x5b8   : > { %v4421_v28 = vadd.f32 %v4420_v7, %v12291_v50  ;;  %v4443_v7 = vmax.f32 %v12085_v15, %v12089_v31 }
 0x5c5   : > { %v12099_v59 = vpop.f32.mrb[200].mxu1 }
 0x5c6   : > { %v12103_v14 = vpop.f32.mrb[201].mxu1  ;;  %v12295_v57 = vadd.f32 %v12099_v59, %v12071_v29 }
 0x5c7   : > { %v12107_v27 = vpop.f32.mrb[202].mxu1  ;;  %v12301_v24 = vadd.f32 %v12103_v14, %v12073_v20 }
 0x5c8   : > { %v12114_v21 = vpop.f32.mrb[203].mxu1  ;;  %13801 = vst [vmem:[#allocation36_spill] sm:$0xff] %v12295_v57  ;;  %v4385_v55 = vadd.f32 %v4384_v9, %v12295_v57  ;;  %v12310_v8 = vadd.f32 %v12107_v27, %v12071_v29  ;;  %v4444_v27 = vmax.f32 %v12077_v23, %v12112_v3 }
 0x5c9   : > { %13802 = vst [vmem:[#allocation50_spill] sm:$0xff] %v12301_v24  ;;  %v4422_v59 = vadd.f32 %v4421_v28, %v12301_v24  ;;  %v12315_v32 = vadd.f32 %v12114_v21, %v12073_v20  ;;  %v4480_v21 = vmax.f32 %v12093_v13, %v12097_v42  ;;  %v4481_v28 = vmax.f32 %v12081_v47, %v12119_v2 }
 0x5ca   : > { %v4386_v9 = vadd.f32 %v4385_v55, %v12310_v8  ;;  %v4445_v24 = vmax.f32 %v4443_v7, %v12123_v52 }
 0x5cb   : > { %v4482_v55 = vmax.f32 %v4480_v21, %v12127_v43  ;;  %v4483_v3 = vmax.f32 %v4481_v28, %v12139_v19 }
 0x5d3   : > { %v12151_v26 = vpop.f32.mrb[204].mxu1 }
 0x5d4   : > { %v12158_v40 = vpop.f32.mrb[205].mxu1  ;;  %v12319_v14 = vadd.f32 %v12151_v26, %v12071_v29  ;;  %v4423_v26 = vadd.f32 %v4422_v59, %v12315_v32  ;;  %v4447_v59 = vmax.f32 %v4445_v24, %v12143_v16 }
 0x5d5   : > { %v12165_v46 = vpop.f32.mrb[206].mxu1  ;;  %v12323_v25 = vadd.f32 %v12158_v40, %v12073_v20  ;;  %v4446_v40 = vmax.f32 %v4444_v27, %v12134_v5 }
 0x5d6   : > { %v12171_v1 = vpop.f32.mrb[207].mxu1  ;;  %v4387_v57 = vadd.f32 %v4386_v9, %v12319_v14  ;;  %v12340_v31 = vadd.f32 %v12165_v46, %v12071_v29  ;;  %v4484_v46 = vmax.f32 %v4482_v55, %v12147_v39  ;;  %v4485_v9 = vmax.f32 %v4483_v3, %v12163_v53 }
 0x5d7   : > { %v4424_v42 = vadd.f32 %v4423_v26, %v12323_v25  ;;  %v12347_v2 = vadd.f32 %v12171_v1, %v12073_v20  ;;  %v4448_v7 = vmax.f32 %v4446_v40, %v12156_v11  ;;  %v4449_v28 = vmax.f32 %v4447_v59, %v12169_v60 }
 0x5d8   : > { %v4388_v1 = vadd.f32 %v4387_v57, %v12340_v31  ;;  %v4486_v24 = vmax.f32 %v4484_v46, %v12175_v51  ;;  %v4487_v40 = vmax.f32 %v4485_v9, %v12187_v12 }
 0x5d9   : > { %v4450_v26 = vmax.f32 %v4448_v7, %v12182_v44  ;;  %v4451_v11 = vmax.f32 %v4449_v28, %v12191_v61 }
 0x5da   : > { %v4488_v59 = vmax.f32 %v4486_v24, %v12195_v63  ;;  %v4489_v57 = vmax.f32 %v4487_v40, %v12207_v0 }
 0x5db   : > { %v4452_v55 = vmax.f32 %v4450_v26, %v12202_v30  ;;  %v4453_v9 = vmax.f32 %v4451_v11, %v12211_v37 }
 0x5dc   : > { %v4491_v24 = vmax.f32 %v4489_v57, %v12227_v54  ;;  %v13811_v54 = vld [vmem:[#allocation50_spill] sm:$0xff] }
 0x5dd   : > { %v4454_v28 = vmax.f32 %v4452_v55, %v12222_v36 }
 0x5df   : > { %v4456_v0 = vmax.f32 %v4454_v28, %v12246_v49  ;;  %v13804_v28 = vld [vmem:[#allocation98_spill] sm:$0xff] }
 0x5e1   : > { %v4458_v57 = vmax.f32 %v4456_v0, %v12266_v34 }
 0x5e3   : > { %v4460_v0 = vmax.f32 %v4458_v57, %v12286_v22 }
 0x5e6   : > { %v4327_v4 = vpop.f32.mrb[208].mxu1 }
 0x5e7   : > { %v4329_v18 = vpop.f32.mrb[209].mxu1  ;;  %v12352_v27 = vadd.f32 %v4327_v4, %v12071_v29  ;;  %v4425_v4 = vadd.f32 %v4424_v42, %v12347_v2 }
 0x5e8   : > { %v12233_v41 = vpop.f32.mrb[210].mxu1  ;;  %v12357_v21 = vadd.f32 %v4329_v18, %v12073_v20 }
 0x5e9   : > { %v12239_v35 = vpop.f32.mrb[211].mxu1  ;;  %v4389_v3 = vadd.f32 %v4388_v1, %v12352_v27  ;;  %v12370_v18 = vadd.f32 %v12233_v41, %v12071_v29  ;;  %v4490_v1 = vmax.f32 %v4488_v59, %v12215_v33 }
 0x5ea   : > { %v4426_v7 = vadd.f32 %v4425_v4, %v12357_v21  ;;  %v12377_v46 = vadd.f32 %v12239_v35, %v12073_v20  ;;  %v4455_v35 = vmax.f32 %v4453_v9, %v12231_v56  ;;  %v4462_v56 = vmax.f32 %v4460_v0, %v12310_v8 }
 0x5eb   : > { %v4390_v11 = vadd.f32 %v4389_v3, %v12370_v18  ;;  %v4492_v55 = vmax.f32 %v4490_v1, %v12237_v58 }
 0x5ec   : > { %v4427_v36 = vadd.f32 %v4426_v7, %v12377_v46  ;;  %v4457_v59 = vmax.f32 %v4455_v35, %v12255_v6  ;;  %v13806_v7 = vld [vmem:[#allocation29_spill] sm:$0xff] }
 0x5ed   : > { %v4494_v49 = vmax.f32 %v4492_v55, %v13804_v28 }
 0x5ee   : > { %v4459_v35 = vmax.f32 %v4457_v59, %v13806_v7 }
 0x5f8   : > { %v4337_v45 = vpop.f32.mrb[212].mxu1 }
 0x5f9   : > { %v4339_v48 = vpop.f32.mrb[213].mxu1  ;;  %v12382_v26 = vadd.f32 %v4337_v45, %v12071_v29  ;;  %v4493_v45 = vmax.f32 %v4491_v24, %v12251_v62  ;;  %v13808_v62 = vld [vmem:[#allocation101_spill] sm:$0xff] }
 0x5fa   : > { %v12297_v38 = vpop.f32.mrb[214].mxu1  ;;  %v12387_v40 = vadd.f32 %v4339_v48, %v12073_v20 }
 0x5fb   : > { %v12303_v17 = vpop.f32.mrb[215].mxu1  ;;  %v4391_v48 = vadd.f32 %v4390_v11, %v12382_v26  ;;  %v12400_v9 = vadd.f32 %v12297_v38, %v12071_v29  ;;  %v4495_v3 = vmax.f32 %v4493_v45, %v12271_v10  ;;  %v4496_v38 = vmax.f32 %v4494_v49, %v13808_v62  ;;  %v13810_v45 = vld [vmem:[#allocation36_spill] sm:$0xff] }
 0x5fc   : > { %13803 = vst [vmem:[#allocation23_spill] sm:$0xff] %v12387_v40  ;;  %v4428_v1 = vadd.f32 %v4427_v36, %v12387_v40  ;;  %v12407_v24 = vadd.f32 %v12303_v17, %v12073_v20  ;;  %v4461_v36 = vmax.f32 %v4459_v35, %v13810_v45  ;;  %v4464_v49 = vmax.f32 %v4462_v56, %v12340_v31 }
 0x5fd   : > { %v4497_v58 = vmax.f32 %v4495_v3, %v12291_v50  ;;  %v4392_v17 = vadd.f32 %v4391_v48, %v12400_v9  ;;  %v4498_v59 = vmax.f32 %v4496_v38, %v13811_v54 }
 0x5fe   : > { %13805 = vst [vmem:[#allocation27_spill] sm:$0xff] %v12407_v24  ;;  %v4463_v33 = vmax.f32 %v4461_v36, %v12319_v14 }
 0x5ff   : > { %v4499_v57 = vmax.f32 %v4497_v58, %v12315_v32  ;;  %v4500_v35 = vmax.f32 %v4498_v59, %v12323_v25 }
 0x600   : > { %v4465_v58 = vmax.f32 %v4463_v33, %v12352_v27 }
 0x601   : > { %v4501_v0 = vmax.f32 %v4499_v57, %v12347_v2  ;;  %v4502_v56 = vmax.f32 %v4500_v35, %v12357_v21 }
 0x603   : > { %v4503_v36 = vmax.f32 %v4501_v0, %v12377_v46  ;;  %v4504_v63 = vmax.f32 %v4502_v56, %v12387_v40 }
 0x605   : > { %v4505_v33 = vmax.f32 %v4503_v36, %v12407_v24 }
 0x60b   : > { %v4347_v42 = vpop.f32.mrb[216].mxu1 }
 0x60c   : > { %v4349_v41 = vpop.f32.mrb[217].mxu1  ;;  %v12412_v11 = vadd.f32 %v4347_v42, %v12071_v29  ;;  %v4429_v42 = vadd.f32 %v4428_v1, %v12407_v24  ;;  %v4466_v1 = vmax.f32 %v4464_v49, %v12370_v18 }
 0x60d   : > { %v4351_v4 = vpop.f32.mrb[218].mxu1  ;;  %v12417_v55 = vadd.f32 %v4349_v41, %v12073_v20 }
 0x60e   : > { %v4353_v37 = vpop.f32.mrb[219].mxu1  ;;  %13807 = vst [vmem:[#allocation88_spill] sm:$0xff] %v12412_v11  ;;  %v4393_v3 = vadd.f32 %v4392_v17, %v12412_v11  ;;  %v12429_v41 = vadd.f32 %v4351_v4, %v12071_v29  ;;  %v4467_v4 = vmax.f32 %v4465_v58, %v12382_v26  ;;  %v4468_v59 = vmax.f32 %v4466_v1, %v12400_v9 }
 0x60f   : > { %13809 = vst [vmem:[#allocation103_spill] sm:$0xff] %v12417_v55  ;;  %v4430_v48 = vadd.f32 %v4429_v42, %v12417_v55  ;;  %v12435_v38 = vadd.f32 %v4353_v37, %v12073_v20  ;;  %v4506_v56 = vmax.f32 %v4504_v63, %v12417_v55 }
 0x610   : > { %13812 = vst [vmem:[#allocation72_spill] sm:$0xff] %v12429_v41  ;;  %v4394_v57 = vadd.f32 %v4393_v3, %v12429_v41  ;;  %v4469_v58 = vmax.f32 %v4467_v4, %v12412_v11  ;;  %v4470_v1 = vmax.f32 %v4468_v59, %v12429_v41 }
 0x611   : > { %13813 = vst [vmem:[#allocation26_spill] sm:$0xff] %v12435_v38  ;;  %v4431_v49 = vadd.f32 %v4430_v48, %v12435_v38  ;;  %v4507_v36 = vmax.f32 %v4505_v33, %v12435_v38 }
 0x619   : > { %v4357_v17 = vpop.f32.mrb[220].mxu1 }
 0x61a   : > { %v12445_v42 = vadd.f32 %v4357_v17, %v12071_v29  ;;  %v4359_v37 = vpop.f32.mrb[221].mxu1 }
 0x61b   : > { %v12451_v35 = vadd.f32 %v4359_v37, %v12073_v20  ;;  %v4361_v0 = vpop.f32.mrb[222].mxu1 }
 0x61c   : > { %13814 = vst [vmem:[#allocation109_spill] sm:$0xff] %v12445_v42  ;;  %v4395_v3 = vadd.f32 %v4394_v57, %v12445_v42  ;;  %v12457_v17 = vadd.f32 %v4361_v0, %v12071_v29  ;;  %v4363_v30 = vpop.f32.mrb[223].mxu1  ;;  %v4471_v61 = vmax.f32 %v4469_v58, %v12445_v42 }
 0x61d   : > { %13815 = vst [vmem:[#allocation116_spill] sm:$0xff] %v12451_v35  ;;  %v4432_v48 = vadd.f32 %v4431_v49, %v12451_v35  ;;  %v12463_v37 = vadd.f32 %v4363_v30, %v12073_v20  ;;  %v4508_v57 = vmax.f32 %v4506_v56, %v12451_v35 }
 0x61e   : > { %13816 = vst [vmem:[#allocation113_spill] sm:$0xff] %v12457_v17  ;;  %v4396_v4 = vadd.f32 %v4395_v3, %v12457_v17  ;;  %v4472_v59 = vmax.f32 %v4470_v1, %v12457_v17 }
 0x61f   : > { %13817 = vst [vmem:[#allocation115_spill] sm:$0xff] %v12463_v37  ;;  %v4433_v29 = vadd.f32 %v4432_v48, %v12463_v37  ;;  %v4509_v0 = vmax.f32 %v4507_v36, %v12463_v37 }
 0x620   : > { %v4397_v63 = vrot.slane %v4396_v4, 4  ;;  %v4473_v55 = vmax.f32 %v4471_v61, %v4472_v59 }
 0x621   : > { %v4434_v33 = vrot.slane %v4433_v29, 4  ;;  %v4510_v38 = vmax.f32 %v4508_v57, %v4509_v0 }
 0x622   : > { %v4398_v49 = vadd.f32 %v4397_v63, %v4396_v4  ;;  %v4474_v41 = vrot.slane %v4473_v55, 4 }
 0x623   : > { %v4435_v20 = vadd.f32 %v4434_v33, %v4433_v29  ;;  %v4511_v30 = vrot.slane %v4510_v38, 4  ;;  %v4623_v33 = vld [vmem:[#allocation11] sm:$0xff] }
 0x624   : > { %v4399_v11 = vrot.slane %v4398_v49, 2  ;;  %v4475_v58 = vmax.f32 %v4473_v55, %v4474_v41 }
 0x625   : > { %v4436_v42 = vrot.slane %v4435_v20, 2  ;;  %v4512_v3 = vmax.f32 %v4510_v38, %v4511_v30  ;;  %v4626_v38 = vld [vmem:[#allocation11 + $0x18] sm:$0xff] }
 0x626   : > { %v4400_v24 = vadd.f32 %v4399_v11, %v4398_v49  ;;  %v4476_v1 = vrot.slane %v4475_v58, 2  ;;  %v4624_v11 = vld [vmem:[#allocation11 + $0x8] sm:$0xff]  ;;  %v4625_v49 = vld [vmem:[#allocation11 + $0x10] sm:$0xff] }
 0x627   : > { %v4437_v17 = vadd.f32 %v4436_v42, %v4435_v20  ;;  %v4513_v56 = vrot.slane %v4512_v3, 2  ;;  %v7983_v42 = vpack.c.bf16 %v4626_v38, %v4624_v11  ;;  %v7985_v20 = vpack.c.bf16 %v4625_v49, %v4623_v33 }
 0x628   : > { %v4401_v35 = vrot.slane %v4400_v24, 1  ;;  %v4477_v48 = vmax.f32 %v4475_v58, %v4476_v1 }
 0x629   : > { %v4438_v40 = vrot.slane %v4437_v17, 1  ;;  %v4514_v36 = vmax.f32 %v4512_v3, %v4513_v56  ;;  %7984 = vmatprep.subr.bf16.mxu0 %v7983_v42 }
 0x62a   : > { %v4402_v37 = vadd.f32 %v4401_v35, %v4400_v24  ;;  %v4478_v61 = vrot.slane %v4477_v48, 1  ;;  %v9035_v24 = vmov 0.0  }
 0x62b   : > { %v4439_v59 = vadd.f32 %v4438_v40, %v4437_v17  ;;  %v4515_v57 = vrot.slane %v4514_v36, 1 }
 0x62c   : > { %v4441_v4 = vmul.f32 0.00390625, %v4402_v37  ;;  %v4479_v29 = vmax.f32 %v4477_v48, %v4478_v61 }
 0x62d   : > { %v4442_v0 = vmul.f32 0.00390625, %v4439_v59  ;;  %v4516_v63 = vmax.f32 %v4514_v36, %v4515_v57 }
 0x62e   : > { %v4518_v41 = vsel %vm4517_vm2, %v4441_v4, %v4479_v29 }
 0x62f   : > { %v4519_v55 = vsel %vm4517_vm2, %v4442_v0, %v4516_v63 }
 0x630   : > { %4616 = vmatprep.mubr.f32.mxu0 %v4519_v55 }
 0x631   : > { %4617 = vmatmul.mubr.f32.vlgmr.msra.gmra.mrb[192].mxu0 %v4518_v41 }
 0x632   : > { %4695 = vmatprep.mubr.f32.mxu0 %v9035_v24  ;;  %7986 = vmatpush1.bf16.msra.mxu0 %v7985_v20 }
 0x704   : > { %v7676_v40 = vpop.f32.mrb[192].mxu0 }
 0x705   : > { %v7677_v35 = vpop.f32.mrb[193].mxu0 }
 0x706   : > { %v7678_v17 = vadd.f32 %v7677_v35, %v7676_v40 }
 0x708   : > { %v4622_v37 = vmax.f32 %v7678_v17, 0.0 }
 0x70a   : > { %6890 = vmatmul.mubr.msk.f32.vlgmr.msra.gmra.mrb[194].mxu0 %vm4627_vm3, %v4622_v37 }
 0x7dd   : > { %v4697_v30 = vpop.f32.mrb[194].mxu0 }
 0x7de   : > { %v4703_v58 = vsel %vm4702_vm4, %v4697_v30, 0.0  ;;  %v4699_v3 = vpop.f32.mrb[195].mxu0 }
 0x7df   : > { %v4704_v1 = vrot.slane %v4703_v58, 4  ;;  %v4710_v56 = vsel %vm4702_vm4, %v4699_v3, 0.0 }
 0x7e0   : > { %v4711_v48 = vrot.slane %v4710_v56, 4 }
 0x7e1   : > { %v4705_v36 = vadd.f32 %v4704_v1, %v4703_v58 }
 0x7e2   : > { %v4712_v61 = vadd.f32 %v4711_v48, %v4710_v56  ;;  %v13826_v48 = vld [vmem:[#allocation44_spill] sm:$0xff] }
 0x7e3   : > { %v4706_v59 = vrot.slane %v4705_v36, 2 }
 0x7e4   : > { %v4713_v57 = vrot.slane %v4712_v61, 2 }
 0x7e5   : > { %v4707_v4 = vadd.f32 %v4706_v59, %v4705_v36  ;;  %v13827_v36 = vld [vmem:[#allocation102_spill] sm:$0xff] }
 0x7e6   : > { %v4714_v29 = vadd.f32 %v4713_v57, %v4712_v61  ;;  %v13828_v61 = vld [vmem:[#allocation69_spill] sm:$0xff] }
 0x7e7   : > { %v4708_v0 = vrot.slane %v4707_v4, 1 }
 0x7e8   : > { %v4715_v63 = vrot.slane %v4714_v29, 1 }
 0x7e9   : > { %v4709_v55 = vadd.f32 %v4708_v0, %v4707_v4 }
 0x7ea   : > { %v4716_v41 = vadd.f32 %v4715_v63, %v4714_v29 }
 0x7eb   : > { %v6891_v11 = vmul.f32 -1.442695, %v4709_v55 }
 0x7ec   : > { %v6892_v38 = vmul.f32 -1.442695, %v4716_v41 }
 0x7ed   : > { %8503 = vpow2.f32 %v6891_v11 }
 0x7ee   : > { %8505 = vpow2.f32 %v6892_v38 }
 0x7f7   : > { %v8504_v42 = vpop.eup %8503 }
 0x7f8   : > { %v8506_v33 = vpop.eup %8505  ;;  %v4723_v49 = vadd.f32 1.0, %v8504_v42 }
 0x7f9   : > { %v4724_v20 = vadd.f32 1.0, %v8506_v33 }
 0x7fa   : > { %8507 = vrcp.f32 %v4723_v49 }
 0x7fb   : > { %8509 = vrcp.f32 %v4724_v20 }
 0x804   : > { %v12471_v24 = vpop.eup %8507 }
 0x805   : > { %v12473_v40 = vpop.eup %8509  ;;  %v12477_v35 = vmul.f32 %v12471_v24, %v12255_v6  ;;  %v12481_v17 = vmul.f32 %v12471_v24, %v12266_v34  ;;  %v12493_v58 = vmul.f32 %v12471_v24, %v12085_v15  ;;  %v12497_v6 = vmul.f32 %v12471_v24, %v12077_v23 }
 0x806   : > { %v12485_v37 = vmul.f32 %v12473_v40, %v13804_v28  ;;  %v12489_v30 = vmul.f32 %v12473_v40, %v12271_v10  ;;  %v12501_v34 = vmul.f32 %v12473_v40, %v12093_v13  ;;  %v12505_v28 = vmul.f32 %v12473_v40, %v12081_v47 }
 0x807   : > { %13818 = vst [vmem:[#allocation125_spill] sm:$0xff] %v12493_v58  ;;  %13819 = vst [vmem:[#allocation124_spill] sm:$0xff] %v12497_v6  ;;  %v12513_v23 = vmul.f32 %v12471_v24, %v13806_v7  ;;  %v12517_v15 = vmul.f32 %v12471_v24, %v12286_v22  ;;  %v12521_v47 = vmul.f32 %v12473_v40, %v13808_v62  ;;  %v13825_v7 = vld [vmem:[#allocation66_spill] sm:$0xff] }
 0x808   : > { %13820 = vst [vmem:[#allocation126_spill] sm:$0xff] %v12501_v34  ;;  %13821 = vst [vmem:[#allocation129_spill] sm:$0xff] %v12505_v28  ;;  %v4844_v10 = vadd.f32 %v12489_v30, %v12481_v17  ;;  %v4841_v3 = vadd.f32 %v12485_v37, %v12477_v35  ;;  %v12525_v13 = vmul.f32 %v12473_v40, %v12291_v50 }
 0x809   : > { %13822 = vst [vmem:[#allocation77_spill] sm:$0xff] %v12517_v15  ;;  %13823 = vst [vmem:[#allocation24_spill] sm:$0xff] %v12521_v47  ;;  %v4796_v1 = vadd.f32 %v12505_v28, %v12497_v6  ;;  %v4793_v56 = vadd.f32 %v12501_v34, %v12493_v58  ;;  %v12533_v22 = vmul.f32 %v12471_v24, %v13825_v7 }
 0x80a   : > { %4845 = vadd.xlane.f32.xlu0 %v4844_v10  ;;  %4842 = vadd.xlane.f32.xlu1 %v4841_v3  ;;  %13824 = vst [vmem:[#allocation127_spill] sm:$0xff] %v12525_v13  ;;  %v12537_v62 = vmul.f32 %v12471_v24, %v13826_v48  ;;  %v12541_v50 = vmul.f32 %v12473_v40, %v13827_v36 }
 0x80b   : > { %v12545_v59 = vmul.f32 %v12473_v40, %v13828_v61  ;;  %v4850_v57 = vadd.f32 %v12525_v13, %v12517_v15  ;;  %v4847_v4 = vadd.f32 %v12521_v47, %v12513_v23  ;;  %v12553_v29 = vmul.f32 %v12471_v24, %v13810_v45 }
 0x80c   : > { %v12557_v0 = vmul.f32 %v12471_v24, %v12310_v8  ;;  %v12561_v63 = vmul.f32 %v12473_v40, %v13811_v54  ;;  %v12565_v55 = vmul.f32 %v12473_v40, %v12315_v32  ;;  %v4799_v11 = vadd.f32 %v12541_v50, %v12533_v22 }
 0x80d   : > { %13829 = vst [vmem:[#allocation128_spill] sm:$0xff] %v12553_v29  ;;  %v4802_v41 = vadd.f32 %v12545_v59, %v12537_v62  ;;  %v12573_v8 = vmul.f32 %v12471_v24, %v12123_v52  ;;  %v12577_v54 = vmul.f32 %v12471_v24, %v12134_v5  ;;  %v12581_v32 = vmul.f32 %v12473_v40, %v12127_v43 }
 0x80e   : > { %4797 = vadd.xlane.f32.xlu0 %v4796_v1  ;;  %4794 = vadd.xlane.f32.xlu1 %v4793_v56  ;;  %13830 = vst [vmem:[#allocation68_spill] sm:$0xff] %v12557_v0  ;;  %13831 = vst [vmem:[#allocation20_spill] sm:$0xff] %v12561_v63  ;;  %v12585_v45 = vmul.f32 %v12473_v40, %v12139_v19  ;;  %v4856_v38 = vadd.f32 %v12565_v55, %v12557_v0 }
 0x80f   : > { %13832 = vst [vmem:[#allocation90_spill] sm:$0xff] %v12565_v55  ;;  %v4853_v42 = vadd.f32 %v12561_v63, %v12553_v29  ;;  %v12593_v52 = vmul.f32 %v12471_v24, %v12319_v14  ;;  %v12597_v43 = vmul.f32 %v12471_v24, %v12340_v31  ;;  %v12601_v5 = vmul.f32 %v12473_v40, %v12323_v25  ;;  %v13837_v14 = vld [vmem:[#allocation93_spill] sm:$0xff] }
 0x810   : > { %v12605_v19 = vmul.f32 %v12473_v40, %v12347_v2  ;;  %v4808_v33 = vadd.f32 %v12585_v45, %v12577_v54  ;;  %v4805_v49 = vadd.f32 %v12581_v32, %v12573_v8  ;;  %v12613_v31 = vmul.f32 %v12471_v24, %v12143_v16 }
 0x811   : > { %13833 = vst [vmem:[#allocation67_spill] sm:$0xff] %v12593_v52  ;;  %13834 = vst [vmem:[#allocation22_spill] sm:$0xff] %v12597_v43  ;;  %v12617_v25 = vmul.f32 %v12471_v24, %v13837_v14  ;;  %v12621_v2 = vmul.f32 %v12473_v40, %v12147_v39  ;;  %v12625_v20 = vmul.f32 %v12473_v40, %v12163_v53 }
 0x812   : > { %4851 = vadd.xlane.f32.xlu0 %v4850_v57  ;;  %4848 = vadd.xlane.f32.xlu1 %v4847_v4  ;;  %13835 = vst [vmem:[#allocation21_spill] sm:$0xff] %v12601_v5  ;;  %13836 = vst [vmem:[#allocation48_spill] sm:$0xff] %v12605_v19  ;;  %v4862_v10 = vadd.f32 %v12605_v19, %v12597_v43  ;;  %v4859_v3 = vadd.f32 %v12601_v5, %v12593_v52  ;;  %v13844_v4 = vld [vmem:[#allocation23_spill] sm:$0xff] }
 0x813   : > { %v12633_v16 = vmul.f32 %v12471_v24, %v12352_v27  ;;  %v12637_v39 = vmul.f32 %v12471_v24, %v12370_v18  ;;  %v12641_v53 = vmul.f32 %v12473_v40, %v12357_v21  ;;  %v12645_v1 = vmul.f32 %v12473_v40, %v12377_v46 }
 0x814   : > { %v4814_v56 = vadd.f32 %v12625_v20, %v12617_v25  ;;  %v4811_v7 = vadd.f32 %v12621_v2, %v12613_v31  ;;  %v12653_v27 = vmul.f32 %v12471_v24, %v12169_v60  ;;  %v12657_v21 = vmul.f32 %v12471_v24, %v12182_v44 }
 0x815   : > { %13838 = vst [vmem:[#allocation31_spill] sm:$0xff] %v12633_v16  ;;  %13839 = vst [vmem:[#allocation79_spill] sm:$0xff] %v12637_v39  ;;  %v12661_v18 = vmul.f32 %v12473_v40, %v12175_v51  ;;  %v12665_v46 = vmul.f32 %v12473_v40, %v12187_v12  ;;  %v4868_v48 = vadd.f32 %v12645_v1, %v12637_v39 }
 0x816   : > { %4803 = vadd.xlane.f32.xlu0 %v4802_v41  ;;  %4800 = vadd.xlane.f32.xlu1 %v4799_v11  ;;  %13840 = vst [vmem:[#allocation83_spill] sm:$0xff] %v12641_v53  ;;  %13841 = vst [vmem:[#allocation25_spill] sm:$0xff] %v12645_v1  ;;  %v4865_v36 = vadd.f32 %v12641_v53, %v12633_v16  ;;  %v4972_v51 = vmax.f32 %v12481_v17, %v12489_v30  ;;  %v13846_v11 = vld [vmem:[#allocation27_spill] sm:$0xff] }
 0x817   : > { %v4820_v60 = vadd.f32 %v12665_v46, %v12657_v21  ;;  %v4817_v44 = vadd.f32 %v12661_v18, %v12653_v27  ;;  %v4969_v12 = vmax.f32 %v12477_v35, %v12485_v37  ;;  %v12681_v61 = vmul.f32 %v12471_v24, %v12382_v26  ;;  %v13848_v26 = vld [vmem:[#allocation73_spill] sm:$0xff] }
 0x818   : > { %v12685_v57 = vmul.f32 %v12471_v24, %v12400_v9  ;;  %v12689_v41 = vmul.f32 %v12473_v40, %v13844_v4  ;;  %v12701_v9 = vmul.f32 %v12471_v24, %v13848_v26  ;;  %v13852_v4 = vld [vmem:[#allocation88_spill] sm:$0xff]  ;;  %v13856_v26 = vld [vmem:[#allocation103_spill] sm:$0xff] }
 0x819   : > { %13842 = vst [vmem:[#allocation81_spill] sm:$0xff] %v12681_v61 }
 0x81a   : > { %4857 = vadd.xlane.f32.xlu0 %v4856_v38  ;;  %4854 = vadd.xlane.f32.xlu1 %v4853_v42  ;;  %13843 = vst [vmem:[#allocation70_spill] sm:$0xff] %v12685_v57  ;;  %13845 = vst [vmem:[#allocation76_spill] sm:$0xff] %v12689_v41  ;;  %v12693_v38 = vmul.f32 %v12473_v40, %v13846_v11  ;;  %v4924_v42 = vmax.f32 %v12497_v6, %v12505_v28  ;;  %v13868_v28 = vld [vmem:[#allocation116_spill] sm:$0xff] }
 0x81b   : > { %v12729_v11 = vmul.f32 %v12471_v24, %v13852_v4  ;;  %v13862_v4 = vld [vmem:[#allocation78_spill] sm:$0xff] }
 0x81c   : > { %13847 = vst [vmem:[#allocation33_spill] sm:$0xff] %v12693_v38 }
 0x81d   : > { %13853 = vst [vmem:[#allocation82_spill] sm:$0xff] %v12729_v11 }
 0x81e   : > { %4809 = vadd.xlane.f32.xlu0 %v4808_v33  ;;  %4806 = vadd.xlane.f32.xlu1 %v4805_v49  ;;  %v4921_v33 = vmax.f32 %v12493_v58, %v12501_v34  ;;  %v13849_v49 = vld [vmem:[#allocation75_spill] sm:$0xff]  ;;  %v13864_v34 = vld [vmem:[#allocation109_spill] sm:$0xff] }
 0x81f   : > { %v12705_v14 = vmul.f32 %v12471_v24, %v13849_v49  ;;  %v12737_v49 = vmul.f32 %v12473_v40, %v13856_v26  ;;  %v13863_v26 = vld [vmem:[#allocation87_spill] sm:$0xff] }
 0x821   : > { %13857 = vst [vmem:[#allocation37_spill] sm:$0xff] %v12737_v49 }
 0x822   : > { %4863 = vadd.xlane.f32.xlu0 %v4862_v10  ;;  %4860 = vadd.xlane.f32.xlu1 %v4859_v3  ;;  %v13850_v10 = vld [vmem:[#allocation46_spill] sm:$0xff] }
 0x823   : > { %v12709_v3 = vmul.f32 %v12473_v40, %v13850_v10  ;;  %v13858_v10 = vld [vmem:[#allocation26_spill] sm:$0xff] }
 0x826   : > { %4815 = vadd.xlane.f32.xlu0 %v4814_v56  ;;  %4812 = vadd.xlane.f32.xlu1 %v4811_v7  ;;  %v13851_v56 = vld [vmem:[#allocation71_spill] sm:$0xff] }
 0x827   : > { %v12713_v7 = vmul.f32 %v12473_v40, %v13851_v56  ;;  %v12741_v56 = vmul.f32 %v12473_v40, %v13858_v10  ;;  %v12761_v10 = vmul.f32 %v12473_v40, %v13863_v26  ;;  %v4981_v26 = vmax.f32 %v12553_v29, %v12561_v63  ;;  %v13875_v63 = vld [vmem:[#allocation107_spill] sm:$0xff] }
 0x828   : > { %v12809_v29 = vmul.f32 %v12473_v40, %v13875_v63  ;;  %v4942_v63 = vmax.f32 %v12617_v25, %v12625_v20 }
 0x829   : > { %13859 = vst [vmem:[#allocation92_spill] sm:$0xff] %v12741_v56 }
 0x82a   : > { %4869 = vadd.xlane.f32.xlu0 %v4868_v48  ;;  %4866 = vadd.xlane.f32.xlu1 %v4865_v36  ;;  %v4874_v48 = vadd.f32 %v12693_v38, %v12685_v57  ;;  %v4871_v36 = vadd.f32 %v12689_v41, %v12681_v61 }
 0x82e   : > { %4821 = vadd.xlane.f32.xlu0 %v4820_v60  ;;  %4818 = vadd.xlane.f32.xlu1 %v4817_v44  ;;  %v4826_v60 = vadd.f32 %v12713_v7, %v12705_v14  ;;  %v4823_v44 = vadd.f32 %v12709_v3, %v12701_v9 }
 0x832   : > { %4973 = vmax.xlane.f32.xlu0 %v4972_v51  ;;  %4970 = vmax.xlane.f32.xlu1 %v4969_v12  ;;  %v4978_v51 = vmax.f32 %v12517_v15, %v12525_v13  ;;  %v4975_v12 = vmax.f32 %v12513_v23, %v12521_v47 }
 0x836   : > { %4925 = vmax.xlane.f32.xlu0 %v4924_v42  ;;  %4922 = vmax.xlane.f32.xlu1 %v4921_v33  ;;  %v13854_v42 = vld [vmem:[#allocation72_spill] sm:$0xff] }
 0x837   : > { %v12733_v33 = vmul.f32 %v12471_v24, %v13854_v42  ;;  %v12757_v42 = vmul.f32 %v12473_v40, %v13862_v4  ;;  %v4984_v4 = vmax.f32 %v12557_v0, %v12565_v55  ;;  %v13873_v55 = vld [vmem:[#allocation97_spill] sm:$0xff]  ;;  %v13874_v0 = vld [vmem:[#allocation64_spill] sm:$0xff] }
 0x839   : > { %13855 = vst [vmem:[#allocation43_spill] sm:$0xff] %v12733_v33 }
 0x83a   : > { %4875 = vadd.xlane.f32.xlu0 %v4874_v48  ;;  %4872 = vadd.xlane.f32.xlu1 %v4871_v36  ;;  %v4930_v48 = vmax.f32 %v12537_v62, %v12545_v59  ;;  %v4927_v36 = vmax.f32 %v12533_v22, %v12541_v50 }
 0x83e   : > { %4827 = vadd.xlane.f32.xlu0 %v4826_v60  ;;  %4824 = vadd.xlane.f32.xlu1 %v4823_v44  ;;  %v13860_v60 = vld [vmem:[#allocation59_spill] sm:$0xff] }
 0x83f   : > { %v12749_v44 = vmul.f32 %v12471_v24, %v13860_v60 }
 0x842   : > { %4979 = vmax.xlane.f32.xlu0 %v4978_v51  ;;  %4976 = vmax.xlane.f32.xlu1 %v4975_v12  ;;  %v13861_v51 = vld [vmem:[#allocation62_spill] sm:$0xff] }
 0x843   : > { %v12753_v12 = vmul.f32 %v12471_v24, %v13861_v51  ;;  %v4829_v51 = vadd.f32 %v12757_v42, %v12749_v44 }
 0x845   : > { %v4832_v60 = vadd.f32 %v12761_v10, %v12753_v12 }
 0x846   : > { %4931 = vmax.xlane.f32.xlu0 %v4930_v48  ;;  %4928 = vmax.xlane.f32.xlu1 %v4927_v36  ;;  %v4880_v48 = vadd.f32 %v12741_v56, %v12733_v33  ;;  %v4877_v36 = vadd.f32 %v12737_v49, %v12729_v11 }
 0x84a   : > { %4881 = vadd.xlane.f32.xlu0 %v4880_v48  ;;  %4878 = vadd.xlane.f32.xlu1 %v4877_v36  ;;  %v12777_v48 = vmul.f32 %v12471_v24, %v13864_v34  ;;  %v13866_v36 = vld [vmem:[#allocation113_spill] sm:$0xff]  ;;  %v13872_v34 = vld [vmem:[#allocation95_spill] sm:$0xff] }
 0x84b   : > { %v12781_v58 = vmul.f32 %v12471_v24, %v13866_v36  ;;  %v12797_v36 = vmul.f32 %v12471_v24, %v13872_v34  ;;  %v4939_v34 = vmax.f32 %v12613_v31, %v12621_v2 }
 0x84c   : > { %13865 = vst [vmem:[#allocation28_spill] sm:$0xff] %v12777_v48 }
 0x84d   : > { %13867 = vst [vmem:[#allocation38_spill] sm:$0xff] %v12781_v58 }
 0x84e   : > { %4833 = vadd.xlane.f32.xlu0 %v4832_v60  ;;  %4830 = vadd.xlane.f32.xlu1 %v4829_v51  ;;  %v12785_v60 = vmul.f32 %v12473_v40, %v13868_v28  ;;  %v13870_v51 = vld [vmem:[#allocation115_spill] sm:$0xff]  ;;  %v12801_v28 = vmul.f32 %v12471_v24, %v13873_v55 }
 0x84f   : > { %v12789_v6 = vmul.f32 %v12473_v40, %v13870_v51  ;;  %v12805_v51 = vmul.f32 %v12473_v40, %v13874_v0  ;;  %v4990_v40 = vmax.f32 %v12597_v43, %v12605_v19  ;;  %v4987_v0 = vmax.f32 %v12593_v52, %v12601_v5 }
 0x850   : > { %13869 = vst [vmem:[#allocation34_spill] sm:$0xff] %v12785_v60  ;;  %v4838_v24 = vadd.f32 %v12809_v29, %v12801_v28 }
 0x851   : > { %13871 = vst [vmem:[#allocation74_spill] sm:$0xff] %v12789_v6  ;;  %v4835_v55 = vadd.f32 %v12805_v51, %v12797_v36 }
 0x852   : > { %4985 = vmax.xlane.f32.xlu0 %v4984_v4  ;;  %4982 = vmax.xlane.f32.xlu1 %v4981_v26  ;;  %v4936_v4 = vmax.f32 %v12577_v54, %v12585_v45  ;;  %v4933_v26 = vmax.f32 %v12573_v8, %v12581_v32 }
 0x856   : > { %4937 = vmax.xlane.f32.xlu0 %v4936_v4  ;;  %4934 = vmax.xlane.f32.xlu1 %v4933_v26  ;;  %v4886_v4 = vadd.f32 %v12789_v6, %v12781_v58  ;;  %v4883_v26 = vadd.f32 %v12785_v60, %v12777_v48 }
 0x85a   : > { %4887 = vadd.xlane.f32.xlu0 %v4886_v4  ;;  %4884 = vadd.xlane.f32.xlu1 %v4883_v26  ;;  %v4996_v4 = vmax.f32 %v12637_v39, %v12645_v1  ;;  %v4993_v26 = vmax.f32 %v12633_v16, %v12641_v53 }
 0x85e   : > { %4839 = vadd.xlane.f32.xlu0 %v4838_v24  ;;  %4836 = vadd.xlane.f32.xlu1 %v4835_v55  ;;  %v4948_v24 = vmax.f32 %v12657_v21, %v12665_v46  ;;  %v4945_v55 = vmax.f32 %v12653_v27, %v12661_v18 }
 0x862   : > { %4991 = vmax.xlane.f32.xlu0 %v4990_v40  ;;  %4988 = vmax.xlane.f32.xlu1 %v4987_v0  ;;  %v5002_v40 = vmax.f32 %v12685_v57, %v12693_v38  ;;  %v4999_v0 = vmax.f32 %v12681_v61, %v12689_v41 }
 0x866   : > { %4943 = vmax.xlane.f32.xlu0 %v4942_v63  ;;  %4940 = vmax.xlane.f32.xlu1 %v4939_v34  ;;  %v8409_v63 = vld [vmem:[#allocation13 + $0x4] ss:$16 sps:$4 sm:$0xff]   ;;  %v4954_v34 = vmax.f32 %v12705_v14, %v12713_v7 }
 0x867   : > { %5465 = vmatprep.mubr.bf16.mxu0 %v8409_v63  ;;  %v5011_v63 = vmax.f32 %v12777_v48, %v12785_v60 }
 0x86a   : > { %4997 = vmax.xlane.f32.xlu0 %v4996_v4  ;;  %4994 = vmax.xlane.f32.xlu1 %v4993_v26  ;;  %v4951_v4 = vmax.f32 %v12701_v9, %v12709_v3  ;;  %v5008_v26 = vmax.f32 %v12733_v33, %v12741_v56 }
 0x86e   : > { %4949 = vmax.xlane.f32.xlu0 %v4948_v24  ;;  %4946 = vmax.xlane.f32.xlu1 %v4945_v55  ;;  %v5005_v24 = vmax.f32 %v12729_v11, %v12737_v49  ;;  %v4960_v55 = vmax.f32 %v12753_v12, %v12761_v10 }
 0x872   : > { %5003 = vmax.xlane.f32.xlu0 %v5002_v40  ;;  %5000 = vmax.xlane.f32.xlu1 %v4999_v0  ;;  %v4957_v40 = vmax.f32 %v12749_v44, %v12757_v42  ;;  %v5014_v0 = vmax.f32 %v12781_v58, %v12789_v6 }
 0x876   : > { %4955 = vmax.xlane.f32.xlu0 %v4954_v34  ;;  %4952 = vmax.xlane.f32.xlu1 %v4951_v4  ;;  %v4966_v34 = vmax.f32 %v12801_v28, %v12809_v29  ;;  %v4963_v4 = vmax.f32 %v12797_v36, %v12805_v51 }
 0x87a   : > { %5009 = vmax.xlane.f32.xlu0 %v5008_v26  ;;  %5006 = vmax.xlane.f32.xlu1 %v5005_v24  ;;  %v8424_v26 = vld [vmem:[#allocation13 + $0x2c] ss:$16 sps:$4 sm:$0xff]  }
 0x87b   : > { %5634 = vmatprep.mubr.bf16.mxu1 %v8424_v26 }
 0x87e   : > { %4961 = vmax.xlane.f32.xlu0 %v4960_v55  ;;  %4958 = vmax.xlane.f32.xlu1 %v4957_v40 }
 0x882   : > { %5015 = vmax.xlane.f32.xlu0 %v5014_v0  ;;  %5012 = vmax.xlane.f32.xlu1 %v5011_v63 }
 0x886   : > { %4967 = vmax.xlane.f32.xlu0 %v4966_v34  ;;  %4964 = vmax.xlane.f32.xlu1 %v4963_v4 }
 0x897   : > { %v4846_v24 = vpop.xlane.xlu0 %4845  ;;  %v4843_v55 = vpop.xlane.xlu1 %4842 }
 0x898   : > { %v4906_v40 = vmul.f32 0.00390625, %v4846_v24  ;;  %v4905_v56 = vmul.f32 0.00390625, %v4843_v55 }
 0x89a   : > { %v5089_v6 = vpack.c.bf16 %v4906_v40, %v4905_v56 }
 0x89b   : > { %v4798_v58 = vpop.xlane.xlu0 %4797  ;;  %v4795_v33 = vpop.xlane.xlu1 %4794 }
 0x89c   : > { %v4890_v60 = vmul.f32 0.00390625, %v4798_v58  ;;  %v4889_v0 = vmul.f32 0.00390625, %v4795_v33  ;;  %7679 = vmatprep.subr.bf16.mxu0 %v5089_v6 }
 0x89e   : > { %v5081_v63 = vpack.c.bf16 %v4890_v60, %v4889_v0 }
 0x89f   : > { %v4852_v48 = vpop.xlane.xlu0 %4851  ;;  %v4849_v49 = vpop.xlane.xlu1 %4848 }
 0x8a0   : > { %v4908_v11 = vmul.f32 0.00390625, %v4852_v48  ;;  %v4907_v38 = vmul.f32 0.00390625, %v4849_v49  ;;  %7680 = vmatpush3.bf16.msra.mxu0 %v5081_v63 }
 0x8a2   : > { %v5090_v34 = vpack.c.bf16 %v4908_v11, %v4907_v38 }
 0x8a3   : > { %v4804_v4 = vpop.xlane.xlu0 %4803  ;;  %v4801_v57 = vpop.xlane.xlu1 %4800 }
 0x8a4   : > { %v4892_v41 = vmul.f32 0.00390625, %v4804_v4  ;;  %v4891_v61 = vmul.f32 0.00390625, %v4801_v57  ;;  %7681 = vmatprep.subr.bf16.mxu0 %v5090_v34 }
 0x8a6   : > { %v5082_v24 = vpack.c.bf16 %v4892_v41, %v4891_v61 }
 0x8a7   : > { %v4858_v26 = vpop.xlane.xlu0 %4857  ;;  %v4855_v56 = vpop.xlane.xlu1 %4854 }
 0x8a8   : > { %v4910_v55 = vmul.f32 0.00390625, %v4858_v26  ;;  %v4909_v40 = vmul.f32 0.00390625, %v4855_v56  ;;  %7682 = vmatpush3.bf16.msra.mxu0 %v5082_v24 }
 0x8aa   : > { %v5091_v58 = vpack.c.bf16 %v4910_v55, %v4909_v40 }
 0x8ab   : > { %v4810_v6 = vpop.xlane.xlu0 %4809  ;;  %v4807_v33 = vpop.xlane.xlu1 %4806 }
 0x8ac   : > { %v4894_v60 = vmul.f32 0.00390625, %v4810_v6  ;;  %v4893_v0 = vmul.f32 0.00390625, %v4807_v33  ;;  %7683 = vmatprep.subr.bf16.mxu0 %v5091_v58 }
 0x8ae   : > { %v5083_v49 = vpack.c.bf16 %v4894_v60, %v4893_v0 }
 0x8af   : > { %v4864_v48 = vpop.xlane.xlu0 %4863  ;;  %v4861_v38 = vpop.xlane.xlu1 %4860 }
 0x8b0   : > { %v4912_v11 = vmul.f32 0.00390625, %v4864_v48  ;;  %v4911_v63 = vmul.f32 0.00390625, %v4861_v38  ;;  %7684 = vmatpush3.bf16.msra.mxu0 %v5083_v49 }
 0x8b2   : > { %v5092_v57 = vpack.c.bf16 %v4912_v11, %v4911_v63 }
 0x8b3   : > { %v4816_v34 = vpop.xlane.xlu0 %4815  ;;  %v4813_v61 = vpop.xlane.xlu1 %4812 }
 0x8b4   : > { %v4896_v41 = vmul.f32 0.00390625, %v4816_v34  ;;  %v4895_v4 = vmul.f32 0.00390625, %v4813_v61  ;;  %7685 = vmatprep.subr.bf16.mxu0 %v5092_v57 }
 0x8b6   : > { %v5084_v26 = vpack.c.bf16 %v4896_v41, %v4895_v4 }
 0x8b7   : > { %v4870_v24 = vpop.xlane.xlu0 %4869  ;;  %v4867_v56 = vpop.xlane.xlu1 %4866 }
 0x8b8   : > { %v4914_v55 = vmul.f32 0.00390625, %v4870_v24  ;;  %v4913_v40 = vmul.f32 0.00390625, %v4867_v56  ;;  %7686 = vmatpush3.bf16.msra.mxu0 %v5084_v26 }
 0x8ba   : > { %v5093_v6 = vpack.c.bf16 %v4914_v55, %v4913_v40 }
 0x8bb   : > { %v4822_v58 = vpop.xlane.xlu0 %4821  ;;  %v4819_v33 = vpop.xlane.xlu1 %4818 }
 0x8bc   : > { %v4898_v60 = vmul.f32 0.00390625, %v4822_v58  ;;  %v4897_v0 = vmul.f32 0.00390625, %v4819_v33  ;;  %7687 = vmatprep.subr.bf16.mxu0 %v5093_v6 }
 0x8be   : > { %v5085_v48 = vpack.c.bf16 %v4898_v60, %v4897_v0 }
 0x8bf   : > { %v4974_v49 = vpop.xlane.xlu0 %4973  ;;  %v4971_v38 = vpop.xlane.xlu1 %4970 }
 0x8c0   : > { %v12859_v11 = vpack.c.bf16 %v4974_v49, %v4971_v38  ;;  %7688 = vmatpush3.bf16.msra.mxu0 %v5085_v48 }
 0x8c2   : > { %7987 = vmatprep.subr.bf16.mxu1 %v12859_v11 }
 0x8c3   : > { %v4926_v63 = vpop.xlane.xlu0 %4925  ;;  %v4923_v57 = vpop.xlane.xlu1 %4922 }
 0x8c4   : > { %v12862_v34 = vpack.c.bf16 %v4926_v63, %v4923_v57 }
 0x8c6   : > { %7995 = vmatpush3.bf16.msra.mxu1 %v12862_v34 }
 0x8c7   : > { %v4876_v61 = vpop.xlane.xlu0 %4875  ;;  %v4873_v41 = vpop.xlane.xlu1 %4872 }
 0x8c8   : > { %v4916_v4 = vmul.f32 0.00390625, %v4876_v61  ;;  %v4915_v26 = vmul.f32 0.00390625, %v4873_v41 }
 0x8ca   : > { %v5094_v24 = vpack.c.bf16 %v4916_v4, %v4915_v26 }
 0x8cb   : > { %v4828_v56 = vpop.xlane.xlu0 %4827  ;;  %v4825_v55 = vpop.xlane.xlu1 %4824 }
 0x8cc   : > { %v4900_v40 = vmul.f32 0.00390625, %v4828_v56  ;;  %v4899_v6 = vmul.f32 0.00390625, %v4825_v55  ;;  %7689 = vmatprep.subr.bf16.mxu0 %v5094_v24 }
 0x8ce   : > { %v5086_v58 = vpack.c.bf16 %v4900_v40, %v4899_v6 }
 0x8cf   : > { %v4980_v33 = vpop.xlane.xlu0 %4979  ;;  %v4977_v60 = vpop.xlane.xlu1 %4976 }
 0x8d0   : > { %v5106_v0 = vpack.c.bf16 %v4980_v33, %v4977_v60  ;;  %7690 = vmatpush3.bf16.msra.mxu0 %v5086_v58 }
 0x8d2   : > { %7988 = vmatprep.subr.bf16.mxu1 %v5106_v0 }
 0x8d3   : > { %v4932_v48 = vpop.xlane.xlu0 %4931  ;;  %v4929_v49 = vpop.xlane.xlu1 %4928 }
 0x8d4   : > { %v5098_v38 = vpack.c.bf16 %v4932_v48, %v4929_v49 }
 0x8d6   : > { %7996 = vmatpush3.bf16.msra.mxu1 %v5098_v38 }
 0x8d7   : > { %v4882_v63 = vpop.xlane.xlu0 %4881  ;;  %v4879_v57 = vpop.xlane.xlu1 %4878 }
 0x8d8   : > { %v4918_v61 = vmul.f32 0.00390625, %v4882_v63  ;;  %v4917_v41 = vmul.f32 0.00390625, %v4879_v57 }
 0x8da   : > { %v5095_v4 = vpack.c.bf16 %v4918_v61, %v4917_v41 }
 0x8db   : > { %v4834_v26 = vpop.xlane.xlu0 %4833  ;;  %v4831_v1 = vpop.xlane.xlu1 %4830 }
 0x8dc   : > { %v4902_v56 = vmul.f32 0.00390625, %v4834_v26  ;;  %v4901_v55 = vmul.f32 0.00390625, %v4831_v1  ;;  %7691 = vmatprep.subr.bf16.mxu0 %v5095_v4 }
 0x8de   : > { %v5087_v24 = vpack.c.bf16 %v4902_v56, %v4901_v55 }
 0x8df   : > { %v4986_v40 = vpop.xlane.xlu0 %4985  ;;  %v4983_v6 = vpop.xlane.xlu1 %4982 }
 0x8e0   : > { %v5107_v33 = vpack.c.bf16 %v4986_v40, %v4983_v6  ;;  %7692 = vmatpush3.bf16.msra.mxu0 %v5087_v24  ;;  %v8407_v40 = vld [vmem:[#allocation13] ss:$16 sps:$4 sm:$0xff]   ;;  %v8410_v6 = vld [vmem:[#allocation13 + $0x24] ss:$16 sps:$4 sm:$0xff]  }
 0x8e2   : > { %7989 = vmatprep.subr.bf16.mxu1 %v5107_v33 }
 0x8e3   : > { %v4938_v58 = vpop.xlane.xlu0 %4937  ;;  %v4935_v60 = vpop.xlane.xlu1 %4934 }
 0x8e4   : > { %v5099_v48 = vpack.c.bf16 %v4938_v58, %v4935_v60 }
 0x8e6   : > { %7997 = vmatpush3.bf16.msra.mxu1 %v5099_v48 }
 0x8e7   : > { %v4888_v49 = vpop.xlane.xlu0 %4887  ;;  %v4885_v39 = vpop.xlane.xlu1 %4884 }
 0x8e8   : > { %v4920_v63 = vmul.f32 0.00390625, %v4888_v49  ;;  %v4919_v57 = vmul.f32 0.00390625, %v4885_v39 }
 0x8ea   : > { %v5096_v61 = vpack.c.bf16 %v4920_v63, %v4919_v57  ;;  %v8412_v63 = vld [vmem:[#allocation13 + $0x20] ss:$16 sps:$4 sm:$0xff]  }
 0x8eb   : > { %v4840_v41 = vpop.xlane.xlu0 %4839  ;;  %v4837_v53 = vpop.xlane.xlu1 %4836 }
 0x8ec   : > { %v4904_v26 = vmul.f32 0.00390625, %v4840_v41  ;;  %v4903_v1 = vmul.f32 0.00390625, %v4837_v53  ;;  %7693 = vmatprep.subr.bf16.mxu0 %v5096_v61  ;;  %v8413_v61 = vld [vmem:[#allocation13 + $0x44] ss:$16 sps:$4 sm:$0xff]  }
 0x8ee   : > { %v5088_v4 = vpack.c.bf16 %v4904_v26, %v4903_v1 }
 0x8ef   : > { %v4992_v56 = vpop.xlane.xlu0 %4991  ;;  %v4989_v55 = vpop.xlane.xlu1 %4988 }
 0x8f0   : > { %v5108_v24 = vpack.c.bf16 %v4992_v56, %v4989_v55  ;;  %7694 = vmatpush3.bf16.msra.mxu0 %v5088_v4  ;;  %v8416_v56 = vld [vmem:[#allocation13 + $0x64] ss:$16 sps:$4 sm:$0xff]  }
 0x8f1   : > { %7791 = vmatprep.subr.bf16.mxu0 %v12859_v11 }
 0x8f2   : > { %7990 = vmatprep.subr.bf16.mxu1 %v5108_v24 }
 0x8f3   : > { %v4944_v58 = vpop.xlane.xlu0 %4943  ;;  %5466 = vmatmul.mubr.bf16.vlgmr.msra.gmra.mrb[196].mxu0 %v8407_v40  ;;  %v4941_v60 = vpop.xlane.xlu1 %4940 }
 0x8f4   : > { %v5100_v39 = vpack.c.bf16 %v4944_v58, %v4941_v60  ;;  %7792 = vmatpush3.bf16.msra.mxu0 %v12862_v34  ;;  %5473 = vmatprep.mubr.bf16.mxu0 %v8410_v6  ;;  %v8419_v58 = vld [vmem:[#allocation13 + $0x84] ss:$16 sps:$4 sm:$0xff]  }
 0x8f5   : > { %7793 = vmatprep.subr.bf16.mxu0 %v5106_v0  ;;  %v8415_v0 = vld [vmem:[#allocation13 + $0x40] ss:$16 sps:$4 sm:$0xff]  }
 0x8f6   : > { %7998 = vmatpush3.bf16.msra.mxu1 %v5100_v39 }
 0x8f7   : > { %v4998_v53 = vpop.xlane.xlu0 %4997  ;;  %v4995_v49 = vpop.xlane.xlu1 %4994 }
 0x8f8   : > { %v5109_v57 = vpack.c.bf16 %v4998_v53, %v4995_v49  ;;  %7794 = vmatpush3.bf16.msra.mxu0 %v5098_v38 }
 0x8f9   : > { %7795 = vmatprep.subr.bf16.mxu0 %v5107_v33 }
 0x8fa   : > { %7991 = vmatprep.subr.bf16.mxu1 %v5109_v57 }
 0x8fb   : > { %v4950_v41 = vpop.xlane.xlu0 %4949  ;;  %5474 = vmatmul.mubr.bf16.gmra.mrb[200].mxu0 %v8412_v63  ;;  %v4947_v11 = vpop.xlane.xlu1 %4946 }
 0x8fc   : > { %v5101_v26 = vpack.c.bf16 %v4950_v41, %v4947_v11  ;;  %7796 = vmatpush3.bf16.msra.mxu0 %v5099_v48  ;;  %5481 = vmatprep.mubr.bf16.mxu0 %v8413_v61  ;;  %v8425_v41 = vld [vmem:[#allocation13 + $0xa4] ss:$16 sps:$4 sm:$0xff]  }
 0x8fd   : > { %7797 = vmatprep.subr.bf16.mxu0 %v5108_v24  ;;  %v8418_v24 = vld [vmem:[#allocation13 + $0x60] ss:$16 sps:$4 sm:$0xff]  }
 0x8fe   : > { %7999 = vmatpush3.bf16.msra.mxu1 %v5101_v26 }
 0x8ff   : > { %v5004_v34 = vpop.xlane.xlu0 %5003  ;;  %v5001_v1 = vpop.xlane.xlu1 %5000 }
 0x900   : > { %v5110_v4 = vpack.c.bf16 %v5004_v34, %v5001_v1  ;;  %7798 = vmatpush3.bf16.msra.mxu0 %v5100_v39  ;;  %v8422_v1 = vld [vmem:[#allocation13 + $0x28] ss:$16 sps:$4 sm:$0xff]  }
 0x901   : > { %7799 = vmatprep.subr.bf16.mxu0 %v5109_v57  ;;  %v8421_v57 = vld [vmem:[#allocation13 + $0x80] ss:$16 sps:$4 sm:$0xff]  }
 0x902   : > { %7992 = vmatprep.subr.bf16.mxu1 %v5110_v4 }
 0x903   : > { %v4956_v38 = vpop.xlane.xlu0 %4955  ;;  %5482 = vmatmul.mubr.bf16.gmra.mrb[204].mxu0 %v8415_v0  ;;  %v4953_v33 = vpop.xlane.xlu1 %4952  ;;  %v8428_v0 = vld [vmem:[#allocation13 + $0x4c] ss:$16 sps:$4 sm:$0xff]  }
 0x904   : > { %v5102_v55 = vpack.c.bf16 %v4956_v38, %v4953_v33  ;;  %7800 = vmatpush3.bf16.msra.mxu0 %v5101_v26  ;;  %5489 = vmatprep.mubr.bf16.mxu0 %v8416_v56  ;;  %v8431_v56 = vld [vmem:[#allocation13 + $0xc4] ss:$16 sps:$4 sm:$0xff]   ;;  %v8430_v38 = vld [vmem:[#allocation13 + $0x48] ss:$16 sps:$4 sm:$0xff]   ;;  %v8434_v33 = vld [vmem:[#allocation13 + $0x6c] ss:$16 sps:$4 sm:$0xff]  }
 0x905   : > { %7801 = vmatprep.subr.bf16.mxu0 %v5110_v4  ;;  %v8427_v4 = vld [vmem:[#allocation13 + $0xa0] ss:$16 sps:$4 sm:$0xff]  }
 0x906   : > { %8000 = vmatpush3.bf16.msra.mxu1 %v5102_v55 }
 0x907   : > { %v5010_v48 = vpop.xlane.xlu0 %5009  ;;  %v5007_v40 = vpop.xlane.xlu1 %5006 }
 0x908   : > { %v5111_v6 = vpack.c.bf16 %v5010_v48, %v5007_v40  ;;  %7802 = vmatpush3.bf16.msra.mxu0 %v5102_v55  ;;  %v8433_v55 = vld [vmem:[#allocation13 + $0xc0] ss:$16 sps:$4 sm:$0xff]   ;;  %v8437_v48 = vld [vmem:[#allocation13 + $0xe4] ss:$16 sps:$4 sm:$0xff]   ;;  %v8436_v40 = vld [vmem:[#allocation13 + $0x68] ss:$16 sps:$4 sm:$0xff]  }
 0x90a   : > { %7803 = vmatprep.subr.bf16.mxu0 %v5111_v6  ;;  %7993 = vmatprep.subr.bf16.mxu1 %v5111_v6  ;;  %v8439_v6 = vld [vmem:[#allocation13 + $0xe0] ss:$16 sps:$4 sm:$0xff]  }
 0x90b   : > { %v4962_v60 = vpop.xlane.xlu0 %4961  ;;  %5490 = vmatmul.mubr.bf16.gmra.mrb[208].mxu0 %v8418_v24  ;;  %v4959_v39 = vpop.xlane.xlu1 %4958  ;;  %v8440_v24 = vld [vmem:[#allocation13 + $0x8c] ss:$16 sps:$4 sm:$0xff]  }
 0x90c   : > { %v5103_v53 = vpack.c.bf16 %v4962_v60, %v4959_v39  ;;  %5497 = vmatprep.mubr.bf16.mxu0 %v8419_v58  ;;  %v8443_v58 = vld [vmem:[#allocation13 + $0x104] ss:$16 sps:$4 sm:$0xff]   ;;  %v8442_v60 = vld [vmem:[#allocation13 + $0x88] ss:$16 sps:$4 sm:$0xff]   ;;  %v8446_v39 = vld [vmem:[#allocation13 + $0xac] ss:$16 sps:$4 sm:$0xff]  }
 0x90e   : > { %7804 = vmatpush3.bf16.msra.mxu0 %v5103_v53  ;;  %8001 = vmatpush3.bf16.msra.mxu1 %v5103_v53  ;;  %v8445_v53 = vld [vmem:[#allocation13 + $0x100] ss:$16 sps:$4 sm:$0xff]  }
 0x90f   : > { %v5016_v49 = vpop.xlane.xlu0 %5015  ;;  %v5013_v63 = vpop.xlane.xlu1 %5012 }
 0x910   : > { %v5112_v61 = vpack.c.bf16 %v5016_v49, %v5013_v63  ;;  %v8449_v49 = vld [vmem:[#allocation13 + $0x124] ss:$16 sps:$4 sm:$0xff]   ;;  %v8448_v63 = vld [vmem:[#allocation13 + $0xa8] ss:$16 sps:$4 sm:$0xff]  }
 0x912   : > { %7805 = vmatprep.subr.bf16.mxu0 %v5112_v61  ;;  %7994 = vmatprep.subr.bf16.mxu1 %v5112_v61  ;;  %v8451_v61 = vld [vmem:[#allocation13 + $0x120] ss:$16 sps:$4 sm:$0xff]  }
 0x913   : > { %v4968_v11 = vpop.xlane.xlu0 %4967  ;;  %5498 = vmatmul.mubr.bf16.gmra.mrb[212].mxu0 %v8421_v57  ;;  %v4965_v26 = vpop.xlane.xlu1 %4964  ;;  %v8452_v57 = vld [vmem:[#allocation13 + $0xcc] ss:$16 sps:$4 sm:$0xff]  }
 0x914   : > { %v5104_v34 = vpack.c.bf16 %v4968_v11, %v4965_v26  ;;  %5505 = vmatprep.mubr.bf16.mxu0 %v8425_v41  ;;  %v8455_v41 = vld [vmem:[#allocation13 + $0x144] ss:$16 sps:$4 sm:$0xff]   ;;  %v8454_v11 = vld [vmem:[#allocation13 + $0xc8] ss:$16 sps:$4 sm:$0xff]   ;;  %v8458_v26 = vld [vmem:[#allocation13 + $0xec] ss:$16 sps:$4 sm:$0xff]  }
 0x916   : > { %7806 = vmatpush3.bf16.msra.mxu0 %v5104_v34  ;;  %8002 = vmatpush3.bf16.msra.mxu1 %v5104_v34  ;;  %v8457_v34 = vld [vmem:[#allocation13 + $0x140] ss:$16 sps:$4 sm:$0xff]  }
 0x919   : > { %5635 = vmatmul.mubr.bf16.vlgmr.msra.gmra.mrb[224].mxu1 %v8422_v1  ;;  %v8461_v1 = vld [vmem:[#allocation13 + $0x164] ss:$16 sps:$4 sm:$0xff]  }
 0x91a   : > { %5642 = vmatprep.mubr.bf16.mxu1 %v8428_v0  ;;  %v8460_v0 = vld [vmem:[#allocation13 + $0xe8] ss:$16 sps:$4 sm:$0xff]  }
 0x91b   : > { %5506 = vmatmul.mubr.bf16.gmra.mrb[216].mxu0 %v8427_v4  ;;  %v8464_v4 = vld [vmem:[#allocation13 + $0x10c] ss:$16 sps:$4 sm:$0xff]  }
 0x91c   : > { %5513 = vmatprep.mubr.bf16.mxu0 %v8431_v56  ;;  %v8463_v56 = vld [vmem:[#allocation13 + $0x160] ss:$16 sps:$4 sm:$0xff]  }
 0x921   : > { %5643 = vmatmul.mubr.bf16.gmra.mrb[228].mxu1 %v8430_v38  ;;  %v8467_v38 = vld [vmem:[#allocation13 + $0x184] ss:$16 sps:$4 sm:$0xff]  }
 0x922   : > { %5650 = vmatprep.mubr.bf16.mxu1 %v8434_v33  ;;  %v8466_v33 = vld [vmem:[#allocation13 + $0x108] ss:$16 sps:$4 sm:$0xff]  }
 0x923   : > { %5514 = vmatmul.mubr.bf16.gmra.mrb[220].mxu0 %v8433_v55  ;;  %v8472_v55 = vld [vmem:[#allocation13 + $0x12c] ss:$16 sps:$4 sm:$0xff]  }
 0x924   : > { %5521 = vmatprep.mubr.bf16.mxu0 %v8437_v48  ;;  %v8469_v48 = vld [vmem:[#allocation13 + $0x180] ss:$16 sps:$4 sm:$0xff]  }
 0x929   : > { %5651 = vmatmul.mubr.bf16.gmra.mrb[232].mxu1 %v8436_v40  ;;  %v8473_v40 = vld [vmem:[#allocation13 + $0x1a4] ss:$16 sps:$4 sm:$0xff]  }
 0x92a   : > { %5658 = vmatprep.mubr.bf16.mxu1 %v8440_v24  ;;  %v8470_v24 = vld [vmem:[#allocation13 + $0x128] ss:$16 sps:$4 sm:$0xff]  }
 0x92b   : > { %5522 = vmatmul.mubr.bf16.gmra.mrb[224].mxu0 %v8439_v6  ;;  %v8478_v6 = vld [vmem:[#allocation13 + $0x14c] ss:$16 sps:$4 sm:$0xff]  }
 0x92c   : > { %5529 = vmatprep.mubr.bf16.mxu0 %v8443_v58  ;;  %v8475_v58 = vld [vmem:[#allocation13 + $0x1a0] ss:$16 sps:$4 sm:$0xff]  }
 0x931   : > { %5659 = vmatmul.mubr.bf16.gmra.mrb[236].mxu1 %v8442_v60  ;;  %v8479_v60 = vld [vmem:[#allocation13 + $0x1c4] ss:$16 sps:$4 sm:$0xff]  }
 0x932   : > { %5666 = vmatprep.mubr.bf16.mxu1 %v8446_v39  ;;  %v8476_v39 = vld [vmem:[#allocation13 + $0x148] ss:$16 sps:$4 sm:$0xff]  }
 0x933   : > { %5530 = vmatmul.mubr.bf16.gmra.mrb[228].mxu0 %v8445_v53  ;;  %v8484_v53 = vld [vmem:[#allocation13 + $0x16c] ss:$16 sps:$4 sm:$0xff]  }
 0x934   : > { %5537 = vmatprep.mubr.bf16.mxu0 %v8449_v49  ;;  %v8481_v49 = vld [vmem:[#allocation13 + $0x1c0] ss:$16 sps:$4 sm:$0xff]  }
 0x939   : > { %5667 = vmatmul.mubr.bf16.gmra.mrb[240].mxu1 %v8448_v63  ;;  %v8487_v63 = vld [vmem:[#allocation13 + $0x1e4] ss:$16 sps:$4 sm:$0xff]  }
 0x93a   : > { %5674 = vmatprep.mubr.bf16.mxu1 %v8452_v57  ;;  %v8482_v57 = vld [vmem:[#allocation13 + $0x168] ss:$16 sps:$4 sm:$0xff]  }
 0x93b   : > { %5538 = vmatmul.mubr.bf16.gmra.mrb[232].mxu0 %v8451_v61  ;;  %v8490_v61 = vld [vmem:[#allocation13 + $0x18c] ss:$16 sps:$4 sm:$0xff]  }
 0x93c   : > { %5545 = vmatprep.mubr.bf16.mxu0 %v8455_v41  ;;  %v8485_v41 = vld [vmem:[#allocation13 + $0x1e0] ss:$16 sps:$4 sm:$0xff]  }
 0x941   : > { %5675 = vmatmul.mubr.bf16.gmra.mrb[244].mxu1 %v8454_v11  ;;  %v8493_v11 = vld [vmem:[#allocation13 + $0xc] ss:$16 sps:$4 sm:$0xff]  }
 0x942   : > { %5682 = vmatprep.mubr.bf16.mxu1 %v8458_v26  ;;  %v8488_v26 = vld [vmem:[#allocation13 + $0x188] ss:$16 sps:$4 sm:$0xff]  }
 0x943   : > { %5546 = vmatmul.mubr.bf16.gmra.mrb[236].mxu0 %v8457_v34  ;;  %v8496_v34 = vld [vmem:[#allocation13 + $0x1ac] ss:$16 sps:$4 sm:$0xff]  }
 0x944   : > { %5553 = vmatprep.mubr.bf16.mxu0 %v8461_v1  ;;  %v8491_v1 = vld [vmem:[#allocation13 + $0x8] ss:$16 sps:$4 sm:$0xff]  }
 0x949   : > { %5683 = vmatmul.mubr.bf16.gmra.mrb[248].mxu1 %v8460_v0  ;;  %v8494_v0 = vld [vmem:[#allocation13 + $0x1a8] ss:$16 sps:$4 sm:$0xff]  }
 0x94a   : > { %5690 = vmatprep.mubr.bf16.mxu1 %v8464_v4  ;;  %v8499_v4 = vld [vmem:[#allocation13 + $0x1cc] ss:$16 sps:$4 sm:$0xff]  }
 0x94b   : > { %5554 = vmatmul.mubr.bf16.gmra.mrb[240].mxu0 %v8463_v56  ;;  %v8497_v56 = vld [vmem:[#allocation13 + $0x1c8] ss:$16 sps:$4 sm:$0xff]  }
 0x94c   : > { %5561 = vmatprep.mubr.bf16.mxu0 %v8467_v38  ;;  %v8502_v38 = vld [vmem:[#allocation13 + $0x1ec] ss:$16 sps:$4 sm:$0xff]  }
 0x951   : > { %5691 = vmatmul.mubr.bf16.gmra.mrb[252].mxu1 %v8466_v33  ;;  %v8500_v33 = vld [vmem:[#allocation13 + $0x1e8] ss:$16 sps:$4 sm:$0xff]  }
 0x952   : > { %5698 = vmatprep.mubr.bf16.mxu1 %v8472_v55 }
 0x953   : > { %5562 = vmatmul.mubr.bf16.gmra.mrb[244].mxu0 %v8469_v48 }
 0x954   : > { %5569 = vmatprep.mubr.bf16.mxu0 %v8473_v40 }
 0x959   : > { %5699 = vmatmul.mubr.bf16.gmra.mrb[0].mxu1 %v8470_v24 }
 0x95a   : > { %5706 = vmatprep.mubr.bf16.mxu1 %v8478_v6 }
 0x95b   : > { %5570 = vmatmul.mubr.bf16.gmra.mrb[248].mxu0 %v8475_v58 }
 0x95c   : > { %5577 = vmatprep.mubr.bf16.mxu0 %v8479_v60 }
 0x961   : > { %5707 = vmatmul.mubr.bf16.gmra.mrb[4].mxu1 %v8476_v39 }
 0x962   : > { %5714 = vmatprep.mubr.bf16.mxu1 %v8484_v53 }
 0x963   : > { %5578 = vmatmul.mubr.bf16.gmra.mrb[252].mxu0 %v8481_v49 }
 0x964   : > { %5585 = vmatprep.mubr.bf16.mxu0 %v8487_v63 }
 0x969   : > { %5715 = vmatmul.mubr.bf16.gmra.mrb[8].mxu1 %v8482_v57 }
 0x96a   : > { %5722 = vmatprep.mubr.bf16.mxu1 %v8490_v61 }
 0x96b   : > { %5586 = vmatmul.mubr.bf16.gmra.mrb[0].mxu0 %v8485_v41 }
 0x96c   : > { %5626 = vmatprep.mubr.bf16.mxu0 %v8493_v11 }
 0x971   : > { %5723 = vmatmul.mubr.bf16.gmra.mrb[12].mxu1 %v8488_v26 }
 0x972   : > { %5730 = vmatprep.mubr.bf16.mxu1 %v8496_v34 }
 0x973   : > { %5627 = vmatmul.mubr.bf16.vlgmr.msra.gmra.mrb[4].mxu0 %v8491_v1 }
 0x979   : > { %5731 = vmatmul.mubr.bf16.gmra.mrb[16].mxu1 %v8494_v0 }
 0x97a   : > { %5738 = vmatprep.mubr.bf16.mxu1 %v8499_v4 }
 0x981   : > { %5739 = vmatmul.mubr.bf16.gmra.mrb[20].mxu1 %v8497_v56 }
 0x982   : > { %5746 = vmatprep.mubr.bf16.mxu1 %v8502_v38 }
 0x989   : > { %5747 = vmatmul.mubr.bf16.gmra.mrb[24].mxu1 %v8500_v33 }
 0x9c6   : > { %v7695_v55 = vpop.f32.mrb[196].mxu0 }
 0x9c7   : > { %v7696_v48 = vpop.f32.mrb[197].mxu0 }
 0x9c8   : > { %v12867_v40 = vadd.f32 %v7696_v48, %v7695_v55  ;;  %v7698_v24 = vpop.f32.mrb[198].mxu0 }
 0x9c9   : > { %v7699_v6 = vpop.f32.mrb[199].mxu0 }
 0x9ca   : > { %v12869_v58 = vadd.f32 %v7699_v6, %v7698_v24 }
 0x9ce   : > { %v7701_v60 = vpop.f32.mrb[200].mxu0 }
 0x9cf   : > { %v7702_v39 = vpop.f32.mrb[201].mxu0 }
 0x9d0   : > { %v7703_v53 = vadd.f32 %v7702_v39, %v7701_v60  ;;  %v7704_v49 = vpop.f32.mrb[202].mxu0 }
 0x9d1   : > { %v7705_v63 = vpop.f32.mrb[203].mxu0 }
 0x9d2   : > { %v7706_v57 = vadd.f32 %v7705_v63, %v7704_v49 }
 0x9d6   : > { %v7707_v61 = vpop.f32.mrb[204].mxu0 }
 0x9d7   : > { %v7708_v41 = vpop.f32.mrb[205].mxu0 }
 0x9d8   : > { %v7709_v11 = vadd.f32 %v7708_v41, %v7707_v61  ;;  %v7710_v26 = vpop.f32.mrb[206].mxu0 }
 0x9d9   : > { %v7711_v34 = vpop.f32.mrb[207].mxu0 }
 0x9da   : > { %v7712_v1 = vadd.f32 %v7711_v34, %v7710_v26 }
 0x9de   : > { %v7713_v0 = vpop.f32.mrb[208].mxu0 }
 0x9df   : > { %v7714_v4 = vpop.f32.mrb[209].mxu0 }
 0x9e0   : > { %v7715_v56 = vadd.f32 %v7714_v4, %v7713_v0  ;;  %v7716_v38 = vpop.f32.mrb[210].mxu0 }
 0x9e1   : > { %v7717_v33 = vpop.f32.mrb[211].mxu0 }
 0x9e2   : > { %v7718_v55 = vadd.f32 %v7717_v33, %v7716_v38 }
 0x9e6   : > { %v7719_v48 = vpop.f32.mrb[212].mxu0 }
 0x9e7   : > { %v7720_v24 = vpop.f32.mrb[213].mxu0 }
 0x9e8   : > { %v12871_v6 = vadd.f32 %v7720_v24, %v7719_v48  ;;  %v7722_v60 = vpop.f32.mrb[214].mxu0 }
 0x9e9   : > { %v7723_v39 = vpop.f32.mrb[215].mxu0 }
 0x9ea   : > { %v12873_v16 = vadd.f32 %v7723_v39, %v7722_v60 }
 0x9ec   : > { %v7813_v49 = vpop.f32.mrb[224].mxu1 }
 0x9ed   : > { %v7814_v63 = vpop.f32.mrb[225].mxu1 }
 0x9ee   : > { %v7815_v61 = vadd.f32 %v7814_v63, %v7813_v49  ;;  %v7816_v41 = vpop.f32.mrb[226].mxu1  ;;  %v7725_v19 = vpop.f32.mrb[216].mxu0 }
 0x9ef   : > { %v7817_v26 = vpop.f32.mrb[227].mxu1  ;;  %v7726_v34 = vpop.f32.mrb[217].mxu0 }
 0x9f0   : > { %v5637_v43 = vadd.f32 %v7815_v61, %v7703_v53  ;;  %v7818_v0 = vadd.f32 %v7817_v26, %v7816_v41  ;;  %v12875_v4 = vadd.f32 %v7726_v34, %v7725_v19  ;;  %v7728_v38 = vpop.f32.mrb[218].mxu0 }
 0x9f1   : > { %v7729_v33 = vpop.f32.mrb[219].mxu0 }
 0x9f2   : > { %v6959_v5 = vmul.f32 -1.442695, %v5637_v43  ;;  %v5640_v48 = vadd.f32 %v7818_v0, %v7706_v57  ;;  %v12877_v24 = vadd.f32 %v7729_v33, %v7728_v38 }
 0x9f4   : > { %8511 = vpow2.f32 %v6959_v5  ;;  %v6960_v60 = vmul.f32 -1.442695, %v5640_v48  ;;  %v7819_v39 = vpop.f32.mrb[228].mxu1 }
 0x9f5   : > { %v7820_v52 = vpop.f32.mrb[229].mxu1 }
 0x9f6   : > { %8513 = vpow2.f32 %v6960_v60  ;;  %v7821_v49 = vadd.f32 %v7820_v52, %v7819_v39  ;;  %v7822_v63 = vpop.f32.mrb[230].mxu1  ;;  %v7731_v13 = vpop.f32.mrb[220].mxu0 }
 0x9f7   : > { %v7823_v15 = vpop.f32.mrb[231].mxu1  ;;  %v7732_v47 = vpop.f32.mrb[221].mxu0 }
 0x9f8   : > { %v5645_v53 = vadd.f32 %v7821_v49, %v7709_v11  ;;  %v7824_v61 = vadd.f32 %v7823_v15, %v7822_v63  ;;  %v12879_v19 = vadd.f32 %v7732_v47, %v7731_v13  ;;  %v7734_v41 = vpop.f32.mrb[222].mxu0 }
 0x9f9   : > { %v7735_v26 = vpop.f32.mrb[223].mxu0 }
 0x9fa   : > { %v6961_v43 = vmul.f32 -1.442695, %v5645_v53  ;;  %v5648_v57 = vadd.f32 %v7824_v61, %v7712_v1  ;;  %v12881_v34 = vadd.f32 %v7735_v26, %v7734_v41 }
 0x9fc   : > { %8515 = vpow2.f32 %v6961_v43  ;;  %v6962_v5 = vmul.f32 -1.442695, %v5648_v57  ;;  %v7825_v0 = vpop.f32.mrb[232].mxu1 }
 0x9fd   : > { %v7826_v38 = vpop.f32.mrb[233].mxu1 }
 0x9fe   : > { %v8512_v33 = vpop.eup %8511  ;;  %8517 = vpow2.f32 %v6962_v5  ;;  %v7827_v52 = vadd.f32 %v7826_v38, %v7825_v0  ;;  %v7828_v48 = vpop.f32.mrb[234].mxu1 }
 0x9ff   : > { %v7737_v60 = vpop.f32.mrb[224].mxu0  ;;  %v5853_v39 = vadd.f32 1.0, %v8512_v33  ;;  %v7829_v11 = vpop.f32.mrb[235].mxu1 }
 0xa00   : > { %v7738_v15 = vpop.f32.mrb[225].mxu0  ;;  %v8514_v47 = vpop.eup %8513  ;;  %v5653_v13 = vadd.f32 %v7827_v52, %v7715_v56  ;;  %v7830_v49 = vadd.f32 %v7829_v11, %v7828_v48 }
 0xa01   : > { %v12883_v63 = vadd.f32 %v7738_v15, %v7737_v60  ;;  %v7740_v1 = vpop.f32.mrb[226].mxu0  ;;  %8519 = vrcp.f32 %v5853_v39  ;;  %v5854_v53 = vadd.f32 1.0, %v8514_v47 }
 0xa02   : > { %v7741_v61 = vpop.f32.mrb[227].mxu0  ;;  %v6963_v41 = vmul.f32 -1.442695, %v5653_v13  ;;  %v5656_v26 = vadd.f32 %v7830_v49, %v7718_v55 }
 0xa03   : > { %v12885_v43 = vadd.f32 %v7741_v61, %v7740_v1 }
 0xa04   : > { %8521 = vpow2.f32 %v6963_v41  ;;  %v6964_v57 = vmul.f32 -1.442695, %v5656_v26  ;;  %v7831_v5 = vpop.f32.mrb[236].mxu1 }
 0xa05   : > { %8523 = vrcp.f32 %v5854_v53  ;;  %v7832_v0 = vpop.f32.mrb[237].mxu1 }
 0xa06   : > { %v8516_v38 = vpop.eup %8515  ;;  %8525 = vpow2.f32 %v6964_v57  ;;  %v7833_v33 = vadd.f32 %v7832_v0, %v7831_v5  ;;  %v7834_v56 = vpop.f32.mrb[238].mxu1 }
 0xa07   : > { %v7743_v52 = vpop.f32.mrb[228].mxu0  ;;  %v5855_v48 = vadd.f32 1.0, %v8516_v38  ;;  %v7835_v60 = vpop.f32.mrb[239].mxu1 }
 0xa08   : > { %v7744_v11 = vpop.f32.mrb[229].mxu0  ;;  %v8518_v39 = vpop.eup %8517  ;;  %v5661_v15 = vadd.f32 %v7833_v33, %v12871_v6  ;;  %v7836_v47 = vadd.f32 %v7835_v60, %v7834_v56 }
 0xa09   : > { %v12888_v55 = vadd.f32 %v7744_v11, %v7743_v52  ;;  %v7746_v13 = vpop.f32.mrb[230].mxu0  ;;  %8527 = vrcp.f32 %v5855_v48  ;;  %v5856_v49 = vadd.f32 1.0, %v8518_v39 }
 0xa0a   : > { %v7747_v1 = vpop.f32.mrb[231].mxu0  ;;  %v6965_v53 = vmul.f32 -1.442695, %v5661_v15  ;;  %v5664_v61 = vadd.f32 %v7836_v47, %v12873_v16 }
 0xa0b   : > { %v12891_v41 = vadd.f32 %v7747_v1, %v7746_v13  ;;  %v8520_v26 = vpop.eup %8519 }
 0xa0c   : > { %8529 = vpow2.f32 %v6965_v53  ;;  %v6966_v57 = vmul.f32 -1.442695, %v5664_v61  ;;  %v7837_v5 = vpop.f32.mrb[240].mxu1  ;;  %6023 = vperm.xlu1 %8261, %v8520_v26  }
 0xa0d   : > { %8531 = vrcp.f32 %v5856_v49  ;;  %v7838_v0 = vpop.f32.mrb[241].mxu1 }
 0xa0e   : > { %v8522_v6 = vpop.eup %8521  ;;  %8533 = vpow2.f32 %v6966_v57  ;;  %v7839_v38 = vadd.f32 %v7838_v0, %v7837_v5  ;;  %v7840_v33 = vpop.f32.mrb[242].mxu1 }
 0xa0f   : > { %v7749_v56 = vpop.f32.mrb[232].mxu0  ;;  %v8524_v52 = vpop.eup %8523  ;;  %v5857_v48 = vadd.f32 1.0, %v8522_v6 }
 0xa10   : > { %v7841_v60 = vpop.f32.mrb[243].mxu1  ;;  %v7750_v11 = vpop.f32.mrb[233].mxu0  ;;  %v5669_v16 = vadd.f32 %v7839_v38, %v12875_v4  ;;  %6028 = vperm.xlu1 %8261, %v8524_v52  }
 0xa11   : > { %v8526_v39 = vpop.eup %8525  ;;  %v7842_v15 = vadd.f32 %v7841_v60, %v7840_v33  ;;  %v12894_v47 = vadd.f32 %v7750_v11, %v7749_v56  ;;  %v7752_v13 = vpop.f32.mrb[234].mxu0  ;;  %8535 = vrcp.f32 %v5857_v48 }
 0xa12   : > { %v5858_v49 = vadd.f32 1.0, %v8526_v39  ;;  %v7753_v1 = vpop.f32.mrb[235].mxu0  ;;  %v6967_v53 = vmul.f32 -1.442695, %v5669_v16 }
 0xa13   : > { %v5672_v61 = vadd.f32 %v7842_v15, %v12877_v24  ;;  %v12897_v26 = vadd.f32 %v7753_v1, %v7752_v13  ;;  %v8528_v57 = vpop.eup %8527 }
 0xa14   : > { %8537 = vpow2.f32 %v6967_v53  ;;  %v7843_v0 = vpop.f32.mrb[244].mxu1  ;;  %6033 = vperm.xlu1 %8261, %v8528_v57  }
 0xa15   : > { %v6968_v5 = vmul.f32 -1.442695, %v5672_v61  ;;  %8539 = vrcp.f32 %v5858_v49  ;;  %v7844_v4 = vpop.f32.mrb[245].mxu1 }
 0xa16   : > { %v8530_v6 = vpop.eup %8529  ;;  %v7845_v38 = vadd.f32 %v7844_v4, %v7843_v0  ;;  %v7846_v33 = vpop.f32.mrb[246].mxu1 }
 0xa17   : > { %8541 = vpow2.f32 %v6968_v5  ;;  %v7755_v56 = vpop.f32.mrb[236].mxu0  ;;  %v8532_v52 = vpop.eup %8531  ;;  %v5859_v48 = vadd.f32 1.0, %v8530_v6 }
 0xa18   : > { %v7847_v60 = vpop.f32.mrb[247].mxu1  ;;  %v7756_v11 = vpop.f32.mrb[237].mxu0  ;;  %v5677_v24 = vadd.f32 %v7845_v38, %v12879_v19  ;;  %6038 = vperm.xlu1 %8261, %v8532_v52  }
 0xa19   : > { %v8534_v39 = vpop.eup %8533  ;;  %v7848_v16 = vadd.f32 %v7847_v60, %v7846_v33  ;;  %v12900_v15 = vadd.f32 %v7756_v11, %v7755_v56  ;;  %v7758_v13 = vpop.f32.mrb[238].mxu0  ;;  %8543 = vrcp.f32 %v5859_v48 }
 0xa1a   : > { %v5860_v49 = vadd.f32 1.0, %v8534_v39  ;;  %v7759_v1 = vpop.f32.mrb[239].mxu0  ;;  %v6969_v53 = vmul.f32 -1.442695, %v5677_v24 }
 0xa1b   : > { %v5680_v61 = vadd.f32 %v7848_v16, %v12881_v34  ;;  %v12903_v57 = vadd.f32 %v7759_v1, %v7758_v13  ;;  %v8536_v5 = vpop.eup %8535 }
 0xa1c   : > { %8545 = vpow2.f32 %v6969_v53  ;;  %v7849_v4 = vpop.f32.mrb[248].mxu1  ;;  %6043 = vperm.xlu1 %8261, %v8536_v5  }
 0xa1d   : > { %v6970_v0 = vmul.f32 -1.442695, %v5680_v61  ;;  %8547 = vrcp.f32 %v5860_v49  ;;  %v7850_v19 = vpop.f32.mrb[249].mxu1 }
 0xa1e   : > { %v8538_v6 = vpop.eup %8537  ;;  %v7851_v38 = vadd.f32 %v7850_v19, %v7849_v4  ;;  %v7852_v33 = vpop.f32.mrb[250].mxu1 }
 0xa1f   : > { %8549 = vpow2.f32 %v6970_v0  ;;  %v7761_v56 = vpop.f32.mrb[240].mxu0  ;;  %v8540_v52 = vpop.eup %8539  ;;  %v5861_v48 = vadd.f32 1.0, %v8538_v6 }
 0xa20   : > { %v7853_v60 = vpop.f32.mrb[251].mxu1  ;;  %v7762_v11 = vpop.f32.mrb[241].mxu0  ;;  %v5685_v34 = vadd.f32 %v7851_v38, %v12883_v63  ;;  %6048 = vperm.xlu1 %8261, %v8540_v52  }
 0xa21   : > { %v8542_v39 = vpop.eup %8541  ;;  %v7854_v24 = vadd.f32 %v7853_v60, %v7852_v33  ;;  %v12906_v16 = vadd.f32 %v7762_v11, %v7761_v56  ;;  %v7764_v13 = vpop.f32.mrb[242].mxu0  ;;  %8551 = vrcp.f32 %v5861_v48 }
 0xa22   : > { %v5862_v49 = vadd.f32 1.0, %v8542_v39  ;;  %v7765_v1 = vpop.f32.mrb[243].mxu0  ;;  %v6971_v53 = vmul.f32 -1.442695, %v5685_v34 }
 0xa23   : > { %v5688_v61 = vadd.f32 %v7854_v24, %v12885_v43  ;;  %v12909_v5 = vadd.f32 %v7765_v1, %v7764_v13  ;;  %v8544_v0 = vpop.eup %8543 }
 0xa24   : > { %8553 = vrcp.f32 %v5862_v49  ;;  %v7855_v19 = vpop.f32.mrb[252].mxu1  ;;  %6053 = vperm.xlu1 %8261, %v8544_v0  }
 0xa25   : > { %8555 = vpow2.f32 %v6971_v53  ;;  %v6972_v4 = vmul.f32 -1.442695, %v5688_v61  ;;  %v7856_v63 = vpop.f32.mrb[253].mxu1 }
 0xa26   : > { %v8546_v6 = vpop.eup %8545  ;;  %v7857_v38 = vadd.f32 %v7856_v63, %v7855_v19  ;;  %v7858_v33 = vpop.f32.mrb[254].mxu1 }
 0xa27   : > { %8557 = vpow2.f32 %v6972_v4  ;;  %v7767_v56 = vpop.f32.mrb[244].mxu0  ;;  %v8548_v52 = vpop.eup %8547  ;;  %v5863_v48 = vadd.f32 1.0, %v8546_v6 }
 0xa28   : > { %v7859_v60 = vpop.f32.mrb[255].mxu1  ;;  %v7768_v11 = vpop.f32.mrb[245].mxu0  ;;  %v5693_v43 = vadd.f32 %v7857_v38, %v12888_v55  ;;  %6058 = vperm.xlu1 %8261, %v8548_v52  }
 0xa29   : > { %v8550_v39 = vpop.eup %8549  ;;  %v7860_v34 = vadd.f32 %v7859_v60, %v7858_v33  ;;  %v12912_v24 = vadd.f32 %v7768_v11, %v7767_v56  ;;  %v7770_v13 = vpop.f32.mrb[246].mxu0  ;;  %8559 = vrcp.f32 %v5863_v48 }
 0xa2a   : > { %v5864_v49 = vadd.f32 1.0, %v8550_v39  ;;  %v7771_v1 = vpop.f32.mrb[247].mxu0  ;;  %v6973_v53 = vmul.f32 -1.442695, %v5693_v43 }
 0xa2b   : > { %v5696_v61 = vadd.f32 %v7860_v34, %v12891_v41  ;;  %v12915_v0 = vadd.f32 %v7771_v1, %v7770_v13  ;;  %v8552_v4 = vpop.eup %8551 }
 0xa2c   : > { %8561 = vrcp.f32 %v5864_v49  ;;  %v7861_v63 = vpop.f32.mrb[0].mxu1  ;;  %6063 = vperm.xlu0 %8262, %v8552_v4  }
 0xa2d   : > { %8563 = vpow2.f32 %v6973_v53  ;;  %v6974_v19 = vmul.f32 -1.442695, %v5696_v61  ;;  %v7862_v6 = vpop.f32.mrb[1].mxu1 }
 0xa2e   : > { %v8554_v55 = vpop.eup %8553  ;;  %v7863_v33 = vadd.f32 %v7862_v6, %v7861_v63  ;;  %v7864_v56 = vpop.f32.mrb[2].mxu1 }
 0xa2f   : > { %v8556_v38 = vpop.eup %8555  ;;  %8565 = vpow2.f32 %v6974_v19  ;;  %6068 = vperm.xlu1 %8261, %v8554_v55   ;;  %v7773_v52 = vpop.f32.mrb[248].mxu0 }
 0xa30   : > { %v5865_v48 = vadd.f32 1.0, %v8556_v38  ;;  %v7865_v60 = vpop.f32.mrb[3].mxu1  ;;  %v7774_v11 = vpop.f32.mrb[249].mxu0  ;;  %v5701_v39 = vadd.f32 %v7863_v33, %v12894_v47 }
 0xa31   : > { %v8558_v41 = vpop.eup %8557  ;;  %v7866_v43 = vadd.f32 %v7865_v60, %v7864_v56  ;;  %v12918_v34 = vadd.f32 %v7774_v11, %v7773_v52  ;;  %v7776_v13 = vpop.f32.mrb[250].mxu0 }
 0xa32   : > { %8567 = vrcp.f32 %v5865_v48  ;;  %v5866_v49 = vadd.f32 1.0, %v8558_v41  ;;  %v7777_v1 = vpop.f32.mrb[251].mxu0  ;;  %v6975_v53 = vmul.f32 -1.442695, %v5701_v39 }
 0xa33   : > { %v5704_v61 = vadd.f32 %v7866_v43, %v12897_v26  ;;  %v12921_v4 = vadd.f32 %v7777_v1, %v7776_v13  ;;  %v8560_v19 = vpop.eup %8559 }
 0xa34   : > { %8569 = vrcp.f32 %v5866_v49  ;;  %v7867_v55 = vpop.f32.mrb[4].mxu1  ;;  %6073 = vperm.xlu0 %8262, %v8560_v19  }
 0xa35   : > { %8571 = vpow2.f32 %v6975_v53  ;;  %v6976_v63 = vmul.f32 -1.442695, %v5704_v61  ;;  %v7868_v47 = vpop.f32.mrb[5].mxu1 }
 0xa36   : > { %v8562_v6 = vpop.eup %8561  ;;  %v7869_v33 = vadd.f32 %v7868_v47, %v7867_v55  ;;  %v7870_v56 = vpop.f32.mrb[6].mxu1 }
 0xa37   : > { %v8564_v38 = vpop.eup %8563  ;;  %8573 = vpow2.f32 %v6976_v63  ;;  %6078 = vperm.xlu1 %8261, %v8562_v6   ;;  %v7779_v52 = vpop.f32.mrb[252].mxu0 }
 0xa38   : > { %v5867_v48 = vadd.f32 1.0, %v8564_v38  ;;  %v7871_v60 = vpop.f32.mrb[7].mxu1  ;;  %v7780_v11 = vpop.f32.mrb[253].mxu0  ;;  %v5709_v41 = vadd.f32 %v7869_v33, %v12900_v15 }
 0xa39   : > { %v8566_v26 = vpop.eup %8565  ;;  %v7872_v39 = vadd.f32 %v7871_v60, %v7870_v56  ;;  %v12924_v43 = vadd.f32 %v7780_v11, %v7779_v52  ;;  %v7782_v13 = vpop.f32.mrb[254].mxu0 }
 0xa3a   : > { %8575 = vrcp.f32 %v5867_v48  ;;  %v5868_v49 = vadd.f32 1.0, %v8566_v26  ;;  %v7783_v1 = vpop.f32.mrb[255].mxu0  ;;  %v6977_v53 = vmul.f32 -1.442695, %v5709_v41 }
 0xa3b   : > { %v5712_v61 = vadd.f32 %v7872_v39, %v12903_v57  ;;  %v12927_v19 = vadd.f32 %v7783_v1, %v7782_v13 }
 0xa3c   : > { %v8568_v63 = vpop.eup %8567  ;;  %8577 = vrcp.f32 %v5868_v49  ;;  %v7873_v6 = vpop.f32.mrb[8].mxu1 }
 0xa3d   : > { %8579 = vpow2.f32 %v6977_v53  ;;  %v6978_v55 = vmul.f32 -1.442695, %v5712_v61  ;;  %6083 = vperm.xlu0 %8262, %v8568_v63   ;;  %v7874_v15 = vpop.f32.mrb[9].mxu1 }
 0xa3e   : > { %v8570_v47 = vpop.eup %8569  ;;  %v7875_v33 = vadd.f32 %v7874_v15, %v7873_v6  ;;  %v7876_v56 = vpop.f32.mrb[10].mxu1 }
 0xa3f   : > { %v8572_v38 = vpop.eup %8571  ;;  %8581 = vpow2.f32 %v6978_v55  ;;  %6088 = vperm.xlu1 %8261, %v8570_v47   ;;  %v7785_v52 = vpop.f32.mrb[0].mxu0 }
 0xa40   : > { %v5869_v48 = vadd.f32 1.0, %v8572_v38  ;;  %v7877_v60 = vpop.f32.mrb[11].mxu1  ;;  %v7786_v11 = vpop.f32.mrb[1].mxu0  ;;  %v5717_v26 = vadd.f32 %v7875_v33, %v12906_v16 }
 0xa41   : > { %v8574_v57 = vpop.eup %8573  ;;  %v7878_v41 = vadd.f32 %v7877_v60, %v7876_v56  ;;  %v12930_v39 = vadd.f32 %v7786_v11, %v7785_v52  ;;  %v7788_v13 = vpop.f32.mrb[2].mxu0 }
 0xa42   : > { %8583 = vrcp.f32 %v5869_v48  ;;  %v5870_v49 = vadd.f32 1.0, %v8574_v57  ;;  %v7789_v1 = vpop.f32.mrb[3].mxu0  ;;  %v6979_v53 = vmul.f32 -1.442695, %v5717_v26 }
 0xa43   : > { %v5720_v61 = vadd.f32 %v7878_v41, %v12909_v5  ;;  %v12933_v63 = vadd.f32 %v7789_v1, %v7788_v13 }
 0xa44   : > { %v8576_v55 = vpop.eup %8575  ;;  %8585 = vrcp.f32 %v5870_v49  ;;  %v7879_v47 = vpop.f32.mrb[12].mxu1 }
 0xa45   : > { %8587 = vpow2.f32 %v6979_v53  ;;  %v6980_v6 = vmul.f32 -1.442695, %v5720_v61  ;;  %6093 = vperm.xlu0 %8262, %v8576_v55   ;;  %v7880_v16 = vpop.f32.mrb[13].mxu1 }
 0xa46   : > { %v8578_v15 = vpop.eup %8577  ;;  %v7881_v33 = vadd.f32 %v7880_v16, %v7879_v47  ;;  %v7882_v56 = vpop.f32.mrb[14].mxu1 }
 0xa47   : > { %v8580_v38 = vpop.eup %8579  ;;  %8589 = vpow2.f32 %v6980_v6  ;;  %6098 = vperm.xlu1 %8261, %v8578_v15   ;;  %v7807_v52 = vpop.f32.mrb[4].mxu0 }
 0xa48   : > { %v5871_v48 = vadd.f32 1.0, %v8580_v38  ;;  %v7808_v60 = vpop.f32.mrb[5].mxu0  ;;  %v7883_v11 = vpop.f32.mrb[15].mxu1  ;;  %v5725_v57 = vadd.f32 %v7881_v33, %v12912_v24 }
 0xa49   : > { %v8582_v5 = vpop.eup %8581  ;;  %v7809_v26 = vadd.f32 %v7808_v60, %v7807_v52  ;;  %v7884_v41 = vadd.f32 %v7883_v11, %v7882_v56  ;;  %v7810_v13 = vpop.f32.mrb[6].mxu0 }
 0xa4a   : > { %8591 = vrcp.f32 %v5871_v48  ;;  %v5872_v49 = vadd.f32 1.0, %v8582_v5  ;;  %v7811_v1 = vpop.f32.mrb[7].mxu0  ;;  %v6981_v53 = vmul.f32 -1.442695, %v5725_v57 }
 0xa4b   : > { %v5629_v61 = vadd.f32 %v7809_v26, %v12867_v40  ;;  %v5728_v55 = vadd.f32 %v7884_v41, %v12915_v0  ;;  %v7812_v6 = vadd.f32 %v7811_v1, %v7810_v13 }
 0xa4c   : > { %v8584_v47 = vpop.eup %8583  ;;  %8593 = vrcp.f32 %v5872_v49  ;;  %v7885_v38 = vpop.f32.mrb[16].mxu1 }
 0xa4d   : > { %8595 = vpow2.f32 %v6981_v53  ;;  %v6982_v15 = vmul.f32 -1.442695, %v5728_v55  ;;  %v5632_v16 = vadd.f32 %v7812_v6, %v12869_v58  ;;  %6103 = vperm.xlu0 %8262, %v8584_v47   ;;  %v7886_v33 = vpop.f32.mrb[17].mxu1 }
 0xa4e   : > { %v8586_v24 = vpop.eup %8585  ;;  %v7887_v52 = vadd.f32 %v7886_v33, %v7885_v38  ;;  %v7888_v48 = vpop.f32.mrb[18].mxu1 }
 0xa4f   : > { %v8588_v56 = vpop.eup %8587  ;;  %6108 = vperm.xlu1 %8261, %v8586_v24   ;;  %8597 = vpow2.f32 %v6982_v15  ;;  %v7889_v40 = vpop.f32.mrb[19].mxu1  ;;  %v6957_v15 = vmul.f32 -1.442695, %v5629_v61 }
 0xa50   : > { %v5873_v60 = vadd.f32 1.0, %v8588_v56  ;;  %v5733_v0 = vadd.f32 %v7887_v52, %v12918_v34  ;;  %v7890_v5 = vadd.f32 %v7889_v40, %v7888_v48  ;;  %v6958_v56 = vmul.f32 -1.442695, %v5632_v16 }
 0xa51   : > { %v8590_v11 = vpop.eup %8589 }
 0xa52   : > { %8599 = vrcp.f32 %v5873_v60  ;;  %v5874_v57 = vadd.f32 1.0, %v8590_v11  ;;  %v6983_v26 = vmul.f32 -1.442695, %v5733_v0  ;;  %v5736_v58 = vadd.f32 %v7890_v5, %v12921_v4 }
 0xa54   : > { %v8592_v41 = vpop.eup %8591  ;;  %8601 = vrcp.f32 %v5874_v57  ;;  %v6984_v13 = vmul.f32 -1.442695, %v5736_v58  ;;  %v7891_v49 = vpop.f32.mrb[20].mxu1 }
 0xa55   : > { %8603 = vpow2.f32 %v6983_v26  ;;  %6113 = vperm.xlu0 %8262, %v8592_v41   ;;  %v7892_v53 = vpop.f32.mrb[21].mxu1 }
 0xa56   : > { %v8594_v1 = vpop.eup %8593  ;;  %8605 = vpow2.f32 %v6984_v13  ;;  %v7893_v6 = vadd.f32 %v7892_v53, %v7891_v49  ;;  %v7894_v47 = vpop.f32.mrb[22].mxu1 }
 0xa57   : > { %v8596_v55 = vpop.eup %8595  ;;  %6118 = vperm.xlu1 %8261, %v8594_v1   ;;  %v7895_v38 = vpop.f32.mrb[23].mxu1 }
 0xa58   : > { %v5875_v34 = vadd.f32 1.0, %v8596_v55  ;;  %v5741_v24 = vadd.f32 %v7893_v6, %v12924_v43  ;;  %v7896_v33 = vadd.f32 %v7895_v38, %v7894_v47 }
 0xa59   : > { %v8598_v4 = vpop.eup %8597 }
 0xa5a   : > { %8607 = vrcp.f32 %v5875_v34  ;;  %v5876_v52 = vadd.f32 1.0, %v8598_v4  ;;  %v6985_v48 = vmul.f32 -1.442695, %v5741_v24  ;;  %v5744_v60 = vadd.f32 %v7896_v33, %v12927_v19 }
 0xa5b   : > { %8609 = vpow2.f32 %v6957_v15 }
 0xa5c   : > { %v8600_v40 = vpop.eup %8599  ;;  %8611 = vrcp.f32 %v5876_v52  ;;  %v6986_v11 = vmul.f32 -1.442695, %v5744_v60  ;;  %v7897_v0 = vpop.f32.mrb[24].mxu1 }
 0xa5d   : > { %6123 = vperm.xlu0 %8262, %v8600_v40   ;;  %8613 = vpow2.f32 %v6958_v56  ;;  %v7898_v61 = vpop.f32.mrb[25].mxu1 }
 0xa5e   : > { %v8602_v5 = vpop.eup %8601  ;;  %8615 = vpow2.f32 %v6985_v48  ;;  %v7899_v43 = vadd.f32 %v7898_v61, %v7897_v0  ;;  %v7900_v26 = vpop.f32.mrb[26].mxu1 }
 0xa5f   : > { %v8604_v57 = vpop.eup %8603  ;;  %6128 = vperm.xlu1 %8261, %v8602_v5   ;;  %8617 = vpow2.f32 %v6986_v11  ;;  %v7901_v16 = vpop.f32.mrb[27].mxu1 }
 0xa60   : > { %v5877_v58 = vadd.f32 1.0, %v8604_v57  ;;  %v8606_v41 = vpop.eup %8605  ;;  %v5749_v19 = vadd.f32 %v7899_v43, %v12930_v39  ;;  %v7902_v13 = vadd.f32 %v7901_v16, %v7900_v26 }
 0xa61   : > { %v5878_v49 = vadd.f32 1.0, %v8606_v41 }
 0xa62   : > { %8619 = vrcp.f32 %v5877_v58  ;;  %v6987_v1 = vmul.f32 -1.442695, %v5749_v19  ;;  %v5752_v53 = vadd.f32 %v7902_v13, %v12933_v63  ;;  %v8704_v58 = vld [vmem:[%s9373_s11 + $0x10] sm:$0xff] }
 0xa63   : > { %8621 = vrcp.f32 %v5878_v49  ;;  %v5951_v16 = vunpack.c.l.bf16 %v8704_v58  ;;  %v5952_v41 = vunpack.c.h.bf16 %v8704_v58 }
 0xa64   : > { %v8608_v55 = vpop.eup %8607  ;;  %8623 = vpow2.f32 %v6987_v1  ;;  %v6988_v6 = vmul.f32 -1.442695, %v5752_v53 }
 0xa65   : > { %6133 = vperm.xlu0 %8262, %v8608_v55   ;;  %v8610_v47 = vpop.eup %8609  ;;  %v8705_v55 = vld [vmem:[%s9373_s11 + $0x18] sm:$0xff] }
 0xa66   : > { %v8612_v34 = vpop.eup %8611  ;;  %8625 = vpow2.f32 %v6988_v6  ;;  %v5851_v52 = vadd.f32 1.0, %v8610_v47  ;;  %v5953_v6 = vunpack.c.l.bf16 %v8705_v55  ;;  %v5954_v47 = vunpack.c.h.bf16 %v8705_v55 }
 0xa67   : > { %v8614_v15 = vpop.eup %8613  ;;  %6138 = vperm.xlu1 %8261, %v8612_v34  }
 0xa68   : > { %v8616_v38 = vpop.eup %8615  ;;  %v5852_v56 = vadd.f32 1.0, %v8614_v15 }
 0xa69   : > { %v8618_v24 = vpop.eup %8617  ;;  %v5879_v33 = vadd.f32 1.0, %v8616_v38 }
 0xa6a   : > { %v5880_v39 = vadd.f32 1.0, %v8618_v24 }
 0xa6b   : > { %8627 = vrcp.f32 %v5879_v33 }
 0xa6c   : > { %v8620_v4 = vpop.eup %8619  ;;  %8629 = vrcp.f32 %v5880_v39  ;;  %v8706_v39 = vld [vmem:[%s9373_s11 + $0x20] sm:$0xff] }
 0xa6d   : > { %6143 = vperm.xlu0 %8262, %v8620_v4   ;;  %v8622_v63 = vpop.eup %8621  ;;  %8631 = vrcp.f32 %v5852_v56  ;;  %v5955_v4 = vunpack.c.l.bf16 %v8706_v39 }
 0xa6e   : > { %v8624_v48 = vpop.eup %8623  ;;  %6148 = vperm.xlu1 %8261, %v8622_v63   ;;  %8633 = vrcp.f32 %v5851_v52 }
 0xa6f   : > { %v5881_v60 = vadd.f32 1.0, %v8624_v48 }
 0xa70   : > { %v8626_v40 = vpop.eup %8625 }
 0xa71   : > { %8635 = vrcp.f32 %v5881_v60  ;;  %v5882_v11 = vadd.f32 1.0, %v8626_v40  ;;  %v8707_v40 = vld [vmem:[%s9373_s11 + $0x28] sm:$0xff] }
 0xa73   : > { %8637 = vrcp.f32 %v5882_v11  ;;  %v5957_v11 = vunpack.c.l.bf16 %v8707_v40 }
 0xa75   : > { %v8628_v0 = vpop.eup %8627 }
 0xa76   : > { %v8630_v5 = vpop.eup %8629  ;;  %6153 = vperm.xlu0 %8262, %v8628_v0  }
 0xa77   : > { %6158 = vperm.xlu1 %8261, %v8630_v5   ;;  %v8632_v61 = vpop.eup %8631 }
 0xa78   : > { %v8634_v57 = vpop.eup %8633 }
 0xa7a   : > { %6018 = vperm.xlu0 %8262, %v8632_v61  }
 0xa7b   : > { %v8636_v43 = vpop.eup %8635  ;;  %6013 = vperm.xlu1 %8261, %v8634_v57   ;;  %v5958_v57 = vunpack.c.h.bf16 %v8707_v40 }
 0xa7d   : > { %v8638_v26 = vpop.eup %8637 }
 0xa7e   : > { %6163 = vperm.xlu0 %8262, %v8636_v43  }
 0xa7f   : > { %6168 = vperm.xlu1 %8261, %v8638_v26  }
 0xa8b   : > { %v6024_v19 = vpop.permute.xlu1 %6023 }
 0xa8c   : > { %v6175_v13 = vmul.f32 %v6024_v19, %v12533_v22  ;;  %v6176_v49 = vmul.f32 %v6024_v19, %v12541_v50  ;;  %v5956_v50 = vunpack.c.h.bf16 %v8706_v39  ;;  %v8708_v19 = vld [vmem:[%s9373_s11 + $0x30] sm:$0xff] }
 0xa8e   : > { %v6239_v1 = vadd.f32 %v6175_v13, %v5951_v16  ;;  %v6240_v53 = vadd.f32 %v6176_v49, %v5952_v41 }
 0xa8f   : > { %v6029_v34 = vpop.permute.xlu1 %6028 }
 0xa90   : > { %v6303_v15 = vmax.f32 %v6239_v1, 0.0  ;;  %v6304_v38 = vmax.f32 %v6240_v53, 0.0  ;;  %v6177_v24 = vmul.f32 %v6029_v34, %v12537_v62  ;;  %v6178_v33 = vmul.f32 %v6029_v34, %v12545_v59 }
 0xa91   : > { %v5960_v1 = vunpack.c.h.bf16 %v8708_v19 }
 0xa92   : > { %v7029_v56 = vpack.c.bf16 %v6304_v38, %v6303_v15  ;;  %v6241_v22 = vadd.f32 %v6177_v24, %v5953_v6  ;;  %v6242_v52 = vadd.f32 %v6178_v33, %v5954_v47  ;;  %v8709_v15 = vld [vmem:[%s9373_s11 + $0x38] sm:$0xff] }
 0xa93   : > { %v6034_v63 = vpop.permute.xlu1 %6033  ;;  %v5962_v33 = vunpack.c.h.bf16 %v8709_v15 }
 0xa94   : > { %6557 = vst [vmem:[%s12954_s30 + $0x10] sm:$0xff] %v7029_v56  ;;  %v6305_v48 = vmax.f32 %v6241_v22, 0.0  ;;  %v6306_v60 = vmax.f32 %v6242_v52, 0.0  ;;  %v6179_v62 = vmul.f32 %v6034_v63, %v12573_v8  ;;  %v6180_v59 = vmul.f32 %v6034_v63, %v12581_v32 }
 0xa95   : > { %v5959_v8 = vunpack.c.l.bf16 %v8708_v19 }
 0xa96   : > { %v7030_v0 = vpack.c.bf16 %v6306_v60, %v6305_v48  ;;  %v6243_v5 = vadd.f32 %v6179_v62, %v5955_v4  ;;  %v6244_v61 = vadd.f32 %v6180_v59, %v5956_v50  ;;  %v8710_v50 = vld [vmem:[%s9373_s11 + $0x40] sm:$0xff] }
 0xa97   : > { %v6039_v43 = vpop.permute.xlu1 %6038  ;;  %v5964_v60 = vunpack.c.h.bf16 %v8710_v50 }
 0xa98   : > { %6558 = vst [vmem:[%s12954_s30 + $0x18] sm:$0xff] %v7030_v0  ;;  %v6307_v26 = vmax.f32 %v6243_v5, 0.0  ;;  %v6308_v58 = vmax.f32 %v6244_v61, 0.0  ;;  %v6181_v16 = vmul.f32 %v6039_v43, %v12577_v54  ;;  %v6182_v41 = vmul.f32 %v6039_v43, %v12585_v45  ;;  %v8711_v5 = vld [vmem:[%s9373_s11 + $0x48] sm:$0xff] }
 0xa99   : > { %v5961_v54 = vunpack.c.l.bf16 %v8709_v15  ;;  %v5966_v43 = vunpack.c.h.bf16 %v8711_v5 }
 0xa9a   : > { %v7031_v13 = vpack.c.bf16 %v6308_v58, %v6307_v26  ;;  %v6245_v32 = vadd.f32 %v6181_v16, %v5957_v11  ;;  %v6246_v49 = vadd.f32 %v6182_v41, %v5958_v57 }
 0xa9b   : > { %v6044_v53 = vpop.permute.xlu1 %6043 }
 0xa9c   : > { %6559 = vst [vmem:[%s12954_s30 + $0x20] sm:$0xff] %v7031_v13  ;;  %v6309_v55 = vmax.f32 %v6245_v32, 0.0  ;;  %v6310_v6 = vmax.f32 %v6246_v49, 0.0  ;;  %v6183_v47 = vmul.f32 %v6044_v53, %v12613_v31  ;;  %v6184_v34 = vmul.f32 %v6044_v53, %v12621_v2  ;;  %v8713_v53 = vld [vmem:[%s9373_s11 + $0x58] sm:$0xff] }
 0xa9d   : > { %v5963_v31 = vunpack.c.l.bf16 %v8710_v50  ;;  %v5970_v15 = vunpack.c.h.bf16 %v8713_v53  ;;  %v8714_v50 = vld [vmem:[%s9373_s11 + $0x60] sm:$0xff] }
 0xa9e   : > { %v7032_v38 = vpack.c.bf16 %v6310_v6, %v6309_v55  ;;  %v6247_v45 = vadd.f32 %v6183_v47, %v5959_v8  ;;  %v6248_v24 = vadd.f32 %v6184_v34, %v5960_v1  ;;  %v8712_v8 = vld [vmem:[%s9373_s11 + $0x50] sm:$0xff]  ;;  %v5969_v55 = vunpack.c.l.bf16 %v8713_v53 }
 0xa9f   : > { %v6049_v39 = vpop.permute.xlu1 %6048  ;;  %v5968_v49 = vunpack.c.h.bf16 %v8712_v8 }
 0xaa0   : > { %6560 = vst [vmem:[%s12954_s30 + $0x28] sm:$0xff] %v7032_v38  ;;  %v6311_v4 = vmax.f32 %v6247_v45, 0.0  ;;  %v6312_v56 = vmax.f32 %v6248_v24, 0.0  ;;  %v6185_v22 = vmul.f32 %v6049_v39, %v12617_v25  ;;  %v6186_v52 = vmul.f32 %v6049_v39, %v12625_v20 }
 0xaa1   : > { %v5965_v25 = vunpack.c.l.bf16 %v8711_v5 }
 0xaa2   : > { %v7033_v63 = vpack.c.bf16 %v6312_v56, %v6311_v4  ;;  %v6249_v2 = vadd.f32 %v6185_v22, %v5961_v54  ;;  %v6250_v48 = vadd.f32 %v6186_v52, %v5962_v33 }
 0xaa3   : > { %v6054_v62 = vpop.permute.xlu1 %6053 }
 0xaa4   : > { %6561 = vst [vmem:[%s12954_s30 + $0x30] sm:$0xff] %v7033_v63  ;;  %v6313_v59 = vmax.f32 %v6249_v2, 0.0  ;;  %v6314_v40 = vmax.f32 %v6250_v48, 0.0  ;;  %v6187_v11 = vmul.f32 %v6054_v62, %v12653_v27  ;;  %v6188_v0 = vmul.f32 %v6054_v62, %v12661_v18 }
 0xaa5   : > { %v5967_v27 = vunpack.c.l.bf16 %v8712_v8  ;;  %v8717_v8 = vld [vmem:[%s9373_s11 + $0x78] sm:$0xff] }
 0xaa6   : > { %v7034_v61 = vpack.c.bf16 %v6314_v40, %v6313_v59  ;;  %v6251_v20 = vadd.f32 %v6187_v11, %v5963_v31  ;;  %v6252_v57 = vadd.f32 %v6188_v0, %v5964_v60  ;;  %v5972_v31 = vunpack.c.h.bf16 %v8714_v50 }
 0xaa7   : > { %v6059_v26 = vpop.permute.xlu1 %6058 }
 0xaa8   : > { %6562 = vst [vmem:[%s12954_s30 + $0x38] sm:$0xff] %v7034_v61  ;;  %v6315_v58 = vmax.f32 %v6251_v20, 0.0  ;;  %v6316_v16 = vmax.f32 %v6252_v57, 0.0  ;;  %v6189_v41 = vmul.f32 %v6059_v26, %v12657_v21  ;;  %v6190_v19 = vmul.f32 %v6059_v26, %v12665_v46 }
 0xaaa   : > { %v7035_v13 = vpack.c.bf16 %v6316_v16, %v6315_v58  ;;  %v6253_v18 = vadd.f32 %v6189_v41, %v5965_v25  ;;  %v6254_v32 = vadd.f32 %v6190_v19, %v5966_v43 }
 0xaab   : > { %v6064_v1 = vpop.permute.xlu0 %6063 }
 0xaac   : > { %6563 = vst [vmem:[%s12954_s30 + $0x40] sm:$0xff] %v7035_v13  ;;  %v6317_v6 = vmax.f32 %v6253_v18, 0.0  ;;  %v6318_v47 = vmax.f32 %v6254_v32, 0.0  ;;  %v6191_v34 = vmul.f32 %v6064_v1, %v12701_v9  ;;  %v6192_v21 = vmul.f32 %v6064_v1, %v12709_v3 }
 0xaad   : > { %v5971_v3 = vunpack.c.l.bf16 %v8714_v50  ;;  %v5978_v18 = vunpack.c.h.bf16 %v8717_v8 }
 0xaae   : > { %v6069_v46 = vpop.permute.xlu1 %6068  ;;  %v7036_v54 = vpack.c.bf16 %v6318_v47, %v6317_v6  ;;  %v6255_v38 = vadd.f32 %v6191_v34, %v5967_v27  ;;  %v6256_v45 = vadd.f32 %v6192_v21, %v5968_v49  ;;  %v5977_v27 = vunpack.c.l.bf16 %v8717_v8 }
 0xaaf   : > { %v6193_v24 = vmul.f32 %v6069_v46, %v12705_v14  ;;  %v6194_v33 = vmul.f32 %v6069_v46, %v12713_v7  ;;  %v8715_v7 = vld [vmem:[%s9373_s11 + $0x68] sm:$0xff] }
 0xab0   : > { %6564 = vst [vmem:[%s12954_s30 + $0x48] sm:$0xff] %v7036_v54  ;;  %v6319_v39 = vmax.f32 %v6255_v38, 0.0  ;;  %v6320_v4 = vmax.f32 %v6256_v45, 0.0  ;;  %v5973_v60 = vunpack.c.l.bf16 %v8715_v7  ;;  %v5974_v62 = vunpack.c.h.bf16 %v8715_v7 }
 0xab1   : > { %v6257_v56 = vadd.f32 %v6193_v24, %v5969_v55  ;;  %v6258_v22 = vadd.f32 %v6194_v33, %v5970_v15  ;;  %v8718_v15 = vld [vmem:[%s9373_s11 + $0x80] sm:$0xff]  ;;  %v8719_v24 = vld [vmem:[%s9373_s11 + $0x88] sm:$0xff] }
 0xab2   : > { %v7037_v9 = vpack.c.bf16 %v6320_v4, %v6319_v39  ;;  %v5980_v38 = vunpack.c.h.bf16 %v8718_v15  ;;  %v5981_v33 = vunpack.c.l.bf16 %v8719_v24  ;;  %v5982_v4 = vunpack.c.h.bf16 %v8719_v24 }
 0xab3   : > { %v6321_v52 = vmax.f32 %v6257_v56, 0.0  ;;  %v6322_v63 = vmax.f32 %v6258_v22, 0.0  ;;  %v6074_v2 = vpop.permute.xlu0 %6073 }
 0xab4   : > { %6565 = vst [vmem:[%s12954_s30 + $0x50] sm:$0xff] %v7037_v9  ;;  %v6195_v48 = vmul.f32 %v6074_v2, %v12749_v44  ;;  %v6196_v14 = vmul.f32 %v6074_v2, %v12757_v42  ;;  %v8716_v42 = vld [vmem:[%s9373_s11 + $0x70] sm:$0xff] }
 0xab5   : > { %v7038_v59 = vpack.c.bf16 %v6322_v63, %v6321_v52  ;;  %v5975_v43 = vunpack.c.l.bf16 %v8716_v42  ;;  %v5976_v41 = vunpack.c.h.bf16 %v8716_v42  ;;  %v13878_v42 = vld [vmem:[#allocation127_spill] sm:$0xff] }
 0xab6   : > { %v6079_v40 = vpop.permute.xlu1 %6078  ;;  %v6259_v11 = vadd.f32 %v6195_v48, %v5971_v3  ;;  %v6260_v0 = vadd.f32 %v6196_v14, %v5972_v31  ;;  %v8720_v48 = vld [vmem:[%s9373_s11 + $0x90] sm:$0xff] }
 0xab7   : > { %v6197_v5 = vmul.f32 %v6079_v40, %v12753_v12  ;;  %v6198_v25 = vmul.f32 %v6079_v40, %v12761_v10  ;;  %6566 = vst [vmem:[%s12954_s30 + $0x58] sm:$0xff] %v7038_v59  ;;  %v8721_v59 = vld [vmem:[%s9373_s11 + $0x98] sm:$0xff] }
 0xab8   : > { %v6323_v61 = vmax.f32 %v6259_v11, 0.0  ;;  %v6324_v20 = vmax.f32 %v6260_v0, 0.0  ;;  %v5985_v40 = vunpack.c.l.bf16 %v8721_v59 }
 0xab9   : > { %v6261_v44 = vadd.f32 %v6197_v5, %v5973_v60  ;;  %v6262_v57 = vadd.f32 %v6198_v25, %v5974_v62  ;;  %v5984_v60 = vunpack.c.h.bf16 %v8720_v48  ;;  %v5986_v5 = vunpack.c.h.bf16 %v8721_v59  ;;  %v13886_v59 = vld [vmem:[#allocation48_spill] sm:$0xff] }
 0xaba   : > { %v7039_v26 = vpack.c.bf16 %v6324_v20, %v6323_v61 }
 0xabb   : > { %v6325_v58 = vmax.f32 %v6261_v44, 0.0  ;;  %v6326_v16 = vmax.f32 %v6262_v57, 0.0  ;;  %v13877_v44 = vld [vmem:[#allocation77_spill] sm:$0xff] }
 0xabc   : > { %v6084_v19 = vpop.permute.xlu0 %6083  ;;  %6567 = vst [vmem:[%s12954_s30 + $0x60] sm:$0xff] %v7039_v26 }
 0xabd   : > { %v7040_v12 = vpack.c.bf16 %v6326_v16, %v6325_v58  ;;  %v6199_v10 = vmul.f32 %v6084_v19, %v12797_v36  ;;  %v6200_v13 = vmul.f32 %v6084_v19, %v12805_v51  ;;  %v5979_v36 = vunpack.c.l.bf16 %v8718_v15  ;;  %v8722_v19 = vld [vmem:[%s9373_s11 + $0xa0] sm:$0xff] }
 0xabe   : > { %v6089_v32 = vpop.permute.xlu1 %6088 }
 0xabf   : > { %6568 = vst [vmem:[%s12954_s30 + $0x68] sm:$0xff] %v7040_v12  ;;  %v6263_v49 = vadd.f32 %v6199_v10, %v5975_v43  ;;  %v6264_v1 = vadd.f32 %v6200_v13, %v5976_v41  ;;  %v6201_v53 = vmul.f32 %v6089_v32, %v12801_v28  ;;  %v6202_v55 = vmul.f32 %v6089_v32, %v12809_v29 }
 0xac0   : > { %v5988_v10 = vunpack.c.h.bf16 %v8722_v19 }
 0xac1   : > { %v6327_v6 = vmax.f32 %v6263_v49, 0.0  ;;  %v6328_v47 = vmax.f32 %v6264_v1, 0.0  ;;  %v6265_v34 = vadd.f32 %v6201_v53, %v5977_v27  ;;  %v6266_v21 = vadd.f32 %v6202_v55, %v5978_v18  ;;  %v8723_v18 = vld [vmem:[%s9373_s11 + $0xa8] sm:$0xff] }
 0xac2   : > { %v5989_v32 = vunpack.c.l.bf16 %v8723_v18  ;;  %v13879_v1 = vld [vmem:[#allocation128_spill] sm:$0xff] }
 0xac3   : > { %v7041_v46 = vpack.c.bf16 %v6328_v47, %v6327_v6  ;;  %v6329_v51 = vmax.f32 %v6265_v34, 0.0  ;;  %v6330_v54 = vmax.f32 %v6266_v21, 0.0  ;;  %v13880_v55 = vld [vmem:[#allocation20_spill] sm:$0xff]  ;;  %v5990_v47 = vunpack.c.h.bf16 %v8723_v18 }
 0xac4   : > { %v6094_v45 = vpop.permute.xlu0 %6093 }
 0xac5   : > { %6569 = vst [vmem:[%s12954_s30 + $0x70] sm:$0xff] %v7041_v46  ;;  %v7042_v39 = vpack.c.bf16 %v6330_v54, %v6329_v51  ;;  %v6203_v28 = vmul.f32 %v6094_v45, %v12477_v35  ;;  %v6204_v29 = vmul.f32 %v6094_v45, %v12485_v37  ;;  %v5983_v35 = vunpack.c.l.bf16 %v8720_v48  ;;  %v13882_v51 = vld [vmem:[#allocation90_spill] sm:$0xff] }
 0xac6   : > { %v6099_v56 = vpop.permute.xlu1 %6098 }
 0xac7   : > { %6570 = vst [vmem:[%s12954_s30 + $0x78] sm:$0xff] %v7042_v39  ;;  %v6267_v22 = vadd.f32 %v6203_v28, %v5979_v36  ;;  %v6268_v9 = vadd.f32 %v6204_v29, %v5980_v38  ;;  %v6205_v52 = vmul.f32 %v6099_v56, %v12481_v17  ;;  %v6206_v50 = vmul.f32 %v6099_v56, %v12489_v30  ;;  %v13876_v30 = vld [vmem:[#allocation24_spill] sm:$0xff]  ;;  %v8724_v39 = vld [vmem:[%s9373_s11 + $0xb0] sm:$0xff] }
 0xac8   : > { %v13881_v36 = vld [vmem:[#allocation68_spill] sm:$0xff]  ;;  %v5991_v28 = vunpack.c.l.bf16 %v8724_v39 }
 0xac9   : > { %v6331_v3 = vmax.f32 %v6267_v22, 0.0  ;;  %v6332_v31 = vmax.f32 %v6268_v9, 0.0  ;;  %v6269_v63 = vadd.f32 %v6205_v52, %v5981_v33  ;;  %v6270_v2 = vadd.f32 %v6206_v50, %v5982_v4  ;;  %v8725_v52 = vld [vmem:[%s9373_s11 + $0xb8] sm:$0xff] }
 0xaca   : > { %v5992_v22 = vunpack.c.h.bf16 %v8724_v39  ;;  %v5993_v50 = vunpack.c.l.bf16 %v8725_v52 }
 0xacb   : > { %v7043_v14 = vpack.c.bf16 %v6332_v31, %v6331_v3  ;;  %v6333_v37 = vmax.f32 %v6269_v63, 0.0  ;;  %v6334_v7 = vmax.f32 %v6270_v2, 0.0  ;;  %v13883_v31 = vld [vmem:[#allocation67_spill] sm:$0xff]  ;;  %v13884_v2 = vld [vmem:[#allocation21_spill] sm:$0xff] }
 0xacc   : > { %v6104_v62 = vpop.permute.xlu0 %6103 }
 0xacd   : > { %6571 = vst [vmem:[%s12954_s30 + $0x80] sm:$0xff] %v7043_v14  ;;  %v7044_v11 = vpack.c.bf16 %v6334_v7, %v6333_v37  ;;  %v6207_v17 = vmul.f32 %v6104_v62, %v12513_v23  ;;  %v6208_v0 = vmul.f32 %v6104_v62, %v13876_v30  ;;  %v5987_v23 = vunpack.c.l.bf16 %v8722_v19  ;;  %v8727_v19 = vld [vmem:[%s9373_s11 + $0xc8] sm:$0xff] }
 0xace   : > { %v6109_v25 = vpop.permute.xlu1 %6108 }
 0xacf   : > { %6572 = vst [vmem:[%s12954_s30 + $0x88] sm:$0xff] %v7044_v11  ;;  %v6271_v61 = vadd.f32 %v6207_v17, %v5983_v35  ;;  %v6272_v20 = vadd.f32 %v6208_v0, %v5984_v60  ;;  %v6209_v57 = vmul.f32 %v6109_v25, %v13877_v44  ;;  %v6210_v43 = vmul.f32 %v6109_v25, %v13878_v42  ;;  %v13885_v60 = vld [vmem:[#allocation22_spill] sm:$0xff] }
 0xad0   : > { %v5994_v35 = vunpack.c.h.bf16 %v8725_v52 }
 0xad1   : > { %v6335_v26 = vmax.f32 %v6271_v61, 0.0  ;;  %v6336_v58 = vmax.f32 %v6272_v20, 0.0  ;;  %v6273_v16 = vadd.f32 %v6209_v57, %v5985_v40  ;;  %v6274_v41 = vadd.f32 %v6210_v43, %v5986_v5  ;;  %v8726_v5 = vld [vmem:[%s9373_s11 + $0xc0] sm:$0xff] }
 0xad2   : > { %v5995_v25 = vunpack.c.l.bf16 %v8726_v5  ;;  %v5996_v57 = vunpack.c.h.bf16 %v8726_v5 }
 0xad3   : > { %v7045_v8 = vpack.c.bf16 %v6336_v58, %v6335_v26  ;;  %v6337_v27 = vmax.f32 %v6273_v16, 0.0  ;;  %v6338_v12 = vmax.f32 %v6274_v41, 0.0  ;;  %v13887_v26 = vld [vmem:[#allocation31_spill] sm:$0xff] }
 0xad4   : > { %v6114_v13 = vpop.permute.xlu0 %6113  ;;  %v13888_v16 = vld [vmem:[#allocation83_spill] sm:$0xff] }
 0xad5   : > { %6573 = vst [vmem:[%s12954_s30 + $0x90] sm:$0xff] %v7045_v8  ;;  %v7046_v49 = vpack.c.bf16 %v6338_v12, %v6337_v27  ;;  %v6211_v53 = vmul.f32 %v6114_v13, %v13879_v1  ;;  %v6212_v6 = vmul.f32 %v6114_v13, %v13880_v55  ;;  %v5998_v8 = vunpack.c.h.bf16 %v8727_v19  ;;  %v13889_v13 = vld [vmem:[#allocation79_spill] sm:$0xff] }
 0xad6   : > { %v6119_v34 = vpop.permute.xlu1 %6118 }
 0xad7   : > { %6574 = vst [vmem:[%s12954_s30 + $0x98] sm:$0xff] %v7046_v49  ;;  %v6275_v21 = vadd.f32 %v6211_v53, %v5987_v23  ;;  %v6276_v15 = vadd.f32 %v6212_v6, %v5988_v10  ;;  %v6213_v46 = vmul.f32 %v6119_v34, %v13881_v36  ;;  %v6214_v54 = vmul.f32 %v6119_v34, %v13882_v51  ;;  %v8728_v34 = vld [vmem:[%s9373_s11 + $0xd0] sm:$0xff] }
 0xad8   : > { %v5997_v23 = vunpack.c.l.bf16 %v8727_v19 }
 0xad9   : > { %v6339_v38 = vmax.f32 %v6275_v21, 0.0  ;;  %v6340_v45 = vmax.f32 %v6276_v15, 0.0  ;;  %v6277_v24 = vadd.f32 %v6213_v46, %v5989_v32  ;;  %v6278_v33 = vadd.f32 %v6214_v54, %v5990_v47  ;;  %v13890_v32 = vld [vmem:[#allocation25_spill] sm:$0xff] }
 0xada   : > { %v5999_v21 = vunpack.c.l.bf16 %v8728_v34  ;;  %v6000_v15 = vunpack.c.h.bf16 %v8728_v34  ;;  %v13891_v54 = vld [vmem:[#allocation81_spill] sm:$0xff] }
 0xadb   : > { %v7047_v29 = vpack.c.bf16 %v6340_v45, %v6339_v38  ;;  %v6341_v4 = vmax.f32 %v6277_v24, 0.0  ;;  %v6342_v56 = vmax.f32 %v6278_v33, 0.0  ;;  %v13892_v45 = vld [vmem:[#allocation76_spill] sm:$0xff]  ;;  %v8729_v33 = vld [vmem:[%s9373_s11 + $0xd8] sm:$0xff] }
 0xadc   : > { %v6124_v9 = vpop.permute.xlu0 %6123  ;;  %v6001_v39 = vunpack.c.l.bf16 %v8729_v33 }
 0xadd   : > { %6575 = vst [vmem:[%s12954_s30 + $0xa0] sm:$0xff] %v7047_v29  ;;  %v7048_v3 = vpack.c.bf16 %v6342_v56, %v6341_v4  ;;  %v6215_v63 = vmul.f32 %v6124_v9, %v13883_v31  ;;  %v6216_v48 = vmul.f32 %v6124_v9, %v13884_v2  ;;  %v13893_v9 = vld [vmem:[#allocation70_spill] sm:$0xff] }
 0xade   : > { %v6129_v14 = vpop.permute.xlu1 %6128 }
 0xadf   : > { %6576 = vst [vmem:[%s12954_s30 + $0xa8] sm:$0xff] %v7048_v3  ;;  %v6279_v37 = vadd.f32 %v6215_v63, %v5991_v28  ;;  %v6280_v7 = vadd.f32 %v6216_v48, %v5992_v22  ;;  %v6217_v62 = vmul.f32 %v6129_v14, %v13885_v60  ;;  %v6218_v40 = vmul.f32 %v6129_v14, %v13886_v59  ;;  %v8730_v60 = vld [vmem:[%s9373_s11 + $0xe0] sm:$0xff] }
 0xae0   : > { %v6002_v28 = vunpack.c.h.bf16 %v8729_v33  ;;  %v6004_v59 = vunpack.c.h.bf16 %v8730_v60 }
 0xae1   : > { %v6343_v11 = vmax.f32 %v6279_v37, 0.0  ;;  %v6344_v17 = vmax.f32 %v6280_v7, 0.0  ;;  %v6281_v30 = vadd.f32 %v6217_v62, %v5993_v50  ;;  %v6282_v0 = vadd.f32 %v6218_v40, %v5994_v35  ;;  %v13894_v50 = vld [vmem:[#allocation33_spill] sm:$0xff] }
 0xae2   : > { %v6003_v62 = vunpack.c.l.bf16 %v8730_v60  ;;  %v13906_v60 = vld [vmem:[#allocation74_spill] sm:$0xff] }
 0xae3   : > { %v7049_v61 = vpack.c.bf16 %v6344_v17, %v6343_v11  ;;  %v6345_v20 = vmax.f32 %v6281_v30, 0.0  ;;  %v6346_v44 = vmax.f32 %v6282_v0, 0.0  ;;  %v8731_v11 = vld [vmem:[%s9373_s11 + $0xe8] sm:$0xff]  ;;  %v13895_v0 = vld [vmem:[#allocation82_spill] sm:$0xff] }
 0xae4   : > { %v6134_v42 = vpop.permute.xlu0 %6133  ;;  %v6005_v17 = vunpack.c.l.bf16 %v8731_v11  ;;  %v6006_v30 = vunpack.c.h.bf16 %v8731_v11 }
 0xae5   : > { %6577 = vst [vmem:[%s12954_s30 + $0xb0] sm:$0xff] %v7049_v61  ;;  %v7050_v43 = vpack.c.bf16 %v6346_v44, %v6345_v20  ;;  %v6219_v58 = vmul.f32 %v6134_v42, %v13887_v26  ;;  %v6220_v41 = vmul.f32 %v6134_v42, %v13888_v16  ;;  %v13897_v44 = vld [vmem:[#allocation43_spill] sm:$0xff]  ;;  %v13898_v42 = vld [vmem:[#allocation92_spill] sm:$0xff] }
 0xae6   : > { %v6139_v10 = vpop.permute.xlu1 %6138  ;;  %v8732_v26 = vld [vmem:[%s9373_s11 + $0x8] sm:$0xff] }
 0xae7   : > { %6578 = vst [vmem:[%s12954_s30 + $0xb8] sm:$0xff] %v7050_v43  ;;  %v6283_v27 = vadd.f32 %v6219_v58, %v5995_v25  ;;  %v6284_v12 = vadd.f32 %v6220_v41, %v5996_v57  ;;  %v6221_v18 = vmul.f32 %v6139_v10, %v13889_v13  ;;  %v6222_v49 = vmul.f32 %v6139_v10, %v13890_v32  ;;  %v13896_v25 = vld [vmem:[#allocation37_spill] sm:$0xff] }
 0xae8   : > { %v5949_v58 = vunpack.c.l.bf16 %v8732_v26  ;;  %v5950_v16 = vunpack.c.h.bf16 %v8732_v26 }
 0xae9   : > { %v6347_v1 = vmax.f32 %v6283_v27, 0.0  ;;  %v6348_v53 = vmax.f32 %v6284_v12, 0.0  ;;  %v6285_v55 = vadd.f32 %v6221_v18, %v5997_v23  ;;  %v6286_v6 = vadd.f32 %v6222_v49, %v5998_v8  ;;  %v8733_v23 = vld [vmem:[%s9373_s11] sm:$0xff]  ;;  %v8734_v18 = vld [vmem:[%s9373_s11 + $0xf0] sm:$0xff] }
 0xaea   : > { %v5947_v8 = vunpack.c.l.bf16 %v8733_v23  ;;  %v5948_v27 = vunpack.c.h.bf16 %v8733_v23  ;;  %v6007_v32 = vunpack.c.l.bf16 %v8734_v18  ;;  %v6008_v49 = vunpack.c.h.bf16 %v8734_v18 }
 0xaeb   : > { %v7051_v47 = vpack.c.bf16 %v6348_v53, %v6347_v1  ;;  %v6349_v36 = vmax.f32 %v6285_v55, 0.0  ;;  %v6350_v46 = vmax.f32 %v6286_v6, 0.0  ;;  %v13899_v55 = vld [vmem:[#allocation124_spill] sm:$0xff] }
 0xaec   : > { %v6144_v51 = vpop.permute.xlu0 %6143 }
 0xaed   : > { %6579 = vst [vmem:[%s12954_s30 + $0xc0] sm:$0xff] %v7051_v47  ;;  %v6223_v38 = vmul.f32 %v6144_v51, %v13891_v54  ;;  %v6224_v24 = vmul.f32 %v6144_v51, %v13892_v45  ;;  %v7052_v29 = vpack.c.bf16 %v6350_v46, %v6349_v36  ;;  %v6149_v4 = vpop.permute.xlu1 %6148  ;;  %v13900_v47 = vld [vmem:[#allocation129_spill] sm:$0xff]  ;;  %v13902_v54 = vld [vmem:[#allocation126_spill] sm:$0xff] }
 0xaee   : > { %v6225_v52 = vmul.f32 %v6149_v4, %v13893_v9  ;;  %v6226_v3 = vmul.f32 %v6149_v4, %v13894_v50  ;;  %v13901_v46 = vld [vmem:[#allocation125_spill] sm:$0xff] }
 0xaef   : > { %v6287_v56 = vadd.f32 %v6223_v38, %v5999_v21  ;;  %v6288_v22 = vadd.f32 %v6224_v24, %v6000_v15  ;;  %6580 = vst [vmem:[%s12954_s30 + $0xc8] sm:$0xff] %v7052_v29 }
 0xaf0   : > { %v6289_v2 = vadd.f32 %v6225_v52, %v6001_v39  ;;  %v6290_v48 = vadd.f32 %v6226_v3, %v6002_v28  ;;  %v8735_v39 = vld [vmem:[%s9373_s11 + $0xf8] sm:$0xff]  ;;  %v13903_v3 = vld [vmem:[#allocation28_spill] sm:$0xff]  ;;  %s6601_s11 = sshll.u32 %s12954_s30, 4  ;;  %s13082_s11 = int_to_ptr.vmem [resolvable:$true] %s6601_s11 }
 0xaf1   : > { %v6351_v31 = vmax.f32 %v6287_v56, 0.0  ;;  %v6352_v63 = vmax.f32 %v6288_v22, 0.0  ;;  %v6009_v28 = vunpack.c.l.bf16 %v8735_v39  ;;  %v6010_v9 = vunpack.c.h.bf16 %v8735_v39  ;;  %s8934_s22 = scalar_lea.vmem %s13082_s11, 4096  ;;  %p8941_p1 = scmp.lt.s32.totalorder %s13082_s11, %s8939_s25 }
 0xaf2   : > { %v6353_v14 = vmax.f32 %v6289_v2, 0.0  ;;  %v6354_v37 = vmax.f32 %v6290_v48, 0.0  ;;  %p8935_p6 = scmp.ne.s32.totalorder %s13082_s11, %s8934_s22  ;;  %p8942_p3 = scmp.lt.s32.totalorder %s8940_s13, %s8934_s22 }
 0xaf3   : > { %v7053_v35 = vpack.c.bf16 %v6352_v63, %v6351_v31  ;;  %v13904_v63 = vld [vmem:[#allocation34_spill] sm:$0xff] }
 0xaf4   : > { %v7054_v7 = vpack.c.bf16 %v6354_v37, %v6353_v14  ;;  %v13905_v37 = vld [vmem:[#allocation38_spill] sm:$0xff]  ;;  %p8936_p12 = pnand %p8935_p6, %p13908_p9  ;;  %p8943_p2 = por %p8942_p3, %p8941_p1 }
 0xaf5   : > { %6581 = vst [vmem:[%s12954_s30 + $0xd0] sm:$0xff] %v7053_v35  ;;  %v6154_v40 = vpop.permute.xlu0 %6153 }
 0xaf6   : > { %6582 = vst [vmem:[%s12954_s30 + $0xd8] sm:$0xff] %v7054_v7  ;;  %v6227_v5 = vmul.f32 %v6154_v40, %v13895_v0  ;;  %v6228_v61 = vmul.f32 %v6154_v40, %v13896_v25  ;;  %v6159_v20 = vpop.permute.xlu1 %6158  ;;  %p8937_p13 = pneg %p8936_p12 }
 0xaf7   : > { %v6229_v57 = vmul.f32 %v6159_v20, %v13897_v44  ;;  %v6230_v43 = vmul.f32 %v6159_v20, %v13898_v42 }
 0xaf8   : > { %v6291_v41 = vadd.f32 %v6227_v5, %v6003_v62  ;;  %v6292_v19 = vadd.f32 %v6228_v61, %v6004_v59  ;;  %p8944_p8 = pnand %p8943_p2, %p8937_p13 }
 0xaf9   : > { %v6293_v12 = vadd.f32 %v6229_v57, %v6005_v17  ;;  %v6294_v10 = vadd.f32 %v6230_v43, %v6006_v30  ;;  %v6019_v13 = vpop.permute.xlu0 %6018 }
 0xafa   : > { %v6355_v1 = vmax.f32 %v6291_v41, 0.0  ;;  %v6356_v53 = vmax.f32 %v6292_v19, 0.0  ;;  %v6173_v6 = vmul.f32 %v6019_v13, %v13899_v55  ;;  %v6174_v34 = vmul.f32 %v6019_v13, %v13900_v47  ;;  %v6014_v21 = vpop.permute.xlu1 %6013 }
 0xafb   : > { %v6357_v15 = vmax.f32 %v6293_v12, 0.0  ;;  %v6358_v36 = vmax.f32 %v6294_v10, 0.0  ;;  %v6171_v51 = vmul.f32 %v6014_v21, %v13901_v46  ;;  %v6172_v38 = vmul.f32 %v6014_v21, %v13902_v54 }
 0xafc   : > { %v7055_v45 = vpack.c.bf16 %v6356_v53, %v6355_v1  ;;  %v6237_v24 = vadd.f32 %v6173_v6, %v5949_v58  ;;  %v6238_v33 = vadd.f32 %v6174_v34, %v5950_v16 }
 0xafd   : > { %v7056_v29 = vpack.c.bf16 %v6358_v36, %v6357_v15  ;;  %v6235_v4 = vadd.f32 %v6171_v51, %v5947_v8  ;;  %v6236_v56 = vadd.f32 %v6172_v38, %v5948_v27  ;;  %v6164_v22 = vpop.permute.xlu0 %6163 }
 0xafe   : > { %6583 = vst [vmem:[%s12954_s30 + $0xe0] sm:$0xff] %v7055_v45  ;;  %v6301_v52 = vmax.f32 %v6237_v24, 0.0  ;;  %v6302_v50 = vmax.f32 %v6238_v33, 0.0  ;;  %v6231_v31 = vmul.f32 %v6164_v22, %v13903_v3  ;;  %v6232_v2 = vmul.f32 %v6164_v22, %v13904_v63  ;;  %v6169_v48 = vpop.permute.xlu1 %6168 }
 0xaff   : > { %6584 = vst [vmem:[%s12954_s30 + $0xe8] sm:$0xff] %v7056_v29  ;;  %v6299_v35 = vmax.f32 %v6235_v4, 0.0  ;;  %v6300_v14 = vmax.f32 %v6236_v56, 0.0  ;;  %v6233_v7 = vmul.f32 %v6169_v48, %v13905_v37  ;;  %v6234_v62 = vmul.f32 %v6169_v48, %v13906_v60 }
 0xb00   : > { %v7028_v59 = vpack.c.bf16 %v6302_v50, %v6301_v52  ;;  %v6295_v40 = vadd.f32 %v6231_v31, %v6007_v32  ;;  %v6296_v11 = vadd.f32 %v6232_v2, %v6008_v49 }
 0xb01   : > { %v7027_v17 = vpack.c.bf16 %v6300_v14, %v6299_v35  ;;  %v6297_v30 = vadd.f32 %v6233_v7, %v6009_v28  ;;  %v6298_v0 = vadd.f32 %v6234_v62, %v6010_v9 }
 0xb02   : > { %6556 = vst [vmem:[%s12954_s30 + $0x8] sm:$0xff] %v7028_v59  ;;  %v6359_v5 = vmax.f32 %v6295_v40, 0.0  ;;  %v6360_v25 = vmax.f32 %v6296_v11, 0.0 }
 0xb03   : > { %6555 = vst [vmem:[%s12954_s30] sm:$0xff] %v7027_v17  ;;  %v6361_v61 = vmax.f32 %v6297_v30, 0.0  ;;  %v6362_v20 = vmax.f32 %v6298_v0, 0.0 }
 0xb04   : > { %v7057_v44 = vpack.c.bf16 %v6360_v25, %v6359_v5 }
 0xb05   : > { %v7058_v57 = vpack.c.bf16 %v6362_v20, %v6361_v61 }
 0xb06   : > { %6585 = vst [vmem:[%s12954_s30 + $0xf0] sm:$0xff] %v7057_v44 }
 0xb07   : > { %6586 = vst [vmem:[%s12954_s30 + $0xf8] sm:$0xff] %v7058_v57 }
 0xb08   : > { %8947 = shalt.err (!%p8944_p8)
}
 0xb09   : > { %s8948_s7 = scalar_lea.hbm %s13080_s4, 4096  ;;  %s8952_s14 = scalar_lea.hbm %s13907_s27, 8192 }
 0xb0a   : > { %p8949_p4 = scmp.ne.s32.totalorder %s13080_s4, %s8948_s7  ;;  %p8953_p0 = scmp.lt.u32.totalorder %s13080_s4, %s13907_s27 }
 0xb0b   : > { %p8954_p5 = scmp.lt.u32.totalorder %s8952_s14, %s8948_s7  ;;  %p8956_p6 = scmp.lt.u32.totalorder %s8948_s7, %s13080_s4 }
 0xb0c   : > { %p8950_p10 = pnand %p8949_p4, %p13908_p9 }
 0xb0d   : > { %p8955_p7 = por %p8954_p5, %p8953_p0 }
 0xb0e   : > { %p8951_p11 = pneg %p8950_p10 }
 0xb0f   : > { %p8957_p12 = por %p8956_p6, %p8955_p7 }
 0xb11   : > { %p8958_p13 = pnand %p8957_p12, %p8951_p11 }
 0xb13   : > { %8961 = shalt.err (!%p8958_p13)
}
 0xb14   : > { %s9037_s22 = smov 128   ;;  %s9038_s21 = smov 8  }
 0xb15   : > { %8029 = dma.vmem_to_hbm [thread:$0]  (%p13908_p9), %s13082_s11, 4096, %s13080_s4, %s6588_s23, %s9037_s22, %s9037_s22, %s9038_s21  }
 0xb16 PF: > { %s6616_s25 = sand.u32 1, %s9000_s17   ;;  %p13909_p1 = scmp.ne.s32.totalorder %s13368_s15, 0 }
 0xb17   : > { %p13910_p3 = scmp.ge.s32.totalorder %s9012_s20, 2  ;;  %s6617_s13 = scalar_lea.sflag [#allocation4], %s6616_s25 }
 0xb19   : > { %p8055_p2 = pnand %p13910_p3, %p13909_p1 }
 0xb1b   : > { %8995 = dma.done.wait (!%p8055_p2), %s6617_s13, 4096  }
 0xb1c   : > { %8997 = vsyncadd (!%p8055_p2), %s6617_s13, 4294963200  ;;  %p27_p8 = scmp.ge.s32.totalorder %s9285_s16, 4   ;;  %s13911_s17 = smov %s9004_s18 }
 0xb1d   : > { %s13912_s18 = smov %s9008_s19  ;;  %s13913_s19 = smov %s9296_s12 }
 0xb1e   : > { %s13914_s20 = smov %s9285_s16  ;;  %29 = sbr.rel (!%p27_p8) target bundleno = 14 (0xe), region = 133 }
 0xb25   :  { %6622 = vsyncpa [#allocation3], 1 }
 0xb26   :  { %6624 = vsyncpa [#allocation3 + $0x1], 1 }
 0xb27   :  { %6625 = vsyncpa [#allocation6], 1 }
 0xb28   :  { %6626 = vsyncpa [#allocation9], 1 }
 0xb29   :  { %6627 = vsyncpa [#allocation12], 1 }
 0xb2a   :  { %6628 = vsyncpa [#allocation4], 1 }
 0xb2b   :  { %6630 = vsyncpa [#allocation4 + $0x1], 1 }

</bundles_post_ra>
